<compile_context>
chip_gen: v7x
topology: tpu7x:2x2x1
jax: 0.10.0
libtpu: 0.0.40
codegen_flags: <defaults>
</compile_context>

<pallas_src>
import functools

import numpy as np
import jax
import jax.numpy as jnp
from jax import lax
from jax.experimental import pallas as pl
from jax.experimental.pallas import tpu as pltpu

EPS = 1e-5
_LANES = 128


# ----------------------------------------------------------------------------
# small helpers
# ----------------------------------------------------------------------------
@functools.lru_cache(maxsize=None)
def _vmem_limit_bytes():
    """Generation-aware scoped-VMEM limit (~3/4 of physical VMEM)."""
    cap = None
    try:
        info = pltpu.get_tpu_info()
        cap = getattr(info, "vmem_capacity_bytes", None)
    except Exception:
        cap = None
    if not cap:
        cap = 64 * 1024 * 1024            # conservative (v7x-sized physical VMEM)
    return max(32 * 1024 * 1024, (int(cap) * 3) // 4)


def _cost(flops, bytes_accessed):
    return pl.CostEstimate(flops=int(flops), transcendentals=0,
                           bytes_accessed=int(bytes_accessed))


def _row_tiling(rows, target):
    """Row tile (multiple of 8), grid size, zero-padded row count."""
    if rows <= 8:
        return rows, 1, rows
    tr = max(8, min((int(target) // 8) * 8, ((rows + 7) // 8) * 8))
    g = -(-rows // tr)
    return tr, g, g * tr


def _pick_kh(H, W, target_rows):
    """Largest divisor kh of H with kh*W <= target_rows (>=1)."""
    best = 1
    for kh in range(1, H + 1):
        if H % kh == 0 and kh * W <= target_rows:
            best = kh
    return best


def _fold_bn(stats, n_tile, n_real, gamma, beta):
    """Chan-merge per-tile (sum, tile-mean-centered M2) partial stats and fold
    training-mode BN into per-channel scale/shift: y = x*scale + shift.

    `stats` may include tiles that cover known zero-padded rows; the exact
    correction for those z = n_pad - n_real zero rows is applied here."""
    stats = stats.reshape(-1, 2, stats.shape[-1])
    s_t = stats[:, 0, :]                       # per-tile sum
    m2_t = stats[:, 1, :]                      # per-tile centered M2
    n_pad = stats.shape[0] * n_tile
    s = jnp.sum(s_t, axis=0)
    mean_pad = s / n_pad
    mean_t = s_t / n_tile
    m2_pad = jnp.sum(m2_t, axis=0) + n_tile * jnp.sum((mean_t - mean_pad) ** 2, axis=0)
    mean = s / n_real
    z = n_pad - n_real
    m2 = m2_pad - mean * mean * (n_real * z / n_pad)
    var = jnp.maximum(m2 / n_real, 0.0)        # biased variance
    scale = gamma.reshape(-1) * lax.rsqrt(var + EPS)
    shift = beta.reshape(-1) - mean * scale
    return scale.reshape(1, -1), shift.reshape(1, -1)


def _conv2_tap_masks(H, W, d):
    """(H*W, 9) constant: mask[r, ki*3+kj] = 1 iff tap (ki,kj) reads a pixel
    that is horizontally in-bounds.  Vertical out-of-bounds is handled by the
    zero halo of the padded slab, so only the column conditions are needed."""
    ww = np.tile(np.arange(W), H)              # output column of each flat row
    cols = []
    for ki in range(3):
        for kj in range(3):
            dj = (kj - 1) * d
            cols.append((ww + dj >= 0) & (ww + dj < W))
    return np.stack(cols, axis=1).astype(np.float32)


# ----------------------------------------------------------------------------
# K1: 1x1 conv (channel matmul) + per-tile centered partial stats
# ----------------------------------------------------------------------------
def _make_conv1_kernel(cdt, tr):
    inv = 1.0 / tr

    def kernel(x_ref, w_ref, h_ref, st_ref):
        h = jnp.dot(x_ref[...].astype(cdt), w_ref[...],
                    preferred_element_type=jnp.float32)          # (TR, P) f32
        h_ref[...] = h.astype(h_ref.dtype)
        s = jnp.sum(h, axis=0, keepdims=True)
        m2 = jnp.sum(jnp.square(h - s * inv), axis=0, keepdims=True)
        st_ref[...] = jnp.concatenate([s, m2], axis=0)[None]     # (1, 2, P)
    return kernel


# ----------------------------------------------------------------------------
# K2: BN1-apply + ReLU + dilated 3x3 conv.  The activated sample lives in a
#     zero-halo-padded VMEM slab; each tap is a plain dynamic slice of it, so
#     no rolls / wraparound handling are needed.  The 9 taps are fused into a
#     (chunk, 9P) x (9P, P) MXU matmul, processed per bounded row chunk.
# ----------------------------------------------------------------------------
def _make_conv2_kernel(W, HW, P, d, CH, NCHUNK, PAD, cdt):
    inv_ch = 1.0 / CH

    def kernel(h1_ref, w2_ref, mask_ref, scale_ref, shift_ref,
               h2_ref, st_ref, pad_ref):
        # zero the halo every step (scratch state is per-core / persistent, and
        # "parallel" grid sharding means we cannot rely on program_id(0)==0).
        zpad = jnp.zeros((PAD, P), dtype=pad_ref.dtype)
        pad_ref[pl.ds(0, PAD), :] = zpad
        pad_ref[pl.ds(PAD + HW, PAD), :] = zpad

        # folded BN1 (one FMA) + ReLU, single traversal, into the slab.
        act = jnp.maximum(
            h1_ref[0].astype(jnp.float32) * scale_ref[...] + shift_ref[...], 0.0)
        pad_ref[pl.ds(PAD, HW), :] = act.astype(pad_ref.dtype)

        def chunk(i):
            c0 = i * CH
            taps = []
            for ki in range(3):
                di = (ki - 1) * d
                for kj in range(3):
                    dj = (kj - 1) * d
                    s = di * W + dj
                    t = pad_ref[pl.ds(PAD + c0 + s, CH), :]      # (CH, P)
                    if dj != 0:                                  # horizontal mask
                        k = ki * 3 + kj
                        t = t * mask_ref[pl.ds(c0, CH), k:k + 1]
                    taps.append(t.astype(cdt))
            # TODO(synk): on v7x (MRB) 9 accumulated (CH,P)x(P,P) matmuls would
            # avoid this lane concat; the fused K=9P shape is kept for v5e/v6e.
            win = jnp.concatenate(taps, axis=1)                  # (CH, 9*P)
            h2 = jnp.dot(win, w2_ref[...], preferred_element_type=jnp.float32)
            h2_ref[0, pl.ds(c0, CH), :] = h2.astype(h2_ref.dtype)
            s_c = jnp.sum(h2, axis=0, keepdims=True)
            m2_c = jnp.sum(jnp.square(h2 - s_c * inv_ch), axis=0, keepdims=True)
            st_ref[0, i] = jnp.concatenate([s_c, m2_c], axis=0)  # (2, P)

        if NCHUNK == 1:
            chunk(0)
        elif NCHUNK <= 8:
            for i in range(NCHUNK):          # static unroll (static indices)
                chunk(i)
        else:
            def body(i, carry):
                chunk(i)
                return carry
            lax.fori_loop(0, NCHUNK, body, 0)
    return kernel


# ----------------------------------------------------------------------------
# K3: BN2-apply + ReLU + 1x1 conv (P -> 4P) + per-tile centered partial stats
# ----------------------------------------------------------------------------
def _make_conv3_kernel(cdt, tr, n_real, r_pad):
    inv = 1.0 / tr
    need_mask = (r_pad != n_real)

    def kernel(h2_ref, w_ref, scale_ref, shift_ref, h3_ref, st_ref):
        a = jnp.maximum(
            h2_ref[...].astype(jnp.float32) * scale_ref[...] + shift_ref[...], 0.0)
        if need_mask:
            # zero the known padded rows so they contribute 0 to h3 and stats.
            row = (pl.program_id(0) * tr
                   + lax.broadcasted_iota(jnp.int32, a.shape, 0))
            a = jnp.where(row < n_real, a, 0.0)
        h3 = jnp.dot(a.astype(cdt), w_ref[...],
                     preferred_element_type=jnp.float32)         # (TR, 4P)
        h3_ref[...] = h3.astype(h3_ref.dtype)
        s = jnp.sum(h3, axis=0, keepdims=True)
        m2 = jnp.sum(jnp.square(h3 - s * inv), axis=0, keepdims=True)
        st_ref[...] = jnp.concatenate([s, m2], axis=0)[None]
    return kernel


# ----------------------------------------------------------------------------
# K4: BN3-apply + residual add + final ReLU (pure FMA epilogue, lane-dense I/O)
# ----------------------------------------------------------------------------
def _finalize_kernel(h3_ref, x_ref, scale_ref, shift_ref, o_ref):
    o_ref[...] = jnp.maximum(
        h3_ref[...].astype(jnp.float32) * scale_ref[...] + shift_ref[...]
        + x_ref[...], 0.0)


# ----------------------------------------------------------------------------
# driver
# ----------------------------------------------------------------------------
@functools.partial(jax.jit,
                   static_argnames=("dilation", "compute_dtype", "row_tile"))
def _bottleneck_impl(x_nhwc, params, *, dilation, compute_dtype, row_tile):
    w1, w2, w3, g1, b1, g2, b2, g3, b3 = params
    N, H, W, Cin = x_nhwc.shape
    P = w1.shape[1]
    Cout = w3.shape[1]
    assert Cout == Cin, "downsample is None => inplanes must equal 4*planes"
    R = N * H * W
    HW = H * W
    d = int(dilation)
    cdt = compute_dtype
    csz = np.dtype(cdt).itemsize

    cparams = pltpu.CompilerParams(
        dimension_semantics=("parallel",),      # shards across v7x's 2 TCs
        vmem_limit_bytes=_vmem_limit_bytes())

    TR, G, R_pad = _row_tiling(R, row_tile)

    x_rows = x_nhwc.reshape(R, Cin).astype(jnp.float32)
    x_rows_p = x_rows if R_pad == R else jnp.pad(x_rows, ((0, R_pad - R), (0, 0)))
    w1c = w1.astype(cdt)
    w2c = w2.reshape(9 * P, P).astype(cdt)      # (9*P, P): taps stacked along K
    w3c = w3.astype(cdt)

    # ---- K1: conv1 + partial BN1 stats (row-tiled, auto-pipelined) ----------
    # TODO(synk): for tiny planes (<64) the (TR, P) stores are lane-masked; a
    # lane-dense repack of h1/h3 (like K4's fold) would help v5e there.
    h1_rows, st1 = pl.pallas_call(
        _make_conv1_kernel(cdt, TR),
        out_shape=(jax.ShapeDtypeStruct((R_pad, P), cdt),
                   jax.ShapeDtypeStruct((G, 2, P), jnp.float32)),
        grid=(G,),
        in_specs=[pl.BlockSpec((TR, Cin), lambda i: (i, 0)),
                  pl.BlockSpec((Cin, P), lambda i: (0, 0))],
        out_specs=(pl.BlockSpec((TR, P), lambda i: (i, 0)),
                   pl.BlockSpec((1, 2, P), lambda i: (i, 0, 0))),
        compiler_params=cparams,
        cost_estimate=_cost(2 * R_pad * Cin * P,
                            4 * R_pad * Cin + csz * R_pad * P + csz * Cin * P),
    )(x_rows_p, w1c)
    scale1, shift1 = _fold_bn(st1, TR, R, g1, b1)

    # ---- K2: BN1 apply + ReLU + fused dilated 3x3 (grid over samples,
    #          row-chunked inside the kernel so VMEM stays bounded) -----------
    KH = _pick_kh(H, W, row_tile)
    CH = KH * W                              # chunk rows (multiple of W)
    NCHUNK = H // KH
    PAD = ((d * (W + 1) + 7) // 8) * 8       # halo rows (covers max |tap shift|)
    tap_mask = jnp.asarray(_conv2_tap_masks(H, W, d), dtype=cdt)
    h1_s = h1_rows[:R].reshape(N, HW, P)
    h2_s, st2 = pl.pallas_call(
        _make_conv2_kernel(W, HW, P, d, CH, NCHUNK, PAD, cdt),
        out_shape=(jax.ShapeDtypeStruct((N, HW, P), cdt),
                   jax.ShapeDtypeStruct((N, NCHUNK, 2, P), jnp.float32)),
        grid=(N,),
        in_specs=[pl.BlockSpec((1, HW, P), lambda n: (n, 0, 0)),
                  pl.BlockSpec((9 * P, P), lambda n: (0, 0)),
                  pl.BlockSpec((HW, 9), lambda n: (0, 0)),
                  pl.BlockSpec((1, P), lambda n: (0, 0)),
                  pl.BlockSpec((1, P), lambda n: (0, 0))],
        out_specs=(pl.BlockSpec((1, HW, P), lambda n: (n, 0, 0)),
                   pl.BlockSpec((1, NCHUNK, 2, P), lambda n: (n, 0, 0, 0))),
        scratch_shapes=[pltpu.VMEM((HW + 2 * PAD, P), cdt)],
        compiler_params=cparams,
        cost_estimate=_cost(2 * R * 9 * P * P,
                            2 * csz * R * P + csz * 9 * P * P + csz * HW * 9),
    )(h1_s, w2c, tap_mask, scale1, shift1)
    scale2, shift2 = _fold_bn(st2, CH, R, g2, b2)

    # ---- K3: BN2 apply + ReLU + conv3 + partial BN3 stats (row-tiled) -------
    h2_rows = h2_s.reshape(R, P)
    if R_pad != R:
        h2_rows = jnp.pad(h2_rows, ((0, R_pad - R), (0, 0)))
    h3_rows, st3 = pl.pallas_call(
        _make_conv3_kernel(cdt, TR, R, R_pad),
        out_shape=(jax.ShapeDtypeStruct((R_pad, Cout), cdt),
                   jax.ShapeDtypeStruct((G, 2, Cout), jnp.float32)),
        grid=(G,),
        in_specs=[pl.BlockSpec((TR, P), lambda i: (i, 0)),
                  pl.BlockSpec((P, Cout), lambda i: (0, 0)),
                  pl.BlockSpec((1, P), lambda i: (0, 0)),
                  pl.BlockSpec((1, P), lambda i: (0, 0))],
        out_specs=(pl.BlockSpec((TR, Cout), lambda i: (i, 0)),
                   pl.BlockSpec((1, 2, Cout), lambda i: (i, 0, 0))),
        compiler_params=cparams,
        cost_estimate=_cost(2 * R_pad * P * Cout,
                            csz * R_pad * (P + Cout) + csz * P * Cout),
    )(h2_rows, w3c, scale2, shift2)
    scale3, shift3 = _fold_bn(st3, TR, R, g3, b3)

    # ---- K4: BN3 apply + residual + ReLU (lane-dense epilogue) --------------
    # Repack rows so the stored last dim is 128 lanes wide when channels are
    # narrow -> unmasked vst instead of masked partial stores.
    fold = 1
    if Cout < _LANES and _LANES % Cout == 0:
        f = _LANES // Cout
        if TR % (8 * f) == 0:
            fold = f
    C4 = Cout * fold
    R4 = R_pad // fold
    TR4 = TR // fold
    out_rows = pl.pallas_call(
        _finalize_kernel,
        out_shape=jax.ShapeDtypeStruct((R4, C4), jnp.float32),
        grid=(G,),
        in_specs=[pl.BlockSpec((TR4, C4), lambda i: (i, 0)),
                  pl.BlockSpec((TR4, C4), lambda i: (i, 0)),
                  pl.BlockSpec((1, C4), lambda i: (0, 0)),
                  pl.BlockSpec((1, C4), lambda i: (0, 0))],
        out_specs=pl.BlockSpec((TR4, C4), lambda i: (i, 0)),
        compiler_params=cparams,
        input_output_aliases={1: 0},       # reuse the residual's HBM buffer
        cost_estimate=_cost(3 * R_pad * Cout, (csz + 8) * R_pad * Cout),
    )(h3_rows.reshape(R4, C4), x_rows_p.reshape(R4, C4),
      jnp.tile(scale3, (1, fold)), jnp.tile(shift3, (1, fold)))

    return out_rows.reshape(R_pad, Cout)[:R].reshape(N, H, W, Cout)


def bottleneck_pallas_nhwc(x_nhwc, params, dilation=1,
                           compute_dtype=jnp.bfloat16, row_tile=512):
    """NHWC entry point (preferred: avoids the HBM-level layout transposes)."""
    return _bottleneck_impl(x_nhwc.astype(jnp.float32), params,
                            dilation=int(dilation),
                            compute_dtype=compute_dtype,
                            row_tile=int(row_tile))


def bottleneck_pallas(x_nchw, params, dilation=1,
                      compute_dtype=jnp.bfloat16, row_tile=512):
    """NCHW (PyTorch-convention) wrapper. x_nchw: (N, Cin, H, W), Cin == 4*planes."""
    x = jnp.transpose(x_nchw, (0, 2, 3, 1))
    out = bottleneck_pallas_nhwc(x, params, dilation=dilation,
                                 compute_dtype=compute_dtype, row_tile=row_tile)
    return jnp.transpose(out, (0, 3, 1, 2))


# ----------------------------------------------------------------------------
# pure-JAX reference (training-mode BN, biased variance) and init
# ----------------------------------------------------------------------------
def bottleneck_ref(x_nchw, params, dilation=1):
    x = jnp.transpose(x_nchw, (0, 2, 3, 1)).astype(jnp.float32)
    w1, w2, w3, g1, b1, g2, b2, g3, b3 = params
    dn = ("NHWC", "HWIO", "NHWC")

    def bn(h, g, b):
        mean = jnp.mean(h, axis=(0, 1, 2), keepdims=True)
        var = jnp.mean((h - mean) ** 2, axis=(0, 1, 2), keepdims=True)
        return (h - mean) / jnp.sqrt(var + EPS) * g + b

    P = w1.shape[1]
    h = jax.lax.conv_general_dilated(x, w1.reshape(1, 1, -1, P), (1, 1), "VALID",
                                     dimension_numbers=dn)
    h = jnp.maximum(bn(h, g1, b1), 0.0)
    w2_hwio = w2.reshape(3, 3, P, P)
    h = jax.lax.conv_general_dilated(h, w2_hwio, (1, 1),
                                     [(dilation, dilation), (dilation, dilation)],
                                     rhs_dilation=(dilation, dilation),
                                     dimension_numbers=dn)
    h = jnp.maximum(bn(h, g2, b2), 0.0)
    h = jax.lax.conv_general_dilated(h, w3.reshape(1, 1, P, -1), (1, 1), "VALID",
                                     dimension_numbers=dn)
    h = bn(h, g3, b3)
    out = jnp.maximum(h + x, 0.0)
    return jnp.transpose(out, (0, 3, 1, 2))


def init_params(key, inplanes, planes):
    ks = jax.random.split(key, 9)
    # conv weights in the kernel's layout: 1x1 convs as (Cin, Cout); the 3x3 as
    # (9, P, P) where index ki*3+kj corresponds to PyTorch weight[:, :, ki, kj].T
    w1 = 0.1 * jax.random.normal(ks[0], (inplanes, planes), jnp.float32)
    w2 = 0.1 * jax.random.normal(ks[1], (9, planes, planes), jnp.float32)
    w3 = 0.1 * jax.random.normal(ks[2], (planes, planes * 4), jnp.float32)
    g1 = 1.0 + 0.1 * jax.random.normal(ks[3], (1, planes), jnp.float32)
    b1 = 0.1 * jax.random.normal(ks[4], (1, planes), jnp.float32)
    g2 = 1.0 + 0.1 * jax.random.normal(ks[5], (1, planes), jnp.float32)
    b2 = 0.1 * jax.random.normal(ks[6], (1, planes), jnp.float32)
    g3 = 1.0 + 0.1 * jax.random.normal(ks[7], (1, planes * 4), jnp.float32)
    b3 = 0.1 * jax.random.normal(ks[8], (1, planes * 4), jnp.float32)
    return (w1, w2, w3, g1, b1, g2, b2, g3, b3)


if __name__ == "__main__":
    key = jax.random.PRNGKey(0)
    k_x, k_p, k_x2, k_p2 = jax.random.split(key, 4)

    # Config A: Bottleneck(inplanes=32, planes=8, stride=1, dilation=2).
    N, inplanes, planes, H, W = 2, 32, 8, 16, 16
    dilation = 2
    x = jax.random.normal(k_x, (N, inplanes, H, W), jnp.float32)   # NCHW input
    params = init_params(k_p, inplanes, planes)
    ref = jax.block_until_ready(bottleneck_ref(x, params, dilation=dilation))

    # f32 MXU path: faithful to the PyTorch f32 forward (tight tolerance).
    out_f32 = jax.block_until_ready(
        bottleneck_pallas(x, params, dilation=dilation,
                          compute_dtype=jnp.float32))
    np.testing.assert_allclose(np.asarray(out_f32), np.asarray(ref),
                               rtol=1e-3, atol=1e-3)

    # default bf16 MXU path with bf16 intermediates: loose tolerance.
    out_bf16 = jax.block_until_ready(
        bottleneck_pallas(x, params, dilation=dilation))
    np.testing.assert_allclose(np.asarray(out_bf16), np.asarray(ref),
                               rtol=1e-1, atol=1e-1)

    # Config B: odd spatial size + small row_tile to exercise the padded
    # row-tile path, the zero-row stats correction and chunked K2.
    N2, inplanes2, planes2, H2, W2 = 1, 32, 8, 15, 15
    x2 = jax.random.normal(k_x2, (N2, inplanes2, H2, W2), jnp.float32)
    params2 = init_params(k_p2, inplanes2, planes2)
    ref2 = jax.block_until_ready(bottleneck_ref(x2, params2, dilation=1))
    out2 = jax.block_until_ready(
        bottleneck_pallas(x2, params2, dilation=1,
                          compute_dtype=jnp.float32, row_tile=64))
    np.testing.assert_allclose(np.asarray(out2), np.asarray(ref2),
                               rtol=1e-3, atol=1e-3)

    print("KERNEL_OK")
</pallas_src>

<mosaic_0001>
module attributes {stable_mosaic.version = 11 : i64} {
  func.func @kernel(%arg0: i32, %arg1: memref<512x32xf32, #tpu.memory_space<vmem>>, %arg2: memref<32x8xf32, #tpu.memory_space<vmem>>, %arg3: memref<512x8xf32, #tpu.memory_space<vmem>>, %arg4: memref<1x2x8xf32, #tpu.memory_space<vmem>>) attributes {dimension_semantics = [#tpu.dimension_semantics<parallel>], iteration_bounds = array<i64: 1>, scalar_prefetch = 0 : i64, scratch_operands = 0 : i64, tpu.core_type = #tpu.core_type<tc>, window_params = [{transform_indices = @transform_0, window_bounds = array<i64: 512, 32>}, {pipeline_mode = #tpu.pipeline_mode<synchronous>, transform_indices = @transform_1, window_bounds = array<i64: 32, 8>}, {transform_indices = @transform_2, window_bounds = array<i64: 512, 8>}, {transform_indices = @transform_3, window_bounds = array<i64: 1, 2, 8>}]} {
    %c0 = arith.constant 0 : index
    %c0_0 = arith.constant 0 : index
    %0 = vector.load %arg1[%c0, %c0_0] : memref<512x32xf32, #tpu.memory_space<vmem>>, vector<512x32xf32>
    %c0_1 = arith.constant 0 : index
    %c0_2 = arith.constant 0 : index
    %1 = vector.load %arg2[%c0_1, %c0_2] : memref<32x8xf32, #tpu.memory_space<vmem>>, vector<32x8xf32>
    %cst = arith.constant dense<0.000000e+00> : vector<512x8xf32>
    %2 = tpu.matmul %0, %1, %cst {dimension_numbers = #tpu.dot_dimension_numbers<[1], [0], [0], [1], [0, 0, 1, 1], [], []>} : vector<512x32xf32>, vector<32x8xf32>, vector<512x8xf32> -> vector<512x8xf32>
    %c0_3 = arith.constant 0 : index
    %c0_4 = arith.constant 0 : index
    %3 = vector.load %arg3[%c0_3, %c0_4] : memref<512x8xf32, #tpu.memory_space<vmem>>, vector<512x8xf32>
    tpu.vector_store %arg3[%c0_3, %c0_4], %2 {strides = array<i32>} : memref<512x8xf32, #tpu.memory_space<vmem>>, vector<512x8xf32>,
    %cst_5 = arith.constant dense<0.000000e+00> : vector<8xf32>
    %4 = vector.multi_reduction <add>, %2, %cst_5 [0] : vector<512x8xf32> to vector<8xf32>
    %5 = vector.shape_cast %4 : vector<8xf32> to vector<1x8xf32>
    %cst_6 = arith.constant 0.001953125 : f32
    %6 = vector.broadcast %cst_6 : f32 to vector<1x8xf32>
    %7 = arith.mulf %5, %6 : vector<1x8xf32>
    %8 = vector.broadcast %7 : vector<1x8xf32> to vector<512x8xf32>
    %9 = arith.subf %2, %8 : vector<512x8xf32>
    %10 = arith.mulf %9, %9 : vector<512x8xf32>
    %cst_7 = arith.constant dense<0.000000e+00> : vector<8xf32>
    %11 = vector.multi_reduction <add>, %10, %cst_7 [0] : vector<512x8xf32> to vector<8xf32>
    %12 = vector.shape_cast %11 : vector<8xf32> to vector<1x8xf32>
    %13 = tpu.concatenate %5, %12 in 0 : vector<1x8xf32>, vector<1x8xf32> -> vector<2x8xf32>
    %14 = vector.shape_cast %13 : vector<2x8xf32> to vector<1x2x8xf32>
    %c0_8 = arith.constant 0 : index
    %c0_9 = arith.constant 0 : index
    %c0_10 = arith.constant 0 : index
    %15 = vector.load %arg4[%c0_8, %c0_9, %c0_10] : memref<1x2x8xf32, #tpu.memory_space<vmem>>, vector<1x2x8xf32>
    tpu.vector_store %arg4[%c0_8, %c0_9, %c0_10], %14 {strides = array<i32>} : memref<1x2x8xf32, #tpu.memory_space<vmem>>, vector<1x2x8xf32>,
    return
  }
  func.func @transform_0(%arg0: i32) -> (i32, i32) {
    %c0_i32 = arith.constant 0 : i32
    %c0_i32_0 = arith.constant 0 : i32
    return %arg0, %c0_i32 : i32, i32
  }
  func.func @transform_1(%arg0: i32) -> (i32, i32) {
    %c0_i32 = arith.constant 0 : i32
    %c0_i32_0 = arith.constant 0 : i32
    %c0_i32_1 = arith.constant 0 : i32
    return %c0_i32, %c0_i32_0 : i32, i32
  }
  func.func @transform_2(%arg0: i32) -> (i32, i32) {
    %c0_i32 = arith.constant 0 : i32
    %c0_i32_0 = arith.constant 0 : i32
    return %arg0, %c0_i32 : i32, i32
  }
  func.func @transform_3(%arg0: i32) -> (i32, i32, i32) {
    %c0_i32 = arith.constant 0 : i32
    %c0_i32_0 = arith.constant 0 : i32
    %c0_i32_1 = arith.constant 0 : i32
    return %arg0, %c0_i32, %c0_i32_0 : i32, i32, i32
  }
}

module attributes {stable_mosaic.version = 11 : i64} {
  func.func @kernel(%arg0: i32, %arg1: memref<1x256x8xf32, #tpu.memory_space<vmem>>, %arg2: memref<72x8xf32, #tpu.memory_space<vmem>>, %arg3: memref<256x9xf32, #tpu.memory_space<vmem>>, %arg4: memref<1x8xf32, #tpu.memory_space<vmem>>, %arg5: memref<1x8xf32, #tpu.memory_space<vmem>>, %arg6: memref<1x256x8xf32, #tpu.memory_space<vmem>>, %arg7: memref<1x1x2x8xf32, #tpu.memory_space<vmem>>, %arg8: memref<336x8xf32, #tpu.memory_space<vmem>>) attributes {dimension_semantics = [#tpu.dimension_semantics<parallel>], iteration_bounds = array<i64: 2>, scalar_prefetch = 0 : i64, scratch_operands = 1 : i64, tpu.core_type = #tpu.core_type<tc>, window_params = [{transform_indices = @transform_0, window_bounds = array<i64: 1, 256, 8>}, {pipeline_mode = #tpu.pipeline_mode<synchronous>, transform_indices = @transform_1, window_bounds = array<i64: 72, 8>}, {pipeline_mode = #tpu.pipeline_mode<synchronous>, transform_indices = @transform_2, window_bounds = array<i64: 256, 9>}, {pipeline_mode = #tpu.pipeline_mode<synchronous>, transform_indices = @transform_3, window_bounds = array<i64: 1, 8>}, {pipeline_mode = #tpu.pipeline_mode<synchronous>, transform_indices = @transform_4, window_bounds = array<i64: 1, 8>}, {transform_indices = @transform_5, window_bounds = array<i64: 1, 256, 8>}, {transform_indices = @transform_6, window_bounds = array<i64: 1, 1, 2, 8>}]} {
    %cst = arith.constant 0.000000e+00 : f32
    %0 = vector.broadcast %cst : f32 to vector<40x8xf32>
    %c0 = arith.constant 0 : index
    %c0_0 = arith.constant 0 : index
    %1 = vector.load %arg8[%c0, %c0_0] : memref<336x8xf32, #tpu.memory_space<vmem>>, vector<40x8xf32>
    tpu.vector_store %arg8[%c0, %c0_0], %0 {strides = array<i32>} : memref<336x8xf32, #tpu.memory_space<vmem>>, vector<40x8xf32>,
    %c296 = arith.constant 296 : index
    %c0_1 = arith.constant 0 : index
    %2 = vector.load %arg8[%c296, %c0_1] : memref<336x8xf32, #tpu.memory_space<vmem>>, vector<40x8xf32>
    tpu.vector_store %arg8[%c296, %c0_1], %0 {strides = array<i32>} : memref<336x8xf32, #tpu.memory_space<vmem>>, vector<40x8xf32>,
    %c0_2 = arith.constant 0 : index
    %c0_3 = arith.constant 0 : index
    %c0_4 = arith.constant 0 : index
    %3 = vector.load %arg1[%c0_2, %c0_3, %c0_4] : memref<1x256x8xf32, #tpu.memory_space<vmem>>, vector<1x256x8xf32>
    %4 = vector.shape_cast %3 : vector<1x256x8xf32> to vector<256x8xf32>
    %c0_5 = arith.constant 0 : index
    %c0_6 = arith.constant 0 : index
    %5 = vector.load %arg4[%c0_5, %c0_6] : memref<1x8xf32, #tpu.memory_space<vmem>>, vector<1x8xf32>
    %6 = vector.broadcast %5 : vector<1x8xf32> to vector<256x8xf32>
    %7 = arith.mulf %4, %6 : vector<256x8xf32>
    %c0_7 = arith.constant 0 : index
    %c0_8 = arith.constant 0 : index
    %8 = vector.load %arg5[%c0_7, %c0_8] : memref<1x8xf32, #tpu.memory_space<vmem>>, vector<1x8xf32>
    %9 = vector.broadcast %8 : vector<1x8xf32> to vector<256x8xf32>
    %10 = arith.addf %7, %9 : vector<256x8xf32>
    %cst_9 = arith.constant 0.000000e+00 : f32
    %11 = vector.broadcast %cst_9 : f32 to vector<256x8xf32>
    %12 = arith.maximumf %10, %11 : vector<256x8xf32>
    %c40 = arith.constant 40 : index
    %c0_10 = arith.constant 0 : index
    %13 = vector.load %arg8[%c40, %c0_10] : memref<336x8xf32, #tpu.memory_space<vmem>>, vector<256x8xf32>
    tpu.vector_store %arg8[%c40, %c0_10], %12 {strides = array<i32>} : memref<336x8xf32, #tpu.memory_space<vmem>>, vector<256x8xf32>,
    %c6 = arith.constant 6 : index
    %c0_11 = arith.constant 0 : index
    %14 = vector.load %arg8[%c6, %c0_11] : memref<336x8xf32, #tpu.memory_space<vmem>>, vector<256x8xf32>
    %c0_12 = arith.constant 0 : index
    %c0_13 = arith.constant 0 : index
    %15 = vector.load %arg3[%c0_12, %c0_13] : memref<256x9xf32, #tpu.memory_space<vmem>>, vector<256x1xf32>
    %16 = vector.broadcast %15 : vector<256x1xf32> to vector<256x8xf32>
    %17 = arith.mulf %14, %16 : vector<256x8xf32>
    %c8 = arith.constant 8 : index
    %c0_14 = arith.constant 0 : index
    %18 = vector.load %arg8[%c8, %c0_14] : memref<336x8xf32, #tpu.memory_space<vmem>>, vector<256x8xf32>
    %c10 = arith.constant 10 : index
    %c0_15 = arith.constant 0 : index
    %19 = vector.load %arg8[%c10, %c0_15] : memref<336x8xf32, #tpu.memory_space<vmem>>, vector<256x8xf32>
    %c0_16 = arith.constant 0 : index
    %c2 = arith.constant 2 : index
    %20 = vector.load %arg3[%c0_16, %c2] : memref<256x9xf32, #tpu.memory_space<vmem>>, vector<256x1xf32>
    %21 = vector.broadcast %20 : vector<256x1xf32> to vector<256x8xf32>
    %22 = arith.mulf %19, %21 : vector<256x8xf32>
    %c38 = arith.constant 38 : index
    %c0_17 = arith.constant 0 : index
    %23 = vector.load %arg8[%c38, %c0_17] : memref<336x8xf32, #tpu.memory_space<vmem>>, vector<256x8xf32>
    %c0_18 = arith.constant 0 : index
    %c3 = arith.constant 3 : index
    %24 = vector.load %arg3[%c0_18, %c3] : memref<256x9xf32, #tpu.memory_space<vmem>>, vector<256x1xf32>
    %25 = vector.broadcast %24 : vector<256x1xf32> to vector<256x8xf32>
    %26 = arith.mulf %23, %25 : vector<256x8xf32>
    %c40_19 = arith.constant 40 : index
    %c0_20 = arith.constant 0 : index
    %27 = vector.load %arg8[%c40_19, %c0_20] : memref<336x8xf32, #tpu.memory_space<vmem>>, vector<256x8xf32>
    %c42 = arith.constant 42 : index
    %c0_21 = arith.constant 0 : index
    %28 = vector.load %arg8[%c42, %c0_21] : memref<336x8xf32, #tpu.memory_space<vmem>>, vector<256x8xf32>
    %c0_22 = arith.constant 0 : index
    %c5 = arith.constant 5 : index
    %29 = vector.load %arg3[%c0_22, %c5] : memref<256x9xf32, #tpu.memory_space<vmem>>, vector<256x1xf32>
    %30 = vector.broadcast %29 : vector<256x1xf32> to vector<256x8xf32>
    %31 = arith.mulf %28, %30 : vector<256x8xf32>
    %c70 = arith.constant 70 : index
    %c0_23 = arith.constant 0 : index
    %32 = vector.load %arg8[%c70, %c0_23] : memref<336x8xf32, #tpu.memory_space<vmem>>, vector<256x8xf32>
    %c0_24 = arith.constant 0 : index
    %c6_25 = arith.constant 6 : index
    %33 = vector.load %arg3[%c0_24, %c6_25] : memref<256x9xf32, #tpu.memory_space<vmem>>, vector<256x1xf32>
    %34 = vector.broadcast %33 : vector<256x1xf32> to vector<256x8xf32>
    %35 = arith.mulf %32, %34 : vector<256x8xf32>
    %c72 = arith.constant 72 : index
    %c0_26 = arith.constant 0 : index
    %36 = vector.load %arg8[%c72, %c0_26] : memref<336x8xf32, #tpu.memory_space<vmem>>, vector<256x8xf32>
    %c74 = arith.constant 74 : index
    %c0_27 = arith.constant 0 : index
    %37 = vector.load %arg8[%c74, %c0_27] : memref<336x8xf32, #tpu.memory_space<vmem>>, vector<256x8xf32>
    %c0_28 = arith.constant 0 : index
    %c8_29 = arith.constant 8 : index
    %38 = vector.load %arg3[%c0_28, %c8_29] : memref<256x9xf32, #tpu.memory_space<vmem>>, vector<256x1xf32>
    %39 = vector.broadcast %38 : vector<256x1xf32> to vector<256x8xf32>
    %40 = arith.mulf %37, %39 : vector<256x8xf32>
    %41 = tpu.concatenate %17, %18, %22, %26, %27, %31, %35, %36, %40 in 1 : vector<256x8xf32>, vector<256x8xf32>, vector<256x8xf32>, vector<256x8xf32>, vector<256x8xf32>, vector<256x8xf32>, vector<256x8xf32>, vector<256x8xf32>, vector<256x8xf32> -> vector<256x72xf32>
    %c0_30 = arith.constant 0 : index
    %c0_31 = arith.constant 0 : index
    %42 = vector.load %arg2[%c0_30, %c0_31] : memref<72x8xf32, #tpu.memory_space<vmem>>, vector<72x8xf32>
    %cst_32 = arith.constant dense<0.000000e+00> : vector<256x8xf32>
    %43 = tpu.matmul %41, %42, %cst_32 {dimension_numbers = #tpu.dot_dimension_numbers<[1], [0], [0], [1], [0, 0, 1, 1], [], []>} : vector<256x72xf32>, vector<72x8xf32>, vector<256x8xf32> -> vector<256x8xf32>
    %c0_33 = arith.constant 0 : index
    %c0_34 = arith.constant 0 : index
    %c0_35 = arith.constant 0 : index
    %44 = vector.load %arg6[%c0_33, %c0_34, %c0_35] : memref<1x256x8xf32, #tpu.memory_space<vmem>>, vector<1x256x8xf32>
    %45 = vector.shape_cast %44 : vector<1x256x8xf32> to vector<256x8xf32>
    %46 = vector.shape_cast %43 : vector<256x8xf32> to vector<1x256x8xf32>
    tpu.vector_store %arg6[%c0_33, %c0_34, %c0_35], %46 {strides = array<i32>} : memref<1x256x8xf32, #tpu.memory_space<vmem>>, vector<1x256x8xf32>,
    %cst_36 = arith.constant dense<0.000000e+00> : vector<8xf32>
    %47 = vector.multi_reduction <add>, %43, %cst_36 [0] : vector<256x8xf32> to vector<8xf32>
    %48 = vector.shape_cast %47 : vector<8xf32> to vector<1x8xf32>
    %cst_37 = arith.constant 3.906250e-03 : f32
    %49 = vector.broadcast %cst_37 : f32 to vector<1x8xf32>
    %50 = arith.mulf %48, %49 : vector<1x8xf32>
    %51 = vector.broadcast %50 : vector<1x8xf32> to vector<256x8xf32>
    %52 = arith.subf %43, %51 : vector<256x8xf32>
    %53 = arith.mulf %52, %52 : vector<256x8xf32>
    %cst_38 = arith.constant dense<0.000000e+00> : vector<8xf32>
    %54 = vector.multi_reduction <add>, %53, %cst_38 [0] : vector<256x8xf32> to vector<8xf32>
    %55 = vector.shape_cast %54 : vector<8xf32> to vector<1x8xf32>
    %56 = tpu.concatenate %48, %55 in 0 : vector<1x8xf32>, vector<1x8xf32> -> vector<2x8xf32>
    %c0_39 = arith.constant 0 : index
    %c0_40 = arith.constant 0 : index
    %c0_41 = arith.constant 0 : index
    %c0_42 = arith.constant 0 : index
    %57 = vector.load %arg7[%c0_39, %c0_40, %c0_41, %c0_42] : memref<1x1x2x8xf32, #tpu.memory_space<vmem>>, vector<1x1x2x8xf32>
    %58 = vector.shape_cast %57 : vector<1x1x2x8xf32> to vector<2x8xf32>
    %59 = vector.shape_cast %56 : vector<2x8xf32> to vector<1x1x2x8xf32>
    tpu.vector_store %arg7[%c0_39, %c0_40, %c0_41, %c0_42], %59 {strides = array<i32>} : memref<1x1x2x8xf32, #tpu.memory_space<vmem>>, vector<1x1x2x8xf32>,
    return
  }
  func.func @transform_0(%arg0: i32) -> (i32, i32, i32) {
    %c0_i32 = arith.constant 0 : i32
    %c0_i32_0 = arith.constant 0 : i32
    %c0_i32_1 = arith.constant 0 : i32
    return %arg0, %c0_i32, %c0_i32_0 : i32, i32, i32
  }
  func.func @transform_1(%arg0: i32) -> (i32, i32) {
    %c0_i32 = arith.constant 0 : i32
    %c0_i32_0 = arith.constant 0 : i32
    %c0_i32_1 = arith.constant 0 : i32
    return %c0_i32, %c0_i32_0 : i32, i32
  }
  func.func @transform_2(%arg0: i32) -> (i32, i32) {
    %c0_i32 = arith.constant 0 : i32
    %c0_i32_0 = arith.constant 0 : i32
    %c0_i32_1 = arith.constant 0 : i32
    return %c0_i32, %c0_i32_0 : i32, i32
  }
  func.func @transform_3(%arg0: i32) -> (i32, i32) {
    %c0_i32 = arith.constant 0 : i32
    %c0_i32_0 = arith.constant 0 : i32
    %c0_i32_1 = arith.constant 0 : i32
    return %c0_i32, %c0_i32_0 : i32, i32
  }
  func.func @transform_4(%arg0: i32) -> (i32, i32) {
    %c0_i32 = arith.constant 0 : i32
    %c0_i32_0 = arith.constant 0 : i32
    %c0_i32_1 = arith.constant 0 : i32
    return %c0_i32, %c0_i32_0 : i32, i32
  }
  func.func @transform_5(%arg0: i32) -> (i32, i32, i32) {
    %c0_i32 = arith.constant 0 : i32
    %c0_i32_0 = arith.constant 0 : i32
    %c0_i32_1 = arith.constant 0 : i32
    return %arg0, %c0_i32, %c0_i32_0 : i32, i32, i32
  }
  func.func @transform_6(%arg0: i32) -> (i32, i32, i32, i32) {
    %c0_i32 = arith.constant 0 : i32
    %c0_i32_0 = arith.constant 0 : i32
    %c0_i32_1 = arith.constant 0 : i32
    %c0_i32_2 = arith.constant 0 : i32
    return %arg0, %c0_i32, %c0_i32_0, %c0_i32_1 : i32, i32, i32, i32
  }
}

module attributes {stable_mosaic.version = 11 : i64} {
  func.func @kernel(%arg0: i32, %arg1: memref<512x8xf32, #tpu.memory_space<vmem>>, %arg2: memref<8x32xf32, #tpu.memory_space<vmem>>, %arg3: memref<1x8xf32, #tpu.memory_space<vmem>>, %arg4: memref<1x8xf32, #tpu.memory_space<vmem>>, %arg5: memref<512x32xf32, #tpu.memory_space<vmem>>, %arg6: memref<1x2x32xf32, #tpu.memory_space<vmem>>) attributes {dimension_semantics = [#tpu.dimension_semantics<parallel>], iteration_bounds = array<i64: 1>, scalar_prefetch = 0 : i64, scratch_operands = 0 : i64, tpu.core_type = #tpu.core_type<tc>, window_params = [{transform_indices = @transform_0, window_bounds = array<i64: 512, 8>}, {pipeline_mode = #tpu.pipeline_mode<synchronous>, transform_indices = @transform_1, window_bounds = array<i64: 8, 32>}, {pipeline_mode = #tpu.pipeline_mode<synchronous>, transform_indices = @transform_2, window_bounds = array<i64: 1, 8>}, {pipeline_mode = #tpu.pipeline_mode<synchronous>, transform_indices = @transform_3, window_bounds = array<i64: 1, 8>}, {transform_indices = @transform_4, window_bounds = array<i64: 512, 32>}, {transform_indices = @transform_5, window_bounds = array<i64: 1, 2, 32>}]} {
    %c0 = arith.constant 0 : index
    %c0_0 = arith.constant 0 : index
    %0 = vector.load %arg1[%c0, %c0_0] : memref<512x8xf32, #tpu.memory_space<vmem>>, vector<512x8xf32>
    %c0_1 = arith.constant 0 : index
    %c0_2 = arith.constant 0 : index
    %1 = vector.load %arg3[%c0_1, %c0_2] : memref<1x8xf32, #tpu.memory_space<vmem>>, vector<1x8xf32>
    %2 = vector.broadcast %1 : vector<1x8xf32> to vector<512x8xf32>
    %3 = arith.mulf %0, %2 : vector<512x8xf32>
    %c0_3 = arith.constant 0 : index
    %c0_4 = arith.constant 0 : index
    %4 = vector.load %arg4[%c0_3, %c0_4] : memref<1x8xf32, #tpu.memory_space<vmem>>, vector<1x8xf32>
    %5 = vector.broadcast %4 : vector<1x8xf32> to vector<512x8xf32>
    %6 = arith.addf %3, %5 : vector<512x8xf32>
    %cst = arith.constant 0.000000e+00 : f32
    %7 = vector.broadcast %cst : f32 to vector<512x8xf32>
    %8 = arith.maximumf %6, %7 : vector<512x8xf32>
    %c0_5 = arith.constant 0 : index
    %c0_6 = arith.constant 0 : index
    %9 = vector.load %arg2[%c0_5, %c0_6] : memref<8x32xf32, #tpu.memory_space<vmem>>, vector<8x32xf32>
    %cst_7 = arith.constant dense<0.000000e+00> : vector<512x32xf32>
    %10 = tpu.matmul %8, %9, %cst_7 {dimension_numbers = #tpu.dot_dimension_numbers<[1], [0], [0], [1], [0, 0, 1, 1], [], []>} : vector<512x8xf32>, vector<8x32xf32>, vector<512x32xf32> -> vector<512x32xf32>
    %c0_8 = arith.constant 0 : index
    %c0_9 = arith.constant 0 : index
    %11 = vector.load %arg5[%c0_8, %c0_9] : memref<512x32xf32, #tpu.memory_space<vmem>>, vector<512x32xf32>
    tpu.vector_store %arg5[%c0_8, %c0_9], %10 {strides = array<i32>} : memref<512x32xf32, #tpu.memory_space<vmem>>, vector<512x32xf32>,
    %cst_10 = arith.constant dense<0.000000e+00> : vector<32xf32>
    %12 = vector.multi_reduction <add>, %10, %cst_10 [0] : vector<512x32xf32> to vector<32xf32>
    %13 = vector.shape_cast %12 : vector<32xf32> to vector<1x32xf32>
    %cst_11 = arith.constant 0.001953125 : f32
    %14 = vector.broadcast %cst_11 : f32 to vector<1x32xf32>
    %15 = arith.mulf %13, %14 : vector<1x32xf32>
    %16 = vector.broadcast %15 : vector<1x32xf32> to vector<512x32xf32>
    %17 = arith.subf %10, %16 : vector<512x32xf32>
    %18 = arith.mulf %17, %17 : vector<512x32xf32>
    %cst_12 = arith.constant dense<0.000000e+00> : vector<32xf32>
    %19 = vector.multi_reduction <add>, %18, %cst_12 [0] : vector<512x32xf32> to vector<32xf32>
    %20 = vector.shape_cast %19 : vector<32xf32> to vector<1x32xf32>
    %21 = tpu.concatenate %13, %20 in 0 : vector<1x32xf32>, vector<1x32xf32> -> vector<2x32xf32>
    %22 = vector.shape_cast %21 : vector<2x32xf32> to vector<1x2x32xf32>
    %c0_13 = arith.constant 0 : index
    %c0_14 = arith.constant 0 : index
    %c0_15 = arith.constant 0 : index
    %23 = vector.load %arg6[%c0_13, %c0_14, %c0_15] : memref<1x2x32xf32, #tpu.memory_space<vmem>>, vector<1x2x32xf32>
    tpu.vector_store %arg6[%c0_13, %c0_14, %c0_15], %22 {strides = array<i32>} : memref<1x2x32xf32, #tpu.memory_space<vmem>>, vector<1x2x32xf32>,
    return
  }
  func.func @transform_0(%arg0: i32) -> (i32, i32) {
    %c0_i32 = arith.constant 0 : i32
    %c0_i32_0 = arith.constant 0 : i32
    return %arg0, %c0_i32 : i32, i32
  }
  func.func @transform_1(%arg0: i32) -> (i32, i32) {
    %c0_i32 = arith.constant 0 : i32
    %c0_i32_0 = arith.constant 0 : i32
    %c0_i32_1 = arith.constant 0 : i32
    return %c0_i32, %c0_i32_0 : i32, i32
  }
  func.func @transform_2(%arg0: i32) -> (i32, i32) {
    %c0_i32 = arith.constant 0 : i32
    %c0_i32_0 = arith.constant 0 : i32
    %c0_i32_1 = arith.constant 0 : i32
    return %c0_i32, %c0_i32_0 : i32, i32
  }
  func.func @transform_3(%arg0: i32) -> (i32, i32) {
    %c0_i32 = arith.constant 0 : i32
    %c0_i32_0 = arith.constant 0 : i32
    %c0_i32_1 = arith.constant 0 : i32
    return %c0_i32, %c0_i32_0 : i32, i32
  }
  func.func @transform_4(%arg0: i32) -> (i32, i32) {
    %c0_i32 = arith.constant 0 : i32
    %c0_i32_0 = arith.constant 0 : i32
    return %arg0, %c0_i32 : i32, i32
  }
  func.func @transform_5(%arg0: i32) -> (i32, i32, i32) {
    %c0_i32 = arith.constant 0 : i32
    %c0_i32_0 = arith.constant 0 : i32
    %c0_i32_1 = arith.constant 0 : i32
    return %arg0, %c0_i32, %c0_i32_0 : i32, i32, i32
  }
}

module attributes {stable_mosaic.version = 11 : i64} {
  func.func @_finalize_kernel(%arg0: i32, %arg1: memref<128x128xf32, #tpu.memory_space<vmem>>, %arg2: memref<128x128xf32, #tpu.memory_space<vmem>>, %arg3: memref<1x128xf32, #tpu.memory_space<vmem>>, %arg4: memref<1x128xf32, #tpu.memory_space<vmem>>, %arg5: memref<128x128xf32, #tpu.memory_space<vmem>>) attributes {dimension_semantics = [#tpu.dimension_semantics<parallel>], iteration_bounds = array<i64: 1>, scalar_prefetch = 0 : i64, scratch_operands = 0 : i64, tpu.core_type = #tpu.core_type<tc>, window_params = [{transform_indices = @transform_0, window_bounds = array<i64: 128, 128>}, {transform_indices = @transform_1, window_bounds = array<i64: 128, 128>}, {pipeline_mode = #tpu.pipeline_mode<synchronous>, transform_indices = @transform_2, window_bounds = array<i64: 1, 128>}, {pipeline_mode = #tpu.pipeline_mode<synchronous>, transform_indices = @transform_3, window_bounds = array<i64: 1, 128>}, {transform_indices = @transform_4, window_bounds = array<i64: 128, 128>}]} {
    %c0 = arith.constant 0 : index
    %c0_0 = arith.constant 0 : index
    %0 = vector.load %arg1[%c0, %c0_0] : memref<128x128xf32, #tpu.memory_space<vmem>>, vector<128x128xf32>
    %c0_1 = arith.constant 0 : index
    %c0_2 = arith.constant 0 : index
    %1 = vector.load %arg3[%c0_1, %c0_2] : memref<1x128xf32, #tpu.memory_space<vmem>>, vector<1x128xf32>
    %2 = vector.broadcast %1 : vector<1x128xf32> to vector<128x128xf32>
    %3 = arith.mulf %0, %2 : vector<128x128xf32>
    %c0_3 = arith.constant 0 : index
    %c0_4 = arith.constant 0 : index
    %4 = vector.load %arg4[%c0_3, %c0_4] : memref<1x128xf32, #tpu.memory_space<vmem>>, vector<1x128xf32>
    %5 = vector.broadcast %4 : vector<1x128xf32> to vector<128x128xf32>
    %6 = arith.addf %3, %5 : vector<128x128xf32>
    %c0_5 = arith.constant 0 : index
    %c0_6 = arith.constant 0 : index
    %7 = vector.load %arg2[%c0_5, %c0_6] : memref<128x128xf32, #tpu.memory_space<vmem>>, vector<128x128xf32>
    %8 = arith.addf %6, %7 : vector<128x128xf32>
    %cst = arith.constant 0.000000e+00 : f32
    %9 = vector.broadcast %cst : f32 to vector<128x128xf32>
    %10 = arith.maximumf %8, %9 : vector<128x128xf32>
    %c0_7 = arith.constant 0 : index
    %c0_8 = arith.constant 0 : index
    %11 = vector.load %arg5[%c0_7, %c0_8] : memref<128x128xf32, #tpu.memory_space<vmem>>, vector<128x128xf32>
    tpu.vector_store %arg5[%c0_7, %c0_8], %10 {strides = array<i32>} : memref<128x128xf32, #tpu.memory_space<vmem>>, vector<128x128xf32>,
    return
  }
  func.func @transform_0(%arg0: i32) -> (i32, i32) {
    %c0_i32 = arith.constant 0 : i32
    %c0_i32_0 = arith.constant 0 : i32
    return %arg0, %c0_i32 : i32, i32
  }
  func.func @transform_1(%arg0: i32) -> (i32, i32) {
    %c0_i32 = arith.constant 0 : i32
    %c0_i32_0 = arith.constant 0 : i32
    return %arg0, %c0_i32 : i32, i32
  }
  func.func @transform_2(%arg0: i32) -> (i32, i32) {
    %c0_i32 = arith.constant 0 : i32
    %c0_i32_0 = arith.constant 0 : i32
    %c0_i32_1 = arith.constant 0 : i32
    return %c0_i32, %c0_i32_0 : i32, i32
  }
  func.func @transform_3(%arg0: i32) -> (i32, i32) {
    %c0_i32 = arith.constant 0 : i32
    %c0_i32_0 = arith.constant 0 : i32
    %c0_i32_1 = arith.constant 0 : i32
    return %c0_i32, %c0_i32_0 : i32, i32
  }
  func.func @transform_4(%arg0: i32) -> (i32, i32) {
    %c0_i32 = arith.constant 0 : i32
    %c0_i32_0 = arith.constant 0 : i32
    return %arg0, %c0_i32 : i32, i32
  }
}

</mosaic_0001>

<bundles_post_ra>
// kernel: _bottleneck_impl.6
= control target key start
LH: loop header
LB: loop body
LE: loop exit
PB: predicated region body
PF: predicated region fallthrough
CT: control target
= control target key end

     0   :  { %vm290_vm0 = vcmask 64512   ;;  %vm868_vm1 = vcmask 261120   ;;  %vm1328_vm2 = vcmask 1040384   ;;  %vm1330_vm3 = vcmask 254976   ;;  %s2980_s1 = inlined_call_operand.vmem [shape: f32[8,32], index: 1, kind: input, shape index: {}]   ;;  %s2981_s0 = inlined_call_operand.vmem [shape: f32[512,8], index: 0, kind: input, shape index: {}]   ;;  %s2982_s2 = inlined_call_operand.vmem [shape: f32[1,8], index: 2, kind: input, shape index: {}]   ;;  %s2983_s3 = inlined_call_operand.vmem [shape: f32[1,8], index: 3, kind: input, shape index: {}]   ;;  %s2984_s4 = inlined_call_operand.vmem [shape: f32[512,32], index: 4, kind: output, shape index: {0}]   ;;  %s2985_s5 = inlined_call_operand.vmem [shape: f32[1,2,32], index: 5, kind: output, shape index: {1}]  }
   0x1   :  { %v289_v0 = vld [vmem:[%s2980_s1] sm:$0xff]  ;;  %v20_v5 = vld [vmem:[%s2981_s0 + $0x8] sm:$0xff]  ;;  %v21_v6 = vld [vmem:[%s2981_s0 + $0x10] sm:$0xff] }
   0x2   :  { %v19_v1 = vld [vmem:[%s2981_s0] sm:$0xff]  ;;  %1471 = vmatprep.subr.mxu0 %v289_v0  ;;  %1569 = vmatprep.subr.mxu1 %v289_v0  ;;  %v22_v9 = vld [vmem:[%s2981_s0 + $0x18] sm:$0xff]  ;;  %v24_v11 = vld [vmem:[%s2981_s0 + $0x28] sm:$0xff] }
   0x3   :  { %v1610_v2 = vld [vmem:[%s2982_s2] ss:$0 sm:$0xff]  ;;  %1472 = vmatpush3.msra.mxu0 %v289_v0  ;;  %1570 = vmatpush3.msra.mxu1 %v289_v0  ;;  %v25_v15 = vld [vmem:[%s2981_s0 + $0x30] sm:$0xff]  ;;  %v26_v19 = vld [vmem:[%s2981_s0 + $0x38] sm:$0xff] }
   0x4   :  { %v90_v3 = vmul.f32 %v1610_v2, %v19_v1  ;;  %v1616_v4 = vld [vmem:[%s2983_s3] ss:$0 sm:$0xff]  ;;  %v91_v7 = vmul.f32 %v1610_v2, %v20_v5  ;;  %v92_v8 = vmul.f32 %v1610_v2, %v21_v6  ;;  %v93_v13 = vmul.f32 %v1610_v2, %v22_v9  ;;  %v28_v33 = vld [vmem:[%s2981_s0 + $0x48] sm:$0xff]  ;;  %v29_v34 = vld [vmem:[%s2981_s0 + $0x50] sm:$0xff] }
   0x5   :  { %v23_v10 = vld [vmem:[%s2981_s0 + $0x20] sm:$0xff]  ;;  %v95_v18 = vmul.f32 %v1610_v2, %v24_v11  ;;  %v96_v23 = vmul.f32 %v1610_v2, %v25_v15  ;;  %v97_v27 = vmul.f32 %v1610_v2, %v26_v19  ;;  %v99_v37 = vmul.f32 %v1610_v2, %v28_v33  ;;  %v30_v41 = vld [vmem:[%s2981_s0 + $0x58] sm:$0xff]  ;;  %v32_v43 = vld [vmem:[%s2981_s0 + $0x68] sm:$0xff] }
   0x6   :  { %v161_v12 = vadd.f32 %v1616_v4, %v90_v3  ;;  %v94_v14 = vmul.f32 %v1610_v2, %v23_v10  ;;  %v162_v16 = vadd.f32 %v1616_v4, %v91_v7  ;;  %v163_v17 = vadd.f32 %v1616_v4, %v92_v8  ;;  %v27_v26 = vld [vmem:[%s2981_s0 + $0x40] sm:$0xff]  ;;  %v33_v44 = vld [vmem:[%s2981_s0 + $0x70] sm:$0xff]  ;;  %v34_v50 = vld [vmem:[%s2981_s0 + $0x78] sm:$0xff] }
   0x7   :  { %v164_v21 = vadd.f32 %v1616_v4, %v93_v13  ;;  %v166_v29 = vadd.f32 %v1616_v4, %v95_v18  ;;  %v167_v31 = vadd.f32 %v1616_v4, %v96_v23  ;;  %v98_v32 = vmul.f32 %v1610_v2, %v27_v26  ;;  %v31_v42 = vld [vmem:[%s2981_s0 + $0x60] sm:$0xff]  ;;  %v36_v63 = vld [vmem:[%s2981_s0 + $0x88] sm:$0xff]  ;;  %v37_v0 = vld [vmem:[%s2981_s0 + $0x90] sm:$0xff] }
   0x8   :  { %v225_v20 = vmax.f32 %v161_v12, 0.0  ;;  %v165_v22 = vadd.f32 %v1616_v4, %v94_v14  ;;  %v226_v24 = vmax.f32 %v162_v16, 0.0  ;;  %v227_v25 = vmax.f32 %v163_v17, 0.0  ;;  %v35_v55 = vld [vmem:[%s2981_s0 + $0x80] sm:$0xff]  ;;  %v38_v3 = vld [vmem:[%s2981_s0 + $0x98] sm:$0xff]  ;;  %v52_v5 = vld [vmem:[%s2981_s0 + $0x108] sm:$0xff] }
   0x9   :  { %v228_v28 = vmax.f32 %v164_v21, 0.0  ;;  %v168_v35 = vadd.f32 %v1616_v4, %v97_v27  ;;  %v230_v36 = vmax.f32 %v166_v29, 0.0  ;;  %v231_v38 = vmax.f32 %v167_v31, 0.0  ;;  %v51_v1 = vld [vmem:[%s2981_s0 + $0x100] sm:$0xff]  ;;  %v53_v6 = vld [vmem:[%s2981_s0 + $0x110] sm:$0xff]  ;;  %v54_v12 = vld [vmem:[%s2981_s0 + $0x118] sm:$0xff] }
   0xa   :  { %1473 = vmatprep.mubr.msk.f32.mxu0 %vm290_vm0, %v225_v20  ;;  %v229_v30 = vmax.f32 %v165_v22, 0.0  ;;  %v169_v39 = vadd.f32 %v1616_v4, %v98_v32  ;;  %v100_v40 = vmul.f32 %v1610_v2, %v29_v34  ;;  %v170_v46 = vadd.f32 %v1616_v4, %v99_v37  ;;  %v39_v11 = vld [vmem:[%s2981_s0 + $0xa0] sm:$0xff]  ;;  %v40_v17 = vld [vmem:[%s2981_s0 + $0xa8] sm:$0xff]  ;;  %v41_v26 = vld [vmem:[%s2981_s0 + $0xb0] sm:$0xff] }
   0xb   :  { %1474 = vmatmul.mubr.msk.f32.vlgmr.msra.gmra.mrb[0].mxu0 %vm290_vm0, %v226_v24  ;;  %v232_v45 = vmax.f32 %v168_v35, 0.0  ;;  %v101_v47 = vmul.f32 %v1610_v2, %v30_v41  ;;  %v102_v48 = vmul.f32 %v1610_v2, %v31_v42  ;;  %v103_v49 = vmul.f32 %v1610_v2, %v32_v43  ;;  %v55_v13 = vld [vmem:[%s2981_s0 + $0x120] sm:$0xff]  ;;  %v56_v19 = vld [vmem:[%s2981_s0 + $0x128] sm:$0xff]  ;;  %v57_v24 = vld [vmem:[%s2981_s0 + $0x130] sm:$0xff] }
   0xc   :  { %1476 = vmatprep.mubr.msk.f32.mxu0 %vm290_vm0, %v227_v25  ;;  %v233_v51 = vmax.f32 %v169_v39, 0.0  ;;  %v171_v52 = vadd.f32 %v1616_v4, %v100_v40  ;;  %v104_v53 = vmul.f32 %v1610_v2, %v33_v44  ;;  %v105_v54 = vmul.f32 %v1610_v2, %v34_v50  ;;  %v42_v27 = vld [vmem:[%s2981_s0 + $0xb8] sm:$0xff]  ;;  %v59_v44 = vld [vmem:[%s2981_s0 + $0x140] sm:$0xff] }
   0xd   :  { %v234_v56 = vmax.f32 %v170_v46, 0.0  ;;  %v172_v57 = vadd.f32 %v1616_v4, %v101_v47  ;;  %v173_v58 = vadd.f32 %v1616_v4, %v102_v48  ;;  %v174_v59 = vadd.f32 %v1616_v4, %v103_v49  ;;  %v58_v39 = vld [vmem:[%s2981_s0 + $0x138] sm:$0xff]  ;;  %v43_v49 = vld [vmem:[%s2981_s0 + $0xc0] sm:$0xff] }
   0xe   :  { %v235_v60 = vmax.f32 %v171_v52, 0.0  ;;  %v1705_v61 = vadd.f32 %v1616_v4, %v104_v53  ;;  %v106_v62 = vmul.f32 %v1610_v2, %v35_v55  ;;  %v1728_v10 = vadd.f32 %v1616_v4, %v105_v54  ;;  %v44_v55 = vld [vmem:[%s2981_s0 + $0xc8] sm:$0xff] }
   0xf   :  { %1477 = vmatmul.mubr.msk.f32.gmra.mrb[2].mxu0 %vm290_vm0, %v228_v28  ;;  %v236_v7 = vmax.f32 %v172_v57, 0.0  ;;  %v237_v8 = vmax.f32 %v173_v58, 0.0  ;;  %v238_v9 = vmax.f32 %v174_v59, 0.0  ;;  %v107_v15 = vmul.f32 %v1610_v2, %v36_v63  ;;  %v60_v59 = vld [vmem:[%s2981_s0 + $0x148] sm:$0xff] }
  0x10   :  { %1479 = vmatprep.mubr.msk.f32.mxu0 %vm290_vm0, %v229_v30  ;;  %v239_v14 = vmax.f32 %v1705_v61, 0.0  ;;  %v108_v16 = vmul.f32 %v1610_v2, %v37_v0  ;;  %v122_v18 = vmul.f32 %v1610_v2, %v51_v1  ;;  %v1751_v20 = vadd.f32 %v1616_v4, %v106_v62  ;;  %v45_v0 = vld [vmem:[%s2981_s0 + $0xd0] sm:$0xff] }
  0x11   :  { %v109_v21 = vmul.f32 %v1610_v2, %v38_v3  ;;  %v123_v22 = vmul.f32 %v1610_v2, %v52_v5  ;;  %v124_v23 = vmul.f32 %v1610_v2, %v53_v6  ;;  %v110_v25 = vmul.f32 %v1610_v2, %v39_v11  ;;  %v61_v1 = vld [vmem:[%s2981_s0 + $0x150] sm:$0xff] }
  0x12   :  { %v193_v28 = vadd.f32 %v1616_v4, %v122_v18  ;;  %v125_v29 = vmul.f32 %v1610_v2, %v54_v12  ;;  %v126_v30 = vmul.f32 %v1610_v2, %v55_v13  ;;  %v111_v31 = vmul.f32 %v1610_v2, %v40_v17 }
  0x13   :  { %1480 = vmatmul.mubr.msk.f32.gmra.mrb[4].mxu0 %vm290_vm0, %v230_v36  ;;  %v194_v32 = vadd.f32 %v1616_v4, %v123_v22  ;;  %v195_v33 = vadd.f32 %v1616_v4, %v124_v23  ;;  %v127_v34 = vmul.f32 %v1610_v2, %v56_v19  ;;  %v112_v40 = vmul.f32 %v1610_v2, %v41_v26 }
  0x14   :  { %1482 = vmatprep.mubr.msk.f32.mxu0 %vm290_vm0, %v231_v38  ;;  %v257_v35 = vmax.f32 %v193_v28, 0.0  ;;  %v196_v36 = vadd.f32 %v1616_v4, %v125_v29  ;;  %v197_v37 = vadd.f32 %v1616_v4, %v126_v30  ;;  %v128_v38 = vmul.f32 %v1610_v2, %v57_v24  ;;  %v64_v30 = vld [vmem:[%s2981_s0 + $0x168] sm:$0xff] }
  0x15   :  { %v113_v41 = vmul.f32 %v1610_v2, %v42_v27  ;;  %v258_v42 = vmax.f32 %v194_v32, 0.0  ;;  %v259_v43 = vmax.f32 %v195_v33, 0.0  ;;  %v1788_v46 = vadd.f32 %v1616_v4, %v108_v16  ;;  %v74_v32 = vld [vmem:[%s2981_s0 + $0x1b8] sm:$0xff] }
  0x16   :  { %v1791_v47 = vadd.f32 %v1616_v4, %v109_v21  ;;  %v1794_v48 = vadd.f32 %v1616_v4, %v110_v25  ;;  %1521 = vmatprep.mubr.msk.f32.mxu1 %vm290_vm0, %v257_v35  ;;  %v240_v50 = vmax.f32 %v1728_v10, 0.0  ;;  %v198_v52 = vadd.f32 %v1616_v4, %v127_v34  ;;  %v47_v10 = vld [vmem:[%s2981_s0 + $0xe0] sm:$0xff]  ;;  %v73_v25 = vld [vmem:[%s2981_s0 + $0x1b0] sm:$0xff] }
  0x17   :  { %1483 = vmatmul.mubr.msk.f32.gmra.mrb[6].mxu0 %vm290_vm0, %v232_v45  ;;  %v178_v45 = vadd.f32 %v1616_v4, %v107_v15  ;;  %1522 = vmatmul.mubr.msk.f32.vlgmr.msra.gmra.mrb[0].mxu1 %vm290_vm0, %v258_v42  ;;  %v129_v53 = vmul.f32 %v1610_v2, %v58_v39  ;;  %v241_v54 = vmax.f32 %v1751_v20, 0.0  ;;  %v199_v57 = vadd.f32 %v1616_v4, %v128_v38  ;;  %v63_v15 = vld [vmem:[%s2981_s0 + $0x160] sm:$0xff]  ;;  %v72_v20 = vld [vmem:[%s2981_s0 + $0x1a8] sm:$0xff] }
  0x18   :  { %1485 = vmatprep.mubr.msk.f32.mxu0 %vm290_vm0, %v233_v51  ;;  %v260_v51 = vmax.f32 %v196_v36, 0.0  ;;  %1524 = vmatprep.mubr.msk.f32.mxu1 %vm290_vm0, %v259_v43  ;;  %v130_v58 = vmul.f32 %v1610_v2, %v59_v44  ;;  %v1820_v61 = vadd.f32 %v1616_v4, %v112_v40  ;;  %v1823_v62 = vadd.f32 %v1616_v4, %v113_v41  ;;  %v76_v42 = vld [vmem:[%s2981_s0 + $0x1c8] sm:$0xff]  ;;  %v77_v43 = vld [vmem:[%s2981_s0 + $0x1d0] sm:$0xff] }
  0x19   :  { %v114_v63 = vmul.f32 %v1610_v2, %v43_v49  ;;  %v242_v3 = vmax.f32 %v178_v45, 0.0  ;;  %v243_v5 = vmax.f32 %v1788_v46, 0.0  ;;  %v244_v6 = vmax.f32 %v1791_v47, 0.0  ;;  %v78_v49 = vld [vmem:[%s2981_s0 + $0x1d8] sm:$0xff] }
  0x1a   :  { %v262_v11 = vmax.f32 %v198_v52, 0.0  ;;  %v200_v12 = vadd.f32 %v1616_v4, %v129_v53  ;;  %v131_v13 = vmul.f32 %v1610_v2, %v60_v59  ;;  %v116_v16 = vmul.f32 %v1610_v2, %v45_v0 }
  0x1b   :  { %1486 = vmatmul.mubr.msk.f32.gmra.mrb[8].mxu0 %vm290_vm0, %v234_v56  ;;  %v261_v56 = vmax.f32 %v197_v37, 0.0  ;;  %1525 = vmatmul.mubr.msk.f32.gmra.mrb[2].mxu1 %vm290_vm0, %v260_v51  ;;  %v263_v17 = vmax.f32 %v199_v57, 0.0  ;;  %v201_v18 = vadd.f32 %v1616_v4, %v130_v58  ;;  %v132_v19 = vmul.f32 %v1610_v2, %v61_v1  ;;  %v75_v37 = vld [vmem:[%s2981_s0 + $0x1c0] sm:$0xff]  ;;  %v66_v57 = vld [vmem:[%s2981_s0 + $0x178] sm:$0xff] }
  0x1c   :  { %1488 = vmatprep.mubr.msk.f32.mxu0 %vm290_vm0, %v235_v60  ;;  %v1817_v60 = vadd.f32 %v1616_v4, %v111_v31  ;;  %v247_v22 = vmax.f32 %v1820_v61, 0.0  ;;  %v248_v23 = vmax.f32 %v1823_v62, 0.0  ;;  %v1864_v24 = vadd.f32 %v1616_v4, %v114_v63  ;;  %v65_v31 = vld [vmem:[%s2981_s0 + $0x170] sm:$0xff] }
  0x1d   :  { %1527 = vmatprep.mubr.msk.f32.mxu1 %vm290_vm0, %v261_v56  ;;  %v1873_v27 = vmul.f32 %v1610_v2, %v47_v10  ;;  %v134_v29 = vmul.f32 %v1610_v2, %v63_v15  ;;  %v264_v34 = vmax.f32 %v200_v12, 0.0  ;;  %v202_v35 = vadd.f32 %v1616_v4, %v131_v13  ;;  %v81_v63 = vld [vmem:[%s2981_s0 + $0x1f0] sm:$0xff]  ;;  %v48_v15 = vld [vmem:[%s2981_s0 + $0xe8] sm:$0xff] }
  0x1e   :  { %v246_v21 = vmax.f32 %v1817_v60, 0.0  ;;  %v143_v36 = vmul.f32 %v1610_v2, %v72_v20  ;;  %v1898_v38 = vadd.f32 %v1616_v4, %v116_v16  ;;  %v265_v39 = vmax.f32 %v201_v18, 0.0  ;;  %v49_v16 = vld [vmem:[%s2981_s0 + $0xf0] sm:$0xff] }
  0x1f   :  { %1489 = vmatmul.mubr.msk.f32.gmra.mrb[10].mxu0 %vm290_vm0, %v236_v7  ;;  %v245_v7 = vmax.f32 %v1794_v48, 0.0  ;;  %1528 = vmatmul.mubr.msk.f32.gmra.mrb[4].mxu1 %vm290_vm0, %v262_v11  ;;  %v203_v40 = vadd.f32 %v1616_v4, %v132_v19  ;;  %v144_v41 = vmul.f32 %v1610_v2, %v73_v25  ;;  %v135_v44 = vmul.f32 %v1610_v2, %v64_v30  ;;  %v67_v48 = vld [vmem:[%s2981_s0 + $0x180] sm:$0xff]  ;;  %v69_v61 = vld [vmem:[%s2981_s0 + $0x190] sm:$0xff] }
  0x20   :  { %1491 = vmatprep.mubr.msk.f32.mxu0 %vm290_vm0, %v237_v8  ;;  %v46_v8 = vld [vmem:[%s2981_s0 + $0xd8] sm:$0xff]  ;;  %1530 = vmatprep.mubr.msk.f32.mxu1 %vm290_vm0, %v263_v17  ;;  %v136_v45 = vmul.f32 %v1610_v2, %v65_v31  ;;  %v1912_v46 = vadd.f32 %v1616_v4, %v143_v36  ;;  %v145_v47 = vmul.f32 %v1610_v2, %v74_v32  ;;  %v266_v56 = vmax.f32 %v202_v35, 0.0 }
  0x21   :  { %v1870_v26 = vmul.f32 %v1610_v2, %v46_v8  ;;  %v205_v52 = vadd.f32 %v1616_v4, %v134_v29  ;;  %v1924_v53 = vadd.f32 %v1616_v4, %v144_v41  ;;  %v147_v59 = vmul.f32 %v1610_v2, %v76_v42  ;;  %v50_v36 = vld [vmem:[%s2981_s0 + $0xf8] sm:$0xff]  ;;  %v71_v41 = vld [vmem:[%s2981_s0 + $0x1a0] sm:$0xff] }
  0x22   :  { %v1936_v58 = vadd.f32 %v1616_v4, %v145_v47  ;;  %v148_v60 = vmul.f32 %v1610_v2, %v77_v43  ;;  %v267_v0 = vmax.f32 %v203_v40, 0.0  ;;  %v249_v8 = vmax.f32 %v1864_v24, 0.0  ;;  %v70_v40 = vld [vmem:[%s2981_s0 + $0x198] sm:$0xff] }
  0x23   :  { %1492 = vmatmul.mubr.msk.f32.gmra.mrb[12].mxu0 %vm290_vm0, %v238_v9  ;;  %v115_v9 = vmul.f32 %v1610_v2, %v44_v55  ;;  %v80_v55 = vld [vmem:[%s2981_s0 + $0x1e8] sm:$0xff]  ;;  %1531 = vmatmul.mubr.msk.f32.gmra.mrb[6].mxu1 %vm290_vm0, %v264_v34  ;;  %v137_v11 = vmul.f32 %v1610_v2, %v66_v57  ;;  %v206_v18 = vadd.f32 %v1616_v4, %v135_v44 }
  0x24   :  { %1494 = vmatprep.mubr.msk.f32.mxu0 %vm290_vm0, %v239_v14  ;;  %v62_v14 = vld [vmem:[%s2981_s0 + $0x158] sm:$0xff]  ;;  %1533 = vmatprep.mubr.msk.f32.mxu1 %vm290_vm0, %v265_v39  ;;  %v151_v10 = vmul.f32 %v1610_v2, %v80_v55  ;;  %v207_v24 = vadd.f32 %v1616_v4, %v136_v45  ;;  %v138_v25 = vmul.f32 %v1610_v2, %v67_v48  ;;  %v251_v39 = vmax.f32 %v1898_v38, 0.0 }
  0x25   :  { %v133_v28 = vmul.f32 %v1610_v2, %v62_v14  ;;  %v1888_v33 = vadd.f32 %v1616_v4, %v115_v9  ;;  %v1963_v9 = vadd.f32 %v1616_v4, %v148_v60  ;;  %v152_v14 = vmul.f32 %v1610_v2, %v81_v63 }
  0x26   :  { %v1984_v19 = vadd.f32 %v1616_v4, %v151_v10  ;;  %v188_v30 = vadd.f32 %v1616_v4, %v1870_v26  ;;  %v189_v31 = vadd.f32 %v1616_v4, %v1873_v27  ;;  %v119_v32 = vmul.f32 %v1610_v2, %v48_v15 }
  0x27   :  { %1495 = vmatmul.mubr.msk.f32.gmra.mrb[14].mxu0 %vm290_vm0, %v240_v50  ;;  %v79_v50 = vld [vmem:[%s2981_s0 + $0x1e0] sm:$0xff]  ;;  %v204_v51 = vadd.f32 %v1616_v4, %v133_v28  ;;  %1534 = vmatmul.mubr.msk.f32.gmra.mrb[8].mxu1 %vm290_vm0, %v266_v56  ;;  %v68_v28 = vld [vmem:[%s2981_s0 + $0x188] sm:$0xff]  ;;  %v1997_v29 = vadd.f32 %v1616_v4, %v152_v14  ;;  %v120_v34 = vmul.f32 %v1610_v2, %v49_v16  ;;  %v250_v35 = vmax.f32 %v1888_v33, 0.0 }
  0x28   :  { %1497 = vmatprep.mubr.msk.f32.mxu0 %vm290_vm0, %v241_v54  ;;  %v146_v54 = vmul.f32 %v1610_v2, %v75_v37  ;;  %1536 = vmatprep.mubr.msk.f32.mxu1 %vm290_vm0, %v267_v0  ;;  %v270_v26 = vmax.f32 %v206_v18, 0.0  ;;  %v208_v37 = vadd.f32 %v1616_v4, %v137_v11  ;;  %v139_v27 = vmul.f32 %v1610_v2, %v68_v28 }
  0x29   :  { %v268_v17 = vmax.f32 %v204_v51, 0.0  ;;  %v271_v62 = vmax.f32 %v207_v24, 0.0  ;;  %v140_v33 = vmul.f32 %v1610_v2, %v69_v61  ;;  %v190_v42 = vadd.f32 %v1616_v4, %v119_v32 }
  0x2a   :  { %v1948_v1 = vadd.f32 %v1616_v4, %v146_v54  ;;  %v191_v43 = vadd.f32 %v1616_v4, %v120_v34  ;;  %v121_v38 = vmul.f32 %v1610_v2, %v50_v36  ;;  %v252_v44 = vmax.f32 %v188_v30, 0.0 }
  0x2b   :  { %1498 = vmatmul.mubr.msk.f32.gmra.mrb[16].mxu0 %vm290_vm0, %v242_v3  ;;  %v149_v3 = vmul.f32 %v1610_v2, %v78_v49  ;;  %1537 = vmatmul.mubr.msk.f32.gmra.mrb[10].mxu1 %vm290_vm0, %v268_v17  ;;  %v272_v45 = vmax.f32 %v208_v37, 0.0  ;;  %v210_v47 = vadd.f32 %v1616_v4, %v139_v27  ;;  %v141_v49 = vmul.f32 %v1610_v2, %v70_v40 }
  0x2c   :  { %1500 = vmatprep.mubr.msk.f32.mxu0 %vm290_vm0, %v243_v5  ;;  %v150_v5 = vmul.f32 %v1610_v2, %v79_v50  ;;  %v253_v50 = vmax.f32 %v189_v31, 0.0  ;;  %v142_v54 = vmul.f32 %v1610_v2, %v71_v41  ;;  %v254_v55 = vmax.f32 %v190_v42, 0.0 }
  0x2d   :  { %v1968_v12 = vadd.f32 %v1616_v4, %v149_v3  ;;  %v192_v56 = vadd.f32 %v1616_v4, %v121_v38  ;;  %v274_v57 = vmax.f32 %v210_v47, 0.0  ;;  %v255_v60 = vmax.f32 %v191_v43, 0.0 }
  0x2e   :  { %v1971_v13 = vadd.f32 %v1616_v4, %v150_v5  ;;  %v213_v0 = vadd.f32 %v1616_v4, %v142_v54  ;;  %v281_v48 = vmax.f32 %v1948_v1, 0.0  ;;  %v286_v1 = vmax.f32 %v1984_v19, 0.0 }
  0x2f   :  { %1501 = vmatmul.mubr.msk.f32.gmra.mrb[18].mxu0 %vm290_vm0, %v244_v6  ;;  %v82_v6 = vld [vmem:[%s2981_s0 + $0x1f8] sm:$0xff] }
  0x30   :  { %1503 = vmatprep.mubr.msk.f32.mxu0 %vm290_vm0, %v245_v7  ;;  %v1960_v7 = vadd.f32 %v1616_v4, %v147_v59  ;;  %v153_v20 = vmul.f32 %v1610_v2, %v82_v6  ;;  %v212_v59 = vadd.f32 %v1616_v4, %v141_v49  ;;  %v256_v2 = vmax.f32 %v192_v56, 0.0 }
  0x31   :  { %v277_v5 = vmax.f32 %v213_v0, 0.0  ;;  %v278_v6 = vmax.f32 %v1912_v46, 0.0  ;;  %v283_v46 = vmax.f32 %v1963_v9, 0.0 }
  0x32   :  { %v276_v3 = vmax.f32 %v212_v59, 0.0  ;;  %v282_v10 = vmax.f32 %v1960_v7, 0.0  ;;  %v287_v7 = vmax.f32 %v1997_v29, 0.0 }
  0x33   :  { %1504 = vmatmul.mubr.msk.f32.gmra.mrb[20].mxu0 %vm290_vm0, %v246_v21  ;;  %v269_v21 = vmax.f32 %v205_v52, 0.0  ;;  %v211_v52 = vadd.f32 %v1616_v4, %v140_v33 }
  0x34   :  { %1506 = vmatprep.mubr.msk.f32.mxu0 %vm290_vm0, %v247_v22  ;;  %v2003_v22 = vadd.f32 %v1616_v4, %v153_v20 }
  0x35   :  { %1539 = vmatprep.mubr.msk.f32.mxu1 %vm290_vm0, %v269_v21  ;;  %v275_v63 = vmax.f32 %v211_v52, 0.0 }
  0x36   :  { %1540 = vmatmul.mubr.msk.f32.gmra.mrb[12].mxu1 %vm290_vm0, %v270_v26  ;;  %v288_v9 = vmax.f32 %v2003_v22, 0.0 }
  0x37   :  { %1507 = vmatmul.mubr.msk.f32.gmra.mrb[22].mxu0 %vm290_vm0, %v248_v23  ;;  %v209_v23 = vadd.f32 %v1616_v4, %v138_v25  ;;  %1542 = vmatprep.mubr.msk.f32.mxu1 %vm290_vm0, %v271_v62  ;;  %v279_v4 = vmax.f32 %v1924_v53, 0.0  ;;  %v284_v53 = vmax.f32 %v1968_v12, 0.0 }
  0x38   :  { %1509 = vmatprep.mubr.msk.f32.mxu0 %vm290_vm0, %v249_v8  ;;  %v280_v8 = vmax.f32 %v1936_v58, 0.0  ;;  %v285_v58 = vmax.f32 %v1971_v13, 0.0 }
  0x39   :  { %v273_v51 = vmax.f32 %v209_v23, 0.0 }
  0x3a   :  { %1543 = vmatmul.mubr.msk.f32.gmra.mrb[14].mxu1 %vm290_vm0, %v272_v45 }
  0x3b   :  { %1510 = vmatmul.mubr.msk.f32.gmra.mrb[24].mxu0 %vm290_vm0, %v250_v35  ;;  %1545 = vmatprep.mubr.msk.f32.mxu1 %vm290_vm0, %v273_v51 }
  0x3c   :  { %1512 = vmatprep.mubr.msk.f32.mxu0 %vm290_vm0, %v251_v39 }
  0x3e   :  { %1546 = vmatmul.mubr.msk.f32.gmra.mrb[16].mxu1 %vm290_vm0, %v274_v57 }
  0x3f   :  { %1513 = vmatmul.mubr.msk.f32.gmra.mrb[26].mxu0 %vm290_vm0, %v252_v44  ;;  %1548 = vmatprep.mubr.msk.f32.mxu1 %vm290_vm0, %v275_v63 }
  0x40   :  { %1515 = vmatprep.mubr.msk.f32.mxu0 %vm290_vm0, %v253_v50 }
  0x42   :  { %1549 = vmatmul.mubr.msk.f32.gmra.mrb[18].mxu1 %vm290_vm0, %v276_v3 }
  0x43   :  { %1516 = vmatmul.mubr.msk.f32.gmra.mrb[28].mxu0 %vm290_vm0, %v254_v55  ;;  %1551 = vmatprep.mubr.msk.f32.mxu1 %vm290_vm0, %v277_v5 }
  0x44   :  { %1518 = vmatprep.mubr.msk.f32.mxu0 %vm290_vm0, %v255_v60 }
  0x46   :  { %1552 = vmatmul.mubr.msk.f32.gmra.mrb[20].mxu1 %vm290_vm0, %v278_v6 }
  0x47   :  { %1519 = vmatmul.mubr.msk.f32.gmra.mrb[30].mxu0 %vm290_vm0, %v256_v2  ;;  %1554 = vmatprep.mubr.msk.f32.mxu1 %vm290_vm0, %v279_v4 }
  0x4a   :  { %1555 = vmatmul.mubr.msk.f32.gmra.mrb[22].mxu1 %vm290_vm0, %v280_v8 }
  0x4b   :  { %1557 = vmatprep.mubr.msk.f32.mxu1 %vm290_vm0, %v281_v48 }
  0x4e   :  { %1558 = vmatmul.mubr.msk.f32.gmra.mrb[24].mxu1 %vm290_vm0, %v282_v10 }
  0x4f   :  { %1560 = vmatprep.mubr.msk.f32.mxu1 %vm290_vm0, %v283_v46 }
  0x52   :  { %1561 = vmatmul.mubr.msk.f32.gmra.mrb[26].mxu1 %vm290_vm0, %v284_v53 }
  0x53   :  { %1563 = vmatprep.mubr.msk.f32.mxu1 %vm290_vm0, %v285_v58 }
  0x56   :  { %1564 = vmatmul.mubr.msk.f32.gmra.mrb[28].mxu1 %vm290_vm0, %v286_v1 }
  0x57   :  { %1566 = vmatprep.mubr.msk.f32.mxu1 %vm290_vm0, %v287_v7 }
  0x5a   :  { %1567 = vmatmul.mubr.msk.f32.gmra.mrb[30].mxu1 %vm290_vm0, %v288_v9 }
  0xde   :  { %v2079_v11 = vpop.f32.mrb[0].mxu0 }
  0xdf   :  { %870 = vst.msk [vmem:[%s2984_s4 + $0x8] sm:$0xff] %vm868_vm1, %v2079_v11  ;;  %v934_v12 = vsel %vm868_vm1, %v2079_v11, 0.0  ;;  %v2088_v13 = vpop.f32.mrb[1].mxu0 }
  0xe0   :  { %869 = vst.msk [vmem:[%s2984_s4] sm:$0xff] %vm868_vm1, %v2088_v13  ;;  %v933_v14 = vsel %vm868_vm1, %v2088_v13, 0.0 }
  0xe1   :  { %v935_v15 = vadd.f32 %v934_v12, %v933_v14 }
  0xe2   :  { %v2097_v16 = vpop.f32.mrb[2].mxu0 }
  0xe3   :  { %872 = vst.msk [vmem:[%s2984_s4 + $0x18] sm:$0xff] %vm868_vm1, %v2097_v16  ;;  %v2104_v17 = vpop.f32.mrb[3].mxu0  ;;  %v938_v20 = vsel %vm868_vm1, %v2097_v16, 0.0 }
  0xe4   :  { %871 = vst.msk [vmem:[%s2984_s4 + $0x10] sm:$0xff] %vm868_vm1, %v2104_v17  ;;  %v936_v18 = vsel %vm868_vm1, %v2104_v17, 0.0 }
  0xe5   :  { %v937_v19 = vadd.f32 %v936_v18, %v935_v15 }
  0xe6   :  { %v2115_v21 = vpop.f32.mrb[4].mxu0 }
  0xe7   :  { %874 = vst.msk [vmem:[%s2984_s4 + $0x28] sm:$0xff] %vm868_vm1, %v2115_v21  ;;  %v2122_v24 = vpop.f32.mrb[5].mxu0  ;;  %v939_v25 = vadd.f32 %v938_v20, %v937_v19  ;;  %v942_v61 = vsel %vm868_vm1, %v2115_v21, 0.0 }
  0xe8   :  { %873 = vst.msk [vmem:[%s2984_s4 + $0x20] sm:$0xff] %vm868_vm1, %v2122_v24  ;;  %v940_v28 = vsel %vm868_vm1, %v2122_v24, 0.0 }
  0xe9   :  { %v941_v29 = vadd.f32 %v940_v28, %v939_v25 }
  0xea   :  { %v2133_v22 = vpop.f32.mrb[6].mxu0  ;;  %v2189_v44 = vpop.f32.mrb[0].mxu1 }
  0xeb   :  { %876 = vst.msk [vmem:[%s2984_s4 + $0x38] sm:$0xff] %vm868_vm1, %v2133_v22  ;;  %v2140_v30 = vpop.f32.mrb[7].mxu0  ;;  %v943_v31 = vadd.f32 %v942_v61, %v941_v29  ;;  %v946_v35 = vsel %vm868_vm1, %v2133_v22, 0.0  ;;  %902 = vst.msk [vmem:[%s2984_s4 + $0x108] sm:$0xff] %vm868_vm1, %v2189_v44  ;;  %v2203_v49 = vpop.f32.mrb[1].mxu1 }
  0xec   :  { %875 = vst.msk [vmem:[%s2984_s4 + $0x30] sm:$0xff] %vm868_vm1, %v2140_v30  ;;  %v944_v32 = vsel %vm868_vm1, %v2140_v30, 0.0  ;;  %3003 = vst [vmem:[#allocation2_spill] sm:$0xff] %v2203_v49 }
  0xed   :  { %v945_v34 = vadd.f32 %v944_v32, %v943_v31  ;;  %901 = vst.msk [vmem:[%s2984_s4 + $0x100] sm:$0xff] %vm868_vm1, %v2203_v49 }
  0xee   :  { %v2151_v36 = vpop.f32.mrb[8].mxu0  ;;  %v2221_v55 = vpop.f32.mrb[2].mxu1 }
  0xef   :  { %878 = vst.msk [vmem:[%s2984_s4 + $0x48] sm:$0xff] %vm868_vm1, %v2151_v36  ;;  %v2158_v26 = vpop.f32.mrb[9].mxu0  ;;  %v947_v37 = vadd.f32 %v946_v35, %v945_v34  ;;  %v950_v62 = vsel %vm868_vm1, %v2151_v36, 0.0  ;;  %904 = vst.msk [vmem:[%s2984_s4 + $0x118] sm:$0xff] %vm868_vm1, %v2221_v55  ;;  %v2235_v59 = vpop.f32.mrb[3].mxu1 }
  0xf0   :  { %877 = vst.msk [vmem:[%s2984_s4 + $0x40] sm:$0xff] %vm868_vm1, %v2158_v26  ;;  %v948_v27 = vsel %vm868_vm1, %v2158_v26, 0.0  ;;  %903 = vst.msk [vmem:[%s2984_s4 + $0x110] sm:$0xff] %vm868_vm1, %v2235_v59 }
  0xf1   :  { %v949_v39 = vadd.f32 %v948_v27, %v947_v37 }
  0xf2   :  { %v2169_v23 = vpop.f32.mrb[10].mxu0  ;;  %v2253_v3 = vpop.f32.mrb[4].mxu1 }
  0xf3   :  { %880 = vst.msk [vmem:[%s2984_s4 + $0x58] sm:$0xff] %vm868_vm1, %v2169_v23  ;;  %v2176_v33 = vpop.f32.mrb[11].mxu0  ;;  %v951_v40 = vadd.f32 %v950_v62, %v949_v39  ;;  %v954_v43 = vsel %vm868_vm1, %v2169_v23, 0.0  ;;  %906 = vst.msk [vmem:[%s2984_s4 + $0x128] sm:$0xff] %vm868_vm1, %v2253_v3  ;;  %v2267_v4 = vpop.f32.mrb[5].mxu1 }
  0xf4   :  { %879 = vst.msk [vmem:[%s2984_s4 + $0x50] sm:$0xff] %vm868_vm1, %v2176_v33  ;;  %v952_v41 = vsel %vm868_vm1, %v2176_v33, 0.0  ;;  %905 = vst.msk [vmem:[%s2984_s4 + $0x120] sm:$0xff] %vm868_vm1, %v2267_v4 }
  0xf5   :  { %v953_v42 = vadd.f32 %v952_v41, %v951_v40 }
  0xf6   :  { %v2187_v38 = vpop.f32.mrb[12].mxu0  ;;  %v2285_v53 = vpop.f32.mrb[6].mxu1 }
  0xf7   :  { %882 = vst.msk [vmem:[%s2984_s4 + $0x68] sm:$0xff] %vm868_vm1, %v2187_v38  ;;  %v2196_v45 = vpop.f32.mrb[13].mxu0  ;;  %v955_v47 = vadd.f32 %v954_v43, %v953_v42  ;;  %v958_v52 = vsel %vm868_vm1, %v2187_v38, 0.0  ;;  %908 = vst.msk [vmem:[%s2984_s4 + $0x138] sm:$0xff] %vm868_vm1, %v2285_v53  ;;  %v2299_v7 = vpop.f32.mrb[7].mxu1 }
  0xf8   :  { %881 = vst.msk [vmem:[%s2984_s4 + $0x60] sm:$0xff] %vm868_vm1, %v2196_v45  ;;  %v956_v50 = vsel %vm868_vm1, %v2196_v45, 0.0  ;;  %907 = vst.msk [vmem:[%s2984_s4 + $0x130] sm:$0xff] %vm868_vm1, %v2299_v7 }
  0xf9   :  { %v957_v51 = vadd.f32 %v956_v50, %v955_v47 }
  0xfa   :  { %v2219_v54 = vpop.f32.mrb[14].mxu0  ;;  %v2317_v18 = vpop.f32.mrb[8].mxu1 }
  0xfb   :  { %884 = vst.msk [vmem:[%s2984_s4 + $0x78] sm:$0xff] %vm868_vm1, %v2219_v54  ;;  %v2228_v56 = vpop.f32.mrb[15].mxu0  ;;  %v959_v57 = vadd.f32 %v958_v52, %v957_v51  ;;  %v962_v0 = vsel %vm868_vm1, %v2219_v54, 0.0  ;;  %910 = vst.msk [vmem:[%s2984_s4 + $0x148] sm:$0xff] %vm868_vm1, %v2317_v18  ;;  %v2331_v25 = vpop.f32.mrb[9].mxu1 }
  0xfc   :  { %883 = vst.msk [vmem:[%s2984_s4 + $0x70] sm:$0xff] %vm868_vm1, %v2228_v56  ;;  %v960_v60 = vsel %vm868_vm1, %v2228_v56, 0.0  ;;  %909 = vst.msk [vmem:[%s2984_s4 + $0x140] sm:$0xff] %vm868_vm1, %v2331_v25 }
  0xfd   :  { %v961_v63 = vadd.f32 %v960_v60, %v959_v57 }
  0xfe   :  { %v2251_v2 = vpop.f32.mrb[16].mxu0  ;;  %v2349_v32 = vpop.f32.mrb[10].mxu1 }
  0xff   :  { %3004 = vst [vmem:[#allocation3_spill] sm:$0xff] %v2251_v2  ;;  %886 = vst.msk [vmem:[%s2984_s4 + $0x88] sm:$0xff] %vm868_vm1, %v2251_v2  ;;  %v2260_v5 = vpop.f32.mrb[17].mxu0  ;;  %v963_v6 = vadd.f32 %v962_v0, %v961_v63  ;;  %v966_v10 = vsel %vm868_vm1, %v2251_v2, 0.0  ;;  %v2363_v37 = vpop.f32.mrb[11].mxu1 }
 0x100   :  { %3005 = vst [vmem:[#allocation4_spill] sm:$0xff] %v2260_v5  ;;  %885 = vst.msk [vmem:[%s2984_s4 + $0x80] sm:$0xff] %vm868_vm1, %v2260_v5  ;;  %v964_v8 = vsel %vm868_vm1, %v2260_v5, 0.0 }
 0x101   :  { %v965_v48 = vadd.f32 %v964_v8, %v963_v6  ;;  %912 = vst.msk [vmem:[%s2984_s4 + $0x158] sm:$0xff] %vm868_vm1, %v2349_v32  ;;  %911 = vst.msk [vmem:[%s2984_s4 + $0x150] sm:$0xff] %vm868_vm1, %v2363_v37 }
 0x102   :  { %v2283_v46 = vpop.f32.mrb[18].mxu0 }
 0x103   :  { %3006 = vst [vmem:[#allocation5_spill] sm:$0xff] %v2283_v46  ;;  %888 = vst.msk [vmem:[%s2984_s4 + $0x98] sm:$0xff] %vm868_vm1, %v2283_v46  ;;  %v2292_v58 = vpop.f32.mrb[19].mxu0  ;;  %v967_v1 = vadd.f32 %v966_v10, %v965_v48  ;;  %v970_v14 = vsel %vm868_vm1, %v2283_v46, 0.0 }
 0x104   :  { %3007 = vst [vmem:[#allocation6_spill] sm:$0xff] %v2292_v58  ;;  %887 = vst.msk [vmem:[%s2984_s4 + $0x90] sm:$0xff] %vm868_vm1, %v2292_v58  ;;  %v968_v9 = vsel %vm868_vm1, %v2292_v58, 0.0 }
 0x105   :  { %v969_v12 = vadd.f32 %v968_v9, %v967_v1 }
 0x106   :  { %v2315_v15 = vpop.f32.mrb[20].mxu0 }
 0x107   :  { %3008 = vst [vmem:[#allocation7_spill] sm:$0xff] %v2315_v15  ;;  %890 = vst.msk [vmem:[%s2984_s4 + $0xa8] sm:$0xff] %vm868_vm1, %v2315_v15  ;;  %v2324_v19 = vpop.f32.mrb[21].mxu0  ;;  %v971_v20 = vadd.f32 %v970_v14, %v969_v12  ;;  %v974_v61 = vsel %vm868_vm1, %v2315_v15, 0.0 }
 0x108   :  { %3009 = vst [vmem:[#allocation8_spill] sm:$0xff] %v2324_v19  ;;  %889 = vst.msk [vmem:[%s2984_s4 + $0xa0] sm:$0xff] %vm868_vm1, %v2324_v19  ;;  %v972_v28 = vsel %vm868_vm1, %v2324_v19, 0.0 }
 0x109   :  { %v973_v29 = vadd.f32 %v972_v28, %v971_v20  ;;  %v2381_v41 = vpop.f32.mrb[12].mxu1 }
 0x10a   :  { %v2347_v31 = vpop.f32.mrb[22].mxu0  ;;  %914 = vst.msk [vmem:[%s2984_s4 + $0x168] sm:$0xff] %vm868_vm1, %v2381_v41  ;;  %v2395_v47 = vpop.f32.mrb[13].mxu1 }
 0x10b   :  { %3010 = vst [vmem:[#allocation9_spill] sm:$0xff] %v2347_v31  ;;  %892 = vst.msk [vmem:[%s2984_s4 + $0xb8] sm:$0xff] %vm868_vm1, %v2347_v31  ;;  %v2356_v34 = vpop.f32.mrb[23].mxu0  ;;  %v975_v35 = vadd.f32 %v974_v61, %v973_v29  ;;  %v978_v62 = vsel %vm868_vm1, %v2347_v31, 0.0 }
 0x10c   :  { %3011 = vst [vmem:[#allocation10_spill] sm:$0xff] %v2356_v34  ;;  %891 = vst.msk [vmem:[%s2984_s4 + $0xb0] sm:$0xff] %vm868_vm1, %v2356_v34  ;;  %v976_v27 = vsel %vm868_vm1, %v2356_v34, 0.0 }
 0x10d   :  { %v977_v39 = vadd.f32 %v976_v27, %v975_v35  ;;  %913 = vst.msk [vmem:[%s2984_s4 + $0x160] sm:$0xff] %vm868_vm1, %v2395_v47  ;;  %v2413_v60 = vpop.f32.mrb[14].mxu1 }
 0x10e   :  { %v2379_v40 = vpop.f32.mrb[24].mxu0  ;;  %916 = vst.msk [vmem:[%s2984_s4 + $0x178] sm:$0xff] %vm868_vm1, %v2413_v60  ;;  %v2427_v6 = vpop.f32.mrb[15].mxu1  ;;  %v1026_v15 = vsel %vm868_vm1, %v2413_v60, 0.0 }
 0x10f   :  { %3012 = vst [vmem:[#allocation11_spill] sm:$0xff] %v2379_v40  ;;  %894 = vst.msk [vmem:[%s2984_s4 + $0xc8] sm:$0xff] %vm868_vm1, %v2379_v40  ;;  %v2388_v42 = vpop.f32.mrb[25].mxu0  ;;  %v979_v43 = vadd.f32 %v978_v62, %v977_v39  ;;  %v982_v52 = vsel %vm868_vm1, %v2379_v40, 0.0  ;;  %v1022_v40 = vsel %vm868_vm1, %v2381_v41, 0.0 }
 0x110   :  { %3013 = vst [vmem:[#allocation12_spill] sm:$0xff] %v2388_v42  ;;  %893 = vst.msk [vmem:[%s2984_s4 + $0xc0] sm:$0xff] %vm868_vm1, %v2388_v42  ;;  %v980_v50 = vsel %vm868_vm1, %v2388_v42, 0.0  ;;  %v1024_v42 = vsel %vm868_vm1, %v2427_v6, 0.0 }
 0x111   :  { %v981_v51 = vadd.f32 %v980_v50, %v979_v43  ;;  %915 = vst.msk [vmem:[%s2984_s4 + $0x170] sm:$0xff] %vm868_vm1, %v2427_v6  ;;  %v2445_v9 = vpop.f32.mrb[16].mxu1 }
 0x112   :  { %v2411_v57 = vpop.f32.mrb[26].mxu0  ;;  %918 = vst.msk [vmem:[%s2984_s4 + $0x188] sm:$0xff] %vm868_vm1, %v2445_v9  ;;  %v2459_v20 = vpop.f32.mrb[17].mxu1 }
 0x113   :  { %3014 = vst [vmem:[#allocation13_spill] sm:$0xff] %v2411_v57  ;;  %896 = vst.msk [vmem:[%s2984_s4 + $0xd8] sm:$0xff] %vm868_vm1, %v2411_v57  ;;  %v2420_v63 = vpop.f32.mrb[27].mxu0  ;;  %v983_v0 = vadd.f32 %v982_v52, %v981_v51  ;;  %v986_v10 = vsel %vm868_vm1, %v2411_v57, 0.0 }
 0x114   :  { %3015 = vst [vmem:[#allocation14_spill] sm:$0xff] %v2420_v63  ;;  %895 = vst.msk [vmem:[%s2984_s4 + $0xd0] sm:$0xff] %vm868_vm1, %v2420_v63  ;;  %v984_v8 = vsel %vm868_vm1, %v2420_v63, 0.0 }
 0x115   :  { %v985_v48 = vadd.f32 %v984_v8, %v983_v0  ;;  %917 = vst.msk [vmem:[%s2984_s4 + $0x180] sm:$0xff] %vm868_vm1, %v2459_v20  ;;  %v2477_v27 = vpop.f32.mrb[18].mxu1  ;;  %v996_v0 = vsel %vm868_vm1, %v2203_v49, 0.0 }
 0x116   :  { %v2443_v1 = vpop.f32.mrb[28].mxu0  ;;  %920 = vst.msk [vmem:[%s2984_s4 + $0x198] sm:$0xff] %vm868_vm1, %v2477_v27  ;;  %v2491_v43 = vpop.f32.mrb[19].mxu1 }
 0x117   :  { %3016 = vst [vmem:[#allocation15_spill] sm:$0xff] %v2443_v1  ;;  %898 = vst.msk [vmem:[%s2984_s4 + $0xe8] sm:$0xff] %vm868_vm1, %v2443_v1  ;;  %v2452_v12 = vpop.f32.mrb[29].mxu0  ;;  %v987_v14 = vadd.f32 %v986_v10, %v985_v48  ;;  %v990_v61 = vsel %vm868_vm1, %v2443_v1, 0.0 }
 0x118   :  { %3017 = vst [vmem:[#allocation16_spill] sm:$0xff] %v2452_v12  ;;  %897 = vst.msk [vmem:[%s2984_s4 + $0xe0] sm:$0xff] %vm868_vm1, %v2452_v12  ;;  %v988_v28 = vsel %vm868_vm1, %v2452_v12, 0.0 }
 0x119   :  { %v989_v29 = vadd.f32 %v988_v28, %v987_v14  ;;  %919 = vst.msk [vmem:[%s2984_s4 + $0x190] sm:$0xff] %vm868_vm1, %v2491_v43  ;;  %v2509_v8 = vpop.f32.mrb[20].mxu1  ;;  %v998_v28 = vsel %vm868_vm1, %v2189_v44, 0.0 }
 0x11a   :  { %v2475_v35 = vpop.f32.mrb[30].mxu0  ;;  %922 = vst.msk [vmem:[%s2984_s4 + $0x1a8] sm:$0xff] %vm868_vm1, %v2509_v8  ;;  %v2516_v10 = vpop.f32.mrb[21].mxu1 }
 0x11b   :  { %3018 = vst [vmem:[#allocation17_spill] sm:$0xff] %v2475_v35  ;;  %900 = vst.msk [vmem:[%s2984_s4 + $0xf8] sm:$0xff] %vm868_vm1, %v2475_v35  ;;  %v2484_v39 = vpop.f32.mrb[31].mxu0  ;;  %v991_v62 = vadd.f32 %v990_v61, %v989_v29  ;;  %v994_v52 = vsel %vm868_vm1, %v2475_v35, 0.0  ;;  %v1000_v29 = vsel %vm868_vm1, %v2235_v59, 0.0 }
 0x11c   :  { %3019 = vst [vmem:[#allocation18_spill] sm:$0xff] %v2484_v39  ;;  %899 = vst.msk [vmem:[%s2984_s4 + $0xf0] sm:$0xff] %vm868_vm1, %v2484_v39  ;;  %v992_v50 = vsel %vm868_vm1, %v2484_v39, 0.0 }
 0x11d   :  { %v993_v51 = vadd.f32 %v992_v50, %v991_v62  ;;  %921 = vst.msk [vmem:[%s2984_s4 + $0x1a0] sm:$0xff] %vm868_vm1, %v2516_v10  ;;  %v2527_v61 = vpop.f32.mrb[22].mxu1 }
 0x11e   :  { %924 = vst.msk [vmem:[%s2984_s4 + $0x1b8] sm:$0xff] %vm868_vm1, %v2527_v61  ;;  %v2534_v50 = vpop.f32.mrb[23].mxu1 }
 0x11f   :  { %v995_v48 = vadd.f32 %v994_v52, %v993_v51  ;;  %923 = vst.msk [vmem:[%s2984_s4 + $0x1b0] sm:$0xff] %vm868_vm1, %v2534_v50  ;;  %v1002_v52 = vsel %vm868_vm1, %v2221_v55, 0.0 }
 0x121   :  { %v997_v14 = vadd.f32 %v996_v0, %v995_v48  ;;  %v1004_v0 = vsel %vm868_vm1, %v2267_v4, 0.0  ;;  %v2545_v48 = vpop.f32.mrb[24].mxu1 }
 0x122   :  { %926 = vst.msk [vmem:[%s2984_s4 + $0x1c8] sm:$0xff] %vm868_vm1, %v2545_v48 }
 0x123   :  { %v999_v62 = vadd.f32 %v998_v28, %v997_v14  ;;  %v2552_v28 = vpop.f32.mrb[25].mxu1 }
 0x124   :  { %925 = vst.msk [vmem:[%s2984_s4 + $0x1c0] sm:$0xff] %vm868_vm1, %v2552_v28 }
 0x125   :  { %v1001_v51 = vadd.f32 %v1000_v29, %v999_v62  ;;  %v1006_v62 = vsel %vm868_vm1, %v2253_v3, 0.0 }
 0x127   :  { %v1003_v14 = vadd.f32 %v1002_v52, %v1001_v51  ;;  %v1008_v51 = vsel %vm868_vm1, %v2299_v7, 0.0  ;;  %v2563_v52 = vpop.f32.mrb[26].mxu1 }
 0x128   :  { %928 = vst.msk [vmem:[%s2984_s4 + $0x1d8] sm:$0xff] %vm868_vm1, %v2563_v52  ;;  %v2570_v35 = vpop.f32.mrb[27].mxu1 }
 0x129   :  { %v1005_v29 = vadd.f32 %v1004_v0, %v1003_v14  ;;  %927 = vst.msk [vmem:[%s2984_s4 + $0x1d0] sm:$0xff] %vm868_vm1, %v2570_v35  ;;  %v1010_v14 = vsel %vm868_vm1, %v2285_v53, 0.0 }
 0x12b   :  { %v1007_v49 = vadd.f32 %v1006_v62, %v1005_v29  ;;  %v1012_v29 = vsel %vm868_vm1, %v2331_v25, 0.0  ;;  %v2581_v62 = vpop.f32.mrb[28].mxu1 }
 0x12c   :  { %930 = vst.msk [vmem:[%s2984_s4 + $0x1e8] sm:$0xff] %vm868_vm1, %v2581_v62  ;;  %v2588_v1 = vpop.f32.mrb[29].mxu1 }
 0x12d   :  { %v1009_v0 = vadd.f32 %v1008_v51, %v1007_v49  ;;  %929 = vst.msk [vmem:[%s2984_s4 + $0x1e0] sm:$0xff] %vm868_vm1, %v2588_v1  ;;  %v1014_v51 = vsel %vm868_vm1, %v2317_v18, 0.0 }
 0x12f   :  { %v1011_v39 = vadd.f32 %v1010_v14, %v1009_v0  ;;  %v1016_v0 = vsel %vm868_vm1, %v2363_v37, 0.0  ;;  %v2599_v14 = vpop.f32.mrb[30].mxu1 }
 0x130   :  { %932 = vst.msk [vmem:[%s2984_s4 + $0x1f8] sm:$0xff] %vm868_vm1, %v2599_v14  ;;  %v2606_v57 = vpop.f32.mrb[31].mxu1 }
 0x131   :  { %v1013_v49 = vadd.f32 %v1012_v29, %v1011_v39  ;;  %931 = vst.msk [vmem:[%s2984_s4 + $0x1f0] sm:$0xff] %vm868_vm1, %v2606_v57  ;;  %v1018_v29 = vsel %vm868_vm1, %v2349_v32, 0.0 }
 0x133   :  { %v1015_v12 = vadd.f32 %v1014_v51, %v1013_v49  ;;  %v1020_v49 = vsel %vm868_vm1, %v2395_v47, 0.0 }
 0x135   :  { %v1017_v39 = vadd.f32 %v1016_v0, %v1015_v12  ;;  %v1028_v12 = vsel %vm868_vm1, %v2459_v20, 0.0 }
 0x137   :  { %v1019_v51 = vadd.f32 %v1018_v29, %v1017_v39  ;;  %v1030_v39 = vsel %vm868_vm1, %v2445_v9, 0.0  ;;  %v1032_v29 = vsel %vm868_vm1, %v2491_v43, 0.0 }
 0x139   :  { %v1021_v63 = vadd.f32 %v1020_v49, %v1019_v51 }
 0x13b   :  { %v1023_v31 = vadd.f32 %v1022_v40, %v1021_v63  ;;  %v1034_v40 = vsel %vm868_vm1, %v2477_v27, 0.0 }
 0x13d   :  { %v1025_v34 = vadd.f32 %v1024_v42, %v1023_v31  ;;  %v1036_v31 = vsel %vm868_vm1, %v2516_v10, 0.0 }
 0x13f   :  { %v1027_v0 = vadd.f32 %v1026_v15, %v1025_v34  ;;  %v1038_v15 = vsel %vm868_vm1, %v2509_v8, 0.0  ;;  %v1040_v34 = vsel %vm868_vm1, %v2534_v50, 0.0 }
 0x141   :  { %v1029_v19 = vadd.f32 %v1028_v12, %v1027_v0 }
 0x143   :  { %v1031_v49 = vadd.f32 %v1030_v39, %v1029_v19  ;;  %v1042_v19 = vsel %vm868_vm1, %v2527_v61, 0.0  ;;  %v1044_v39 = vsel %vm868_vm1, %v2552_v28, 0.0 }
 0x145   :  { %v1033_v51 = vadd.f32 %v1032_v29, %v1031_v49 }
 0x147   :  { %v1035_v42 = vadd.f32 %v1034_v40, %v1033_v51  ;;  %v1046_v51 = vsel %vm868_vm1, %v2545_v48, 0.0  ;;  %v1048_v40 = vsel %vm868_vm1, %v2570_v35, 0.0 }
 0x149   :  { %v1037_v63 = vadd.f32 %v1036_v31, %v1035_v42 }
 0x14b   :  { %v1039_v12 = vadd.f32 %v1038_v15, %v1037_v63  ;;  %v1050_v63 = vsel %vm868_vm1, %v2563_v52, 0.0  ;;  %v1052_v15 = vsel %vm868_vm1, %v2588_v1, 0.0 }
 0x14d   :  { %v1041_v0 = vadd.f32 %v1040_v34, %v1039_v12 }
 0x14f   :  { %v1043_v29 = vadd.f32 %v1042_v19, %v1041_v0  ;;  %v1054_v0 = vsel %vm868_vm1, %v2581_v62, 0.0  ;;  %v1056_v19 = vsel %vm868_vm1, %v2606_v57, 0.0 }
 0x151   :  { %v1045_v49 = vadd.f32 %v1044_v39, %v1043_v29 }
 0x153   :  { %v1047_v31 = vadd.f32 %v1046_v51, %v1045_v49  ;;  %v1058_v49 = vsel %vm868_vm1, %v2599_v14, 0.0 }
 0x155   :  { %v1049_v42 = vadd.f32 %v1048_v40, %v1047_v31 }
 0x157   :  { %v1051_v34 = vadd.f32 %v1050_v63, %v1049_v42 }
 0x159   :  { %v1053_v12 = vadd.f32 %v1052_v15, %v1051_v34 }
 0x15b   :  { %v1055_v39 = vadd.f32 %v1054_v0, %v1053_v12 }
 0x15d   :  { %v1057_v29 = vadd.f32 %v1056_v19, %v1055_v39 }
 0x15f   :  { %v1059_v51 = vadd.f32 %v1058_v49, %v1057_v29 }
 0x161   :  { %v1060_v40 = vrot.slane %v1059_v51, 4 }
 0x163   :  { %v1061_v31 = vadd.f32 %v1060_v40, %v1059_v51 }
 0x165   :  { %v1062_v46 = vrot.slane %v1061_v31, 2 }
 0x167   :  { %v1063_v58 = vadd.f32 %v1062_v46, %v1061_v31 }
 0x169   :  { %v1064_v2 = vrot.slane %v1063_v58, 1 }
 0x16b   :  { %v2655_v5 = vadd.f32 %v1064_v2, %v1063_v58 }
 0x16d   :  { %v2658_v42 = vmul.f32 0.001953125, %v2655_v5 }
 0x16f   :  { %v2662_v63 = vsub.f32 %v2189_v44, %v2658_v42  ;;  %v2666_v15 = vsub.f32 %v2235_v59, %v2658_v42  ;;  %v2670_v34 = vsub.f32 %v2221_v55, %v2658_v42  ;;  %v2674_v46 = vsub.f32 %v2267_v4, %v2658_v42 }
 0x170   :  { %v2678_v2 = vsub.f32 %v2253_v3, %v2658_v42  ;;  %v2682_v44 = vsub.f32 %v2299_v7, %v2658_v42  ;;  %v2686_v59 = vsub.f32 %v2285_v53, %v2658_v42  ;;  %v2690_v55 = vsub.f32 %v2331_v25, %v2658_v42 }
 0x171   :  { %v2694_v4 = vsub.f32 %v2317_v18, %v2658_v42  ;;  %v2698_v3 = vsub.f32 %v2363_v37, %v2658_v42  ;;  %v2702_v58 = vsub.f32 %v2349_v32, %v2658_v42  ;;  %v2706_v53 = vsub.f32 %v2395_v47, %v2658_v42 }
 0x172   :  { %v2710_v7 = vsub.f32 %v2381_v41, %v2658_v42  ;;  %v2714_v18 = vsub.f32 %v2427_v6, %v2658_v42  ;;  %v2718_v25 = vsub.f32 %v2413_v60, %v2658_v42  ;;  %v2722_v32 = vsub.f32 %v2459_v20, %v2658_v42 }
 0x173   :  { %v2726_v37 = vsub.f32 %v2445_v9, %v2658_v42  ;;  %v2730_v41 = vsub.f32 %v2491_v43, %v2658_v42  ;;  %v2734_v47 = vsub.f32 %v2477_v27, %v2658_v42  ;;  %v2738_v60 = vsub.f32 %v2516_v10, %v2658_v42 }
 0x174   :  { %v2742_v6 = vsub.f32 %v2509_v8, %v2658_v42  ;;  %v2746_v9 = vsub.f32 %v2534_v50, %v2658_v42  ;;  %v2750_v20 = vsub.f32 %v2527_v61, %v2658_v42  ;;  %v2754_v27 = vsub.f32 %v2552_v28, %v2658_v42 }
 0x175   :  { %v2758_v43 = vsub.f32 %v2545_v48, %v2658_v42  ;;  %v2762_v8 = vsub.f32 %v2570_v35, %v2658_v42  ;;  %v2766_v10 = vsub.f32 %v2563_v52, %v2658_v42  ;;  %v2770_v61 = vsub.f32 %v2588_v1, %v2658_v42 }
 0x176   :  { %v2774_v50 = vsub.f32 %v2581_v62, %v2658_v42  ;;  %v2778_v48 = vsub.f32 %v2606_v57, %v2658_v42  ;;  %v2782_v35 = vsub.f32 %v2599_v14, %v2658_v42  ;;  %v1067_v28 = vsub.f32 %v2088_v13, %v2658_v42 }
 0x177   :  { %v1068_v52 = vsub.f32 %v2079_v11, %v2658_v42  ;;  %v1069_v1 = vsub.f32 %v2104_v17, %v2658_v42  ;;  %v1070_v62 = vsub.f32 %v2097_v16, %v2658_v42  ;;  %v1071_v57 = vsub.f32 %v2122_v24, %v2658_v42 }
 0x178   :  { %v1131_v12 = vmul.f32 %v1067_v28, %v1067_v28  ;;  %v1072_v14 = vsub.f32 %v2115_v21, %v2658_v42  ;;  %v1073_v17 = vsub.f32 %v2140_v30, %v2658_v42  ;;  %v1074_v24 = vsub.f32 %v2133_v22, %v2658_v42 }
 0x179   :  { %v1132_v0 = vmul.f32 %v1068_v52, %v1068_v52  ;;  %v1133_v19 = vmul.f32 %v1069_v1, %v1069_v1  ;;  %v1134_v39 = vmul.f32 %v1070_v62, %v1070_v62  ;;  %v1135_v49 = vmul.f32 %v1071_v57, %v1071_v57 }
 0x17a   :  { %v1195_v13 = vsel %vm868_vm1, %v1131_v12, 0.0  ;;  %v1136_v40 = vmul.f32 %v1072_v14, %v1072_v14  ;;  %v1075_v28 = vsub.f32 %v2158_v26, %v2658_v42  ;;  %v1137_v52 = vmul.f32 %v1073_v17, %v1073_v17 }
 0x17b   :  { %v1196_v11 = vsel %vm868_vm1, %v1132_v0, 0.0  ;;  %v1198_v16 = vsel %vm868_vm1, %v1133_v19, 0.0  ;;  %v1200_v31 = vsel %vm868_vm1, %v1134_v39, 0.0  ;;  %v1202_v1 = vsel %vm868_vm1, %v1135_v49, 0.0 }
 0x17c   :  { %v1197_v29 = vadd.f32 %v1196_v11, %v1195_v13  ;;  %v1076_v30 = vsub.f32 %v2151_v36, %v2658_v42  ;;  %v1138_v12 = vmul.f32 %v1074_v24, %v1074_v24  ;;  %v1204_v0 = vsel %vm868_vm1, %v1136_v40, 0.0 }
 0x17d   :  { %v1077_v22 = vsub.f32 %v2176_v33, %v2658_v42  ;;  %v1139_v19 = vmul.f32 %v1075_v28, %v1075_v28  ;;  %v1206_v14 = vsel %vm868_vm1, %v1137_v52, 0.0  ;;  %v1078_v26 = vsub.f32 %v2169_v23, %v2658_v42 }
 0x17e   :  { %v1199_v51 = vadd.f32 %v1198_v16, %v1197_v29  ;;  %v1140_v13 = vmul.f32 %v1076_v30, %v1076_v30  ;;  %v1208_v11 = vsel %vm868_vm1, %v1138_v12, 0.0  ;;  %v1079_v36 = vsub.f32 %v2196_v45, %v2658_v42 }
 0x17f   :  { %v1141_v17 = vmul.f32 %v1077_v22, %v1077_v22  ;;  %v1210_v49 = vsel %vm868_vm1, %v1139_v19, 0.0  ;;  %v1080_v33 = vsub.f32 %v2187_v38, %v2658_v42  ;;  %v1081_v23 = vsub.f32 %v2228_v56, %v2658_v42  ;;  %v3020_v38 = vld [vmem:[#allocation4_spill] sm:$0xff]  ;;  %v3021_v56 = vld [vmem:[#allocation3_spill] sm:$0xff] }
 0x180   :  { %v1201_v21 = vadd.f32 %v1200_v31, %v1199_v51  ;;  %v1142_v51 = vmul.f32 %v1078_v26, %v1078_v26  ;;  %v1212_v24 = vsel %vm868_vm1, %v1140_v13, 0.0  ;;  %v1143_v31 = vmul.f32 %v1079_v36, %v1079_v36  ;;  %v3023_v36 = vld [vmem:[#allocation5_spill] sm:$0xff] }
 0x181   :  { %v1082_v45 = vsub.f32 %v2219_v54, %v2658_v42  ;;  %v1144_v52 = vmul.f32 %v1080_v33, %v1080_v33  ;;  %v1083_v30 = vsub.f32 %v3020_v38, %v2658_v42  ;;  %v1145_v12 = vmul.f32 %v1081_v23, %v1081_v23  ;;  %v3022_v54 = vld [vmem:[#allocation6_spill] sm:$0xff] }
 0x182   :  { %v1203_v62 = vadd.f32 %v1202_v1, %v1201_v21  ;;  %v1214_v21 = vsel %vm868_vm1, %v1141_v17, 0.0  ;;  %v1216_v1 = vsel %vm868_vm1, %v1142_v51, 0.0  ;;  %v1084_v22 = vsub.f32 %v3021_v56, %v2658_v42  ;;  %v3024_v51 = vld [vmem:[#allocation8_spill] sm:$0xff] }
 0x183   :  { %v1146_v19 = vmul.f32 %v1082_v45, %v1082_v45  ;;  %v1085_v26 = vsub.f32 %v3022_v54, %v2658_v42  ;;  %v1147_v13 = vmul.f32 %v1083_v30, %v1083_v30  ;;  %v1086_v17 = vsub.f32 %v3023_v36, %v2658_v42 }
 0x184   :  { %v1205_v57 = vadd.f32 %v1204_v0, %v1203_v62  ;;  %v1218_v0 = vsel %vm868_vm1, %v1143_v31, 0.0 }
 0x185   :  { %v1226_v23 = vsel %vm868_vm1, %v1147_v13, 0.0  ;;  %v1150_v45 = vmul.f32 %v1086_v17, %v1086_v17 }
 0x186   :  { %v1207_v39 = vadd.f32 %v1206_v14, %v1205_v57  ;;  %v1220_v14 = vsel %vm868_vm1, %v1144_v52, 0.0 }
 0x188   :  { %v1209_v29 = vadd.f32 %v1208_v11, %v1207_v39  ;;  %v1222_v11 = vsel %vm868_vm1, %v1145_v12, 0.0 }
 0x18a   :  { %v1211_v16 = vadd.f32 %v1210_v49, %v1209_v29  ;;  %v1148_v49 = vmul.f32 %v1084_v22, %v1084_v22 }
 0x18c   :  { %v1213_v40 = vadd.f32 %v1212_v24, %v1211_v16  ;;  %v1224_v16 = vsel %vm868_vm1, %v1146_v19, 0.0  ;;  %v1087_v24 = vsub.f32 %v3024_v51, %v2658_v42  ;;  %v1228_v52 = vsel %vm868_vm1, %v1148_v49, 0.0 }
 0x18d   :  { %v1232_v19 = vsel %vm868_vm1, %v1150_v45, 0.0 }
 0x18e   :  { %v1215_v28 = vadd.f32 %v1214_v21, %v1213_v40  ;;  %v1149_v40 = vmul.f32 %v1085_v26, %v1085_v26  ;;  %v3025_v21 = vld [vmem:[#allocation7_spill] sm:$0xff]  ;;  %v1151_v30 = vmul.f32 %v1087_v24, %v1087_v24 }
 0x190   :  { %v1217_v62 = vadd.f32 %v1216_v1, %v1215_v28  ;;  %v1088_v28 = vsub.f32 %v3025_v21, %v2658_v42  ;;  %v1230_v12 = vsel %vm868_vm1, %v1149_v40, 0.0  ;;  %v1234_v13 = vsel %vm868_vm1, %v1151_v30, 0.0 }
 0x192   :  { %v1219_v57 = vadd.f32 %v1218_v0, %v1217_v62  ;;  %v3026_v62 = vld [vmem:[#allocation10_spill] sm:$0xff]  ;;  %v1152_v22 = vmul.f32 %v1088_v28, %v1088_v28 }
 0x193   :  { %v1089_v38 = vsub.f32 %v3026_v62, %v2658_v42 }
 0x194   :  { %v1221_v39 = vadd.f32 %v1220_v14, %v1219_v57  ;;  %v3027_v57 = vld [vmem:[#allocation9_spill] sm:$0xff]  ;;  %v1236_v49 = vsel %vm868_vm1, %v1152_v22, 0.0 }
 0x195   :  { %v1090_v56 = vsub.f32 %v3027_v57, %v2658_v42  ;;  %v1153_v26 = vmul.f32 %v1089_v38, %v1089_v38 }
 0x196   :  { %v1223_v29 = vadd.f32 %v1222_v11, %v1221_v39  ;;  %v3028_v39 = vld [vmem:[#allocation12_spill] sm:$0xff] }
 0x197   :  { %v1091_v54 = vsub.f32 %v3028_v39, %v2658_v42  ;;  %v1154_v17 = vmul.f32 %v1090_v56, %v1090_v56  ;;  %v1238_v40 = vsel %vm868_vm1, %v1153_v26, 0.0 }
 0x198   :  { %v1225_v33 = vadd.f32 %v1224_v16, %v1223_v29  ;;  %v3029_v29 = vld [vmem:[#allocation11_spill] sm:$0xff] }
 0x199   :  { %v1092_v36 = vsub.f32 %v3029_v29, %v2658_v42  ;;  %v1155_v24 = vmul.f32 %v1091_v54, %v1091_v54  ;;  %v1240_v45 = vsel %vm868_vm1, %v1154_v17, 0.0 }
 0x19a   :  { %v1227_v31 = vadd.f32 %v1226_v23, %v1225_v33  ;;  %v3030_v33 = vld [vmem:[#allocation14_spill] sm:$0xff] }
 0x19b   :  { %v1093_v51 = vsub.f32 %v3030_v33, %v2658_v42  ;;  %v1156_v28 = vmul.f32 %v1092_v36, %v1092_v36  ;;  %v1242_v30 = vsel %vm868_vm1, %v1155_v24, 0.0 }
 0x19c   :  { %v1229_v1 = vadd.f32 %v1228_v52, %v1227_v31  ;;  %v3031_v31 = vld [vmem:[#allocation13_spill] sm:$0xff] }
 0x19d   :  { %v1094_v21 = vsub.f32 %v3031_v31, %v2658_v42  ;;  %v1157_v38 = vmul.f32 %v1093_v51, %v1093_v51  ;;  %v1244_v22 = vsel %vm868_vm1, %v1156_v28, 0.0 }
 0x19e   :  { %v1231_v0 = vadd.f32 %v1230_v12, %v1229_v1  ;;  %v3032_v1 = vld [vmem:[#allocation16_spill] sm:$0xff] }
 0x19f   :  { %v1095_v62 = vsub.f32 %v3032_v1, %v2658_v42  ;;  %v1158_v56 = vmul.f32 %v1094_v21, %v1094_v21  ;;  %v1246_v26 = vsel %vm868_vm1, %v1157_v38, 0.0  ;;  %v1164_v1 = vmul.f32 %v2662_v63, %v2662_v63 }
 0x1a0   :  { %v1233_v14 = vadd.f32 %v1232_v19, %v1231_v0  ;;  %v3033_v0 = vld [vmem:[#allocation15_spill] sm:$0xff] }
 0x1a1   :  { %v1096_v57 = vsub.f32 %v3033_v0, %v2658_v42  ;;  %v1159_v54 = vmul.f32 %v1095_v62, %v1095_v62  ;;  %v1248_v17 = vsel %vm868_vm1, %v1158_v56, 0.0  ;;  %v1166_v0 = vmul.f32 %v2670_v34, %v2670_v34 }
 0x1a2   :  { %v1235_v11 = vadd.f32 %v1234_v13, %v1233_v14  ;;  %v3034_v14 = vld [vmem:[#allocation18_spill] sm:$0xff] }
 0x1a3   :  { %v1097_v39 = vsub.f32 %v3034_v14, %v2658_v42  ;;  %v1160_v36 = vmul.f32 %v1096_v57, %v1096_v57  ;;  %v1250_v24 = vsel %vm868_vm1, %v1159_v54, 0.0  ;;  %v1260_v57 = vsel %vm868_vm1, %v1164_v1, 0.0 }
 0x1a4   :  { %v1237_v16 = vadd.f32 %v1236_v49, %v1235_v11  ;;  %v3035_v11 = vld [vmem:[#allocation17_spill] sm:$0xff]  ;;  %v1168_v14 = vmul.f32 %v2678_v2, %v2678_v2  ;;  %v1169_v54 = vmul.f32 %v2682_v44, %v2682_v44 }
 0x1a5   :  { %v1098_v29 = vsub.f32 %v3035_v11, %v2658_v42  ;;  %v1161_v51 = vmul.f32 %v1097_v39, %v1097_v39  ;;  %v1252_v31 = vsel %vm868_vm1, %v1160_v36, 0.0 }
 0x1a6   :  { %v1239_v23 = vadd.f32 %v1238_v40, %v1237_v16  ;;  %v3036_v16 = vld [vmem:[#allocation2_spill] sm:$0xff]  ;;  %v1270_v2 = vsel %vm868_vm1, %v1169_v54, 0.0  ;;  %v1186_v54 = vmul.f32 %v2750_v20, %v2750_v20 }
 0x1a7   :  { %v1099_v33 = vsub.f32 %v3036_v16, %v2658_v42  ;;  %v1165_v42 = vmul.f32 %v2666_v15, %v2666_v15  ;;  %v1264_v15 = vsel %vm868_vm1, %v1166_v0, 0.0  ;;  %v1173_v16 = vmul.f32 %v2698_v3, %v2698_v3 }
 0x1a8   :  { %v1241_v52 = vadd.f32 %v1240_v45, %v1239_v23  ;;  %v1162_v23 = vmul.f32 %v1098_v29, %v1098_v29  ;;  %v1254_v45 = vsel %vm868_vm1, %v1161_v51, 0.0  ;;  %v1171_v29 = vmul.f32 %v2690_v55, %v2690_v55 }
 0x1a9   :  { %v1163_v28 = vmul.f32 %v1099_v33, %v1099_v33  ;;  %v1262_v63 = vsel %vm868_vm1, %v1165_v42, 0.0  ;;  %v1174_v51 = vmul.f32 %v2702_v58, %v2702_v58  ;;  %v1180_v42 = vmul.f32 %v2726_v37, %v2726_v37 }
 0x1aa   :  { %v1243_v12 = vadd.f32 %v1242_v30, %v1241_v52  ;;  %v1256_v62 = vsel %vm868_vm1, %v1162_v23, 0.0 }
 0x1ab   :  { %v1258_v30 = vsel %vm868_vm1, %v1163_v28, 0.0  ;;  %v1280_v3 = vsel %vm868_vm1, %v1174_v51, 0.0  ;;  %v1177_v28 = vmul.f32 %v2714_v18, %v2714_v18 }
 0x1ac   :  { %v1245_v19 = vadd.f32 %v1244_v22, %v1243_v12  ;;  %v1167_v22 = vmul.f32 %v2674_v46, %v2674_v46  ;;  %v1268_v46 = vsel %vm868_vm1, %v1168_v14, 0.0 }
 0x1ae   :  { %v1247_v13 = vadd.f32 %v1246_v26, %v1245_v19  ;;  %v1266_v34 = vsel %vm868_vm1, %v1167_v22, 0.0  ;;  %v1183_v22 = vmul.f32 %v2738_v60, %v2738_v60 }
 0x1b0   :  { %v1249_v49 = vadd.f32 %v1248_v17, %v1247_v13  ;;  %v1170_v13 = vmul.f32 %v2686_v59, %v2686_v59  ;;  %v1172_v17 = vmul.f32 %v2694_v4, %v2694_v4  ;;  %v1274_v59 = vsel %vm868_vm1, %v1171_v29, 0.0 }
 0x1b1   :  { %v1278_v4 = vsel %vm868_vm1, %v1173_v16, 0.0  ;;  %v1189_v29 = vmul.f32 %v2762_v8, %v2762_v8  ;;  %v1192_v16 = vmul.f32 %v2774_v50, %v2774_v50 }
 0x1b2   :  { %v1251_v40 = vadd.f32 %v1250_v24, %v1249_v49  ;;  %v1272_v44 = vsel %vm868_vm1, %v1170_v13, 0.0  ;;  %v1276_v55 = vsel %vm868_vm1, %v1172_v17, 0.0 }
 0x1b4   :  { %v1253_v21 = vadd.f32 %v1252_v31, %v1251_v40  ;;  %v1175_v40 = vmul.f32 %v2706_v53, %v2706_v53  ;;  %v1176_v31 = vmul.f32 %v2710_v7, %v2710_v7  ;;  %v1286_v7 = vsel %vm868_vm1, %v1177_v28, 0.0 }
 0x1b6   :  { %v1255_v52 = vadd.f32 %v1254_v45, %v1253_v21  ;;  %v1282_v58 = vsel %vm868_vm1, %v1175_v40, 0.0  ;;  %v1284_v53 = vsel %vm868_vm1, %v1176_v31, 0.0 }
 0x1b8   :  { %v1257_v38 = vadd.f32 %v1256_v62, %v1255_v52  ;;  %v1178_v52 = vmul.f32 %v2718_v25, %v2718_v25  ;;  %v1179_v62 = vmul.f32 %v2722_v32, %v2722_v32  ;;  %v1292_v32 = vsel %vm868_vm1, %v1180_v42, 0.0 }
 0x1ba   :  { %v1259_v12 = vadd.f32 %v1258_v30, %v1257_v38  ;;  %v1288_v18 = vsel %vm868_vm1, %v1178_v52, 0.0  ;;  %v1290_v25 = vsel %vm868_vm1, %v1179_v62, 0.0 }
 0x1bc   :  { %v1261_v56 = vadd.f32 %v1260_v57, %v1259_v12  ;;  %v1181_v12 = vmul.f32 %v2730_v41, %v2730_v41  ;;  %v1182_v57 = vmul.f32 %v2734_v47, %v2734_v47  ;;  %v1298_v47 = vsel %vm868_vm1, %v1183_v22, 0.0 }
 0x1be   :  { %v1263_v19 = vadd.f32 %v1262_v63, %v1261_v56  ;;  %v1294_v37 = vsel %vm868_vm1, %v1181_v12, 0.0  ;;  %v1296_v41 = vsel %vm868_vm1, %v1182_v57, 0.0 }
 0x1c0   :  { %v1265_v39 = vadd.f32 %v1264_v15, %v1263_v19  ;;  %v1184_v19 = vmul.f32 %v2742_v6, %v2742_v6  ;;  %v1185_v15 = vmul.f32 %v2746_v9, %v2746_v9  ;;  %v1304_v9 = vsel %vm868_vm1, %v1186_v54, 0.0 }
 0x1c2   :  { %v1267_v26 = vadd.f32 %v1266_v34, %v1265_v39  ;;  %v1300_v60 = vsel %vm868_vm1, %v1184_v19, 0.0  ;;  %v1302_v6 = vsel %vm868_vm1, %v1185_v15, 0.0 }
 0x1c4   :  { %v1269_v11 = vadd.f32 %v1268_v46, %v1267_v26  ;;  %v1187_v26 = vmul.f32 %v2754_v27, %v2754_v27  ;;  %v1188_v46 = vmul.f32 %v2758_v43, %v2758_v43  ;;  %v1310_v43 = vsel %vm868_vm1, %v1189_v29, 0.0 }
 0x1c6   :  { %v1271_v36 = vadd.f32 %v1270_v2, %v1269_v11  ;;  %v1306_v20 = vsel %vm868_vm1, %v1187_v26, 0.0  ;;  %v1308_v27 = vsel %vm868_vm1, %v1188_v46, 0.0 }
 0x1c8   :  { %v1273_v49 = vadd.f32 %v1272_v44, %v1271_v36  ;;  %v1190_v36 = vmul.f32 %v2766_v10, %v2766_v10  ;;  %v1191_v44 = vmul.f32 %v2770_v61, %v2770_v61  ;;  %v1316_v61 = vsel %vm868_vm1, %v1192_v16, 0.0 }
 0x1ca   :  { %v1275_v33 = vadd.f32 %v1274_v59, %v1273_v49  ;;  %v1312_v8 = vsel %vm868_vm1, %v1190_v36, 0.0  ;;  %v1314_v10 = vsel %vm868_vm1, %v1191_v44, 0.0 }
 0x1cc   :  { %v1277_v24 = vadd.f32 %v1276_v55, %v1275_v33  ;;  %v1193_v33 = vmul.f32 %v2778_v48, %v2778_v48  ;;  %v1194_v55 = vmul.f32 %v2782_v35, %v2782_v35 }
 0x1ce   :  { %v1279_v23 = vadd.f32 %v1278_v4, %v1277_v24  ;;  %v1318_v40 = vsel %vm868_vm1, %v1193_v33, 0.0  ;;  %v1320_v50 = vsel %vm868_vm1, %v1194_v55, 0.0 }
 0x1d0   :  { %v1281_v21 = vadd.f32 %v1280_v3, %v1279_v23 }
 0x1d2   :  { %v1283_v45 = vadd.f32 %v1282_v58, %v1281_v21 }
 0x1d4   :  { %v1285_v1 = vadd.f32 %v1284_v53, %v1283_v45 }
 0x1d6   :  { %v1287_v38 = vadd.f32 %v1286_v7, %v1285_v1 }
 0x1d8   :  { %v1289_v30 = vadd.f32 %v1288_v18, %v1287_v38 }
 0x1da   :  { %v1291_v0 = vadd.f32 %v1290_v25, %v1289_v30 }
 0x1dc   :  { %v1293_v56 = vadd.f32 %v1292_v32, %v1291_v0 }
 0x1de   :  { %v1295_v63 = vadd.f32 %v1294_v37, %v1293_v56 }
 0x1e0   :  { %v1297_v14 = vadd.f32 %v1296_v41, %v1295_v63 }
 0x1e2   :  { %v1299_v39 = vadd.f32 %v1298_v47, %v1297_v14 }
 0x1e4   :  { %v1301_v34 = vadd.f32 %v1300_v60, %v1299_v39 }
 0x1e6   :  { %v1303_v13 = vadd.f32 %v1302_v6, %v1301_v34 }
 0x1e8   :  { %v1305_v11 = vadd.f32 %v1304_v9, %v1303_v13 }
 0x1ea   :  { %v1307_v2 = vadd.f32 %v1306_v20, %v1305_v11 }
 0x1ec   :  { %v1309_v17 = vadd.f32 %v1308_v27, %v1307_v2 }
 0x1ee   :  { %v1311_v49 = vadd.f32 %v1310_v43, %v1309_v17 }
 0x1f0   :  { %v1313_v59 = vadd.f32 %v1312_v8, %v1311_v49 }
 0x1f2   :  { %v1315_v51 = vadd.f32 %v1314_v10, %v1313_v59 }
 0x1f4   :  { %v1317_v24 = vadd.f32 %v1316_v61, %v1315_v51 }
 0x1f6   :  { %v1319_v4 = vadd.f32 %v1318_v40, %v1317_v24 }
 0x1f8   :  { %v1321_v23 = vadd.f32 %v1320_v50, %v1319_v4 }
 0x1fa   :  { %v1322_v31 = vrot.slane %v1321_v23, 4 }
 0x1fc   :  { %v1323_v3 = vadd.f32 %v1322_v31, %v1321_v23 }
 0x1fe   :  { %v1324_v21 = vrot.slane %v1323_v3, 2 }
 0x200   :  { %v1325_v28 = vadd.f32 %v1324_v21, %v1323_v3 }
 0x202   :  { %v1326_v48 = vrot.slane %v1325_v28, 1 }
 0x204   :  { %v1327_v58 = vadd.f32 %v1326_v48, %v1325_v28 }
 0x206   :  { %v1329_v45 = vsel %vm1328_vm2, %v2655_v5, %v1327_v58 }
 0x207   :  { %1331 = vst.msk [vmem:[%s2985_s5] sm:$0x3] %vm1330_vm3, %v1329_v45 }

// kernel: _bottleneck_impl.4
= control target key start
LH: loop header
LB: loop body
LE: loop exit
PB: predicated region body
PF: predicated region fallthrough
CT: control target
= control target key end

     0   :  { %9 = vsyncpa [#allocation3], 0  ;;  %s1421_s12 = smov [#allocation2]   ;;  %s2433_s0 = inlined_call_operand.hbm [shape: f32[512,32], index: 0, kind: input, shape index: {}]   ;;  %s2434_s1 = inlined_call_operand.vmem [shape: f32[32,8], index: 1, kind: input, shape index: {}]   ;;  %s2435_s2 = inlined_call_operand.vmem [shape: f32[512,8], index: 2, kind: output, shape index: {0}]   ;;  %s2436_s3 = inlined_call_operand.vmem [shape: f32[1,2,8], index: 3, kind: output, shape index: {1}]  }
   0x1   :  { %s15_s13 = sshll.u32 %s1421_s12, 4  ;;  %s1397_s16 = scalar_lea.hbm %s2433_s0, 8192  ;;  %s16_s13 = int_to_ptr.vmem [resolvable:$true] %s15_s13 }
   0x2   :  { %p1398_p0 = scmp.ne.s32.totalorder %s2433_s0, %s1397_s16  ;;  %p1401_p1 = scmp.lt.u32.totalorder %s1397_s16, %s2433_s0 }
   0x4   :  { %p1403_p2 = pnand %p1401_p1, %p1398_p0 }
   0x6   :  { %1406 = shalt.err (!%p1403_p2)
}
   0x7   :  { %s1407_s21 = scalar_lea.vmem %s16_s13, 8192  ;;  %p1412_p4 = scmp.lt.s32.totalorder %s16_s13, %s16_s13 }
   0x8   :  { %p1408_p3 = scmp.ne.s32.totalorder %s16_s13, %s1407_s21  ;;  %p1413_p5 = scmp.lt.s32.totalorder %s1407_s21, %s1407_s21 }
   0xa   :  { %p1414_p6 = por %p1413_p5, %p1412_p4 }
   0xc   :  { %p1415_p7 = pnand %p1414_p6, %p1408_p3 }
   0xe   :  { %1418 = shalt.err (!%p1415_p7)
}
   0xf   :  { %s1422_s22 = smov 128   ;;  %s1423_s23 = smov 8  }
  0x10   :  { %21 = dma.hbm_to_vmem [thread:$0]  %s2433_s0, 8192, %s16_s13, [#allocation3], %s1422_s22, %s1422_s22, %s1423_s23  }
  0x11   :  { %1419 = dma.done.wait [#allocation3], 8192  }
  0x12   :  { %1420 = vsyncadd [#allocation3], 4294959104  ;;  %vm95_vm0 = vcmask 261120   ;;  %v91_v0 = vld [vmem:[%s2434_s1] sm:$0xff]  ;;  %v92_v1 = vld [vmem:[%s2434_s1 + $0x8] sm:$0xff]  ;;  %vm673_vm1 = vcmask 64512  }
  0x13   :  { %v93_v2 = vld [vmem:[%s2434_s1 + $0x10] sm:$0xff]  ;;  %v1382_v3 = vpack.c.bf16 %v92_v1, %v91_v0  ;;  %v94_v4 = vld [vmem:[%s2434_s1 + $0x18] sm:$0xff]  ;;  %v27_v5 = vld [vmem:[#allocation2] sm:$0xff]  ;;  %vm1133_vm2 = vcmask 1040384   ;;  %vm1135_vm3 = vcmask 58368  }
  0x14   :  { %v1386_v6 = vpack.c.bf16 %v94_v4, %v93_v2  ;;  %1286 = vmatprep.mubr.msk.f32.mxu0 %vm95_vm0, %v27_v5  ;;  %v28_v7 = vld [vmem:[#allocation2 + $0x8] sm:$0xff]  ;;  %v29_v8 = vld [vmem:[#allocation2 + $0x10] sm:$0xff]  ;;  %v30_v9 = vld [vmem:[#allocation2 + $0x18] sm:$0xff] }
  0x15   :  { %1383 = vmatprep.subr.bf16.mxu0 %v1382_v3  ;;  %1390 = vmatprep.subr.bf16.mxu1 %v1382_v3  ;;  %v59_v10 = vld [vmem:[#allocation2 + $0x100] sm:$0xff]  ;;  %v60_v11 = vld [vmem:[#allocation2 + $0x108] sm:$0xff]  ;;  %v61_v12 = vld [vmem:[#allocation2 + $0x110] sm:$0xff] }
  0x16   :  { %1385 = vmatpush3.bf16.msra.mxu0 %v1382_v3  ;;  %1392 = vmatpush3.bf16.msra.mxu1 %v1382_v3  ;;  %v31_v13 = vld [vmem:[#allocation2 + $0x20] sm:$0xff]  ;;  %v62_v14 = vld [vmem:[#allocation2 + $0x118] sm:$0xff]  ;;  %v32_v15 = vld [vmem:[#allocation2 + $0x28] sm:$0xff] }
  0x17   :  { %1387 = vmatprep.subr.bf16.mxu0 %v1386_v6  ;;  %1391 = vmatprep.subr.bf16.mxu1 %v1386_v6  ;;  %v63_v16 = vld [vmem:[#allocation2 + $0x120] sm:$0xff]  ;;  %v33_v17 = vld [vmem:[#allocation2 + $0x30] sm:$0xff]  ;;  %v64_v18 = vld [vmem:[#allocation2 + $0x128] sm:$0xff] }
  0x18   :  { %1334 = vmatprep.mubr.msk.f32.mxu1 %vm95_vm0, %v59_v10  ;;  %v34_v19 = vld [vmem:[#allocation2 + $0x38] sm:$0xff]  ;;  %v65_v20 = vld [vmem:[#allocation2 + $0x130] sm:$0xff]  ;;  %v35_v21 = vld [vmem:[#allocation2 + $0x40] sm:$0xff] }
  0x19   :  { %v66_v22 = vld [vmem:[#allocation2 + $0x138] sm:$0xff]  ;;  %v36_v23 = vld [vmem:[#allocation2 + $0x48] sm:$0xff]  ;;  %v67_v24 = vld [vmem:[#allocation2 + $0x140] sm:$0xff] }
  0x1a   :  { %1389 = vmatpush3.bf16.msra.mxu0 %v1386_v6  ;;  %1393 = vmatpush3.bf16.msra.mxu1 %v1386_v6  ;;  %v37_v25 = vld [vmem:[#allocation2 + $0x50] sm:$0xff]  ;;  %v68_v26 = vld [vmem:[#allocation2 + $0x148] sm:$0xff]  ;;  %v38_v27 = vld [vmem:[#allocation2 + $0x58] sm:$0xff] }
  0x1b   :  { %v69_v28 = vld [vmem:[#allocation2 + $0x150] sm:$0xff]  ;;  %v39_v29 = vld [vmem:[#allocation2 + $0x60] sm:$0xff]  ;;  %v70_v30 = vld [vmem:[#allocation2 + $0x158] sm:$0xff] }
  0x1c   :  { %v40_v31 = vld [vmem:[#allocation2 + $0x68] sm:$0xff]  ;;  %v71_v32 = vld [vmem:[#allocation2 + $0x160] sm:$0xff]  ;;  %v41_v33 = vld [vmem:[#allocation2 + $0x70] sm:$0xff] }
  0x1d   :  { %1287 = vmatmul.mubr.msk.f32.vlgmr.msra.gmra.mrb[0].mxu0 %vm95_vm0, %v28_v7  ;;  %1335 = vmatmul.mubr.msk.f32.vlgmr.msra.gmra.mrb[0].mxu1 %vm95_vm0, %v60_v11  ;;  %v72_v34 = vld [vmem:[#allocation2 + $0x168] sm:$0xff]  ;;  %v42_v35 = vld [vmem:[#allocation2 + $0x78] sm:$0xff]  ;;  %v73_v36 = vld [vmem:[#allocation2 + $0x170] sm:$0xff] }
  0x1e   :  { %1289 = vmatprep.mubr.msk.f32.mxu0 %vm95_vm0, %v29_v8  ;;  %1337 = vmatprep.mubr.msk.f32.mxu1 %vm95_vm0, %v61_v12  ;;  %v43_v37 = vld [vmem:[#allocation2 + $0x80] sm:$0xff]  ;;  %v74_v38 = vld [vmem:[#allocation2 + $0x178] sm:$0xff]  ;;  %v44_v39 = vld [vmem:[#allocation2 + $0x88] sm:$0xff] }
  0x1f   :  { %v75_v40 = vld [vmem:[#allocation2 + $0x180] sm:$0xff]  ;;  %v45_v41 = vld [vmem:[#allocation2 + $0x90] sm:$0xff]  ;;  %v76_v42 = vld [vmem:[#allocation2 + $0x188] sm:$0xff] }
  0x20   :  { %v46_v43 = vld [vmem:[#allocation2 + $0x98] sm:$0xff]  ;;  %v77_v44 = vld [vmem:[#allocation2 + $0x190] sm:$0xff]  ;;  %v47_v45 = vld [vmem:[#allocation2 + $0xa0] sm:$0xff] }
  0x21   :  { %1290 = vmatmul.mubr.msk.f32.gmra.mrb[2].mxu0 %vm95_vm0, %v30_v9  ;;  %1338 = vmatmul.mubr.msk.f32.gmra.mrb[2].mxu1 %vm95_vm0, %v62_v14  ;;  %v78_v46 = vld [vmem:[#allocation2 + $0x198] sm:$0xff]  ;;  %v48_v47 = vld [vmem:[#allocation2 + $0xa8] sm:$0xff]  ;;  %v79_v48 = vld [vmem:[#allocation2 + $0x1a0] sm:$0xff] }
  0x22   :  { %1292 = vmatprep.mubr.msk.f32.mxu0 %vm95_vm0, %v31_v13  ;;  %1340 = vmatprep.mubr.msk.f32.mxu1 %vm95_vm0, %v63_v16  ;;  %v49_v49 = vld [vmem:[#allocation2 + $0xb0] sm:$0xff]  ;;  %v80_v50 = vld [vmem:[#allocation2 + $0x1a8] sm:$0xff]  ;;  %v50_v51 = vld [vmem:[#allocation2 + $0xb8] sm:$0xff] }
  0x23   :  { %v81_v52 = vld [vmem:[#allocation2 + $0x1b0] sm:$0xff]  ;;  %v51_v53 = vld [vmem:[#allocation2 + $0xc0] sm:$0xff]  ;;  %v82_v54 = vld [vmem:[#allocation2 + $0x1b8] sm:$0xff] }
  0x24   :  { %v52_v55 = vld [vmem:[#allocation2 + $0xc8] sm:$0xff]  ;;  %v83_v56 = vld [vmem:[#allocation2 + $0x1c0] sm:$0xff]  ;;  %v53_v57 = vld [vmem:[#allocation2 + $0xd0] sm:$0xff] }
  0x25   :  { %1293 = vmatmul.mubr.msk.f32.gmra.mrb[4].mxu0 %vm95_vm0, %v32_v15  ;;  %1341 = vmatmul.mubr.msk.f32.gmra.mrb[4].mxu1 %vm95_vm0, %v64_v18  ;;  %v84_v58 = vld [vmem:[#allocation2 + $0x1c8] sm:$0xff]  ;;  %v54_v59 = vld [vmem:[#allocation2 + $0xd8] sm:$0xff]  ;;  %v85_v60 = vld [vmem:[#allocation2 + $0x1d0] sm:$0xff] }
  0x26   :  { %1295 = vmatprep.mubr.msk.f32.mxu0 %vm95_vm0, %v33_v17  ;;  %1343 = vmatprep.mubr.msk.f32.mxu1 %vm95_vm0, %v65_v20  ;;  %v55_v61 = vld [vmem:[#allocation2 + $0xe0] sm:$0xff]  ;;  %v86_v62 = vld [vmem:[#allocation2 + $0x1d8] sm:$0xff]  ;;  %v56_v63 = vld [vmem:[#allocation2 + $0xe8] sm:$0xff] }
  0x27   :  { %v87_v0 = vld [vmem:[#allocation2 + $0x1e0] sm:$0xff]  ;;  %v57_v1 = vld [vmem:[#allocation2 + $0xf0] sm:$0xff]  ;;  %v88_v2 = vld [vmem:[#allocation2 + $0x1e8] sm:$0xff] }
  0x28   :  { %v58_v3 = vld [vmem:[#allocation2 + $0xf8] sm:$0xff]  ;;  %v89_v4 = vld [vmem:[#allocation2 + $0x1f0] sm:$0xff] }
  0x29   :  { %1296 = vmatmul.mubr.msk.f32.gmra.mrb[6].mxu0 %vm95_vm0, %v34_v19  ;;  %1344 = vmatmul.mubr.msk.f32.gmra.mrb[6].mxu1 %vm95_vm0, %v66_v22  ;;  %v90_v5 = vld [vmem:[#allocation2 + $0x1f8] sm:$0xff] }
  0x2a   :  { %1298 = vmatprep.mubr.msk.f32.mxu0 %vm95_vm0, %v35_v21  ;;  %1346 = vmatprep.mubr.msk.f32.mxu1 %vm95_vm0, %v67_v24 }
  0x2d   :  { %1299 = vmatmul.mubr.msk.f32.gmra.mrb[8].mxu0 %vm95_vm0, %v36_v23  ;;  %1347 = vmatmul.mubr.msk.f32.gmra.mrb[8].mxu1 %vm95_vm0, %v68_v26 }
  0x2e   :  { %1301 = vmatprep.mubr.msk.f32.mxu0 %vm95_vm0, %v37_v25  ;;  %1349 = vmatprep.mubr.msk.f32.mxu1 %vm95_vm0, %v69_v28 }
  0x31   :  { %1302 = vmatmul.mubr.msk.f32.gmra.mrb[10].mxu0 %vm95_vm0, %v38_v27  ;;  %1350 = vmatmul.mubr.msk.f32.gmra.mrb[10].mxu1 %vm95_vm0, %v70_v30 }
  0x32   :  { %1304 = vmatprep.mubr.msk.f32.mxu0 %vm95_vm0, %v39_v29  ;;  %1352 = vmatprep.mubr.msk.f32.mxu1 %vm95_vm0, %v71_v32 }
  0x35   :  { %1305 = vmatmul.mubr.msk.f32.gmra.mrb[12].mxu0 %vm95_vm0, %v40_v31  ;;  %1353 = vmatmul.mubr.msk.f32.gmra.mrb[12].mxu1 %vm95_vm0, %v72_v34 }
  0x36   :  { %1307 = vmatprep.mubr.msk.f32.mxu0 %vm95_vm0, %v41_v33  ;;  %1355 = vmatprep.mubr.msk.f32.mxu1 %vm95_vm0, %v73_v36 }
  0x39   :  { %1308 = vmatmul.mubr.msk.f32.gmra.mrb[14].mxu0 %vm95_vm0, %v42_v35  ;;  %1356 = vmatmul.mubr.msk.f32.gmra.mrb[14].mxu1 %vm95_vm0, %v74_v38 }
  0x3a   :  { %1310 = vmatprep.mubr.msk.f32.mxu0 %vm95_vm0, %v43_v37  ;;  %1358 = vmatprep.mubr.msk.f32.mxu1 %vm95_vm0, %v75_v40 }
  0x3d   :  { %1311 = vmatmul.mubr.msk.f32.gmra.mrb[16].mxu0 %vm95_vm0, %v44_v39  ;;  %1359 = vmatmul.mubr.msk.f32.gmra.mrb[16].mxu1 %vm95_vm0, %v76_v42 }
  0x3e   :  { %1313 = vmatprep.mubr.msk.f32.mxu0 %vm95_vm0, %v45_v41  ;;  %1361 = vmatprep.mubr.msk.f32.mxu1 %vm95_vm0, %v77_v44 }
  0x41   :  { %1314 = vmatmul.mubr.msk.f32.gmra.mrb[18].mxu0 %vm95_vm0, %v46_v43  ;;  %1362 = vmatmul.mubr.msk.f32.gmra.mrb[18].mxu1 %vm95_vm0, %v78_v46 }
  0x42   :  { %1316 = vmatprep.mubr.msk.f32.mxu0 %vm95_vm0, %v47_v45  ;;  %1364 = vmatprep.mubr.msk.f32.mxu1 %vm95_vm0, %v79_v48 }
  0x45   :  { %1317 = vmatmul.mubr.msk.f32.gmra.mrb[20].mxu0 %vm95_vm0, %v48_v47  ;;  %1365 = vmatmul.mubr.msk.f32.gmra.mrb[20].mxu1 %vm95_vm0, %v80_v50 }
  0x46   :  { %1319 = vmatprep.mubr.msk.f32.mxu0 %vm95_vm0, %v49_v49  ;;  %1367 = vmatprep.mubr.msk.f32.mxu1 %vm95_vm0, %v81_v52 }
  0x49   :  { %1320 = vmatmul.mubr.msk.f32.gmra.mrb[22].mxu0 %vm95_vm0, %v50_v51  ;;  %1368 = vmatmul.mubr.msk.f32.gmra.mrb[22].mxu1 %vm95_vm0, %v82_v54 }
  0x4a   :  { %1322 = vmatprep.mubr.msk.f32.mxu0 %vm95_vm0, %v51_v53  ;;  %1370 = vmatprep.mubr.msk.f32.mxu1 %vm95_vm0, %v83_v56 }
  0x4d   :  { %1323 = vmatmul.mubr.msk.f32.gmra.mrb[24].mxu0 %vm95_vm0, %v52_v55  ;;  %1371 = vmatmul.mubr.msk.f32.gmra.mrb[24].mxu1 %vm95_vm0, %v84_v58 }
  0x4e   :  { %1325 = vmatprep.mubr.msk.f32.mxu0 %vm95_vm0, %v53_v57  ;;  %1373 = vmatprep.mubr.msk.f32.mxu1 %vm95_vm0, %v85_v60 }
  0x51   :  { %1326 = vmatmul.mubr.msk.f32.gmra.mrb[26].mxu0 %vm95_vm0, %v54_v59  ;;  %1374 = vmatmul.mubr.msk.f32.gmra.mrb[26].mxu1 %vm95_vm0, %v86_v62 }
  0x52   :  { %1328 = vmatprep.mubr.msk.f32.mxu0 %vm95_vm0, %v55_v61  ;;  %1376 = vmatprep.mubr.msk.f32.mxu1 %vm95_vm0, %v87_v0 }
  0x55   :  { %1329 = vmatmul.mubr.msk.f32.gmra.mrb[28].mxu0 %vm95_vm0, %v56_v63  ;;  %1377 = vmatmul.mubr.msk.f32.gmra.mrb[28].mxu1 %vm95_vm0, %v88_v2 }
  0x56   :  { %1331 = vmatprep.mubr.msk.f32.mxu0 %vm95_vm0, %v57_v1  ;;  %1379 = vmatprep.mubr.msk.f32.mxu1 %vm95_vm0, %v89_v4 }
  0x59   :  { %1332 = vmatmul.mubr.msk.f32.gmra.mrb[30].mxu0 %vm95_vm0, %v58_v3  ;;  %1380 = vmatmul.mubr.msk.f32.gmra.mrb[30].mxu1 %vm95_vm0, %v90_v5 }
  0xf0   :  { %v1532_v6 = vpop.f32.mrb[0].mxu0  ;;  %v1550_v11 = vpop.f32.mrb[0].mxu1 }
  0xf1   :  { %675 = vst.msk [vmem:[%s2435_s2 + $0x8] sm:$0xff] %vm673_vm1, %v1532_v6  ;;  %v739_v7 = vsel %vm673_vm1, %v1532_v6, 0.0  ;;  %v1541_v8 = vpop.f32.mrb[1].mxu0  ;;  %707 = vst.msk [vmem:[%s2435_s2 + $0x108] sm:$0xff] %vm673_vm1, %v1550_v11  ;;  %v1559_v13 = vpop.f32.mrb[1].mxu1 }
  0xf2   :  { %674 = vst.msk [vmem:[%s2435_s2] sm:$0xff] %vm673_vm1, %v1541_v8  ;;  %v738_v9 = vsel %vm673_vm1, %v1541_v8, 0.0  ;;  %2454 = vst [vmem:[#allocation5_spill] sm:$0xff] %v1559_v13 }
  0xf3   :  { %v740_v10 = vadd.f32 %v739_v7, %v738_v9  ;;  %706 = vst.msk [vmem:[%s2435_s2 + $0x100] sm:$0xff] %vm673_vm1, %v1559_v13 }
  0xf4   :  { %v1552_v12 = vpop.f32.mrb[2].mxu0  ;;  %v1580_v17 = vpop.f32.mrb[2].mxu1 }
  0xf5   :  { %677 = vst.msk [vmem:[%s2435_s2 + $0x18] sm:$0xff] %vm673_vm1, %v1552_v12  ;;  %v1566_v14 = vpop.f32.mrb[3].mxu0  ;;  %v743_v18 = vsel %vm673_vm1, %v1552_v12, 0.0  ;;  %709 = vst.msk [vmem:[%s2435_s2 + $0x118] sm:$0xff] %vm673_vm1, %v1580_v17  ;;  %v1591_v20 = vpop.f32.mrb[3].mxu1 }
  0xf6   :  { %676 = vst.msk [vmem:[%s2435_s2 + $0x10] sm:$0xff] %vm673_vm1, %v1566_v14  ;;  %v741_v15 = vsel %vm673_vm1, %v1566_v14, 0.0  ;;  %708 = vst.msk [vmem:[%s2435_s2 + $0x110] sm:$0xff] %vm673_vm1, %v1591_v20 }
  0xf7   :  { %v742_v16 = vadd.f32 %v741_v15, %v740_v10 }
  0xf8   :  { %v1584_v19 = vpop.f32.mrb[4].mxu0  ;;  %v1612_v25 = vpop.f32.mrb[4].mxu1 }
  0xf9   :  { %679 = vst.msk [vmem:[%s2435_s2 + $0x28] sm:$0xff] %vm673_vm1, %v1584_v19  ;;  %v1598_v21 = vpop.f32.mrb[5].mxu0  ;;  %v744_v22 = vadd.f32 %v743_v18, %v742_v16  ;;  %v747_v26 = vsel %vm673_vm1, %v1584_v19, 0.0  ;;  %711 = vst.msk [vmem:[%s2435_s2 + $0x128] sm:$0xff] %vm673_vm1, %v1612_v25  ;;  %v1623_v28 = vpop.f32.mrb[5].mxu1 }
  0xfa   :  { %678 = vst.msk [vmem:[%s2435_s2 + $0x20] sm:$0xff] %vm673_vm1, %v1598_v21  ;;  %v745_v23 = vsel %vm673_vm1, %v1598_v21, 0.0  ;;  %710 = vst.msk [vmem:[%s2435_s2 + $0x120] sm:$0xff] %vm673_vm1, %v1623_v28 }
  0xfb   :  { %v746_v24 = vadd.f32 %v745_v23, %v744_v22 }
  0xfc   :  { %v1616_v27 = vpop.f32.mrb[6].mxu0  ;;  %v1644_v33 = vpop.f32.mrb[6].mxu1 }
  0xfd   :  { %681 = vst.msk [vmem:[%s2435_s2 + $0x38] sm:$0xff] %vm673_vm1, %v1616_v27  ;;  %v1630_v29 = vpop.f32.mrb[7].mxu0  ;;  %v748_v30 = vadd.f32 %v747_v26, %v746_v24  ;;  %v751_v34 = vsel %vm673_vm1, %v1616_v27, 0.0  ;;  %713 = vst.msk [vmem:[%s2435_s2 + $0x138] sm:$0xff] %vm673_vm1, %v1644_v33  ;;  %v1655_v36 = vpop.f32.mrb[7].mxu1 }
  0xfe   :  { %680 = vst.msk [vmem:[%s2435_s2 + $0x30] sm:$0xff] %vm673_vm1, %v1630_v29  ;;  %v749_v31 = vsel %vm673_vm1, %v1630_v29, 0.0  ;;  %712 = vst.msk [vmem:[%s2435_s2 + $0x130] sm:$0xff] %vm673_vm1, %v1655_v36 }
  0xff   :  { %v750_v32 = vadd.f32 %v749_v31, %v748_v30 }
 0x100   :  { %v1648_v35 = vpop.f32.mrb[8].mxu0  ;;  %v1676_v41 = vpop.f32.mrb[8].mxu1 }
 0x101   :  { %683 = vst.msk [vmem:[%s2435_s2 + $0x48] sm:$0xff] %vm673_vm1, %v1648_v35  ;;  %v1662_v37 = vpop.f32.mrb[9].mxu0  ;;  %v752_v38 = vadd.f32 %v751_v34, %v750_v32  ;;  %v755_v42 = vsel %vm673_vm1, %v1648_v35, 0.0  ;;  %715 = vst.msk [vmem:[%s2435_s2 + $0x148] sm:$0xff] %vm673_vm1, %v1676_v41  ;;  %v1687_v44 = vpop.f32.mrb[9].mxu1 }
 0x102   :  { %682 = vst.msk [vmem:[%s2435_s2 + $0x40] sm:$0xff] %vm673_vm1, %v1662_v37  ;;  %v753_v39 = vsel %vm673_vm1, %v1662_v37, 0.0  ;;  %714 = vst.msk [vmem:[%s2435_s2 + $0x140] sm:$0xff] %vm673_vm1, %v1687_v44 }
 0x103   :  { %v754_v40 = vadd.f32 %v753_v39, %v752_v38 }
 0x104   :  { %v1680_v43 = vpop.f32.mrb[10].mxu0  ;;  %v1708_v49 = vpop.f32.mrb[10].mxu1 }
 0x105   :  { %685 = vst.msk [vmem:[%s2435_s2 + $0x58] sm:$0xff] %vm673_vm1, %v1680_v43  ;;  %v1694_v45 = vpop.f32.mrb[11].mxu0  ;;  %v756_v46 = vadd.f32 %v755_v42, %v754_v40  ;;  %v759_v50 = vsel %vm673_vm1, %v1680_v43, 0.0  ;;  %717 = vst.msk [vmem:[%s2435_s2 + $0x158] sm:$0xff] %vm673_vm1, %v1708_v49  ;;  %v1719_v52 = vpop.f32.mrb[11].mxu1 }
 0x106   :  { %684 = vst.msk [vmem:[%s2435_s2 + $0x50] sm:$0xff] %vm673_vm1, %v1694_v45  ;;  %v757_v47 = vsel %vm673_vm1, %v1694_v45, 0.0  ;;  %716 = vst.msk [vmem:[%s2435_s2 + $0x150] sm:$0xff] %vm673_vm1, %v1719_v52 }
 0x107   :  { %v758_v48 = vadd.f32 %v757_v47, %v756_v46 }
 0x108   :  { %v1712_v51 = vpop.f32.mrb[12].mxu0  ;;  %v1740_v57 = vpop.f32.mrb[12].mxu1 }
 0x109   :  { %687 = vst.msk [vmem:[%s2435_s2 + $0x68] sm:$0xff] %vm673_vm1, %v1712_v51  ;;  %v1726_v53 = vpop.f32.mrb[13].mxu0  ;;  %v760_v54 = vadd.f32 %v759_v50, %v758_v48  ;;  %v763_v58 = vsel %vm673_vm1, %v1712_v51, 0.0  ;;  %719 = vst.msk [vmem:[%s2435_s2 + $0x168] sm:$0xff] %vm673_vm1, %v1740_v57  ;;  %v1751_v60 = vpop.f32.mrb[13].mxu1 }
 0x10a   :  { %686 = vst.msk [vmem:[%s2435_s2 + $0x60] sm:$0xff] %vm673_vm1, %v1726_v53  ;;  %v761_v55 = vsel %vm673_vm1, %v1726_v53, 0.0  ;;  %718 = vst.msk [vmem:[%s2435_s2 + $0x160] sm:$0xff] %vm673_vm1, %v1751_v60 }
 0x10b   :  { %v762_v56 = vadd.f32 %v761_v55, %v760_v54 }
 0x10c   :  { %v1744_v59 = vpop.f32.mrb[14].mxu0  ;;  %v1772_v1 = vpop.f32.mrb[14].mxu1 }
 0x10d   :  { %689 = vst.msk [vmem:[%s2435_s2 + $0x78] sm:$0xff] %vm673_vm1, %v1744_v59  ;;  %v1758_v61 = vpop.f32.mrb[15].mxu0  ;;  %v764_v62 = vadd.f32 %v763_v58, %v762_v56  ;;  %v767_v2 = vsel %vm673_vm1, %v1744_v59, 0.0  ;;  %721 = vst.msk [vmem:[%s2435_s2 + $0x178] sm:$0xff] %vm673_vm1, %v1772_v1  ;;  %v1783_v4 = vpop.f32.mrb[15].mxu1 }
 0x10e   :  { %688 = vst.msk [vmem:[%s2435_s2 + $0x70] sm:$0xff] %vm673_vm1, %v1758_v61  ;;  %v765_v63 = vsel %vm673_vm1, %v1758_v61, 0.0  ;;  %720 = vst.msk [vmem:[%s2435_s2 + $0x170] sm:$0xff] %vm673_vm1, %v1783_v4 }
 0x10f   :  { %v766_v0 = vadd.f32 %v765_v63, %v764_v62 }
 0x110   :  { %v1776_v3 = vpop.f32.mrb[16].mxu0  ;;  %v1804_v15 = vpop.f32.mrb[16].mxu1 }
 0x111   :  { %2455 = vst [vmem:[#allocation6_spill] sm:$0xff] %v1776_v3  ;;  %691 = vst.msk [vmem:[%s2435_s2 + $0x88] sm:$0xff] %vm673_vm1, %v1776_v3  ;;  %v1790_v5 = vpop.f32.mrb[17].mxu0  ;;  %v768_v7 = vadd.f32 %v767_v2, %v766_v0  ;;  %v771_v16 = vsel %vm673_vm1, %v1776_v3, 0.0  ;;  %v1815_v22 = vpop.f32.mrb[17].mxu1 }
 0x112   :  { %2456 = vst [vmem:[#allocation7_spill] sm:$0xff] %v1790_v5  ;;  %690 = vst.msk [vmem:[%s2435_s2 + $0x80] sm:$0xff] %vm673_vm1, %v1790_v5  ;;  %v769_v9 = vsel %vm673_vm1, %v1790_v5, 0.0 }
 0x113   :  { %v770_v10 = vadd.f32 %v769_v9, %v768_v7  ;;  %723 = vst.msk [vmem:[%s2435_s2 + $0x188] sm:$0xff] %vm673_vm1, %v1804_v15  ;;  %722 = vst.msk [vmem:[%s2435_s2 + $0x180] sm:$0xff] %vm673_vm1, %v1815_v22 }
 0x114   :  { %v1808_v18 = vpop.f32.mrb[18].mxu0  ;;  %v1836_v31 = vpop.f32.mrb[18].mxu1 }
 0x115   :  { %2457 = vst [vmem:[#allocation8_spill] sm:$0xff] %v1808_v18  ;;  %693 = vst.msk [vmem:[%s2435_s2 + $0x98] sm:$0xff] %vm673_vm1, %v1808_v18  ;;  %v1822_v23 = vpop.f32.mrb[19].mxu0  ;;  %v772_v24 = vadd.f32 %v771_v16, %v770_v10  ;;  %v775_v32 = vsel %vm673_vm1, %v1808_v18, 0.0  ;;  %v1847_v38 = vpop.f32.mrb[19].mxu1 }
 0x116   :  { %2458 = vst [vmem:[#allocation9_spill] sm:$0xff] %v1822_v23  ;;  %692 = vst.msk [vmem:[%s2435_s2 + $0x90] sm:$0xff] %vm673_vm1, %v1822_v23  ;;  %v773_v26 = vsel %vm673_vm1, %v1822_v23, 0.0 }
 0x117   :  { %v774_v30 = vadd.f32 %v773_v26, %v772_v24  ;;  %725 = vst.msk [vmem:[%s2435_s2 + $0x198] sm:$0xff] %vm673_vm1, %v1836_v31  ;;  %724 = vst.msk [vmem:[%s2435_s2 + $0x190] sm:$0xff] %vm673_vm1, %v1847_v38 }
 0x118   :  { %v1840_v34 = vpop.f32.mrb[20].mxu0  ;;  %v1868_v47 = vpop.f32.mrb[20].mxu1 }
 0x119   :  { %2459 = vst [vmem:[#allocation10_spill] sm:$0xff] %v1840_v34  ;;  %695 = vst.msk [vmem:[%s2435_s2 + $0xa8] sm:$0xff] %vm673_vm1, %v1840_v34  ;;  %v1854_v39 = vpop.f32.mrb[21].mxu0  ;;  %v776_v40 = vadd.f32 %v775_v32, %v774_v30  ;;  %v779_v48 = vsel %vm673_vm1, %v1840_v34, 0.0  ;;  %v1879_v54 = vpop.f32.mrb[21].mxu1  ;;  %v811_v34 = vsel %vm673_vm1, %v1612_v25, 0.0 }
 0x11a   :  { %2460 = vst [vmem:[#allocation11_spill] sm:$0xff] %v1854_v39  ;;  %694 = vst.msk [vmem:[%s2435_s2 + $0xa0] sm:$0xff] %vm673_vm1, %v1854_v39  ;;  %v777_v42 = vsel %vm673_vm1, %v1854_v39, 0.0 }
 0x11b   :  { %v778_v46 = vadd.f32 %v777_v42, %v776_v40  ;;  %727 = vst.msk [vmem:[%s2435_s2 + $0x1a8] sm:$0xff] %vm673_vm1, %v1868_v47  ;;  %726 = vst.msk [vmem:[%s2435_s2 + $0x1a0] sm:$0xff] %vm673_vm1, %v1879_v54 }
 0x11c   :  { %v1872_v50 = vpop.f32.mrb[22].mxu0  ;;  %v1900_v63 = vpop.f32.mrb[22].mxu1 }
 0x11d   :  { %2461 = vst [vmem:[#allocation12_spill] sm:$0xff] %v1872_v50  ;;  %697 = vst.msk [vmem:[%s2435_s2 + $0xb8] sm:$0xff] %vm673_vm1, %v1872_v50  ;;  %v1886_v55 = vpop.f32.mrb[23].mxu0  ;;  %v780_v56 = vadd.f32 %v779_v48, %v778_v46  ;;  %v783_v0 = vsel %vm673_vm1, %v1872_v50, 0.0  ;;  %v1911_v7 = vpop.f32.mrb[23].mxu1  ;;  %v807_v50 = vsel %vm673_vm1, %v1580_v17, 0.0 }
 0x11e   :  { %2462 = vst [vmem:[#allocation13_spill] sm:$0xff] %v1886_v55  ;;  %696 = vst.msk [vmem:[%s2435_s2 + $0xb0] sm:$0xff] %vm673_vm1, %v1886_v55  ;;  %v781_v58 = vsel %vm673_vm1, %v1886_v55, 0.0 }
 0x11f   :  { %v782_v62 = vadd.f32 %v781_v58, %v780_v56  ;;  %729 = vst.msk [vmem:[%s2435_s2 + $0x1b8] sm:$0xff] %vm673_vm1, %v1900_v63  ;;  %728 = vst.msk [vmem:[%s2435_s2 + $0x1b0] sm:$0xff] %vm673_vm1, %v1911_v7 }
 0x120   :  { %v1904_v2 = vpop.f32.mrb[24].mxu0  ;;  %v1932_v26 = vpop.f32.mrb[24].mxu1 }
 0x121   :  { %2463 = vst [vmem:[#allocation14_spill] sm:$0xff] %v1904_v2  ;;  %699 = vst.msk [vmem:[%s2435_s2 + $0xc8] sm:$0xff] %vm673_vm1, %v1904_v2  ;;  %v1918_v9 = vpop.f32.mrb[25].mxu0  ;;  %v784_v10 = vadd.f32 %v783_v0, %v782_v62  ;;  %v787_v30 = vsel %vm673_vm1, %v1904_v2, 0.0  ;;  %v1943_v40 = vpop.f32.mrb[25].mxu1 }
 0x122   :  { %2464 = vst [vmem:[#allocation15_spill] sm:$0xff] %v1918_v9  ;;  %698 = vst.msk [vmem:[%s2435_s2 + $0xc0] sm:$0xff] %vm673_vm1, %v1918_v9  ;;  %v785_v16 = vsel %vm673_vm1, %v1918_v9, 0.0 }
 0x123   :  { %v786_v24 = vadd.f32 %v785_v16, %v784_v10  ;;  %731 = vst.msk [vmem:[%s2435_s2 + $0x1c8] sm:$0xff] %vm673_vm1, %v1932_v26  ;;  %730 = vst.msk [vmem:[%s2435_s2 + $0x1c0] sm:$0xff] %vm673_vm1, %v1943_v40 }
 0x124   :  { %v1936_v32 = vpop.f32.mrb[26].mxu0  ;;  %v1964_v58 = vpop.f32.mrb[26].mxu1 }
 0x125   :  { %2465 = vst [vmem:[#allocation16_spill] sm:$0xff] %v1936_v32  ;;  %701 = vst.msk [vmem:[%s2435_s2 + $0xd8] sm:$0xff] %vm673_vm1, %v1936_v32  ;;  %v1950_v42 = vpop.f32.mrb[27].mxu0  ;;  %v788_v46 = vadd.f32 %v787_v30, %v786_v24  ;;  %v791_v62 = vsel %vm673_vm1, %v1936_v32, 0.0  ;;  %v1975_v10 = vpop.f32.mrb[27].mxu1 }
 0x126   :  { %2466 = vst [vmem:[#allocation17_spill] sm:$0xff] %v1950_v42  ;;  %700 = vst.msk [vmem:[%s2435_s2 + $0xd0] sm:$0xff] %vm673_vm1, %v1950_v42  ;;  %v789_v48 = vsel %vm673_vm1, %v1950_v42, 0.0 }
 0x127   :  { %v790_v56 = vadd.f32 %v789_v48, %v788_v46  ;;  %733 = vst.msk [vmem:[%s2435_s2 + $0x1d8] sm:$0xff] %vm673_vm1, %v1964_v58  ;;  %732 = vst.msk [vmem:[%s2435_s2 + $0x1d0] sm:$0xff] %vm673_vm1, %v1975_v10 }
 0x128   :  { %v1968_v0 = vpop.f32.mrb[28].mxu0  ;;  %v1996_v48 = vpop.f32.mrb[28].mxu1 }
 0x129   :  { %2467 = vst [vmem:[#allocation18_spill] sm:$0xff] %v1968_v0  ;;  %703 = vst.msk [vmem:[%s2435_s2 + $0xe8] sm:$0xff] %vm673_vm1, %v1968_v0  ;;  %v1982_v16 = vpop.f32.mrb[29].mxu0  ;;  %v792_v24 = vadd.f32 %v791_v62, %v790_v56  ;;  %v795_v56 = vsel %vm673_vm1, %v1968_v0, 0.0  ;;  %v2007_v32 = vpop.f32.mrb[29].mxu1 }
 0x12a   :  { %2468 = vst [vmem:[#allocation19_spill] sm:$0xff] %v1982_v16  ;;  %702 = vst.msk [vmem:[%s2435_s2 + $0xe0] sm:$0xff] %vm673_vm1, %v1982_v16  ;;  %v793_v30 = vsel %vm673_vm1, %v1982_v16, 0.0 }
 0x12b   :  { %v794_v46 = vadd.f32 %v793_v30, %v792_v24  ;;  %735 = vst.msk [vmem:[%s2435_s2 + $0x1e8] sm:$0xff] %vm673_vm1, %v1996_v48  ;;  %734 = vst.msk [vmem:[%s2435_s2 + $0x1e0] sm:$0xff] %vm673_vm1, %v2007_v32 }
 0x12c   :  { %v2000_v62 = vpop.f32.mrb[30].mxu0  ;;  %v2028_v42 = vpop.f32.mrb[30].mxu1 }
 0x12d   :  { %2469 = vst [vmem:[#allocation20_spill] sm:$0xff] %v2000_v62  ;;  %705 = vst.msk [vmem:[%s2435_s2 + $0xf8] sm:$0xff] %vm673_vm1, %v2000_v62  ;;  %v2014_v24 = vpop.f32.mrb[31].mxu0  ;;  %v796_v30 = vadd.f32 %v795_v56, %v794_v46  ;;  %v799_v46 = vsel %vm673_vm1, %v2000_v62, 0.0  ;;  %v801_v56 = vsel %vm673_vm1, %v1559_v13, 0.0  ;;  %v2039_v2 = vpop.f32.mrb[31].mxu1 }
 0x12e   :  { %2470 = vst [vmem:[#allocation21_spill] sm:$0xff] %v2014_v24  ;;  %704 = vst.msk [vmem:[%s2435_s2 + $0xf0] sm:$0xff] %vm673_vm1, %v2014_v24  ;;  %v797_v0 = vsel %vm673_vm1, %v2014_v24, 0.0  ;;  %v805_v13 = vsel %vm673_vm1, %v1591_v20, 0.0 }
 0x12f   :  { %v798_v16 = vadd.f32 %v797_v0, %v796_v30  ;;  %737 = vst.msk [vmem:[%s2435_s2 + $0x1f8] sm:$0xff] %vm673_vm1, %v2028_v42  ;;  %736 = vst.msk [vmem:[%s2435_s2 + $0x1f0] sm:$0xff] %vm673_vm1, %v2039_v2  ;;  %v803_v30 = vsel %vm673_vm1, %v1550_v11, 0.0 }
 0x131   :  { %v800_v9 = vadd.f32 %v799_v46, %v798_v16  ;;  %v809_v16 = vsel %vm673_vm1, %v1623_v28, 0.0 }
 0x133   :  { %v802_v0 = vadd.f32 %v801_v56, %v800_v9  ;;  %v813_v9 = vsel %vm673_vm1, %v1655_v36, 0.0 }
 0x135   :  { %v804_v62 = vadd.f32 %v803_v30, %v802_v0  ;;  %v815_v0 = vsel %vm673_vm1, %v1644_v33, 0.0 }
 0x137   :  { %v806_v24 = vadd.f32 %v805_v13, %v804_v62  ;;  %v817_v13 = vsel %vm673_vm1, %v1687_v44, 0.0 }
 0x139   :  { %v808_v46 = vadd.f32 %v807_v50, %v806_v24  ;;  %v819_v50 = vsel %vm673_vm1, %v1676_v41, 0.0  ;;  %v821_v24 = vsel %vm673_vm1, %v1719_v52, 0.0 }
 0x13b   :  { %v810_v55 = vadd.f32 %v809_v16, %v808_v46 }
 0x13d   :  { %v812_v56 = vadd.f32 %v811_v34, %v810_v55  ;;  %v823_v34 = vsel %vm673_vm1, %v1708_v49, 0.0  ;;  %v825_v55 = vsel %vm673_vm1, %v1751_v60, 0.0 }
 0x13f   :  { %v814_v39 = vadd.f32 %v813_v9, %v812_v56 }
 0x141   :  { %v816_v62 = vadd.f32 %v815_v0, %v814_v39  ;;  %v827_v39 = vsel %vm673_vm1, %v1740_v57, 0.0  ;;  %v829_v0 = vsel %vm673_vm1, %v1783_v4, 0.0 }
 0x143   :  { %v818_v30 = vadd.f32 %v817_v13, %v816_v62 }
 0x145   :  { %v820_v16 = vadd.f32 %v819_v50, %v818_v30  ;;  %v831_v30 = vsel %vm673_vm1, %v1772_v1, 0.0  ;;  %v833_v50 = vsel %vm673_vm1, %v1815_v22, 0.0 }
 0x147   :  { %v822_v46 = vadd.f32 %v821_v24, %v820_v16 }
 0x149   :  { %v824_v9 = vadd.f32 %v823_v34, %v822_v46  ;;  %v835_v46 = vsel %vm673_vm1, %v1804_v15, 0.0  ;;  %v837_v34 = vsel %vm673_vm1, %v1847_v38, 0.0 }
 0x14b   :  { %v826_v56 = vadd.f32 %v825_v55, %v824_v9 }
 0x14d   :  { %v828_v13 = vadd.f32 %v827_v39, %v826_v56  ;;  %v839_v56 = vsel %vm673_vm1, %v1836_v31, 0.0  ;;  %v841_v39 = vsel %vm673_vm1, %v1879_v54, 0.0 }
 0x14f   :  { %v830_v62 = vadd.f32 %v829_v0, %v828_v13 }
 0x151   :  { %v832_v24 = vadd.f32 %v831_v30, %v830_v62  ;;  %v843_v62 = vsel %vm673_vm1, %v1868_v47, 0.0  ;;  %v845_v30 = vsel %vm673_vm1, %v1911_v7, 0.0 }
 0x153   :  { %v834_v16 = vadd.f32 %v833_v50, %v832_v24 }
 0x155   :  { %v836_v55 = vadd.f32 %v835_v46, %v834_v16  ;;  %v847_v16 = vsel %vm673_vm1, %v1900_v63, 0.0  ;;  %v849_v46 = vsel %vm673_vm1, %v1943_v40, 0.0 }
 0x157   :  { %v838_v9 = vadd.f32 %v837_v34, %v836_v55 }
 0x159   :  { %v840_v0 = vadd.f32 %v839_v56, %v838_v9  ;;  %v851_v9 = vsel %vm673_vm1, %v1932_v26, 0.0  ;;  %v853_v56 = vsel %vm673_vm1, %v1975_v10, 0.0 }
 0x15b   :  { %v842_v13 = vadd.f32 %v841_v39, %v840_v0 }
 0x15d   :  { %v844_v50 = vadd.f32 %v843_v62, %v842_v13  ;;  %v855_v13 = vsel %vm673_vm1, %v1964_v58, 0.0  ;;  %v857_v62 = vsel %vm673_vm1, %v2007_v32, 0.0 }
 0x15f   :  { %v846_v24 = vadd.f32 %v845_v30, %v844_v50 }
 0x161   :  { %v848_v34 = vadd.f32 %v847_v16, %v846_v24  ;;  %v859_v24 = vsel %vm673_vm1, %v1996_v48, 0.0  ;;  %v861_v16 = vsel %vm673_vm1, %v2039_v2, 0.0 }
 0x163   :  { %v850_v55 = vadd.f32 %v849_v46, %v848_v34 }
 0x165   :  { %v852_v39 = vadd.f32 %v851_v9, %v850_v55  ;;  %v863_v55 = vsel %vm673_vm1, %v2028_v42, 0.0 }
 0x167   :  { %v854_v0 = vadd.f32 %v853_v56, %v852_v39 }
 0x169   :  { %v856_v30 = vadd.f32 %v855_v13, %v854_v0 }
 0x16b   :  { %v858_v50 = vadd.f32 %v857_v62, %v856_v30 }
 0x16d   :  { %v860_v46 = vadd.f32 %v859_v24, %v858_v50 }
 0x16f   :  { %v862_v34 = vadd.f32 %v861_v16, %v860_v46 }
 0x171   :  { %v864_v9 = vadd.f32 %v863_v55, %v862_v34 }
 0x173   :  { %v865_v56 = vrot.slane %v864_v9, 4 }
 0x175   :  { %v866_v39 = vadd.f32 %v865_v56, %v864_v9 }
 0x177   :  { %v867_v18 = vrot.slane %v866_v39, 2 }
 0x179   :  { %v868_v23 = vadd.f32 %v867_v18, %v866_v39 }
 0x17b   :  { %v869_v3 = vrot.slane %v868_v23, 1 }
 0x17d   :  { %v2108_v5 = vadd.f32 %v869_v3, %v868_v23 }
 0x17f   :  { %v2111_v0 = vmul.f32 0.001953125, %v2108_v5 }
 0x181   :  { %v2115_v13 = vsub.f32 %v1550_v11, %v2111_v0  ;;  %v2119_v62 = vsub.f32 %v1591_v20, %v2111_v0  ;;  %v2123_v30 = vsub.f32 %v1580_v17, %v2111_v0  ;;  %v2127_v18 = vsub.f32 %v1623_v28, %v2111_v0 }
 0x182   :  { %v2131_v3 = vsub.f32 %v1612_v25, %v2111_v0  ;;  %v2135_v11 = vsub.f32 %v1655_v36, %v2111_v0  ;;  %v2139_v20 = vsub.f32 %v1644_v33, %v2111_v0  ;;  %v2143_v17 = vsub.f32 %v1687_v44, %v2111_v0 }
 0x183   :  { %v2147_v28 = vsub.f32 %v1676_v41, %v2111_v0  ;;  %v2151_v25 = vsub.f32 %v1719_v52, %v2111_v0  ;;  %v2155_v36 = vsub.f32 %v1708_v49, %v2111_v0  ;;  %v2159_v33 = vsub.f32 %v1751_v60, %v2111_v0 }
 0x184   :  { %v2163_v44 = vsub.f32 %v1740_v57, %v2111_v0  ;;  %v2167_v41 = vsub.f32 %v1783_v4, %v2111_v0  ;;  %v2171_v52 = vsub.f32 %v1772_v1, %v2111_v0  ;;  %v2175_v49 = vsub.f32 %v1815_v22, %v2111_v0 }
 0x185   :  { %v2179_v60 = vsub.f32 %v1804_v15, %v2111_v0  ;;  %v2183_v57 = vsub.f32 %v1847_v38, %v2111_v0  ;;  %v2187_v4 = vsub.f32 %v1836_v31, %v2111_v0  ;;  %v2191_v1 = vsub.f32 %v1879_v54, %v2111_v0 }
 0x186   :  { %v2195_v22 = vsub.f32 %v1868_v47, %v2111_v0  ;;  %v2199_v15 = vsub.f32 %v1911_v7, %v2111_v0  ;;  %v2203_v23 = vsub.f32 %v1900_v63, %v2111_v0  ;;  %v2207_v31 = vsub.f32 %v1943_v40, %v2111_v0 }
 0x187   :  { %v2211_v38 = vsub.f32 %v1932_v26, %v2111_v0  ;;  %v2215_v47 = vsub.f32 %v1975_v10, %v2111_v0  ;;  %v2219_v54 = vsub.f32 %v1964_v58, %v2111_v0  ;;  %v2223_v63 = vsub.f32 %v2007_v32, %v2111_v0 }
 0x188   :  { %v2227_v7 = vsub.f32 %v1996_v48, %v2111_v0  ;;  %v2231_v26 = vsub.f32 %v2039_v2, %v2111_v0  ;;  %v2235_v40 = vsub.f32 %v2028_v42, %v2111_v0  ;;  %v872_v58 = vsub.f32 %v1541_v8, %v2111_v0 }
 0x189   :  { %v873_v10 = vsub.f32 %v1532_v6, %v2111_v0  ;;  %v874_v32 = vsub.f32 %v1566_v14, %v2111_v0  ;;  %v875_v48 = vsub.f32 %v1552_v12, %v2111_v0  ;;  %v876_v2 = vsub.f32 %v1598_v21, %v2111_v0 }
 0x18a   :  { %v936_v50 = vmul.f32 %v872_v58, %v872_v58  ;;  %v877_v42 = vsub.f32 %v1584_v19, %v2111_v0  ;;  %v878_v14 = vsub.f32 %v1630_v29, %v2111_v0  ;;  %v879_v21 = vsub.f32 %v1616_v27, %v2111_v0 }
 0x18b   :  { %v937_v24 = vmul.f32 %v873_v10, %v873_v10  ;;  %v938_v16 = vmul.f32 %v874_v32, %v874_v32  ;;  %v939_v46 = vmul.f32 %v875_v48, %v875_v48  ;;  %v940_v55 = vmul.f32 %v876_v2, %v876_v2 }
 0x18c   :  { %v1000_v8 = vsel %vm673_vm1, %v936_v50, 0.0  ;;  %v941_v56 = vmul.f32 %v877_v42, %v877_v42  ;;  %v880_v58 = vsub.f32 %v1662_v37, %v2111_v0  ;;  %v942_v10 = vmul.f32 %v878_v14, %v878_v14 }
 0x18d   :  { %v1001_v6 = vsel %vm673_vm1, %v937_v24, 0.0  ;;  %v1003_v12 = vsel %vm673_vm1, %v938_v16, 0.0  ;;  %v1005_v39 = vsel %vm673_vm1, %v939_v46, 0.0  ;;  %v1007_v32 = vsel %vm673_vm1, %v940_v55, 0.0 }
 0x18e   :  { %v1002_v34 = vadd.f32 %v1001_v6, %v1000_v8  ;;  %v881_v29 = vsub.f32 %v1648_v35, %v2111_v0  ;;  %v943_v50 = vmul.f32 %v879_v21, %v879_v21  ;;  %v1009_v24 = vsel %vm673_vm1, %v941_v56, 0.0 }
 0x18f   :  { %v882_v27 = vsub.f32 %v1694_v45, %v2111_v0  ;;  %v944_v16 = vmul.f32 %v880_v58, %v880_v58  ;;  %v1011_v42 = vsel %vm673_vm1, %v942_v10, 0.0  ;;  %v883_v37 = vsub.f32 %v1680_v43, %v2111_v0 }
 0x190   :  { %v1004_v9 = vadd.f32 %v1003_v12, %v1002_v34  ;;  %v945_v8 = vmul.f32 %v881_v29, %v881_v29  ;;  %v1013_v6 = vsel %vm673_vm1, %v943_v50, 0.0  ;;  %v884_v35 = vsub.f32 %v1726_v53, %v2111_v0 }
 0x191   :  { %v946_v14 = vmul.f32 %v882_v27, %v882_v27  ;;  %v1015_v55 = vsel %vm673_vm1, %v944_v16, 0.0  ;;  %v885_v45 = vsub.f32 %v1712_v51, %v2111_v0  ;;  %v886_v43 = vsub.f32 %v1758_v61, %v2111_v0  ;;  %v2471_v51 = vld [vmem:[#allocation7_spill] sm:$0xff]  ;;  %v2472_v61 = vld [vmem:[#allocation6_spill] sm:$0xff] }
 0x192   :  { %v1006_v19 = vadd.f32 %v1005_v39, %v1004_v9  ;;  %v947_v9 = vmul.f32 %v883_v37, %v883_v37  ;;  %v1017_v21 = vsel %vm673_vm1, %v945_v8, 0.0  ;;  %v948_v39 = vmul.f32 %v884_v35, %v884_v35  ;;  %v2474_v35 = vld [vmem:[#allocation8_spill] sm:$0xff] }
 0x193   :  { %v887_v53 = vsub.f32 %v1744_v59, %v2111_v0  ;;  %v949_v10 = vmul.f32 %v885_v45, %v885_v45  ;;  %v888_v29 = vsub.f32 %v2471_v51, %v2111_v0  ;;  %v950_v50 = vmul.f32 %v886_v43, %v886_v43  ;;  %v2473_v59 = vld [vmem:[#allocation9_spill] sm:$0xff] }
 0x194   :  { %v1008_v48 = vadd.f32 %v1007_v32, %v1006_v19  ;;  %v1019_v19 = vsel %vm673_vm1, %v946_v14, 0.0  ;;  %v1021_v32 = vsel %vm673_vm1, %v947_v9, 0.0  ;;  %v889_v27 = vsub.f32 %v2472_v61, %v2111_v0  ;;  %v2475_v9 = vld [vmem:[#allocation11_spill] sm:$0xff] }
 0x195   :  { %v951_v16 = vmul.f32 %v887_v53, %v887_v53  ;;  %v890_v37 = vsub.f32 %v2473_v59, %v2111_v0  ;;  %v952_v8 = vmul.f32 %v888_v29, %v888_v29  ;;  %v891_v14 = vsub.f32 %v2474_v35, %v2111_v0 }
 0x196   :  { %v1010_v2 = vadd.f32 %v1009_v24, %v1008_v48  ;;  %v1023_v24 = vsel %vm673_vm1, %v948_v39, 0.0 }
 0x197   :  { %v1031_v43 = vsel %vm673_vm1, %v952_v8, 0.0  ;;  %v955_v53 = vmul.f32 %v891_v14, %v891_v14 }
 0x198   :  { %v1012_v46 = vadd.f32 %v1011_v42, %v1010_v2  ;;  %v1025_v42 = vsel %vm673_vm1, %v949_v10, 0.0 }
 0x19a   :  { %v1014_v34 = vadd.f32 %v1013_v6, %v1012_v46  ;;  %v1027_v6 = vsel %vm673_vm1, %v950_v50, 0.0 }
 0x19c   :  { %v1016_v12 = vadd.f32 %v1015_v55, %v1014_v34  ;;  %v953_v55 = vmul.f32 %v889_v27, %v889_v27 }
 0x19e   :  { %v1018_v56 = vadd.f32 %v1017_v21, %v1016_v12  ;;  %v1029_v12 = vsel %vm673_vm1, %v951_v16, 0.0  ;;  %v892_v21 = vsub.f32 %v2475_v9, %v2111_v0  ;;  %v1033_v10 = vsel %vm673_vm1, %v953_v55, 0.0 }
 0x19f   :  { %v1037_v16 = vsel %vm673_vm1, %v955_v53, 0.0 }
 0x1a0   :  { %v1020_v58 = vadd.f32 %v1019_v19, %v1018_v56  ;;  %v954_v56 = vmul.f32 %v890_v37, %v890_v37  ;;  %v2476_v19 = vld [vmem:[#allocation10_spill] sm:$0xff]  ;;  %v956_v29 = vmul.f32 %v892_v21, %v892_v21 }
 0x1a2   :  { %v1022_v48 = vadd.f32 %v1021_v32, %v1020_v58  ;;  %v893_v58 = vsub.f32 %v2476_v19, %v2111_v0  ;;  %v1035_v50 = vsel %vm673_vm1, %v954_v56, 0.0  ;;  %v1039_v8 = vsel %vm673_vm1, %v956_v29, 0.0 }
 0x1a4   :  { %v1024_v2 = vadd.f32 %v1023_v24, %v1022_v48  ;;  %v2477_v48 = vld [vmem:[#allocation13_spill] sm:$0xff]  ;;  %v957_v27 = vmul.f32 %v893_v58, %v893_v58 }
 0x1a5   :  { %v894_v51 = vsub.f32 %v2477_v48, %v2111_v0 }
 0x1a6   :  { %v1026_v46 = vadd.f32 %v1025_v42, %v1024_v2  ;;  %v2478_v2 = vld [vmem:[#allocation12_spill] sm:$0xff]  ;;  %v1041_v55 = vsel %vm673_vm1, %v957_v27, 0.0 }
 0x1a7   :  { %v895_v61 = vsub.f32 %v2478_v2, %v2111_v0  ;;  %v958_v37 = vmul.f32 %v894_v51, %v894_v51 }
 0x1a8   :  { %v1028_v34 = vadd.f32 %v1027_v6, %v1026_v46  ;;  %v2479_v46 = vld [vmem:[#allocation15_spill] sm:$0xff] }
 0x1a9   :  { %v896_v59 = vsub.f32 %v2479_v46, %v2111_v0  ;;  %v959_v14 = vmul.f32 %v895_v61, %v895_v61  ;;  %v1043_v56 = vsel %vm673_vm1, %v958_v37, 0.0 }
 0x1aa   :  { %v1030_v45 = vadd.f32 %v1029_v12, %v1028_v34  ;;  %v2480_v34 = vld [vmem:[#allocation14_spill] sm:$0xff] }
 0x1ab   :  { %v897_v35 = vsub.f32 %v2480_v34, %v2111_v0  ;;  %v960_v21 = vmul.f32 %v896_v59, %v896_v59  ;;  %v1045_v53 = vsel %vm673_vm1, %v959_v14, 0.0 }
 0x1ac   :  { %v1032_v39 = vadd.f32 %v1031_v43, %v1030_v45  ;;  %v2481_v45 = vld [vmem:[#allocation17_spill] sm:$0xff] }
 0x1ad   :  { %v898_v9 = vsub.f32 %v2481_v45, %v2111_v0  ;;  %v961_v58 = vmul.f32 %v897_v35, %v897_v35  ;;  %v1047_v29 = vsel %vm673_vm1, %v960_v21, 0.0 }
 0x1ae   :  { %v1034_v32 = vadd.f32 %v1033_v10, %v1032_v39  ;;  %v2482_v39 = vld [vmem:[#allocation16_spill] sm:$0xff] }
 0x1af   :  { %v899_v19 = vsub.f32 %v2482_v39, %v2111_v0  ;;  %v962_v51 = vmul.f32 %v898_v9, %v898_v9  ;;  %v1049_v27 = vsel %vm673_vm1, %v961_v58, 0.0 }
 0x1b0   :  { %v1036_v24 = vadd.f32 %v1035_v50, %v1034_v32  ;;  %v2483_v32 = vld [vmem:[#allocation19_spill] sm:$0xff] }
 0x1b1   :  { %v900_v48 = vsub.f32 %v2483_v32, %v2111_v0  ;;  %v963_v61 = vmul.f32 %v899_v19, %v899_v19  ;;  %v1051_v37 = vsel %vm673_vm1, %v962_v51, 0.0  ;;  %v969_v32 = vmul.f32 %v2115_v13, %v2115_v13 }
 0x1b2   :  { %v1038_v42 = vadd.f32 %v1037_v16, %v1036_v24  ;;  %v2484_v24 = vld [vmem:[#allocation18_spill] sm:$0xff] }
 0x1b3   :  { %v901_v2 = vsub.f32 %v2484_v24, %v2111_v0  ;;  %v964_v59 = vmul.f32 %v900_v48, %v900_v48  ;;  %v1053_v14 = vsel %vm673_vm1, %v963_v61, 0.0  ;;  %v971_v24 = vmul.f32 %v2123_v30, %v2123_v30 }
 0x1b4   :  { %v1040_v6 = vadd.f32 %v1039_v8, %v1038_v42  ;;  %v2485_v42 = vld [vmem:[#allocation21_spill] sm:$0xff] }
 0x1b5   :  { %v902_v46 = vsub.f32 %v2485_v42, %v2111_v0  ;;  %v965_v35 = vmul.f32 %v901_v2, %v901_v2  ;;  %v1055_v21 = vsel %vm673_vm1, %v964_v59, 0.0  ;;  %v1065_v2 = vsel %vm673_vm1, %v969_v32, 0.0 }
 0x1b6   :  { %v1042_v12 = vadd.f32 %v1041_v55, %v1040_v6  ;;  %v2486_v6 = vld [vmem:[#allocation20_spill] sm:$0xff]  ;;  %v973_v42 = vmul.f32 %v2131_v3, %v2131_v3  ;;  %v974_v59 = vmul.f32 %v2135_v11, %v2135_v11 }
 0x1b7   :  { %v903_v34 = vsub.f32 %v2486_v6, %v2111_v0  ;;  %v966_v9 = vmul.f32 %v902_v46, %v902_v46  ;;  %v1057_v39 = vsel %vm673_vm1, %v965_v35, 0.0 }
 0x1b8   :  { %v1044_v43 = vadd.f32 %v1043_v56, %v1042_v12  ;;  %v2487_v12 = vld [vmem:[#allocation5_spill] sm:$0xff]  ;;  %v1075_v3 = vsel %vm673_vm1, %v974_v59, 0.0  ;;  %v991_v59 = vmul.f32 %v2203_v23, %v2203_v23 }
 0x1b9   :  { %v904_v45 = vsub.f32 %v2487_v12, %v2111_v0  ;;  %v970_v0 = vmul.f32 %v2119_v62, %v2119_v62  ;;  %v1069_v62 = vsel %vm673_vm1, %v971_v24, 0.0  ;;  %v978_v12 = vmul.f32 %v2151_v25, %v2151_v25 }
 0x1ba   :  { %v1046_v10 = vadd.f32 %v1045_v53, %v1044_v43  ;;  %v967_v43 = vmul.f32 %v903_v34, %v903_v34  ;;  %v1059_v53 = vsel %vm673_vm1, %v966_v9, 0.0  ;;  %v976_v34 = vmul.f32 %v2143_v17, %v2143_v17 }
 0x1bb   :  { %v968_v58 = vmul.f32 %v904_v45, %v904_v45  ;;  %v1067_v13 = vsel %vm673_vm1, %v970_v0, 0.0  ;;  %v979_v9 = vmul.f32 %v2155_v36, %v2155_v36  ;;  %v985_v0 = vmul.f32 %v2179_v60, %v2179_v60 }
 0x1bc   :  { %v1048_v50 = vadd.f32 %v1047_v29, %v1046_v10  ;;  %v1061_v48 = vsel %vm673_vm1, %v967_v43, 0.0 }
 0x1bd   :  { %v1063_v29 = vsel %vm673_vm1, %v968_v58, 0.0  ;;  %v1085_v25 = vsel %vm673_vm1, %v979_v9, 0.0  ;;  %v982_v58 = vmul.f32 %v2167_v41, %v2167_v41 }
 0x1be   :  { %v1050_v16 = vadd.f32 %v1049_v27, %v1048_v50  ;;  %v972_v27 = vmul.f32 %v2127_v18, %v2127_v18  ;;  %v1073_v18 = vsel %vm673_vm1, %v973_v42, 0.0 }
 0x1c0   :  { %v1052_v8 = vadd.f32 %v1051_v37, %v1050_v16  ;;  %v1071_v30 = vsel %vm673_vm1, %v972_v27, 0.0  ;;  %v988_v27 = vmul.f32 %v2191_v1, %v2191_v1 }
 0x1c2   :  { %v1054_v55 = vadd.f32 %v1053_v14, %v1052_v8  ;;  %v975_v8 = vmul.f32 %v2139_v20, %v2139_v20  ;;  %v977_v14 = vmul.f32 %v2147_v28, %v2147_v28  ;;  %v1079_v20 = vsel %vm673_vm1, %v976_v34, 0.0 }
 0x1c3   :  { %v1083_v28 = vsel %vm673_vm1, %v978_v12, 0.0  ;;  %v994_v34 = vmul.f32 %v2215_v47, %v2215_v47  ;;  %v997_v12 = vmul.f32 %v2227_v7, %v2227_v7 }
 0x1c4   :  { %v1056_v56 = vadd.f32 %v1055_v21, %v1054_v55  ;;  %v1077_v11 = vsel %vm673_vm1, %v975_v8, 0.0  ;;  %v1081_v17 = vsel %vm673_vm1, %v977_v14, 0.0 }
 0x1c6   :  { %v1058_v19 = vadd.f32 %v1057_v39, %v1056_v56  ;;  %v980_v56 = vmul.f32 %v2159_v33, %v2159_v33  ;;  %v981_v39 = vmul.f32 %v2163_v44, %v2163_v44  ;;  %v1091_v44 = vsel %vm673_vm1, %v982_v58, 0.0 }
 0x1c8   :  { %v1060_v10 = vadd.f32 %v1059_v53, %v1058_v19  ;;  %v1087_v36 = vsel %vm673_vm1, %v980_v56, 0.0  ;;  %v1089_v33 = vsel %vm673_vm1, %v981_v39, 0.0 }
 0x1ca   :  { %v1062_v51 = vadd.f32 %v1061_v48, %v1060_v10  ;;  %v983_v10 = vmul.f32 %v2171_v52, %v2171_v52  ;;  %v984_v48 = vmul.f32 %v2175_v49, %v2175_v49  ;;  %v1097_v49 = vsel %vm673_vm1, %v985_v0, 0.0 }
 0x1cc   :  { %v1064_v50 = vadd.f32 %v1063_v29, %v1062_v51  ;;  %v1093_v41 = vsel %vm673_vm1, %v983_v10, 0.0  ;;  %v1095_v52 = vsel %vm673_vm1, %v984_v48, 0.0 }
 0x1ce   :  { %v1066_v61 = vadd.f32 %v1065_v2, %v1064_v50  ;;  %v986_v50 = vmul.f32 %v2183_v57, %v2183_v57  ;;  %v987_v2 = vmul.f32 %v2187_v4, %v2187_v4  ;;  %v1103_v4 = vsel %vm673_vm1, %v988_v27, 0.0 }
 0x1d0   :  { %v1068_v16 = vadd.f32 %v1067_v13, %v1066_v61  ;;  %v1099_v60 = vsel %vm673_vm1, %v986_v50, 0.0  ;;  %v1101_v57 = vsel %vm673_vm1, %v987_v2, 0.0 }
 0x1d2   :  { %v1070_v46 = vadd.f32 %v1069_v62, %v1068_v16  ;;  %v989_v16 = vmul.f32 %v2195_v22, %v2195_v22  ;;  %v990_v62 = vmul.f32 %v2199_v15, %v2199_v15  ;;  %v1109_v15 = vsel %vm673_vm1, %v991_v59, 0.0 }
 0x1d4   :  { %v1072_v37 = vadd.f32 %v1071_v30, %v1070_v46  ;;  %v1105_v1 = vsel %vm673_vm1, %v989_v16, 0.0  ;;  %v1107_v22 = vsel %vm673_vm1, %v990_v62, 0.0 }
 0x1d6   :  { %v1074_v6 = vadd.f32 %v1073_v18, %v1072_v37  ;;  %v992_v37 = vmul.f32 %v2207_v31, %v2207_v31  ;;  %v993_v18 = vmul.f32 %v2211_v38, %v2211_v38  ;;  %v1115_v38 = vsel %vm673_vm1, %v994_v34, 0.0 }
 0x1d8   :  { %v1076_v35 = vadd.f32 %v1075_v3, %v1074_v6  ;;  %v1111_v23 = vsel %vm673_vm1, %v992_v37, 0.0  ;;  %v1113_v31 = vsel %vm673_vm1, %v993_v18, 0.0 }
 0x1da   :  { %v1078_v55 = vadd.f32 %v1077_v11, %v1076_v35  ;;  %v995_v35 = vmul.f32 %v2219_v54, %v2219_v54  ;;  %v996_v11 = vmul.f32 %v2223_v63, %v2223_v63  ;;  %v1121_v63 = vsel %vm673_vm1, %v997_v12, 0.0 }
 0x1dc   :  { %v1080_v45 = vadd.f32 %v1079_v20, %v1078_v55  ;;  %v1117_v47 = vsel %vm673_vm1, %v995_v35, 0.0  ;;  %v1119_v54 = vsel %vm673_vm1, %v996_v11, 0.0 }
 0x1de   :  { %v1082_v21 = vadd.f32 %v1081_v17, %v1080_v45  ;;  %v998_v45 = vmul.f32 %v2231_v26, %v2231_v26  ;;  %v999_v17 = vmul.f32 %v2235_v40, %v2235_v40 }
 0x1e0   :  { %v1084_v43 = vadd.f32 %v1083_v28, %v1082_v21  ;;  %v1123_v56 = vsel %vm673_vm1, %v998_v45, 0.0  ;;  %v1125_v7 = vsel %vm673_vm1, %v999_v17, 0.0 }
 0x1e2   :  { %v1086_v19 = vadd.f32 %v1085_v25, %v1084_v43 }
 0x1e4   :  { %v1088_v53 = vadd.f32 %v1087_v36, %v1086_v19 }
 0x1e6   :  { %v1090_v32 = vadd.f32 %v1089_v33, %v1088_v53 }
 0x1e8   :  { %v1092_v51 = vadd.f32 %v1091_v44, %v1090_v32 }
 0x1ea   :  { %v1094_v29 = vadd.f32 %v1093_v41, %v1092_v51 }
 0x1ec   :  { %v1096_v24 = vadd.f32 %v1095_v52, %v1094_v29 }
 0x1ee   :  { %v1098_v61 = vadd.f32 %v1097_v49, %v1096_v24 }
 0x1f0   :  { %v1100_v13 = vadd.f32 %v1099_v60, %v1098_v61 }
 0x1f2   :  { %v1102_v42 = vadd.f32 %v1101_v57, %v1100_v13 }
 0x1f4   :  { %v1104_v46 = vadd.f32 %v1103_v4, %v1102_v42 }
 0x1f6   :  { %v1106_v30 = vadd.f32 %v1105_v1, %v1104_v46 }
 0x1f8   :  { %v1108_v8 = vadd.f32 %v1107_v22, %v1106_v30 }
 0x1fa   :  { %v1110_v6 = vadd.f32 %v1109_v15, %v1108_v8 }
 0x1fc   :  { %v1112_v3 = vadd.f32 %v1111_v23, %v1110_v6 }
 0x1fe   :  { %v1114_v14 = vadd.f32 %v1113_v31, %v1112_v3 }
 0x200   :  { %v1116_v55 = vadd.f32 %v1115_v38, %v1114_v14 }
 0x202   :  { %v1118_v20 = vadd.f32 %v1117_v47, %v1116_v55 }
 0x204   :  { %v1120_v9 = vadd.f32 %v1119_v54, %v1118_v20 }
 0x206   :  { %v1122_v21 = vadd.f32 %v1121_v63, %v1120_v9 }
 0x208   :  { %v1124_v28 = vadd.f32 %v1123_v56, %v1122_v21 }
 0x20a   :  { %v1126_v43 = vadd.f32 %v1125_v7, %v1124_v28 }
 0x20c   :  { %v1127_v39 = vrot.slane %v1126_v43, 4 }
 0x20e   :  { %v1128_v25 = vadd.f32 %v1127_v39, %v1126_v43 }
 0x210   :  { %v1129_v19 = vrot.slane %v1128_v25, 2 }
 0x212   :  { %v1130_v58 = vadd.f32 %v1129_v19, %v1128_v25 }
 0x214   :  { %v1131_v26 = vrot.slane %v1130_v58, 1 }
 0x216   :  { %v1132_v36 = vadd.f32 %v1131_v26, %v1130_v58 }
 0x218   :  { %v1134_v53 = vsel %vm1133_vm2, %v2108_v5, %v1132_v36 }
 0x219   :  { %1136 = vst.msk [vmem:[%s2436_s3] sm:$0x3] %vm1135_vm3, %v1134_v53 }
 0x21a   :  { %1145 = vsyncpa [#allocation3], 1 }

// kernel: _bottleneck_impl.7
= control target key start
LH: loop header
LB: loop body
LE: loop exit
PB: predicated region body
PF: predicated region fallthrough
CT: control target
= control target key end

     0   :  { %s360_s0 = inlined_call_operand.vmem [shape: f32[128,128], index: 0, kind: input, shape index: {}]   ;;  %s361_s1 = inlined_call_operand.vmem [shape: f32[128,128], index: 1, kind: input, shape index: {}, may-alias: {1,4}]   ;;  %s362_s2 = inlined_call_operand.vmem [shape: f32[1,128], index: 2, kind: input, shape index: {}]   ;;  %s363_s3 = inlined_call_operand.vmem [shape: f32[1,128], index: 3, kind: input, shape index: {}]   ;;  %s364_s4 = inlined_call_operand.vmem [shape: f32[128,128], index: 4, kind: output, shape index: {}, may-alias: {1,4}]  }
   0x1   :  { %v17_v0 = vld [vmem:[%s360_s0] sm:$0xff]  ;;  %v18_v4 = vld [vmem:[%s360_s0 + $0x8] sm:$0xff]  ;;  %v19_v7 = vld [vmem:[%s360_s0 + $0x10] sm:$0xff] }
   0x2   :  { %v180_v1 = vld [vmem:[%s362_s2] ss:$0 sm:$0xff]  ;;  %v20_v8 = vld [vmem:[%s360_s0 + $0x18] sm:$0xff]  ;;  %v80_v10 = vld [vmem:[%s361_s1 + $0x8] sm:$0xff] }
   0x3   :  { %v185_v2 = vld [vmem:[%s363_s3] ss:$0 sm:$0xff]  ;;  %v40_v3 = vmul.f32 %v180_v1, %v17_v0  ;;  %v41_v6 = vmul.f32 %v180_v1, %v18_v4  ;;  %v42_v11 = vmul.f32 %v180_v1, %v19_v7  ;;  %v81_v12 = vld [vmem:[%s361_s1 + $0x10] sm:$0xff]  ;;  %v43_v13 = vmul.f32 %v180_v1, %v20_v8  ;;  %v82_v16 = vld [vmem:[%s361_s1 + $0x18] sm:$0xff] }
   0x4   :  { %v79_v5 = vld [vmem:[%s361_s1] sm:$0xff]  ;;  %v22_v18 = vld [vmem:[%s360_s0 + $0x28] sm:$0xff]  ;;  %v23_v19 = vld [vmem:[%s360_s0 + $0x30] sm:$0xff] }
   0x5   :  { %v63_v9 = vadd.f32 %v185_v2, %v40_v3  ;;  %v21_v14 = vld [vmem:[%s360_s0 + $0x20] sm:$0xff]  ;;  %v64_v15 = vadd.f32 %v185_v2, %v41_v6  ;;  %v65_v21 = vadd.f32 %v185_v2, %v42_v11  ;;  %v66_v22 = vadd.f32 %v185_v2, %v43_v13  ;;  %v24_v25 = vld [vmem:[%s360_s0 + $0x38] sm:$0xff]  ;;  %v84_v28 = vld [vmem:[%s361_s1 + $0x28] sm:$0xff] }
   0x6   :  { %v44_v17 = vmul.f32 %v180_v1, %v21_v14  ;;  %v83_v23 = vld [vmem:[%s361_s1 + $0x20] sm:$0xff]  ;;  %v45_v24 = vmul.f32 %v180_v1, %v22_v18  ;;  %v46_v29 = vmul.f32 %v180_v1, %v23_v19  ;;  %v47_v30 = vmul.f32 %v180_v1, %v24_v25  ;;  %v85_v36 = vld [vmem:[%s361_s1 + $0x30] sm:$0xff]  ;;  %v86_v37 = vld [vmem:[%s361_s1 + $0x38] sm:$0xff] }
   0x7   :  { %v95_v20 = vadd.f32 %v79_v5, %v63_v9  ;;  %v96_v26 = vadd.f32 %v80_v10, %v64_v15  ;;  %v25_v31 = vld [vmem:[%s360_s0 + $0x40] sm:$0xff]  ;;  %v97_v33 = vadd.f32 %v81_v12, %v65_v21  ;;  %v98_v34 = vadd.f32 %v82_v16, %v66_v22  ;;  %v26_v38 = vld [vmem:[%s360_s0 + $0x48] sm:$0xff]  ;;  %v27_v43 = vld [vmem:[%s360_s0 + $0x50] sm:$0xff] }
   0x8   :  { %v67_v27 = vadd.f32 %v185_v2, %v44_v17  ;;  %v68_v35 = vadd.f32 %v185_v2, %v45_v24  ;;  %v69_v41 = vadd.f32 %v185_v2, %v46_v29  ;;  %v70_v42 = vadd.f32 %v185_v2, %v47_v30  ;;  %v28_v44 = vld [vmem:[%s360_s0 + $0x58] sm:$0xff]  ;;  %v29_v49 = vld [vmem:[%s360_s0 + $0x60] sm:$0xff]  ;;  %v30_v55 = vld [vmem:[%s360_s0 + $0x68] sm:$0xff] }
   0x9   :  { %v111_v32 = vmax.f32 %v95_v20, 0.0  ;;  %v112_v39 = vmax.f32 %v96_v26, 0.0  ;;  %v113_v45 = vmax.f32 %v97_v33, 0.0  ;;  %v114_v46 = vmax.f32 %v98_v34, 0.0  ;;  %v31_v61 = vld [vmem:[%s360_s0 + $0x70] sm:$0xff]  ;;  %v32_v62 = vld [vmem:[%s360_s0 + $0x78] sm:$0xff] }
   0xa   :  { %v99_v40 = vadd.f32 %v83_v23, %v67_v27  ;;  %v100_v47 = vadd.f32 %v84_v28, %v68_v35  ;;  %v48_v48 = vmul.f32 %v180_v1, %v25_v31  ;;  %v101_v51 = vadd.f32 %v85_v36, %v69_v41 }
   0xb   :  { %127 = vst [vmem:[%s364_s4] sm:$0xff] %v111_v32  ;;  %128 = vst [vmem:[%s364_s4 + $0x8] sm:$0xff] %v112_v39  ;;  %v102_v52 = vadd.f32 %v86_v37, %v70_v42  ;;  %v49_v54 = vmul.f32 %v180_v1, %v26_v38  ;;  %v50_v59 = vmul.f32 %v180_v1, %v27_v43 }
   0xc   :  { %v115_v50 = vmax.f32 %v99_v40, 0.0  ;;  %v116_v56 = vmax.f32 %v100_v47, 0.0  ;;  %v71_v57 = vadd.f32 %v185_v2, %v48_v48  ;;  %v51_v60 = vmul.f32 %v180_v1, %v28_v44 }
   0xd   :  { %v117_v63 = vmax.f32 %v101_v51, 0.0  ;;  %v118_v0 = vmax.f32 %v102_v52, 0.0  ;;  %v72_v3 = vadd.f32 %v185_v2, %v49_v54  ;;  %v52_v6 = vmul.f32 %v180_v1, %v29_v49 }
   0xe   :  { %v73_v8 = vadd.f32 %v185_v2, %v50_v59  ;;  %v74_v9 = vadd.f32 %v185_v2, %v51_v60  ;;  %v53_v11 = vmul.f32 %v180_v1, %v30_v55  ;;  %v54_v15 = vmul.f32 %v180_v1, %v31_v61 }
   0xf   :  { %v75_v13 = vadd.f32 %v185_v2, %v52_v6  ;;  %v55_v16 = vmul.f32 %v180_v1, %v32_v62 }
  0x10   :  { %v76_v20 = vadd.f32 %v185_v2, %v53_v11  ;;  %v77_v25 = vadd.f32 %v185_v2, %v54_v15 }
  0x11   :  { %v78_v26 = vadd.f32 %v185_v2, %v55_v16 }
  0x12   :  { %v87_v53 = vld [vmem:[%s361_s1 + $0x40] sm:$0xff] }
  0x13   :  { %129 = vst [vmem:[%s364_s4 + $0x10] sm:$0xff] %v113_v45  ;;  %130 = vst [vmem:[%s364_s4 + $0x18] sm:$0xff] %v114_v46  ;;  %v103_v7 = vadd.f32 %v87_v53, %v71_v57 }
  0x15   :  { %v119_v17 = vmax.f32 %v103_v7, 0.0 }
  0x1a   :  { %v88_v58 = vld [vmem:[%s361_s1 + $0x48] sm:$0xff] }
  0x1b   :  { %131 = vst [vmem:[%s364_s4 + $0x20] sm:$0xff] %v115_v50  ;;  %v104_v12 = vadd.f32 %v88_v58, %v72_v3 }
  0x1d   :  { %v120_v23 = vmax.f32 %v104_v12, 0.0 }
  0x22   :  { %v89_v4 = vld [vmem:[%s361_s1 + $0x50] sm:$0xff]  ;;  %v90_v5 = vld [vmem:[%s361_s1 + $0x58] sm:$0xff] }
  0x23   :  { %132 = vst [vmem:[%s364_s4 + $0x28] sm:$0xff] %v116_v56  ;;  %v105_v18 = vadd.f32 %v89_v4, %v73_v8  ;;  %v106_v19 = vadd.f32 %v90_v5, %v74_v9 }
  0x25   :  { %v121_v1 = vmax.f32 %v105_v18, 0.0  ;;  %v122_v27 = vmax.f32 %v106_v19, 0.0 }
  0x2a   :  { %v91_v10 = vld [vmem:[%s361_s1 + $0x60] sm:$0xff] }
  0x2b   :  { %133 = vst [vmem:[%s364_s4 + $0x30] sm:$0xff] %v117_v63  ;;  %134 = vst [vmem:[%s364_s4 + $0x38] sm:$0xff] %v118_v0  ;;  %v107_v24 = vadd.f32 %v91_v10, %v75_v13 }
  0x2d   :  { %v123_v29 = vmax.f32 %v107_v24, 0.0 }
  0x32   :  { %v92_v14 = vld [vmem:[%s361_s1 + $0x68] sm:$0xff]  ;;  %v93_v21 = vld [vmem:[%s361_s1 + $0x70] sm:$0xff]  ;;  %v94_v22 = vld [vmem:[%s361_s1 + $0x78] sm:$0xff] }
  0x33   :  { %135 = vst [vmem:[%s364_s4 + $0x40] sm:$0xff] %v119_v17  ;;  %v108_v28 = vadd.f32 %v92_v14, %v76_v20  ;;  %136 = vst [vmem:[%s364_s4 + $0x48] sm:$0xff] %v120_v23  ;;  %v109_v30 = vadd.f32 %v93_v21, %v77_v25  ;;  %v110_v31 = vadd.f32 %v94_v22, %v78_v26 }
  0x34   :  { %137 = vst [vmem:[%s364_s4 + $0x50] sm:$0xff] %v121_v1  ;;  %138 = vst [vmem:[%s364_s4 + $0x58] sm:$0xff] %v122_v27 }
  0x35   :  { %v124_v2 = vmax.f32 %v108_v28, 0.0  ;;  %139 = vst [vmem:[%s364_s4 + $0x60] sm:$0xff] %v123_v29  ;;  %v125_v32 = vmax.f32 %v109_v30, 0.0  ;;  %v126_v33 = vmax.f32 %v110_v31, 0.0 }
  0x37   :  { %140 = vst [vmem:[%s364_s4 + $0x68] sm:$0xff] %v124_v2  ;;  %141 = vst [vmem:[%s364_s4 + $0x70] sm:$0xff] %v125_v32 }
  0x38   :  { %142 = vst [vmem:[%s364_s4 + $0x78] sm:$0xff] %v126_v33 }

// kernel: _bottleneck_impl.5
= control target key start
LH: loop header
LB: loop body
LE: loop exit
PB: predicated region body
PF: predicated region fallthrough
CT: control target
= control target key end

     0   :  { %s3990_s21 = smov 0   ;;  %s6652_s0 = inlined_call_operand.vmem [shape: f32[2,256,8], index: 0, kind: input, shape index: {}]   ;;  %s6653_s1 = inlined_call_operand.vmem [shape: f32[72,8], index: 1, kind: input, shape index: {}]   ;;  %s6654_s2 = inlined_call_operand.vmem [shape: f32[256,9], index: 2, kind: input, shape index: {}]   ;;  %s6655_s3 = inlined_call_operand.vmem [shape: f32[1,8], index: 3, kind: input, shape index: {}]   ;;  %s6656_s4 = inlined_call_operand.vmem [shape: f32[1,8], index: 4, kind: input, shape index: {}]   ;;  %s6657_s5 = inlined_call_operand.vmem [shape: f32[2,256,8], index: 5, kind: output, shape index: {0}]   ;;  %s6658_s6 = inlined_call_operand.vmem [shape: f32[2,1,2,8], index: 6, kind: output, shape index: {1}]  }
   0x1 LB: > { %s3703_s22 = sadd.s32 4294967295, %s3938_s21   ;;  %p3707_p0 = scmp.ge.s32.totalorder %s3938_s21, 1  ;;  %s3938_s21 = sphi %s3990_s21, %s17_s21  }
   0x2   : > { %p215_p1 = scmp.lt.s32.totalorder %s3938_s21, 3 }
   0x4   : > { %p216_p2 = pnand %p3707_p0, %p215_p1 }
   0x6   : > { %219 = sbr.rel (%p216_p2) target bundleno = 1363 (0x553), region = 40 }
   0xd   : > { %v4001_v0 = vld [vmem:[%s6654_s2 + $0x10] sm:$0xff]  ;;  %v4006_v1 = vld [vmem:[%s6654_s2] sm:$0xff]  ;;  %vm263_vm0 = vcmask 64512   ;;  %v3940_v2 = vmov 0   ;;  %p4008_p3 = scmp.lt.s32.totalorder %s3703_s22, 1  ;;  %v3941_v3 = vmov 0.0  }
   0xe   : > { %3908 = vset.pattern.permute.xlu1 %v3940_v2  ;;  %3907 = vset.pattern.permute.xlu0 %v3940_v2  ;;  %266 = vst.msk [vmem:[#allocation2 + $0x10] sm:$0xff] %vm263_vm0, %v3941_v3  ;;  %267 = vst.msk [vmem:[#allocation2 + $0x18] sm:$0xff] %vm263_vm0, %v3941_v3  ;;  %v4027_v4 = vld [vmem:[%s6654_s2 + $0x18] sm:$0xff]  ;;  %v4032_v5 = vld [vmem:[%s6654_s2 + $0x8] sm:$0xff]  ;;  %s3948_s11 = smov 16   ;;  %s3949_s12 = smov 24  }
   0xf   : > { %524 = vperm.xlu1 %3908, %v4001_v0   ;;  %514 = vperm.xlu0 %3907, %v4006_v1   ;;  %264 = vst.msk [vmem:[#allocation2] sm:$0xff] %vm263_vm0, %v3941_v3  ;;  %265 = vst.msk [vmem:[#allocation2 + $0x8] sm:$0xff] %vm263_vm0, %v3941_v3  ;;  %s7001_s22 = smov (!%p4008_p3, %s3703_s22), 1  ;;  %v4044_v6 = vld [vmem:[%s6654_s2 + $0x28] sm:$0xff]  ;;  %v4049_v7 = vld [vmem:[%s6654_s2 + $0x20] sm:$0xff]  ;;  %s3950_s13 = smov 32  }
  0x10   : > { %268 = vst.msk [vmem:[#allocation2 + $0x20] sm:$0xff] %vm263_vm0, %v3941_v3  ;;  %269 = vst.msk [vmem:[#allocation2 + $0x128] sm:$0xff] %vm263_vm0, %v3941_v3  ;;  %s3749_s8 = sshll.u32 %s7001_s22, 8  ;;  %v4063_v8 = vld [vmem:[%s6654_s2 + $0x38] sm:$0xff]  ;;  %v4068_v9 = vld [vmem:[%s6654_s2 + $0x30] sm:$0xff]  ;;  %s3951_s14 = smov 40  }
  0x11   : > { %270 = vst.msk [vmem:[#allocation2 + $0x130] sm:$0xff] %vm263_vm0, %v3941_v3  ;;  %271 = vst.msk [vmem:[#allocation2 + $0x138] sm:$0xff] %vm263_vm0, %v3941_v3  ;;  %s4056_s15 = scalar_lea.vmem %s6652_s0, %s3749_s8  ;;  %v4075_v12 = vld [vmem:[%s6655_s3] ss:$0 sm:$0xff]  ;;  %v4096_v23 = vld [vmem:[%s6654_s2 + $0x48] sm:$0xff]  ;;  %s3952_s16 = smov 56  }
  0x12   : > { %272 = vst.msk [vmem:[#allocation2 + $0x140] sm:$0xff] %vm263_vm0, %v3941_v3  ;;  %273 = vst.msk [vmem:[#allocation2 + $0x148] sm:$0xff] %vm263_vm0, %v3941_v3  ;;  %v274_v10 = vld [vmem:[%s4056_s15] sm:$0xff]  ;;  %v275_v11 = vld [vmem:[%s4056_s15 + $0x8] sm:$0xff]  ;;  %s3953_s17 = smov 64   ;;  %s3954_s18 = smov 48  }
  0x13   : > { %529 = vperm.xlu1 %3908, %v4027_v4   ;;  %519 = vperm.xlu0 %3907, %v4032_v5   ;;  %v313_v13 = vmul.f32 %v4075_v12, %v274_v10  ;;  %v314_v14 = vmul.f32 %v4075_v12, %v275_v11  ;;  %v4082_v15 = vld [vmem:[%s6656_s4] ss:$0 sm:$0xff]  ;;  %v276_v16 = vld [vmem:[%s4056_s15 + $0x10] sm:$0xff]  ;;  %v277_v17 = vld [vmem:[%s4056_s15 + $0x18] sm:$0xff]  ;;  %vm2816_vm1 = vcmask 130048   ;;  %vm2849_vm2 = vcmask 195584   ;;  %s6019_s27 = scalar_lea.vmem %s6657_s5, %s3749_s8 }
  0x14   : > { %v315_v18 = vmul.f32 %v4075_v12, %v276_v16  ;;  %v316_v19 = vmul.f32 %v4075_v12, %v277_v17  ;;  %v278_v20 = vld [vmem:[%s4056_s15 + $0x20] sm:$0xff]  ;;  %v279_v21 = vld [vmem:[%s4056_s15 + $0x28] sm:$0xff]  ;;  %v280_v22 = vld [vmem:[%s4056_s15 + $0x30] sm:$0xff]  ;;  %vm2882_vm3 = vcmask 261120   ;;  %vm2948_vm4 = vcmask 392192   ;;  %s3712_s8 = sshll.u32 %s7001_s22, 1 }
  0x15   : > { %v4101_v24 = vld [vmem:[%s6654_s2 + $0x40] sm:$0xff]  ;;  %v352_v25 = vadd.f32 %v4082_v15, %v313_v13  ;;  %v353_v26 = vadd.f32 %v4082_v15, %v314_v14  ;;  %v317_v27 = vmul.f32 %v4075_v12, %v278_v20  ;;  %v318_v28 = vmul.f32 %v4075_v12, %v279_v21  ;;  %v281_v29 = vld [vmem:[%s4056_s15 + $0x38] sm:$0xff]  ;;  %v283_v35 = vld [vmem:[%s4056_s15 + $0x48] sm:$0xff] }
  0x16   : > { %v354_v30 = vadd.f32 %v4082_v15, %v315_v18  ;;  %v355_v31 = vadd.f32 %v4082_v15, %v316_v19  ;;  %v319_v32 = vmul.f32 %v4075_v12, %v280_v22  ;;  %v320_v33 = vmul.f32 %v4075_v12, %v281_v29  ;;  %v282_v34 = vld [vmem:[%s4056_s15 + $0x40] sm:$0xff]  ;;  %v284_v40 = vld [vmem:[%s4056_s15 + $0x50] sm:$0xff]  ;;  %v285_v41 = vld [vmem:[%s4056_s15 + $0x58] sm:$0xff] }
  0x17   : > { %539 = vperm.xlu1 %3908, %v4044_v6   ;;  %534 = vperm.xlu0 %3907, %v4049_v7   ;;  %v384_v36 = vmax.f32 %v352_v25, 0.0  ;;  %v385_v37 = vmax.f32 %v353_v26, 0.0  ;;  %v356_v38 = vadd.f32 %v4082_v15, %v317_v27  ;;  %v357_v39 = vadd.f32 %v4082_v15, %v318_v28  ;;  %v4123_v42 = vld [vmem:[%s6654_s2 + $0x58] sm:$0xff]  ;;  %v4130_v47 = vld [vmem:[%s6654_s2 + $0x50] sm:$0xff]  ;;  %v286_v52 = vld [vmem:[%s4056_s15 + $0x60] sm:$0xff] }
  0x18   : > { %v386_v43 = vmax.f32 %v354_v30, 0.0  ;;  %v387_v44 = vmax.f32 %v355_v31, 0.0  ;;  %v358_v45 = vadd.f32 %v4082_v15, %v319_v32  ;;  %v359_v46 = vadd.f32 %v4082_v15, %v320_v33  ;;  %v287_v53 = vld [vmem:[%s4056_s15 + $0x68] sm:$0xff]  ;;  %v4162_v3 = vld [vmem:[%s6654_s2 + $0x60] sm:$0xff]  ;;  %v288_v16 = vld [vmem:[%s4056_s15 + $0x70] sm:$0xff] }
  0x19   : > { %416 = vst.msk [vmem:[#allocation2 + $0x28] sm:$0xff] %vm263_vm0, %v384_v36  ;;  %417 = vst.msk [vmem:[#allocation2 + $0x30] sm:$0xff] %vm263_vm0, %v385_v37  ;;  %v388_v48 = vmax.f32 %v356_v38, 0.0  ;;  %v389_v49 = vmax.f32 %v357_v39, 0.0  ;;  %v321_v50 = vmul.f32 %v4075_v12, %v282_v34  ;;  %v322_v51 = vmul.f32 %v4075_v12, %v283_v35  ;;  %v4153_v62 = vld [vmem:[%s6654_s2 + $0x68] sm:$0xff]  ;;  %v289_v17 = vld [vmem:[%s4056_s15 + $0x78] sm:$0xff] }
  0x1a   : > { %418 = vst.msk [vmem:[#allocation2 + $0x38] sm:$0xff] %vm263_vm0, %v386_v43  ;;  %419 = vst.msk [vmem:[#allocation2 + $0x40] sm:$0xff] %vm263_vm0, %v387_v44  ;;  %v390_v54 = vmax.f32 %v358_v45, 0.0  ;;  %v391_v55 = vmax.f32 %v359_v46, 0.0  ;;  %v323_v56 = vmul.f32 %v4075_v12, %v284_v40  ;;  %v324_v57 = vmul.f32 %v4075_v12, %v285_v41  ;;  %v4181_v28 = vld [vmem:[%s6654_s2 + $0x78] sm:$0xff]  ;;  %v4186_v29 = vld [vmem:[%s6654_s2 + $0x70] sm:$0xff] }
  0x1b   : > { %549 = vperm.xlu1 %3908, %v4063_v8   ;;  %544 = vperm.xlu0 %3907, %v4068_v9   ;;  %420 = vst.msk [vmem:[#allocation2 + $0x48] sm:$0xff] %vm263_vm0, %v388_v48  ;;  %421 = vst.msk [vmem:[#allocation2 + $0x50] sm:$0xff] %vm263_vm0, %v389_v49  ;;  %v360_v58 = vadd.f32 %v4082_v15, %v321_v50  ;;  %v361_v59 = vadd.f32 %v4082_v15, %v322_v51  ;;  %v290_v30 = vld [vmem:[%s4056_s15 + $0x80] sm:$0xff]  ;;  %v291_v33 = vld [vmem:[%s4056_s15 + $0x88] sm:$0xff]  ;;  %vm2915_vm5 = vcmask 326656   ;;  %vm2981_vm6 = vcmask 457728  }
  0x1c   : > { %v325_v60 = vmul.f32 %v4075_v12, %v286_v52  ;;  %v326_v61 = vmul.f32 %v4075_v12, %v287_v53  ;;  %422 = vst.msk [vmem:[#allocation2 + $0x58] sm:$0xff] %vm263_vm0, %v390_v54  ;;  %423 = vst.msk [vmem:[#allocation2 + $0x60] sm:$0xff] %vm263_vm0, %v391_v55  ;;  %v362_v63 = vadd.f32 %v4082_v15, %v323_v56  ;;  %v4199_v36 = vld [vmem:[%s6654_s2 + $0x88] sm:$0xff]  ;;  %v4207_v38 = vld [vmem:[%s6654_s2 + $0x80] sm:$0xff]  ;;  %vm3014_vm7 = vcmask 523264  }
  0x1d   : > { %v363_v2 = vadd.f32 %v4082_v15, %v324_v57  ;;  %v392_v10 = vmax.f32 %v360_v58, 0.0  ;;  %v393_v11 = vmax.f32 %v361_v59, 0.0  ;;  %v327_v20 = vmul.f32 %v4075_v12, %v288_v16  ;;  %v292_v40 = vld [vmem:[%s4056_s15 + $0x90] sm:$0xff]  ;;  %v293_v41 = vld [vmem:[%s4056_s15 + $0x98] sm:$0xff]  ;;  %v294_v52 = vld [vmem:[%s4056_s15 + $0xa0] sm:$0xff] }
  0x1e   : > { %v364_v13 = vadd.f32 %v4082_v15, %v325_v60  ;;  %v365_v14 = vadd.f32 %v4082_v15, %v326_v61  ;;  %v394_v18 = vmax.f32 %v362_v63, 0.0  ;;  %v328_v21 = vmul.f32 %v4075_v12, %v289_v17  ;;  %v4219_v48 = vld [vmem:[%s6654_s2 + $0x98] sm:$0xff]  ;;  %v4227_v51 = vld [vmem:[%s6654_s2 + $0x90] sm:$0xff]  ;;  %v295_v53 = vld [vmem:[%s4056_s15 + $0xa8] sm:$0xff] }
  0x1f   : > { %559 = vperm.xlu1 %3908, %v4096_v23   ;;  %554 = vperm.xlu0 %3907, %v4101_v24   ;;  %v395_v19 = vmax.f32 %v363_v2, 0.0  ;;  %424 = vst.msk [vmem:[#allocation2 + $0x68] sm:$0xff] %vm263_vm0, %v392_v10  ;;  %425 = vst.msk [vmem:[#allocation2 + $0x70] sm:$0xff] %vm263_vm0, %v393_v11  ;;  %v366_v26 = vadd.f32 %v4082_v15, %v327_v20  ;;  %v329_v34 = vmul.f32 %v4075_v12, %v290_v30  ;;  %v4239_v58 = vld [vmem:[%s6654_s2 + $0xa8] sm:$0xff]  ;;  %v4248_v61 = vld [vmem:[%s6654_s2 + $0xa0] sm:$0xff]  ;;  %vm3056_vm8 = vcmask 588800  }
  0x20   : > { %v396_v22 = vmax.f32 %v364_v13, 0.0  ;;  %v397_v25 = vmax.f32 %v365_v14, 0.0  ;;  %426 = vst.msk [vmem:[#allocation2 + $0x78] sm:$0xff] %vm263_vm0, %v394_v18  ;;  %v367_v27 = vadd.f32 %v4082_v15, %v328_v21  ;;  %v330_v35 = vmul.f32 %v4075_v12, %v291_v33  ;;  %v296_v63 = vld [vmem:[%s4056_s15 + $0xb0] sm:$0xff]  ;;  %v297_v2 = vld [vmem:[%s4056_s15 + $0xb8] sm:$0xff]  ;;  %v298_v20 = vld [vmem:[%s4056_s15 + $0xc0] sm:$0xff] }
  0x21   : > { %427 = vst.msk [vmem:[#allocation2 + $0x80] sm:$0xff] %vm263_vm0, %v395_v19  ;;  %v398_v31 = vmax.f32 %v366_v26, 0.0  ;;  %v368_v37 = vadd.f32 %v4082_v15, %v329_v34  ;;  %v331_v44 = vmul.f32 %v4075_v12, %v292_v40  ;;  %v332_v45 = vmul.f32 %v4075_v12, %v293_v41  ;;  %v4259_v16 = vld [vmem:[%s6654_s2 + $0xb8] sm:$0xff]  ;;  %v4268_v19 = vld [vmem:[%s6654_s2 + $0xb0] sm:$0xff]  ;;  %v299_v21 = vld [vmem:[%s4056_s15 + $0xc8] sm:$0xff] }
  0x22   : > { %428 = vst.msk [vmem:[#allocation2 + $0x88] sm:$0xff] %vm263_vm0, %v396_v22  ;;  %429 = vst.msk [vmem:[#allocation2 + $0x90] sm:$0xff] %vm263_vm0, %v397_v25  ;;  %v399_v32 = vmax.f32 %v367_v27, 0.0  ;;  %v369_v39 = vadd.f32 %v4082_v15, %v330_v35  ;;  %v333_v56 = vmul.f32 %v4075_v12, %v294_v52  ;;  %v334_v57 = vmul.f32 %v4075_v12, %v295_v53  ;;  %v4279_v30 = vld [vmem:[%s6654_s2 + $0xc8] sm:$0xff]  ;;  %v4288_v33 = vld [vmem:[%s6654_s2 + $0xc0] sm:$0xff] }
  0x23   : > { %569 = vperm.xlu1 %3908, %v4123_v42   ;;  %564 = vperm.xlu0 %3907, %v4130_v47   ;;  %430 = vst.msk [vmem:[#allocation2 + $0x98] sm:$0xff] %vm263_vm0, %v398_v31  ;;  %v400_v43 = vmax.f32 %v368_v37, 0.0  ;;  %v370_v49 = vadd.f32 %v4082_v15, %v331_v44  ;;  %v371_v50 = vadd.f32 %v4082_v15, %v332_v45  ;;  %v300_v34 = vld [vmem:[%s4056_s15 + $0xd0] sm:$0xff]  ;;  %v301_v35 = vld [vmem:[%s4056_s15 + $0xd8] sm:$0xff]  ;;  %v4317_v52 = vld [vmem:[%s6654_s2 + $0xe8] sm:$0xff]  ;;  %vm3613_vm9 = vcmask 1040384  }
  0x24   : > { %431 = vst.msk [vmem:[#allocation2 + $0xa0] sm:$0xff] %vm263_vm0, %v399_v32  ;;  %v401_v46 = vmax.f32 %v369_v39, 0.0  ;;  %v372_v59 = vadd.f32 %v4082_v15, %v333_v56  ;;  %v373_v60 = vadd.f32 %v4082_v15, %v334_v57  ;;  %v335_v13 = vmul.f32 %v4075_v12, %v296_v63  ;;  %v4303_v45 = vld [vmem:[%s6654_s2 + $0xd8] sm:$0xff]  ;;  %v4322_v53 = vld [vmem:[%s6654_s2 + $0xe0] sm:$0xff] }
  0x25   : > { %432 = vst.msk [vmem:[#allocation2 + $0xa8] sm:$0xff] %vm263_vm0, %v400_v43  ;;  %v402_v54 = vmax.f32 %v370_v49, 0.0  ;;  %v403_v55 = vmax.f32 %v371_v50, 0.0  ;;  %v336_v14 = vmul.f32 %v4075_v12, %v297_v2  ;;  %v337_v26 = vmul.f32 %v4075_v12, %v298_v20  ;;  %v302_v57 = vld [vmem:[%s4056_s15 + $0xe0] sm:$0xff] }
  0x26   : > { %433 = vst.msk [vmem:[#allocation2 + $0xb0] sm:$0xff] %vm263_vm0, %v401_v46  ;;  %v404_v10 = vmax.f32 %v372_v59, 0.0  ;;  %v405_v11 = vmax.f32 %v373_v60, 0.0  ;;  %v374_v17 = vadd.f32 %v4082_v15, %v335_v13  ;;  %v338_v27 = vmul.f32 %v4075_v12, %v299_v21  ;;  %v4308_v46 = vld [vmem:[%s6654_s2 + $0xd0] sm:$0xff] }
  0x27   : > { %579 = vperm.xlu1 %3908, %v4153_v62   ;;  %574 = vperm.xlu0 %3907, %v4162_v3   ;;  %434 = vst.msk [vmem:[#allocation2 + $0xb8] sm:$0xff] %vm263_vm0, %v402_v54  ;;  %435 = vst.msk [vmem:[#allocation2 + $0xc0] sm:$0xff] %vm263_vm0, %v403_v55  ;;  %v375_v18 = vadd.f32 %v4082_v15, %v336_v14  ;;  %v376_v31 = vadd.f32 %v4082_v15, %v337_v26  ;;  %v4329_v54 = vld [vmem:[%s6654_s2 + $0xf8] sm:$0xff]  ;;  %v4334_v55 = vld [vmem:[%s6654_s2 + $0xf0] sm:$0xff]  ;;  %v3942_v56 = vmov 2   ;;  %vm3615_vm10 = vcmask 58368  }
  0x28   : > { %436 = vst.msk [vmem:[#allocation2 + $0xc8] sm:$0xff] %vm263_vm0, %v404_v10  ;;  %437 = vst.msk [vmem:[#allocation2 + $0xd0] sm:$0xff] %vm263_vm0, %v405_v11  ;;  %v406_v22 = vmax.f32 %v374_v17, 0.0  ;;  %v377_v32 = vadd.f32 %v4082_v15, %v338_v27  ;;  %v339_v40 = vmul.f32 %v4075_v12, %v300_v34  ;;  %v340_v41 = vmul.f32 %v4075_v12, %v301_v35 }
  0x29   : > { %v407_v25 = vmax.f32 %v375_v18, 0.0  ;;  %v408_v37 = vmax.f32 %v376_v31, 0.0  ;;  %v341_v59 = vmul.f32 %v4075_v12, %v302_v57  ;;  %v3943_v11 = vmov 3   ;;  %v304_v57 = vld [vmem:[%s4056_s15 + $0xf0] sm:$0xff] }
  0x2a   : > { %438 = vst.msk [vmem:[#allocation2 + $0xd8] sm:$0xff] %vm263_vm0, %v406_v22  ;;  %v409_v39 = vmax.f32 %v377_v32, 0.0  ;;  %v378_v43 = vadd.f32 %v4082_v15, %v339_v40  ;;  %v379_v44 = vadd.f32 %v4082_v15, %v340_v41 }
  0x2b   : > { %589 = vperm.xlu1 %3908, %v4181_v28   ;;  %584 = vperm.xlu0 %3907, %v4186_v29   ;;  %439 = vst.msk [vmem:[#allocation2 + $0xe0] sm:$0xff] %vm263_vm0, %v407_v25  ;;  %440 = vst.msk [vmem:[#allocation2 + $0xe8] sm:$0xff] %vm263_vm0, %v408_v37  ;;  %v380_v60 = vadd.f32 %v4082_v15, %v341_v59 }
  0x2c   : > { %441 = vst.msk [vmem:[#allocation2 + $0xf0] sm:$0xff] %vm263_vm0, %v409_v39  ;;  %v410_v49 = vmax.f32 %v378_v43, 0.0  ;;  %v411_v50 = vmax.f32 %v379_v44, 0.0 }
  0x2d   : > { %v412_v63 = vmax.f32 %v380_v60, 0.0  ;;  %v343_v60 = vmul.f32 %v4075_v12, %v304_v57 }
  0x2e   : > { %442 = vst.msk [vmem:[#allocation2 + $0xf8] sm:$0xff] %vm263_vm0, %v410_v49  ;;  %443 = vst.msk [vmem:[#allocation2 + $0x100] sm:$0xff] %vm263_vm0, %v411_v50 }
  0x2f   : > { %599 = vperm.xlu1 %3908, %v4199_v36   ;;  %594 = vperm.xlu0 %3907, %v4207_v38   ;;  %444 = vst.msk [vmem:[#allocation2 + $0x108] sm:$0xff] %vm263_vm0, %v412_v63 }
  0x33   : > { %609 = vperm.xlu1 %3908, %v4219_v48   ;;  %604 = vperm.xlu0 %3907, %v4227_v51  }
  0x37   : > { %619 = vperm.xlu1 %3908, %v4239_v58   ;;  %614 = vperm.xlu0 %3907, %v4248_v61  }
  0x3b   : > { %629 = vperm.xlu1 %3908, %v4259_v16   ;;  %624 = vperm.xlu0 %3907, %v4268_v19  }
  0x3f   : > { %639 = vperm.xlu1 %3908, %v4279_v30   ;;  %634 = vperm.xlu0 %3907, %v4288_v33  }
  0x43   : > { %649 = vperm.xlu1 %3908, %v4303_v45   ;;  %644 = vperm.xlu0 %3907, %v4308_v46  }
  0x47   : > { %659 = vperm.xlu1 %3908, %v4317_v52   ;;  %654 = vperm.xlu0 %3907, %v4322_v53  }
  0x4b   : > { %669 = vperm.xlu1 %3908, %v4329_v54   ;;  %664 = vperm.xlu0 %3907, %v4334_v55  }
  0x4f   : > { %3910 = vset.pattern.permute.xlu1 %v3942_v56  ;;  %3909 = vset.pattern.permute.xlu0 %v3942_v56  ;;  %v303_v56 = vld [vmem:[%s4056_s15 + $0xe8] sm:$0xff] }
  0x50   : > { %773 = vperm.xlu1 %3910, %v4032_v5   ;;  %769 = vperm.xlu0 %3909, %v4006_v1   ;;  %v342_v59 = vmul.f32 %v4075_v12, %v303_v56 }
  0x52   : > { %v381_v63 = vadd.f32 %v4082_v15, %v342_v59  ;;  %v305_v59 = vld [vmem:[%s4056_s15 + $0xf8] sm:$0xff]  ;;  %s3947_s15 = smov 8  }
  0x54   : > { %777 = vperm.xlu1 %3910, %v4001_v0   ;;  %781 = vperm.xlu0 %3909, %v4027_v4  }
  0x58   : > { %785 = vperm.xlu1 %3910, %v4049_v7   ;;  %789 = vperm.xlu0 %3909, %v4044_v6  }
  0x5c   : > { %793 = vperm.xlu1 %3910, %v4068_v9   ;;  %797 = vperm.xlu0 %3909, %v4063_v8  }
  0x60   : > { %801 = vperm.xlu1 %3910, %v4101_v24   ;;  %805 = vperm.xlu0 %3909, %v4096_v23  }
  0x64   : > { %809 = vperm.xlu1 %3910, %v4130_v47   ;;  %813 = vperm.xlu0 %3909, %v4123_v42  }
  0x68   : > { %817 = vperm.xlu1 %3910, %v4162_v3   ;;  %821 = vperm.xlu0 %3909, %v4153_v62  }
  0x6c   : > { %825 = vperm.xlu1 %3910, %v4186_v29   ;;  %829 = vperm.xlu0 %3909, %v4181_v28  }
  0x70   : > { %833 = vperm.xlu1 %3910, %v4207_v38   ;;  %837 = vperm.xlu0 %3909, %v4199_v36  }
  0x74   : > { %841 = vperm.xlu1 %3910, %v4227_v51   ;;  %845 = vperm.xlu0 %3909, %v4219_v48  }
  0x78   : > { %849 = vperm.xlu1 %3910, %v4248_v61   ;;  %853 = vperm.xlu0 %3909, %v4239_v58  }
  0x7c   : > { %857 = vperm.xlu1 %3910, %v4268_v19   ;;  %861 = vperm.xlu0 %3909, %v4259_v16  }
  0x80   : > { %865 = vperm.xlu1 %3910, %v4288_v33   ;;  %869 = vperm.xlu0 %3909, %v4279_v30  }
  0x84   : > { %873 = vperm.xlu1 %3910, %v4308_v46   ;;  %877 = vperm.xlu0 %3909, %v4303_v45  }
  0x88   : > { %881 = vperm.xlu1 %3910, %v4322_v53   ;;  %885 = vperm.xlu0 %3909, %v4317_v52  }
  0x8c   : > { %889 = vperm.xlu1 %3910, %v4334_v55   ;;  %893 = vperm.xlu0 %3909, %v4329_v54  }
  0x8e   : > { %v4374_v2 = vpop.permute.xlu1 %524  ;;  %v4376_v10 = vpop.permute.xlu0 %514 }
  0x8f   : > { %6674 = vst [vmem:[#allocation3_spill] sm:$0xff] %v4374_v2  ;;  %6675 = vst [vmem:[#allocation4_spill] sm:$0xff] %v4376_v10 }
  0x90   : > { %3911 = vset.pattern.permute.xlu1 %v3943_v11  ;;  %3912 = vset.pattern.permute.xlu0 %v3943_v11  ;;  %v382_v11 = vadd.f32 %v4082_v15, %v343_v60  ;;  %v344_v60 = vmul.f32 %v4075_v12, %v305_v59  ;;  %v3944_v59 = vmov 5  }
  0x91   : > { %961 = vperm.xlu1 %3911, %v4006_v1   ;;  %965 = vperm.xlu0 %3912, %v4032_v5  }
  0x92   : > { %v4380_v13 = vpop.permute.xlu1 %529  ;;  %v4382_v14 = vpop.permute.xlu0 %519 }
  0x93   : > { %6676 = vst [vmem:[#allocation5_spill] sm:$0xff] %v4380_v13  ;;  %6677 = vst [vmem:[#allocation6_spill] sm:$0xff] %v4382_v14 }
  0x95   : > { %969 = vperm.xlu1 %3911, %v4001_v0   ;;  %977 = vperm.xlu0 %3912, %v4049_v7  }
  0x96   : > { %v4386_v17 = vpop.permute.xlu1 %539  ;;  %v4388_v18 = vpop.permute.xlu0 %534 }
  0x97   : > { %6678 = vst [vmem:[#allocation7_spill] sm:$0xff] %v4386_v17  ;;  %6679 = vst [vmem:[#allocation8_spill] sm:$0xff] %v4388_v18 }
  0x99   : > { %973 = vperm.xlu1 %3911, %v4027_v4   ;;  %985 = vperm.xlu0 %3912, %v4068_v9  }
  0x9a   : > { %v4392_v20 = vpop.permute.xlu1 %549  ;;  %v4394_v21 = vpop.permute.xlu0 %544 }
  0x9b   : > { %6680 = vst [vmem:[#allocation9_spill] sm:$0xff] %v4392_v20  ;;  %6681 = vst [vmem:[#allocation10_spill] sm:$0xff] %v4394_v21 }
  0x9d   : > { %981 = vperm.xlu1 %3911, %v4044_v6   ;;  %993 = vperm.xlu0 %3912, %v4101_v24  }
  0x9e   : > { %v4398_v22 = vpop.permute.xlu1 %559  ;;  %v4400_v25 = vpop.permute.xlu0 %554 }
  0x9f   : > { %6682 = vst [vmem:[#allocation11_spill] sm:$0xff] %v4398_v22  ;;  %6683 = vst [vmem:[#allocation12_spill] sm:$0xff] %v4400_v25 }
  0xa1   : > { %989 = vperm.xlu1 %3911, %v4063_v8   ;;  %1001 = vperm.xlu0 %3912, %v4130_v47  }
  0xa2   : > { %v4404_v26 = vpop.permute.xlu1 %569  ;;  %v4406_v27 = vpop.permute.xlu0 %564 }
  0xa3   : > { %6684 = vst [vmem:[#allocation13_spill] sm:$0xff] %v4404_v26  ;;  %6685 = vst [vmem:[#allocation14_spill] sm:$0xff] %v4406_v27 }
  0xa5   : > { %997 = vperm.xlu1 %3911, %v4096_v23   ;;  %1009 = vperm.xlu0 %3912, %v4162_v3  }
  0xa6   : > { %v4410_v31 = vpop.permute.xlu1 %579  ;;  %v4412_v32 = vpop.permute.xlu0 %574 }
  0xa7   : > { %6686 = vst [vmem:[#allocation15_spill] sm:$0xff] %v4410_v31  ;;  %6687 = vst [vmem:[#allocation16_spill] sm:$0xff] %v4412_v32 }
  0xa9   : > { %1005 = vperm.xlu1 %3911, %v4123_v42   ;;  %1017 = vperm.xlu0 %3912, %v4186_v29  }
  0xaa   : > { %v4416_v34 = vpop.permute.xlu1 %589  ;;  %v4418_v35 = vpop.permute.xlu0 %584 }
  0xab   : > { %6688 = vst [vmem:[#allocation17_spill] sm:$0xff] %v4416_v34  ;;  %6689 = vst [vmem:[#allocation18_spill] sm:$0xff] %v4418_v35 }
  0xad   : > { %1013 = vperm.xlu1 %3911, %v4153_v62   ;;  %1025 = vperm.xlu0 %3912, %v4207_v38  }
  0xae   : > { %v4422_v37 = vpop.permute.xlu1 %599  ;;  %v4424_v39 = vpop.permute.xlu0 %594 }
  0xaf   : > { %6690 = vst [vmem:[#allocation19_spill] sm:$0xff] %v4422_v37  ;;  %6691 = vst [vmem:[#allocation20_spill] sm:$0xff] %v4424_v39 }
  0xb1   : > { %1021 = vperm.xlu1 %3911, %v4181_v28   ;;  %1033 = vperm.xlu0 %3912, %v4227_v51  }
  0xb2   : > { %v4428_v40 = vpop.permute.xlu1 %609  ;;  %v4430_v41 = vpop.permute.xlu0 %604 }
  0xb3   : > { %6692 = vst [vmem:[#allocation21_spill] sm:$0xff] %v4428_v40  ;;  %6693 = vst [vmem:[#allocation22_spill] sm:$0xff] %v4430_v41 }
  0xb5   : > { %1029 = vperm.xlu1 %3911, %v4199_v36   ;;  %1041 = vperm.xlu0 %3912, %v4248_v61  }
  0xb6   : > { %v4434_v43 = vpop.permute.xlu1 %619  ;;  %v4436_v44 = vpop.permute.xlu0 %614 }
  0xb7   : > { %6694 = vst [vmem:[#allocation23_spill] sm:$0xff] %v4434_v43  ;;  %6695 = vst [vmem:[#allocation24_spill] sm:$0xff] %v4436_v44  ;;  %v414_v44 = vmax.f32 %v382_v11, 0.0 }
  0xb9   : > { %1037 = vperm.xlu1 %3911, %v4219_v48   ;;  %1049 = vperm.xlu0 %3912, %v4268_v19   ;;  %446 = vst.msk [vmem:[#allocation2 + $0x118] sm:$0xff] %vm263_vm0, %v414_v44 }
  0xba   : > { %v4440_v49 = vpop.permute.xlu1 %629  ;;  %v4442_v50 = vpop.permute.xlu0 %624 }
  0xbb   : > { %6696 = vst [vmem:[#allocation25_spill] sm:$0xff] %v4440_v49  ;;  %6697 = vst [vmem:[#allocation26_spill] sm:$0xff] %v4442_v50  ;;  %v413_v50 = vmax.f32 %v381_v63, 0.0  ;;  %v383_v63 = vadd.f32 %v4082_v15, %v344_v60 }
  0xbd   : > { %1045 = vperm.xlu1 %3911, %v4239_v58   ;;  %1057 = vperm.xlu0 %3912, %v4288_v33   ;;  %445 = vst.msk [vmem:[#allocation2 + $0x110] sm:$0xff] %vm263_vm0, %v413_v50  ;;  %v415_v50 = vmax.f32 %v383_v63, 0.0 }
  0xbe   : > { %v4452_v43 = vpop.permute.xlu1 %639  ;;  %v4454_v49 = vpop.permute.xlu0 %634 }
  0xbf   : > { %6698 = vst [vmem:[#allocation27_spill] sm:$0xff] %v4452_v43  ;;  %6699 = vst [vmem:[#allocation28_spill] sm:$0xff] %v4454_v49 }
  0xc0   : > { %447 = vst.msk [vmem:[#allocation2 + $0x120] sm:$0xff] %vm263_vm0, %v415_v50 }
  0xc1   : > { %1053 = vperm.xlu1 %3911, %v4259_v16   ;;  %1065 = vperm.xlu0 %3912, %v4308_v46  }
  0xc2   : > { %v4460_v56 = vpop.permute.xlu1 %649  ;;  %v4462_v57 = vpop.permute.xlu0 %644 }
  0xc3   : > { %6700 = vst [vmem:[#allocation29_spill] sm:$0xff] %v4460_v56  ;;  %6701 = vst [vmem:[#allocation30_spill] sm:$0xff] %v4462_v57 }
  0xc5   : > { %1061 = vperm.xlu1 %3911, %v4279_v30   ;;  %1073 = vperm.xlu0 %3912, %v4322_v53  }
  0xc6   : > { %v4469_v11 = vpop.permute.xlu1 %659  ;;  %v4471_v43 = vpop.permute.xlu0 %654 }
  0xc7   : > { %6702 = vst [vmem:[#allocation31_spill] sm:$0xff] %v4469_v11  ;;  %6703 = vst [vmem:[#allocation32_spill] sm:$0xff] %v4471_v43 }
  0xc9   : > { %1069 = vperm.xlu1 %3911, %v4303_v45   ;;  %1081 = vperm.xlu0 %3912, %v4334_v55  }
  0xca   : > { %v4476_v44 = vpop.permute.xlu1 %669  ;;  %v4478_v12 = vpop.permute.xlu0 %664 }
  0xcb   : > { %6704 = vst [vmem:[#allocation33_spill] sm:$0xff] %v4476_v44  ;;  %6705 = vst [vmem:[#allocation34_spill] sm:$0xff] %v4478_v12 }
  0xcd   : > { %1077 = vperm.xlu1 %3911, %v4317_v52   ;;  %3913 = vset.pattern.permute.xlu0 %v3944_v59 }
  0xce   : > { %1185 = vperm.xlu0 %3913, %v4006_v1  }
  0xcf   : > { %v4482_v15 = vpop.permute.xlu1 %773  ;;  %v4484_v60 = vpop.permute.xlu0 %769 }
  0xd1   : > { %1085 = vperm.xlu1 %3911, %v4329_v54  }
  0xd2   : > { %1197 = vperm.xlu0 %3913, %v4027_v4  }
  0xd3   : > { %v4488_v63 = vpop.permute.xlu1 %777  ;;  %v4490_v50 = vpop.permute.xlu0 %781 }
  0xd5   : > { %3914 = vset.pattern.permute.xlu1 %v3944_v59 }
  0xd6   : > { %1189 = vperm.xlu1 %3914, %v4032_v5   ;;  %1205 = vperm.xlu0 %3913, %v4044_v6  }
  0xd7   : > { %v4494_v12 = vpop.permute.xlu1 %785  ;;  %v4496_v44 = vpop.permute.xlu0 %789 }
  0xda   : > { %1193 = vperm.xlu1 %3914, %v4001_v0   ;;  %1213 = vperm.xlu0 %3913, %v4063_v8  }
  0xdb   : > { %v4500_v11 = vpop.permute.xlu1 %793  ;;  %v4502_v43 = vpop.permute.xlu0 %797 }
  0xde   : > { %1201 = vperm.xlu1 %3914, %v4049_v7   ;;  %1221 = vperm.xlu0 %3913, %v4096_v23  }
  0xdf   : > { %v4506_v59 = vpop.permute.xlu1 %801  ;;  %v4508_v56 = vpop.permute.xlu0 %805 }
  0xe2   : > { %1209 = vperm.xlu1 %3914, %v4068_v9   ;;  %1229 = vperm.xlu0 %3913, %v4123_v42  }
  0xe3   : > { %v4512_v57 = vpop.permute.xlu1 %809  ;;  %v4514_v49 = vpop.permute.xlu0 %813 }
  0xe4   : > { %6706 = vst [vmem:[#allocation35_spill] sm:$0xff] %v4514_v49  ;;  %v739_v49 = vld [vmem:[#allocation2 + $0x22] sm:$0xff] }
  0xe6   : > { %1217 = vperm.xlu1 %3914, %v4101_v24   ;;  %1237 = vperm.xlu0 %3913, %v4153_v62  }
  0xe7   : > { %v4518_v40 = vpop.permute.xlu1 %817  ;;  %v4520_v41 = vpop.permute.xlu0 %821 }
  0xe8   : > { %6707 = vst [vmem:[#allocation36_spill] sm:$0xff] %v4518_v40  ;;  %6708 = vst [vmem:[#allocation37_spill] sm:$0xff] %v4520_v41  ;;  %v4893_v40 = vld [vmem:[#allocation2 + $0xa8] sm:$0xff] }
  0xe9   : > { %6791 = vst [vmem:[#allocation120_spill] sm:$0xff] %v4893_v40 }
  0xea   : > { %1225 = vperm.xlu1 %3914, %v4130_v47   ;;  %1245 = vperm.xlu0 %3913, %v4181_v28  }
  0xeb   : > { %v4524_v37 = vpop.permute.xlu1 %825  ;;  %v4526_v39 = vpop.permute.xlu0 %829 }
  0xec   : > { %6709 = vst [vmem:[#allocation38_spill] sm:$0xff] %v4524_v37  ;;  %6710 = vst [vmem:[#allocation39_spill] sm:$0xff] %v4526_v39 }
  0xee   : > { %1233 = vperm.xlu1 %3914, %v4162_v3   ;;  %1253 = vperm.xlu0 %3913, %v4199_v36  }
  0xef   : > { %v4530_v34 = vpop.permute.xlu1 %833  ;;  %v4532_v35 = vpop.permute.xlu0 %837 }
  0xf0   : > { %6711 = vst [vmem:[#allocation40_spill] sm:$0xff] %v4530_v34  ;;  %6712 = vst [vmem:[#allocation41_spill] sm:$0xff] %v4532_v35 }
  0xf2   : > { %1241 = vperm.xlu1 %3914, %v4186_v29   ;;  %1261 = vperm.xlu0 %3913, %v4219_v48  }
  0xf3   : > { %v4536_v31 = vpop.permute.xlu1 %841  ;;  %v4538_v32 = vpop.permute.xlu0 %845 }
  0xf4   : > { %6713 = vst [vmem:[#allocation42_spill] sm:$0xff] %v4536_v31  ;;  %6714 = vst [vmem:[#allocation43_spill] sm:$0xff] %v4538_v32 }
  0xf6   : > { %1249 = vperm.xlu1 %3914, %v4207_v38   ;;  %1269 = vperm.xlu0 %3913, %v4239_v58  }
  0xf7   : > { %v4542_v26 = vpop.permute.xlu1 %849  ;;  %v4544_v27 = vpop.permute.xlu0 %853 }
  0xf8   : > { %6715 = vst [vmem:[#allocation44_spill] sm:$0xff] %v4542_v26  ;;  %6716 = vst [vmem:[#allocation45_spill] sm:$0xff] %v4544_v27 }
  0xfa   : > { %1257 = vperm.xlu1 %3914, %v4227_v51   ;;  %1277 = vperm.xlu0 %3913, %v4259_v16  }
  0xfb   : > { %v4548_v22 = vpop.permute.xlu1 %857  ;;  %v4550_v25 = vpop.permute.xlu0 %861 }
  0xfc   : > { %6717 = vst [vmem:[#allocation46_spill] sm:$0xff] %v4548_v22  ;;  %6718 = vst [vmem:[#allocation47_spill] sm:$0xff] %v4550_v25 }
  0xfe   : > { %1265 = vperm.xlu1 %3914, %v4248_v61   ;;  %1285 = vperm.xlu0 %3913, %v4279_v30  }
  0xff   : > { %v4554_v20 = vpop.permute.xlu1 %865  ;;  %v4556_v32 = vpop.permute.xlu0 %869 }
 0x100   : > { %6719 = vst [vmem:[#allocation48_spill] sm:$0xff] %v4554_v20  ;;  %6720 = vst [vmem:[#allocation49_spill] sm:$0xff] %v4556_v32 }
 0x102   : > { %1273 = vperm.xlu1 %3914, %v4268_v19   ;;  %1293 = vperm.xlu0 %3913, %v4303_v45  }
 0x103   : > { %v4560_v27 = vpop.permute.xlu1 %873  ;;  %v4562_v26 = vpop.permute.xlu0 %877 }
 0x104   : > { %6721 = vst [vmem:[#allocation50_spill] sm:$0xff] %v4560_v27  ;;  %6722 = vst [vmem:[#allocation51_spill] sm:$0xff] %v4562_v26  ;;  %v3945_v27 = vmov 6  }
 0x106   : > { %1281 = vperm.xlu1 %3914, %v4288_v33   ;;  %1301 = vperm.xlu0 %3913, %v4317_v52  }
 0x107   : > { %v4566_v25 = vpop.permute.xlu1 %881  ;;  %v4568_v22 = vpop.permute.xlu0 %885 }
 0x108   : > { %6723 = vst [vmem:[#allocation52_spill] sm:$0xff] %v4566_v25  ;;  %6724 = vst [vmem:[#allocation53_spill] sm:$0xff] %v4568_v22 }
 0x10a   : > { %1289 = vperm.xlu1 %3914, %v4308_v46   ;;  %1309 = vperm.xlu0 %3913, %v4329_v54  }
 0x10b   : > { %v4572_v32 = vpop.permute.xlu1 %889  ;;  %v4574_v20 = vpop.permute.xlu0 %893 }
 0x10c   : > { %6725 = vst [vmem:[#allocation54_spill] sm:$0xff] %v4572_v32  ;;  %6726 = vst [vmem:[#allocation55_spill] sm:$0xff] %v4574_v20 }
 0x10e   : > { %1297 = vperm.xlu1 %3914, %v4322_v53   ;;  %3916 = vset.pattern.permute.xlu0 %v3945_v27 }
 0x10f   : > { %1381 = vperm.xlu0 %3916, %v4032_v5  }
 0x110   : > { %v4578_v26 = vpop.permute.xlu1 %961  ;;  %v4580_v21 = vpop.permute.xlu0 %965 }
 0x112   : > { %1305 = vperm.xlu1 %3914, %v4334_v55  }
 0x113   : > { %1393 = vperm.xlu0 %3916, %v4049_v7  }
 0x114   : > { %v4584_v22 = vpop.permute.xlu1 %969  ;;  %v4586_v25 = vpop.permute.xlu0 %977 }
 0x116   : > { %3915 = vset.pattern.permute.xlu1 %v3945_v27 }
 0x117   : > { %1377 = vperm.xlu1 %3915, %v4006_v1   ;;  %1401 = vperm.xlu0 %3916, %v4068_v9  }
 0x118   : > { %v4590_v20 = vpop.permute.xlu1 %973  ;;  %v4592_v32 = vpop.permute.xlu0 %985 }
 0x11b   : > { %1385 = vperm.xlu1 %3915, %v4001_v0   ;;  %1409 = vperm.xlu0 %3916, %v4101_v24  }
 0x11c   : > { %v4596_v31 = vpop.permute.xlu1 %981  ;;  %v4598_v17 = vpop.permute.xlu0 %993 }
 0x11f   : > { %1389 = vperm.xlu1 %3915, %v4027_v4   ;;  %1417 = vperm.xlu0 %3916, %v4130_v47  }
 0x120   : > { %v4602_v27 = vpop.permute.xlu1 %989  ;;  %v4604_v35 = vpop.permute.xlu0 %1001 }
 0x123   : > { %1397 = vperm.xlu1 %3915, %v4044_v6   ;;  %1425 = vperm.xlu0 %3916, %v4162_v3  }
 0x124   : > { %v4608_v18 = vpop.permute.xlu1 %997  ;;  %v4610_v34 = vpop.permute.xlu0 %1009 }
 0x125   : > { %6727 = vst [vmem:[#allocation56_spill] sm:$0xff] %v4610_v34 }
 0x127   : > { %1405 = vperm.xlu1 %3915, %v4063_v8   ;;  %1433 = vperm.xlu0 %3916, %v4186_v29  }
 0x128   : > { %v4614_v39 = vpop.permute.xlu1 %1005  ;;  %v4616_v13 = vpop.permute.xlu0 %1017 }
 0x129   : > { %6728 = vst [vmem:[#allocation57_spill] sm:$0xff] %v4614_v39  ;;  %6729 = vst [vmem:[#allocation58_spill] sm:$0xff] %v4616_v13 }
 0x12b   : > { %1413 = vperm.xlu1 %3915, %v4096_v23   ;;  %1441 = vperm.xlu0 %3916, %v4207_v38  }
 0x12c   : > { %v4620_v2 = vpop.permute.xlu1 %1013  ;;  %v4622_v14 = vpop.permute.xlu0 %1025 }
 0x12d   : > { %6730 = vst [vmem:[#allocation59_spill] sm:$0xff] %v4620_v2  ;;  %6731 = vst [vmem:[#allocation60_spill] sm:$0xff] %v4622_v14 }
 0x12f   : > { %1421 = vperm.xlu1 %3915, %v4123_v42   ;;  %1449 = vperm.xlu0 %3916, %v4227_v51  }
 0x130   : > { %v4626_v37 = vpop.permute.xlu1 %1021  ;;  %v4628_v41 = vpop.permute.xlu0 %1033 }
 0x131   : > { %6732 = vst [vmem:[#allocation61_spill] sm:$0xff] %v4626_v37  ;;  %6733 = vst [vmem:[#allocation62_spill] sm:$0xff] %v4628_v41 }
 0x133   : > { %1429 = vperm.xlu1 %3915, %v4153_v62   ;;  %1457 = vperm.xlu0 %3916, %v4248_v61  }
 0x134   : > { %v4632_v13 = vpop.permute.xlu1 %1029  ;;  %v4634_v10 = vpop.permute.xlu0 %1041 }
 0x135   : > { %6734 = vst [vmem:[#allocation63_spill] sm:$0xff] %v4632_v13  ;;  %6735 = vst [vmem:[#allocation64_spill] sm:$0xff] %v4634_v10 }
 0x137   : > { %1437 = vperm.xlu1 %3915, %v4181_v28   ;;  %1465 = vperm.xlu0 %3916, %v4268_v19  }
 0x138   : > { %v4638_v14 = vpop.permute.xlu1 %1037  ;;  %v4640_v2 = vpop.permute.xlu0 %1049 }
 0x139   : > { %6736 = vst [vmem:[#allocation65_spill] sm:$0xff] %v4638_v14  ;;  %6737 = vst [vmem:[#allocation66_spill] sm:$0xff] %v4640_v2 }
 0x13b   : > { %1445 = vperm.xlu1 %3915, %v4199_v36   ;;  %1473 = vperm.xlu0 %3916, %v4288_v33  }
 0x13c   : > { %v4644_v41 = vpop.permute.xlu1 %1045  ;;  %v4646_v37 = vpop.permute.xlu0 %1057 }
 0x13d   : > { %6738 = vst [vmem:[#allocation67_spill] sm:$0xff] %v4644_v41  ;;  %6739 = vst [vmem:[#allocation68_spill] sm:$0xff] %v4646_v37 }
 0x13f   : > { %1453 = vperm.xlu1 %3915, %v4219_v48   ;;  %1481 = vperm.xlu0 %3916, %v4308_v46  }
 0x140   : > { %v4650_v10 = vpop.permute.xlu1 %1053  ;;  %v4652_v13 = vpop.permute.xlu0 %1065 }
 0x141   : > { %6740 = vst [vmem:[#allocation69_spill] sm:$0xff] %v4650_v10  ;;  %6741 = vst [vmem:[#allocation70_spill] sm:$0xff] %v4652_v13  ;;  %v3946_v10 = vmov 8  }
 0x143   : > { %1461 = vperm.xlu1 %3915, %v4239_v58   ;;  %1489 = vperm.xlu0 %3916, %v4322_v53  }
 0x144   : > { %v4656_v2 = vpop.permute.xlu1 %1061  ;;  %v4658_v14 = vpop.permute.xlu0 %1073 }
 0x145   : > { %6742 = vst [vmem:[#allocation71_spill] sm:$0xff] %v4656_v2  ;;  %6743 = vst [vmem:[#allocation72_spill] sm:$0xff] %v4658_v14 }
 0x147   : > { %1469 = vperm.xlu1 %3915, %v4259_v16   ;;  %1497 = vperm.xlu0 %3916, %v4334_v55  }
 0x148   : > { %v4662_v37 = vpop.permute.xlu1 %1069  ;;  %v4664_v41 = vpop.permute.xlu0 %1081 }
 0x149   : > { %6744 = vst [vmem:[#allocation73_spill] sm:$0xff] %v4662_v37  ;;  %6745 = vst [vmem:[#allocation74_spill] sm:$0xff] %v4664_v41 }
 0x14b   : > { %1477 = vperm.xlu1 %3915, %v4279_v30   ;;  %3917 = vset.pattern.permute.xlu0 %v3946_v10 }
 0x14c   : > { %v4667_v13 = vpop.permute.xlu1 %1077  ;;  %1601 = vperm.xlu0 %3917, %v4006_v1  }
 0x14d   : > { %6746 = vst [vmem:[#allocation75_spill] sm:$0xff] %v4667_v13  ;;  %v4670_v34 = vpop.permute.xlu0 %1185 }
 0x14f   : > { %1485 = vperm.xlu1 %3915, %v4303_v45  }
 0x150   : > { %v4673_v14 = vpop.permute.xlu1 %1085  ;;  %1613 = vperm.xlu0 %3917, %v4027_v4  }
 0x151   : > { %6747 = vst [vmem:[#allocation76_spill] sm:$0xff] %v4673_v14  ;;  %v4676_v2 = vpop.permute.xlu0 %1197 }
 0x153   : > { %1493 = vperm.xlu1 %3915, %v4317_v52  }
 0x154   : > { %1621 = vperm.xlu0 %3917, %v4044_v6  }
 0x155   : > { %v4680_v41 = vpop.permute.xlu1 %1189  ;;  %v4682_v37 = vpop.permute.xlu0 %1205 }
 0x157   : > { %1501 = vperm.xlu1 %3915, %v4329_v54  }
 0x158   : > { %1629 = vperm.xlu0 %3917, %v4063_v8  }
 0x159   : > { %v4686_v1 = vpop.permute.xlu1 %1193  ;;  %v4688_v13 = vpop.permute.xlu0 %1213 }
 0x15b   : > { %3918 = vset.pattern.permute.xlu1 %v3946_v10 }
 0x15c   : > { %1605 = vperm.xlu1 %3918, %v4032_v5   ;;  %1637 = vperm.xlu0 %3917, %v4096_v23  }
 0x15d   : > { %v4692_v4 = vpop.permute.xlu1 %1201  ;;  %v4694_v6 = vpop.permute.xlu0 %1221 }
 0x15e   : > { %6748 = vst [vmem:[#allocation77_spill] sm:$0xff] %v4694_v6 }
 0x160   : > { %1609 = vperm.xlu1 %3918, %v4001_v0   ;;  %1645 = vperm.xlu0 %3917, %v4123_v42  }
 0x161   : > { %v4698_v14 = vpop.permute.xlu1 %1209  ;;  %v4700_v8 = vpop.permute.xlu0 %1229 }
 0x162   : > { %6749 = vst [vmem:[#allocation78_spill] sm:$0xff] %v4700_v8 }
 0x164   : > { %1617 = vperm.xlu1 %3918, %v4049_v7   ;;  %1653 = vperm.xlu0 %3917, %v4153_v62  }
 0x165   : > { %v4704_v10 = vpop.permute.xlu1 %1217  ;;  %v4706_v5 = vpop.permute.xlu0 %1237 }
 0x166   : > { %6750 = vst [vmem:[#allocation79_spill] sm:$0xff] %v4706_v5 }
 0x168   : > { %1625 = vperm.xlu1 %3918, %v4068_v9   ;;  %1661 = vperm.xlu0 %3917, %v4181_v28  }
 0x169   : > { %v4710_v23 = vpop.permute.xlu1 %1225  ;;  %v4712_v0 = vpop.permute.xlu0 %1245 }
 0x16a   : > { %6751 = vst [vmem:[#allocation80_spill] sm:$0xff] %v4710_v23  ;;  %6752 = vst [vmem:[#allocation81_spill] sm:$0xff] %v4712_v0  ;;  %v4902_v23 = vld [vmem:[#allocation2 + $0xb8] sm:$0xff] }
 0x16c   : > { %1633 = vperm.xlu1 %3918, %v4101_v24   ;;  %1669 = vperm.xlu0 %3917, %v4199_v36  }
 0x16d   : > { %v4716_v42 = vpop.permute.xlu1 %1233  ;;  %v4718_v7 = vpop.permute.xlu0 %1253 }
 0x16e   : > { %6753 = vst [vmem:[#allocation82_spill] sm:$0xff] %v4716_v42  ;;  %6754 = vst [vmem:[#allocation83_spill] sm:$0xff] %v4718_v7  ;;  %v4832_v7 = vld [vmem:[#allocation2 + $0x48] sm:$0xff] }
 0x16f   : > { %v4856_v42 = vld [vmem:[#allocation2 + $0x68] sm:$0xff] }
 0x170   : > { %1641 = vperm.xlu1 %3918, %v4130_v47   ;;  %1677 = vperm.xlu0 %3917, %v4219_v48  }
 0x171   : > { %v4722_v62 = vpop.permute.xlu1 %1241  ;;  %v4724_v9 = vpop.permute.xlu0 %1261 }
 0x172   : > { %6755 = vst [vmem:[#allocation84_spill] sm:$0xff] %v4722_v62  ;;  %6756 = vst [vmem:[#allocation85_spill] sm:$0xff] %v4724_v9  ;;  %v4844_v62 = vld [vmem:[#allocation2 + $0x58] sm:$0xff] }
 0x174   : > { %1649 = vperm.xlu1 %3918, %v4162_v3   ;;  %1685 = vperm.xlu0 %3917, %v4239_v58  }
 0x175   : > { %v4728_v28 = vpop.permute.xlu1 %1249  ;;  %v4730_v24 = vpop.permute.xlu0 %1269 }
 0x176   : > { %6757 = vst [vmem:[#allocation86_spill] sm:$0xff] %v4728_v28  ;;  %6758 = vst [vmem:[#allocation87_spill] sm:$0xff] %v4730_v24  ;;  %v4818_v24 = vld [vmem:[#allocation2 + $0x80] sm:$0xff] }
 0x178   : > { %1657 = vperm.xlu1 %3918, %v4186_v29   ;;  %1693 = vperm.xlu0 %3917, %v4259_v16  }
 0x179   : > { %v4734_v36 = vpop.permute.xlu1 %1257  ;;  %v4736_v47 = vpop.permute.xlu0 %1277 }
 0x17a   : > { %6759 = vst [vmem:[#allocation88_spill] sm:$0xff] %v4734_v36  ;;  %6760 = vst [vmem:[#allocation89_spill] sm:$0xff] %v4736_v47  ;;  %v4808_v47 = vld [vmem:[#allocation2 + $0x28] sm:$0xff]  ;;  %v4830_v36 = vld [vmem:[#allocation2 + $0x90] sm:$0xff] }
 0x17b   : > { %6774 = vst [vmem:[#allocation103_spill] sm:$0xff] %v4830_v36 }
 0x17c   : > { %1665 = vperm.xlu1 %3918, %v4207_v38   ;;  %1701 = vperm.xlu0 %3917, %v4279_v30  }
 0x17d   : > { %v4740_v48 = vpop.permute.xlu1 %1265  ;;  %v4742_v3 = vpop.permute.xlu0 %1285 }
 0x17e   : > { %6761 = vst [vmem:[#allocation90_spill] sm:$0xff] %v4740_v48  ;;  %6762 = vst [vmem:[#allocation91_spill] sm:$0xff] %v4742_v3 }
 0x180   : > { %1673 = vperm.xlu1 %3918, %v4227_v51   ;;  %1709 = vperm.xlu0 %3917, %v4303_v45   ;;  %v705_v45 = vld [vmem:[#allocation2 + $0x10] sm:$0xff] }
 0x181   : > { %v4746_v58 = vpop.permute.xlu1 %1273  ;;  %v4748_v29 = vpop.permute.xlu0 %1293 }
 0x182   : > { %6763 = vst [vmem:[#allocation92_spill] sm:$0xff] %v4746_v58  ;;  %6764 = vst [vmem:[#allocation93_spill] sm:$0xff] %v4748_v29 }
 0x184   : > { %1681 = vperm.xlu1 %3918, %v4248_v61   ;;  %1717 = vperm.xlu0 %3917, %v4317_v52   ;;  %v707_v52 = vld [vmem:[#allocation2 + $0x20] sm:$0xff] }
 0x185   : > { %v4752_v16 = vpop.permute.xlu1 %1281  ;;  %v4754_v38 = vpop.permute.xlu0 %1301 }
 0x186   : > { %6765 = vst [vmem:[#allocation94_spill] sm:$0xff] %v4752_v16  ;;  %6766 = vst [vmem:[#allocation95_spill] sm:$0xff] %v4754_v38  ;;  %v4806_v16 = vld [vmem:[#allocation2 + $0x70] sm:$0xff] }
 0x188   : > { %1689 = vperm.xlu1 %3918, %v4268_v19   ;;  %1725 = vperm.xlu0 %3917, %v4329_v54   ;;  %v4772_v54 = vld [vmem:[#allocation2 + $0x30] sm:$0xff] }
 0x189   : > { %v4758_v30 = vpop.permute.xlu1 %1289  ;;  %v4760_v51 = vpop.permute.xlu0 %1309 }
 0x18a   : > { %6767 = vst [vmem:[#allocation96_spill] sm:$0xff] %v4758_v30  ;;  %6768 = vst [vmem:[#allocation97_spill] sm:$0xff] %v4760_v51  ;;  %v4797_v30 = vld [vmem:[#allocation2 + $0x60] sm:$0xff] }
 0x18c   : > { %1697 = vperm.xlu1 %3918, %v4288_v33   ;;  %1794 = vrot.lane.b32.xlu0 %v705_v45, %s3947_s15  ;;  %v4779_v33 = vld [vmem:[#allocation2 + $0x40] sm:$0xff] }
 0x18d   : > { %v4764_v61 = vpop.permute.xlu1 %1297 }
 0x18e   : > { %6769 = vst [vmem:[#allocation98_spill] sm:$0xff] %v4764_v61  ;;  %v4766_v29 = vpop.permute.xlu0 %1381  ;;  %v706_v61 = vld [vmem:[#allocation2 + $0x18] sm:$0xff] }
 0x190   : > { %1705 = vperm.xlu1 %3918, %v4308_v46   ;;  %1798 = vrot.lane.b32.xlu0 %v707_v52, %s3947_s15  ;;  %v704_v46 = vld [vmem:[#allocation2 + $0x8] sm:$0xff]  ;;  %v4788_v52 = vld [vmem:[#allocation2 + $0x50] sm:$0xff] }
 0x191   : > { %v4770_v19 = vpop.permute.xlu1 %1305 }
 0x192   : > { %6770 = vst [vmem:[#allocation99_spill] sm:$0xff] %v4770_v19  ;;  %v4774_v51 = vpop.permute.xlu0 %1393 }
 0x194   : > { %1713 = vperm.xlu1 %3918, %v4322_v53   ;;  %1802 = vrot.lane.b32.xlu0 %v4772_v54, %s3947_s15 }
 0x196   : > { %v4781_v45 = vpop.permute.xlu1 %1377  ;;  %v4783_v38 = vpop.permute.xlu0 %1401 }
 0x198   : > { %1721 = vperm.xlu1 %3918, %v4334_v55   ;;  %1806 = vrot.lane.b32.xlu0 %v4779_v33, %s3947_s15 }
 0x19a   : > { %v4790_v19 = vpop.permute.xlu1 %1385  ;;  %v4792_v53 = vpop.permute.xlu0 %1409 }
 0x19c   : > { %1792 = vrot.lane.b32.xlu1 %v704_v46, %s3947_s15  ;;  %1810 = vrot.lane.b32.xlu0 %v4788_v52, %s3947_s15 }
 0x19e   : > { %v4799_v3 = vpop.permute.xlu1 %1389  ;;  %v4801_v55 = vpop.permute.xlu0 %1417 }
 0x19f   : > { %6771 = vst [vmem:[#allocation100_spill] sm:$0xff] %v4801_v55 }
 0x1a0   : > { %1796 = vrot.lane.b32.xlu1 %v706_v61, %s3947_s15  ;;  %1814 = vrot.lane.b32.xlu0 %v4797_v30, %s3947_s15  ;;  %v4820_v61 = vld [vmem:[#allocation2 + $0x38] sm:$0xff] }
 0x1a2   : > { %v4810_v46 = vpop.permute.xlu1 %1397  ;;  %v4812_v58 = vpop.permute.xlu0 %1425 }
 0x1a3   : > { %6772 = vst [vmem:[#allocation101_spill] sm:$0xff] %v4812_v58 }
 0x1a4   : > { %1818 = vrot.lane.b32.xlu0 %v4806_v16, %s3947_s15  ;;  %1800 = vrot.lane.b32.xlu1 %v4808_v47, %s3947_s15 }
 0x1a6   : > { %v4822_v48 = vpop.permute.xlu1 %1405  ;;  %v4824_v9 = vpop.permute.xlu0 %1433 }
 0x1a7   : > { %6773 = vst [vmem:[#allocation102_spill] sm:$0xff] %v4824_v9  ;;  %v4842_v9 = vld [vmem:[#allocation2 + $0xa0] sm:$0xff] }
 0x1a8   : > { %1822 = vrot.lane.b32.xlu0 %v4818_v24, %s3947_s15  ;;  %1804 = vrot.lane.b32.xlu1 %v4820_v61, %s3947_s15  ;;  %6777 = vst [vmem:[#allocation106_spill] sm:$0xff] %v4842_v9 }
 0x1aa   : > { %v4834_v28 = vpop.permute.xlu1 %1413  ;;  %v4836_v0 = vpop.permute.xlu0 %1441 }
 0x1ab   : > { %6775 = vst [vmem:[#allocation104_spill] sm:$0xff] %v4834_v28  ;;  %6776 = vst [vmem:[#allocation105_spill] sm:$0xff] %v4836_v0  ;;  %v4854_v0 = vld [vmem:[#allocation2 + $0xb0] sm:$0xff]  ;;  %v4884_v28 = vld [vmem:[#allocation2 + $0x98] sm:$0xff] }
 0x1ac   : > { %1826 = vrot.lane.b32.xlu0 %v4830_v36, %s3947_s15  ;;  %1808 = vrot.lane.b32.xlu1 %v4832_v7, %s3947_s15  ;;  %6780 = vst [vmem:[#allocation109_spill] sm:$0xff] %v4854_v0  ;;  %6788 = vst [vmem:[#allocation117_spill] sm:$0xff] %v4884_v28 }
 0x1ae   : > { %v4846_v5 = vpop.permute.xlu1 %1421  ;;  %v4848_v58 = vpop.permute.xlu0 %1449 }
 0x1af   : > { %6778 = vst [vmem:[#allocation107_spill] sm:$0xff] %v4846_v5  ;;  %6779 = vst [vmem:[#allocation108_spill] sm:$0xff] %v4848_v58  ;;  %v727_v58 = vld [vmem:[#allocation2 + $0xc0] sm:$0xff]  ;;  %v4866_v5 = vld [vmem:[#allocation2 + $0x78] sm:$0xff] }
 0x1b0   : > { %1830 = vrot.lane.b32.xlu0 %v4842_v9, %s3947_s15  ;;  %1812 = vrot.lane.b32.xlu1 %v4844_v62, %s3947_s15 }
 0x1b2   : > { %v4858_v8 = vpop.permute.xlu1 %1429  ;;  %v4860_v36 = vpop.permute.xlu0 %1457 }
 0x1b3   : > { %6781 = vst [vmem:[#allocation110_spill] sm:$0xff] %v4858_v8  ;;  %6782 = vst [vmem:[#allocation111_spill] sm:$0xff] %v4860_v36  ;;  %v729_v8 = vld [vmem:[#allocation2 + $0xd0] sm:$0xff]  ;;  %v4875_v36 = vld [vmem:[#allocation2 + $0x88] sm:$0xff] }
 0x1b4   : > { %1834 = vrot.lane.b32.xlu0 %v4854_v0, %s3947_s15  ;;  %1816 = vrot.lane.b32.xlu1 %v4856_v42, %s3947_s15  ;;  %6785 = vst [vmem:[#allocation114_spill] sm:$0xff] %v4875_v36 }
 0x1b6   : > { %v4868_v9 = vpop.permute.xlu1 %1437  ;;  %v4870_v55 = vpop.permute.xlu0 %1465 }
 0x1b7   : > { %6783 = vst [vmem:[#allocation112_spill] sm:$0xff] %v4868_v9  ;;  %6784 = vst [vmem:[#allocation113_spill] sm:$0xff] %v4870_v55  ;;  %v731_v9 = vld [vmem:[#allocation2 + $0xe0] sm:$0xff] }
 0x1b8   : > { %1838 = vrot.lane.b32.xlu0 %v727_v58, %s3947_s15  ;;  %1820 = vrot.lane.b32.xlu1 %v4866_v5, %s3947_s15 }
 0x1ba   : > { %v4877_v39 = vpop.permute.xlu1 %1445  ;;  %v4879_v0 = vpop.permute.xlu0 %1473 }
 0x1bb   : > { %6786 = vst [vmem:[#allocation115_spill] sm:$0xff] %v4877_v39  ;;  %6787 = vst [vmem:[#allocation116_spill] sm:$0xff] %v4879_v0  ;;  %v733_v39 = vld [vmem:[#allocation2 + $0xf0] sm:$0xff] }
 0x1bc   : > { %1842 = vrot.lane.b32.xlu0 %v729_v8, %s3947_s15  ;;  %1824 = vrot.lane.b32.xlu1 %v4875_v36, %s3947_s15 }
 0x1be   : > { %v4886_v55 = vpop.permute.xlu1 %1453  ;;  %v4888_v58 = vpop.permute.xlu0 %1481 }
 0x1bf   : > { %6789 = vst [vmem:[#allocation118_spill] sm:$0xff] %v4886_v55  ;;  %6790 = vst [vmem:[#allocation119_spill] sm:$0xff] %v4888_v58  ;;  %v735_v55 = vld [vmem:[#allocation2 + $0x100] sm:$0xff] }
 0x1c0   : > { %1846 = vrot.lane.b32.xlu0 %v731_v9, %s3947_s15  ;;  %1828 = vrot.lane.b32.xlu1 %v4884_v28, %s3947_s15  ;;  %v737_v28 = vld [vmem:[#allocation2 + $0x12] sm:$0xff] }
 0x1c2   : > { %v4895_v0 = vpop.permute.xlu1 %1461  ;;  %v4897_v8 = vpop.permute.xlu0 %1489 }
 0x1c3   : > { %6792 = vst [vmem:[#allocation121_spill] sm:$0xff] %v4895_v0  ;;  %6793 = vst [vmem:[#allocation122_spill] sm:$0xff] %v4897_v8  ;;  %v728_v0 = vld [vmem:[#allocation2 + $0xc8] sm:$0xff]  ;;  %v897_v8 = vmul.f32 %v4482_v15, %v737_v28 }
 0x1c4   : > { %1850 = vrot.lane.b32.xlu0 %v733_v39, %s3947_s15  ;;  %1832 = vrot.lane.b32.xlu1 %v4893_v40, %s3947_s15  ;;  %v732_v15 = vld [vmem:[#allocation2 + $0xe8] sm:$0xff] }
 0x1c6   : > { %v4904_v58 = vpop.permute.xlu1 %1469  ;;  %v4906_v9 = vpop.permute.xlu0 %1497 }
 0x1c7   : > { %6794 = vst [vmem:[#allocation123_spill] sm:$0xff] %v4904_v58  ;;  %6795 = vst [vmem:[#allocation124_spill] sm:$0xff] %v4906_v9  ;;  %v730_v58 = vld [vmem:[#allocation2 + $0xd8] sm:$0xff]  ;;  %v899_v9 = vmul.f32 %v4490_v50, %v739_v49  ;;  %v4930_v49 = vld [vmem:[#allocation2 + $0x2e] sm:$0xff] }
 0x1c8   : > { %1854 = vrot.lane.b32.xlu0 %v735_v55, %s3947_s15  ;;  %1836 = vrot.lane.b32.xlu1 %v4902_v23, %s3947_s15  ;;  %v741_v55 = vld [vmem:[#allocation2 + $0x32] sm:$0xff]  ;;  %6799 = vst [vmem:[#allocation128_spill] sm:$0xff] %v4930_v49 }
 0x1c9   : > { %v901_v28 = vmul.f32 %v4496_v44, %v741_v55  ;;  %v734_v50 = vld [vmem:[#allocation2 + $0xf8] sm:$0xff] }
 0x1ca   : > { %v4912_v39 = vpop.permute.xlu1 %1477 }
 0x1cb   : > { %6796 = vst [vmem:[#allocation125_spill] sm:$0xff] %v4912_v39  ;;  %v1602_v40 = vpop.permute.xlu0 %1601 }
 0x1cc   : > { %1922 = vrot.lane.b32.xlu0 %v897_v8, %s3948_s11  ;;  %1840 = vrot.lane.b32.xlu1 %v728_v0, %s3947_s15  ;;  %v1089_v0 = vmul.f32 %v4580_v21, %v4930_v49 }
 0x1ce   : > { %v4917_v6 = vpop.permute.xlu1 %1485 }
 0x1cf   : > { %6797 = vst [vmem:[#allocation126_spill] sm:$0xff] %v4917_v6  ;;  %v4919_v36 = vpop.permute.xlu0 %1613 }
 0x1d0   : > { %1926 = vrot.lane.b32.xlu0 %v899_v9, %s3948_s11  ;;  %1844 = vrot.lane.b32.xlu1 %v730_v58, %s3947_s15  ;;  %v736_v58 = vld [vmem:[#allocation2 + $0xa] sm:$0xff] }
 0x1d1   : > { %v896_v44 = vmul.f32 %v4484_v60, %v736_v58  ;;  %v4956_v60 = vld [vmem:[#allocation2 + $0x36] sm:$0xff] }
 0x1d2   : > { %v4924_v39 = vpop.permute.xlu1 %1493  ;;  %6801 = vst [vmem:[#allocation130_spill] sm:$0xff] %v4956_v60  ;;  %v1090_v58 = vmul.f32 %v4584_v22, %v4956_v60  ;;  %v1568_v22 = vld [vmem:[#allocation2 + $0x4a] sm:$0xff] }
 0x1d3   : > { %6798 = vst [vmem:[#allocation127_spill] sm:$0xff] %v4924_v39  ;;  %v4926_v8 = vpop.permute.xlu0 %1621 }
 0x1d4   : > { %1930 = vrot.lane.b32.xlu0 %v901_v28, %s3948_s11  ;;  %1848 = vrot.lane.b32.xlu1 %v732_v15, %s3947_s15  ;;  %v738_v28 = vld [vmem:[#allocation2 + $0x1a] sm:$0xff] }
 0x1d5   : > { %v898_v21 = vmul.f32 %v4488_v63, %v738_v28 }
 0x1d6   : > { %v4934_v9 = vpop.permute.xlu1 %1501 }
 0x1d7   : > { %6800 = vst [vmem:[#allocation129_spill] sm:$0xff] %v4934_v9  ;;  %v4936_v6 = vpop.permute.xlu0 %1629  ;;  %v1313_v9 = vmul.f32 %v4680_v41, %v741_v55  ;;  %v4967_v55 = vld [vmem:[#allocation2 + $0x26] sm:$0xff] }
 0x1d8   : > { %2050 = vrot.lane.b32.xlu0 %v1089_v0, %s3949_s12  ;;  %1852 = vrot.lane.b32.xlu1 %v734_v50, %s3947_s15  ;;  %v740_v0 = vld [vmem:[#allocation2 + $0x2a] sm:$0xff] }
 0x1db   : > { %v4941_v15 = vpop.permute.xlu1 %1605  ;;  %v4943_v39 = vpop.permute.xlu0 %1637 }
 0x1dc   : > { %2178 = vrot.lane.b32.xlu0 %v4772_v54, %s3950_s13  ;;  %1920 = vrot.lane.b32.xlu1 %v896_v44, %s3948_s11  ;;  %v900_v54 = vmul.f32 %v4494_v12, %v740_v0 }
 0x1df   : > { %v4950_v49 = vpop.permute.xlu1 %1609  ;;  %v4952_v50 = vpop.permute.xlu0 %1645 }
 0x1e0   : > { %2306 = vrot.lane.b32.xlu0 %v1313_v9, %s3951_s14  ;;  %1924 = vrot.lane.b32.xlu1 %v898_v21, %s3948_s11  ;;  %v1088_v9 = vmul.f32 %v4578_v26, %v4967_v55  ;;  %v1312_v26 = vmul.f32 %v4670_v34, %v740_v0  ;;  %v3047_v0 = vld [vmem:[%s6653_s1] sm:$0xff] }
 0x1e3   : > { %v4961_v63 = vpop.permute.xlu1 %1617  ;;  %v4963_v41 = vpop.permute.xlu0 %1653 }
 0x1e4   : > { %2052 = vrot.lane.b32.xlu0 %v1090_v58, %s3949_s12  ;;  %1928 = vrot.lane.b32.xlu1 %v900_v54, %s3948_s11  ;;  %v1728_v54 = vmul.f32 %v1602_v40, %v1568_v22  ;;  %v1344_v58 = vld [vmem:[#allocation2 + $0x46] sm:$0xff] }
 0x1e5   : > { %v5010_v22 = vld [vmem:[#allocation2 + $0x42] sm:$0xff] }
 0x1e7   : > { %v4971_v44 = vpop.permute.xlu1 %1625  ;;  %v4973_v28 = vpop.permute.xlu0 %1661 }
 0x1e8   : > { %6802 = vst [vmem:[#allocation131_spill] sm:$0xff] %v4973_v28  ;;  %2560 = vrot.lane.b32.xlu0 %v4832_v7, %s3952_s16  ;;  %2048 = vrot.lane.b32.xlu1 %v1088_v9, %s3949_s12  ;;  %v4993_v9 = vld [vmem:[#allocation2 + $0x3a] sm:$0xff] }
 0x1eb   : > { %v4978_v12 = vpop.permute.xlu1 %1633  ;;  %v4980_v21 = vpop.permute.xlu0 %1669 }
 0x1ec   : > { %6803 = vst [vmem:[#allocation132_spill] sm:$0xff] %v4980_v21  ;;  %2180 = vrot.lane.b32.xlu0 %v4820_v61, %s3950_s13  ;;  %2176 = vrot.lane.b32.xlu1 %v4808_v47, %s3950_s13  ;;  %v1314_v61 = vmul.f32 %v4686_v1, %v4993_v9  ;;  %v1504_v47 = vmul.f32 %v4781_v45, %v1344_v58  ;;  %v1345_v21 = vld [vmem:[#allocation2 + $0x4e] sm:$0xff] }
 0x1ed   : > { %v3048_v1 = vld [vmem:[%s6653_s1 + $0x8] sm:$0xff] }
 0x1ee   : > { %v3858_v45 = vpack.c.bf16 %v3048_v1, %v3047_v0  ;;  %v5027_v0 = vld [vmem:[#allocation2 + $0x3e] sm:$0xff] }
 0x1ef   : > { %v4987_v28 = vpop.permute.xlu1 %1641  ;;  %v4989_v60 = vpop.permute.xlu0 %1677 }
 0x1f0   : > { %2688 = vrot.lane.b32.xlu0 %v1728_v54, %s3953_s17  ;;  %2304 = vrot.lane.b32.xlu1 %v1312_v26, %s3951_s14  ;;  %v1315_v26 = vmul.f32 %v4676_v2, %v5010_v22  ;;  %v1505_v54 = vmul.f32 %v4766_v29, %v1345_v21  ;;  %v3050_v2 = vld [vmem:[%s6653_s1 + $0x18] sm:$0xff]  ;;  %v5029_v29 = vld [vmem:[#allocation2 + $0x46] sm:$0xff] }
 0x1f1   : > { %3859 = vmatprep.subr.bf16.mxu0 %v3858_v45  ;;  %3874 = vmatprep.subr.bf16.mxu1 %v3858_v45  ;;  %v1092_v1 = vmul.f32 %v4586_v25, %v5029_v29  ;;  %v3052_v25 = vld [vmem:[%s6653_s1 + $0x28] sm:$0xff] }
 0x1f2   : > { %3861 = vmatpush3.bf16.msra.mxu0 %v3858_v45  ;;  %3879 = vmatpush3.bf16.msra.mxu1 %v3858_v45  ;;  %v3051_v45 = vld [vmem:[%s6653_s1 + $0x20] sm:$0xff] }
 0x1f3   : > { %v4998_v34 = vpop.permute.xlu1 %1649  ;;  %v5000_v40 = vpop.permute.xlu0 %1685 }
 0x1f4   : > { %6804 = vst [vmem:[#allocation133_spill] sm:$0xff] %v5000_v40  ;;  %2308 = vrot.lane.b32.xlu0 %v1314_v61, %s3951_s14  ;;  %2432 = vrot.lane.b32.xlu1 %v1504_v47, %s3954_s18  ;;  %v3049_v47 = vld [vmem:[%s6653_s1 + $0x10] sm:$0xff]  ;;  %v3055_v40 = vld [vmem:[%s6653_s1 + $0x40] sm:$0xff] }
 0x1f5   : > { %v3862_v21 = vpack.c.bf16 %v3050_v2, %v3049_v47 }
 0x1f7   : > { %v5015_v58 = vpop.permute.xlu1 %1657  ;;  %v5017_v61 = vpop.permute.xlu0 %1693  ;;  %3863 = vmatprep.subr.bf16.mxu0 %v3862_v21  ;;  %3875 = vmatprep.subr.bf16.mxu1 %v3862_v21 }
 0x1f8   : > { %6805 = vst [vmem:[#allocation134_spill] sm:$0xff] %v5017_v61  ;;  %2310 = vrot.lane.b32.xlu0 %v1315_v26, %s3951_s14  ;;  %2434 = vrot.lane.b32.xlu1 %v1505_v54, %s3954_s18  ;;  %v1091_v26 = vmul.f32 %v4590_v20, %v5027_v0  ;;  %v3866_v20 = vpack.c.bf16 %v3052_v25, %v3051_v45  ;;  %v1569_v45 = vld [vmem:[#allocation2 + $0x52] sm:$0xff]  ;;  %v1570_v25 = vld [vmem:[#allocation2 + $0x5a] sm:$0xff] }
 0x1f9   : > { %3865 = vmatpush3.bf16.msra.mxu0 %v3862_v21  ;;  %3880 = vmatpush3.bf16.msra.mxu1 %v3862_v21  ;;  %v3054_v21 = vld [vmem:[%s6653_s1 + $0x38] sm:$0xff] }
 0x1fa   : > { %3867 = vmatprep.subr.bf16.mxu0 %v3866_v20  ;;  %3876 = vmatprep.subr.bf16.mxu1 %v3866_v20 }
 0x1fb   : > { %v5035_v54 = vpop.permute.xlu1 %1665  ;;  %v5037_v61 = vpop.permute.xlu0 %1701 }
 0x1fc   : > { %6806 = vst [vmem:[#allocation135_spill] sm:$0xff] %v5037_v61  ;;  %2056 = vrot.lane.b32.xlu0 %v1092_v1, %s3949_s12  ;;  %2054 = vrot.lane.b32.xlu1 %v1091_v26, %s3949_s12  ;;  %v3053_v1 = vld [vmem:[%s6653_s1 + $0x30] sm:$0xff] }
 0x1fd   : > { %3869 = vmatpush3.bf16.msra.mxu0 %v3866_v20  ;;  %v3870_v26 = vpack.c.bf16 %v3054_v21, %v3053_v1  ;;  %3881 = vmatpush3.bf16.msra.mxu1 %v3866_v20  ;;  %v1729_v20 = vmul.f32 %v4941_v15, %v1569_v45  ;;  %v1730_v1 = vmul.f32 %v4950_v49, %v1570_v25  ;;  %v1346_v21 = vld [vmem:[#allocation2 + $0x56] sm:$0xff] }
 0x1fe   : > { %v1506_v15 = vmul.f32 %v4790_v19, %v1346_v21  ;;  %v902_v25 = vmul.f32 %v4500_v11, %v4993_v9  ;;  %v5097_v19 = vld [vmem:[#allocation2 + $0x4e] sm:$0xff] }
 0x1ff   : > { %v5047_v47 = vpop.permute.xlu1 %1673  ;;  %v5049_v2 = vpop.permute.xlu0 %1709  ;;  %3871 = vmatprep.subr.bf16.mxu0 %v3870_v26  ;;  %3877 = vmatprep.subr.bf16.mxu1 %v3870_v26  ;;  %v1093_v21 = vmul.f32 %v4596_v31, %v5097_v19  ;;  %v1571_v31 = vld [vmem:[#allocation2 + $0x62] sm:$0xff] }
 0x200   : > { %6807 = vst [vmem:[#allocation136_spill] sm:$0xff] %v5049_v2  ;;  %2564 = vrot.lane.b32.xlu0 %v4844_v62, %s3952_s16  ;;  %2562 = vrot.lane.b32.xlu1 %v4788_v52, %s3952_s16 }
 0x201   : > { %3873 = vmatpush3.bf16.msra.mxu0 %v3870_v26  ;;  %3882 = vmatpush3.bf16.msra.mxu1 %v3870_v26  ;;  %v1347_v26 = vld [vmem:[#allocation2 + $0x5e] sm:$0xff] }
 0x202   : > { %3808 = vmatprep.subr.mxu0 %v3055_v40  ;;  %3878 = vmatprep.subr.mxu1 %v3055_v40 }
 0x203   : > { %v5061_v2 = vpop.permute.xlu1 %1681  ;;  %v5063_v61 = vpop.permute.xlu0 %1717 }
 0x204   : > { %6808 = vst [vmem:[#allocation137_spill] sm:$0xff] %v5061_v2  ;;  %6809 = vst [vmem:[#allocation138_spill] sm:$0xff] %v5063_v61  ;;  %2184 = vrot.lane.b32.xlu0 %v4832_v7, %s3950_s13  ;;  %2182 = vrot.lane.b32.xlu1 %v4779_v33, %s3950_s13  ;;  %v744_v7 = vld [vmem:[#allocation2 + $0x4a] sm:$0xff] }
 0x205   : > { %3809 = vmatpush3.msra.mxu0 %v3055_v40  ;;  %3883 = vmatpush3.msra.mxu1 %v3055_v40  ;;  %v1316_v33 = vmul.f32 %v4692_v4, %v744_v7 }
 0x207   : > { %v5074_v61 = vpop.permute.xlu1 %1689  ;;  %v5076_v2 = vpop.permute.xlu0 %1725 }
 0x208   : > { %6810 = vst [vmem:[#allocation139_spill] sm:$0xff] %v5074_v61  ;;  %6811 = vst [vmem:[#allocation140_spill] sm:$0xff] %v5076_v2  ;;  %2692 = vrot.lane.b32.xlu0 %v1730_v1, %s3953_s17  ;;  %2690 = vrot.lane.b32.xlu1 %v1729_v20, %s3953_s17  ;;  %v1507_v20 = vmul.f32 %v4799_v3, %v1347_v26  ;;  %v1348_v1 = vld [vmem:[#allocation2 + $0x66] sm:$0xff]  ;;  %v5108_v3 = vld [vmem:[#allocation2 + $0x56] sm:$0xff] }
 0x209   : > { %v1094_v9 = vmul.f32 %v4592_v32, %v5108_v3  ;;  %v1731_v32 = vmul.f32 %v4919_v36, %v1571_v31  ;;  %v746_v36 = vld [vmem:[#allocation2 + $0x5a] sm:$0xff]  ;;  %v903_v31 = vmul.f32 %v4502_v43, %v5010_v22 }
 0x20a   : > { %v6856_v61 = vld [vmem:[#allocation101_spill] sm:$0xff] }
 0x20b   : > { %v5082_v49 = vpop.permute.xlu1 %1697  ;;  %v5084_v45 = vpop.permute.xlu0 %1794 }
 0x20c   : > { %6812 = vst [vmem:[#allocation141_spill] sm:$0xff] %v5082_v49  ;;  %2312 = vrot.lane.b32.xlu0 %v1316_v33, %s3951_s14  ;;  %2436 = vrot.lane.b32.xlu1 %v1506_v15, %s3954_s18  ;;  %v1508_v33 = vmul.f32 %v4774_v51, %v1348_v1  ;;  %v1572_v1 = vld [vmem:[#allocation2 + $0x6a] sm:$0xff] }
 0x20d   : > { %v1732_v2 = vmul.f32 %v4961_v63, %v1572_v1  ;;  %v904_v63 = vmul.f32 %v4506_v59, %v744_v7 }
 0x20f   : > { %v5091_v40 = vpop.permute.xlu1 %1705  ;;  %v5093_v4 = vpop.permute.xlu0 %1798 }
 0x210   : > { %6813 = vst [vmem:[#allocation142_spill] sm:$0xff] %v5091_v40  ;;  %1932 = vrot.lane.b32.xlu0 %v902_v25, %s3948_s11  ;;  %2438 = vrot.lane.b32.xlu1 %v1507_v20, %s3954_s18 }
 0x213   : > { %v5102_v15 = vpop.permute.xlu1 %1713  ;;  %v5104_v11 = vpop.permute.xlu0 %1802 }
 0x214   : > { %6814 = vst [vmem:[#allocation143_spill] sm:$0xff] %v5102_v15  ;;  %2440 = vrot.lane.b32.xlu0 %v1508_v33, %s3954_s18  ;;  %2058 = vrot.lane.b32.xlu1 %v1093_v21, %s3949_s12 }
 0x217   : > { %v5112_v26 = vpop.permute.xlu1 %1721  ;;  %v5114_v25 = vpop.permute.xlu0 %1806 }
 0x218   : > { %6815 = vst [vmem:[#allocation144_spill] sm:$0xff] %v5112_v26  ;;  %2060 = vrot.lane.b32.xlu0 %v1094_v9, %s3949_s12  ;;  %2566 = vrot.lane.b32.xlu1 %v4797_v30, %s3952_s16  ;;  %v745_v9 = vld [vmem:[#allocation2 + $0x52] sm:$0xff] }
 0x219   : > { %v1317_v26 = vmul.f32 %v4682_v37, %v745_v9 }
 0x21b   : > { %v5119_v51 = vpop.permute.xlu1 %1792  ;;  %v5121_v20 = vpop.permute.xlu0 %1810 }
 0x21c   : > { %2568 = vrot.lane.b32.xlu0 %v4856_v42, %s3952_s16  ;;  %2186 = vrot.lane.b32.xlu1 %v4788_v52, %s3950_s13 }
 0x21f   : > { %v5128_v21 = vpop.permute.xlu1 %1796  ;;  %v5130_v33 = vpop.permute.xlu0 %1814 }
 0x220   : > { %2188 = vrot.lane.b32.xlu0 %v4844_v62, %s3950_s13  ;;  %2694 = vrot.lane.b32.xlu1 %v1731_v32, %s3953_s17  ;;  %v1318_v62 = vmul.f32 %v4698_v14, %v746_v36  ;;  %v1349_v32 = vld [vmem:[#allocation2 + $0x6e] sm:$0xff]  ;;  %v5160_v14 = vld [vmem:[#allocation2 + $0x5e] sm:$0xff] }
 0x221   : > { %v1095_v43 = vmul.f32 %v4602_v27, %v5160_v14  ;;  %v1573_v27 = vld [vmem:[#allocation2 + $0x72] sm:$0xff] }
 0x223   : > { %v5137_v15 = vpop.permute.xlu0 %1818  ;;  %v5139_v52 = vpop.permute.xlu1 %1800 }
 0x224   : > { %6816 = vst [vmem:[#allocation145_spill] sm:$0xff] %v5137_v15  ;;  %2696 = vrot.lane.b32.xlu0 %v1732_v2, %s3953_s17  ;;  %2314 = vrot.lane.b32.xlu1 %v1317_v26, %s3951_s14  ;;  %v1509_v2 = vmul.f32 %v4810_v46, %v1349_v32  ;;  %v1350_v26 = vld [vmem:[#allocation2 + $0x76] sm:$0xff]  ;;  %v5171_v46 = vld [vmem:[#allocation2 + $0x66] sm:$0xff] }
 0x225   : > { %v1510_v22 = vmul.f32 %v4783_v38, %v1350_v26  ;;  %v1096_v7 = vmul.f32 %v4598_v17, %v5171_v46  ;;  %v1733_v17 = vmul.f32 %v4926_v8, %v1573_v27  ;;  %v748_v8 = vld [vmem:[#allocation2 + $0x6a] sm:$0xff]  ;;  %v905_v27 = vmul.f32 %v4508_v56, %v745_v9  ;;  %v450_v15 = vld [vmem:[#allocation2 + $0x16] sm:$0xff] }
 0x226   : > { %v5222_v56 = vld [vmem:[#allocation2 + $0x6e] sm:$0xff] }
 0x227   : > { %v5146_v40 = vpop.permute.xlu0 %1822  ;;  %v5148_v37 = vpop.permute.xlu1 %1804  ;;  %6831 = vst [vmem:[#allocation160_spill] sm:$0xff] %v5222_v56 }
 0x228   : > { %6817 = vst [vmem:[#allocation146_spill] sm:$0xff] %v5146_v40  ;;  %2316 = vrot.lane.b32.xlu0 %v1318_v62, %s3951_s14  ;;  %1934 = vrot.lane.b32.xlu1 %v903_v31, %s3948_s11 }
 0x22b   : > { %v5154_v1 = vpop.permute.xlu0 %1826  ;;  %v5156_v49 = vpop.permute.xlu1 %1808 }
 0x22c   : > { %6818 = vst [vmem:[#allocation147_spill] sm:$0xff] %v5154_v1  ;;  %1936 = vrot.lane.b32.xlu0 %v904_v63, %s3948_s11  ;;  %2442 = vrot.lane.b32.xlu1 %v1509_v2, %s3954_s18  ;;  %v1574_v2 = vld [vmem:[#allocation2 + $0x7a] sm:$0xff] }
 0x22d   : > { %v6844_v1 = vld [vmem:[#allocation100_spill] sm:$0xff] }
 0x22f   : > { %v5165_v31 = vpop.permute.xlu0 %1830  ;;  %v5167_v59 = vpop.permute.xlu1 %1812 }
 0x230   : > { %6819 = vst [vmem:[#allocation148_spill] sm:$0xff] %v5165_v31  ;;  %2444 = vrot.lane.b32.xlu0 %v1510_v22, %s3954_s18  ;;  %2062 = vrot.lane.b32.xlu1 %v1095_v43, %s3949_s12  ;;  %v747_v22 = vld [vmem:[#allocation2 + $0x62] sm:$0xff] }
 0x233   : > { %v5175_v62 = vpop.permute.xlu0 %1834  ;;  %v5177_v32 = vpop.permute.xlu1 %1816 }
 0x234   : > { %6820 = vst [vmem:[#allocation149_spill] sm:$0xff] %v5175_v62  ;;  %2064 = vrot.lane.b32.xlu0 %v1096_v7, %s3949_s12  ;;  %2570 = vrot.lane.b32.xlu1 %v4806_v16, %s3952_s16  ;;  %v1319_v7 = vmul.f32 %v4688_v13, %v747_v22  ;;  %v906_v13 = vmul.f32 %v4512_v57, %v746_v36 }
 0x237   : > { %v5182_v38 = vpop.permute.xlu0 %1838  ;;  %v5184_v63 = vpop.permute.xlu1 %1820 }
 0x238   : > { %6821 = vst [vmem:[#allocation150_spill] sm:$0xff] %v5182_v38  ;;  %6822 = vst [vmem:[#allocation151_spill] sm:$0xff] %v5184_v63  ;;  %2572 = vrot.lane.b32.xlu0 %v4866_v5, %s3952_s16  ;;  %2190 = vrot.lane.b32.xlu1 %v4797_v30, %s3950_s13  ;;  %v1734_v38 = vmul.f32 %v4971_v44, %v1574_v2 }
 0x23b   : > { %v5191_v26 = vpop.permute.xlu0 %1842  ;;  %v5193_v43 = vpop.permute.xlu1 %1824 }
 0x23c   : > { %6823 = vst [vmem:[#allocation152_spill] sm:$0xff] %v5191_v26  ;;  %6824 = vst [vmem:[#allocation153_spill] sm:$0xff] %v5193_v43  ;;  %2192 = vrot.lane.b32.xlu0 %v4856_v42, %s3950_s13  ;;  %2698 = vrot.lane.b32.xlu1 %v1733_v17, %s3953_s17  ;;  %v1320_v42 = vmul.f32 %v4704_v10, %v748_v8  ;;  %v1351_v26 = vld [vmem:[#allocation2 + $0x7e] sm:$0xff]  ;;  %v1097_v10 = vmul.f32 %v4608_v18, %v5222_v56 }
 0x23d   : > { %v1511_v44 = vmul.f32 %v4822_v48, %v1351_v26  ;;  %v5233_v48 = vld [vmem:[#allocation2 + $0x76] sm:$0xff]  ;;  %v1575_v18 = vld [vmem:[#allocation2 + $0x82] sm:$0xff] }
 0x23e   : > { %6833 = vst [vmem:[#allocation162_spill] sm:$0xff] %v5233_v48  ;;  %v1098_v36 = vmul.f32 %v4604_v35, %v5233_v48  ;;  %v1735_v35 = vmul.f32 %v4936_v6, %v1575_v18  ;;  %v5269_v18 = vld [vmem:[#allocation2 + $0x7a] sm:$0xff]  ;;  %v465_v48 = vld [vmem:[#allocation2 + $0x8e] sm:$0xff] }
 0x23f   : > { %v5200_v62 = vpop.permute.xlu0 %1846  ;;  %v5202_v30 = vpop.permute.xlu1 %1828 }
 0x240   : > { %6825 = vst [vmem:[#allocation154_spill] sm:$0xff] %v5200_v62  ;;  %6826 = vst [vmem:[#allocation155_spill] sm:$0xff] %v5202_v30  ;;  %2700 = vrot.lane.b32.xlu0 %v1734_v38, %s3953_s17  ;;  %2318 = vrot.lane.b32.xlu1 %v1319_v7, %s3951_s14  ;;  %v1352_v38 = vld [vmem:[#allocation2 + $0x86] sm:$0xff] }
 0x241   : > { %v1512_v9 = vmul.f32 %v4792_v53, %v1352_v38  ;;  %v1576_v38 = vld [vmem:[#allocation2 + $0x8a] sm:$0xff] }
 0x243   : > { %v5208_v17 = vpop.permute.xlu0 %1850  ;;  %v5210_v31 = vpop.permute.xlu1 %1832 }
 0x244   : > { %6827 = vst [vmem:[#allocation156_spill] sm:$0xff] %v5208_v17  ;;  %6828 = vst [vmem:[#allocation157_spill] sm:$0xff] %v5210_v31  ;;  %2320 = vrot.lane.b32.xlu0 %v1320_v42, %s3951_s14  ;;  %1938 = vrot.lane.b32.xlu1 %v905_v27, %s3948_s11 }
 0x247   : > { %v5216_v2 = vpop.permute.xlu0 %1854  ;;  %v5218_v7 = vpop.permute.xlu1 %1836 }
 0x248   : > { %6829 = vst [vmem:[#allocation158_spill] sm:$0xff] %v5216_v2  ;;  %6830 = vst [vmem:[#allocation159_spill] sm:$0xff] %v5218_v7  ;;  %1940 = vrot.lane.b32.xlu0 %v906_v13, %s3948_s11  ;;  %2446 = vrot.lane.b32.xlu1 %v1511_v44, %s3954_s18  ;;  %v6836_v44 = vld [vmem:[#allocation114_spill] sm:$0xff]  ;;  %v6838_v2 = vld [vmem:[#allocation77_spill] sm:$0xff] }
 0x249   : > { %v1354_v7 = vld [vmem:[#allocation2 + $0x96] sm:$0xff] }
 0x24b   : > { %v5227_v27 = vpop.permute.xlu0 %1922  ;;  %v5229_v57 = vpop.permute.xlu1 %1840 }
 0x24c   : > { %6832 = vst [vmem:[#allocation161_spill] sm:$0xff] %v5229_v57  ;;  %2448 = vrot.lane.b32.xlu0 %v1512_v9, %s3954_s18  ;;  %2066 = vrot.lane.b32.xlu1 %v1097_v10, %s3949_s12 }
 0x24f   : > { %v5237_v26 = vpop.permute.xlu0 %1926  ;;  %v5239_v42 = vpop.permute.xlu1 %1844 }
 0x250   : > { %6834 = vst [vmem:[#allocation163_spill] sm:$0xff] %v5239_v42  ;;  %2068 = vrot.lane.b32.xlu0 %v1098_v36, %s3949_s12  ;;  %2574 = vrot.lane.b32.xlu1 %v4818_v24, %s3952_s16  ;;  %v5260_v36 = vld [vmem:[#allocation2 + $0x72] sm:$0xff] }
 0x251   : > { %v1321_v17 = vmul.f32 %v6838_v2, %v5260_v36  ;;  %v1353_v42 = vld [vmem:[#allocation2 + $0x8e] sm:$0xff] }
 0x253   : > { %v5244_v53 = vpop.permute.xlu0 %1930  ;;  %v5246_v13 = vpop.permute.xlu1 %1848 }
 0x254   : > { %6835 = vst [vmem:[#allocation164_spill] sm:$0xff] %v5246_v13  ;;  %2576 = vrot.lane.b32.xlu0 %v6836_v44, %s3952_s16  ;;  %2194 = vrot.lane.b32.xlu1 %v4806_v16, %s3950_s13  ;;  %v1736_v13 = vmul.f32 %v4978_v12, %v1576_v38  ;;  %v6841_v12 = vld [vmem:[#allocation36_spill] sm:$0xff] }
 0x255   : > { %v6842_v38 = vld [vmem:[#allocation104_spill] sm:$0xff] }
 0x257   : > { %v5253_v10 = vpop.permute.xlu0 %2050  ;;  %v5255_v9 = vpop.permute.xlu1 %1852 }
 0x258   : > { %6837 = vst [vmem:[#allocation114_spill] sm:$0xff] %v5255_v9  ;;  %2196 = vrot.lane.b32.xlu0 %v4866_v5, %s3950_s13  ;;  %2702 = vrot.lane.b32.xlu1 %v1735_v35, %s3953_s17  ;;  %v6839_v9 = vld [vmem:[#allocation35_spill] sm:$0xff]  ;;  %v6840_v35 = vld [vmem:[#allocation80_spill] sm:$0xff] }
 0x259   : > { %v907_v5 = vmul.f32 %v6839_v9, %v747_v22  ;;  %v1322_v62 = vmul.f32 %v6840_v35, %v5269_v18  ;;  %v463_v9 = vld [vmem:[#allocation2 + $0x7e] sm:$0xff] }
 0x25a   : > { %v6843_v35 = vld [vmem:[#allocation57_spill] sm:$0xff] }
 0x25b   : > { %v5265_v16 = vpop.permute.xlu0 %2178  ;;  %v1921_v6 = vpop.permute.xlu1 %1920  ;;  %v1099_v30 = vmul.f32 %v6843_v35, %v463_v9  ;;  %v6847_v9 = vld [vmem:[#allocation4_spill] sm:$0xff] }
 0x25c   : > { %2704 = vrot.lane.b32.xlu0 %v1736_v13, %s3953_s17  ;;  %2322 = vrot.lane.b32.xlu1 %v1321_v17, %s3951_s14  ;;  %v908_v13 = vmul.f32 %v6841_v12, %v748_v8  ;;  %v1513_v17 = vmul.f32 %v6842_v38, %v1353_v42  ;;  %v464_v8 = vld [vmem:[#allocation2 + $0x86] sm:$0xff]  ;;  %v6845_v12 = vld [vmem:[#allocation56_spill] sm:$0xff] }
 0x25d   : > { %v448_v42 = vld [vmem:[#allocation2 + $0x6] sm:$0xff]  ;;  %v1100_v38 = vmul.f32 %v6845_v12, %v464_v8 }
 0x25e   : > { %v6848_v12 = vld [vmem:[#allocation117_spill] sm:$0xff] }
 0x25f   : > { %v5274_v57 = vpop.permute.xlu0 %2306  ;;  %v5276_v2 = vpop.permute.xlu1 %1924 }
 0x260   : > { %2324 = vrot.lane.b32.xlu0 %v1322_v62, %s3951_s14  ;;  %1942 = vrot.lane.b32.xlu1 %v907_v5, %s3948_s11  ;;  %v1514_v62 = vmul.f32 %v6844_v1, %v1354_v7  ;;  %v672_v1 = vmul.f32 %v6847_v9, %v448_v42  ;;  %v1577_v7 = vld [vmem:[#allocation2 + $0x92] sm:$0xff]  ;;  %v1578_v9 = vld [vmem:[#allocation2 + $0x9a] sm:$0xff] }
 0x261   : > { %v1737_v42 = vmul.f32 %v4943_v39, %v1577_v7  ;;  %v1738_v7 = vmul.f32 %v4987_v28, %v1578_v9  ;;  %v1355_v28 = vld [vmem:[#allocation2 + $0x9e] sm:$0xff] }
 0x262   : > { %v2784_v35 = vsel %vm263_vm0, %v672_v1, %v5119_v51 }
 0x263   : > { %v5282_v31 = vpop.permute.xlu0 %2052  ;;  %v5284_v22 = vpop.permute.xlu1 %1928  ;;  %v2817_v8 = vsel %vm2816_vm1, %v2784_v35, %v1921_v6 }
 0x264   : > { %1944 = vrot.lane.b32.xlu0 %v908_v13, %s3948_s11  ;;  %2450 = vrot.lane.b32.xlu1 %v1513_v17, %s3954_s18  ;;  %v6846_v17 = vld [vmem:[#allocation103_spill] sm:$0xff] }
 0x267   : > { %v2561_v43 = vpop.permute.xlu0 %2560  ;;  %v2049_v5 = vpop.permute.xlu1 %2048 }
 0x268   : > { %2452 = vrot.lane.b32.xlu0 %v1514_v62, %s3954_s18  ;;  %2070 = vrot.lane.b32.xlu1 %v1099_v30, %s3949_s12 }
 0x26b   : > { %v5293_v40 = vpop.permute.xlu0 %2180  ;;  %v2177_v13 = vpop.permute.xlu1 %2176 }
 0x26c   : > { %2072 = vrot.lane.b32.xlu0 %v1100_v38, %s3949_s12  ;;  %2578 = vrot.lane.b32.xlu1 %v6846_v17, %s3952_s16  ;;  %v2850_v38 = vsel %vm2849_vm2, %v2817_v8, %v2049_v5  ;;  %v6849_v5 = vld [vmem:[#allocation78_spill] sm:$0xff] }
 0x26d   : > { %v2883_v51 = vsel %vm2882_vm3, %v2850_v38, %v2177_v13 }
 0x26f   : > { %v2689_v30 = vpop.permute.xlu0 %2688  ;;  %v2305_v62 = vpop.permute.xlu1 %2304 }
 0x270   : > { %2580 = vrot.lane.b32.xlu0 %v6848_v12, %s3952_s16  ;;  %2198 = vrot.lane.b32.xlu1 %v4818_v24, %s3950_s13  ;;  %v2916_v1 = vsel %vm2915_vm5, %v2883_v51, %v2305_v62  ;;  %v5316_v24 = vld [vmem:[#allocation2 + $0x82] sm:$0xff] }
 0x271   : > { %v1323_v13 = vmul.f32 %v6849_v5, %v5316_v24  ;;  %v6853_v5 = vld [vmem:[#allocation107_spill] sm:$0xff] }
 0x273   : > { %v5310_v6 = vpop.permute.xlu0 %2308  ;;  %v2433_v35 = vpop.permute.xlu1 %2432 }
 0x274   : > { %v2949_v63 = vsel %vm2948_vm4, %v2916_v1, %v2433_v35  ;;  %2200 = vrot.lane.b32.xlu0 %v6836_v44, %s3950_s13  ;;  %2706 = vrot.lane.b32.xlu1 %v1737_v42, %s3953_s17  ;;  %v5328_v44 = vld [vmem:[#allocation2 + $0x8a] sm:$0xff] }
 0x275   : > { %v2982_v39 = vsel %vm2981_vm6, %v2949_v63, %v2561_v43  ;;  %v6850_v63 = vld [vmem:[#allocation37_spill] sm:$0xff]  ;;  %v6851_v42 = vld [vmem:[#allocation82_spill] sm:$0xff] }
 0x276   : > { %v3015_v62 = vsel %vm3014_vm7, %v2982_v39, %v2689_v30  ;;  %v909_v43 = vmul.f32 %v6850_v63, %v5260_v36  ;;  %v1324_v51 = vmul.f32 %v6851_v42, %v5328_v44  ;;  %v449_v1 = vld [vmem:[#allocation2 + $0xe] sm:$0xff] }
 0x277   : > { %v5323_v8 = vpop.permute.xlu0 %2310  ;;  %3810 = vmatprep.mubr.msk.f32.mxu0 %vm3056_vm8, %v3015_v62  ;;  %v2435_v38 = vpop.permute.xlu1 %2434  ;;  %v6852_v35 = vld [vmem:[#allocation38_spill] sm:$0xff] }
 0x278   : > { %2708 = vrot.lane.b32.xlu0 %v1738_v7, %s3953_s17  ;;  %2326 = vrot.lane.b32.xlu1 %v1323_v13, %s3951_s14  ;;  %v910_v39 = vmul.f32 %v6852_v35, %v5269_v18  ;;  %v1515_v13 = vmul.f32 %v6853_v5, %v1355_v28  ;;  %v6854_v7 = vld [vmem:[#allocation6_spill] sm:$0xff] }
 0x279   : > { %v673_v36 = vmul.f32 %v6854_v7, %v449_v1  ;;  %v1356_v62 = vld [vmem:[#allocation2 + $0xa6] sm:$0xff] }
 0x27a   : > { %v1516_v18 = vmul.f32 %v6856_v61, %v1356_v62 }
 0x27b   : > { %v5334_v9 = vpop.permute.xlu0 %2056  ;;  %v5336_v30 = vpop.permute.xlu1 %2054 }
 0x27c   : > { %2328 = vrot.lane.b32.xlu0 %v1324_v51, %s3951_s14  ;;  %1946 = vrot.lane.b32.xlu1 %v909_v43, %s3948_s11  ;;  %v2785_v51 = vsel %vm263_vm0, %v673_v36, %v5084_v45  ;;  %v6855_v43 = vld [vmem:[#allocation59_spill] sm:$0xff] }
 0x27d   : > { %v1101_v56 = vmul.f32 %v6855_v43, %v465_v48  ;;  %v2818_v28 = vsel %vm2816_vm1, %v2785_v51, %v5227_v27  ;;  %v6857_v45 = vld [vmem:[#allocation3_spill] sm:$0xff]  ;;  %v6858_v27 = vld [vmem:[#allocation58_spill] sm:$0xff] }
 0x27e   : > { %v2851_v1 = vsel %vm2849_vm2, %v2818_v28, %v5253_v10  ;;  %v674_v48 = vmul.f32 %v6857_v45, %v450_v15  ;;  %v1580_v45 = vld [vmem:[#allocation2 + $0xaa] sm:$0xff] }
 0x27f   : > { %v2565_v63 = vpop.permute.xlu0 %2564  ;;  %v2563_v42 = vpop.permute.xlu1 %2562  ;;  %v2884_v5 = vsel %vm2882_vm3, %v2851_v1, %v5265_v16  ;;  %v6860_v1 = vld [vmem:[#allocation120_spill] sm:$0xff] }
 0x280   : > { %1948 = vrot.lane.b32.xlu0 %v910_v39, %s3948_s11  ;;  %2454 = vrot.lane.b32.xlu1 %v1515_v13, %s3954_s18  ;;  %v466_v13 = vld [vmem:[#allocation2 + $0x96] sm:$0xff]  ;;  %v2917_v61 = vsel %vm2915_vm5, %v2884_v5, %v5274_v57  ;;  %v2786_v36 = vsel %vm263_vm0, %v674_v48, %v5128_v21  ;;  %v6859_v57 = vld [vmem:[#allocation106_spill] sm:$0xff] }
 0x281   : > { %v1102_v7 = vmul.f32 %v6858_v27, %v466_v13  ;;  %v2950_v10 = vsel %vm2948_vm4, %v2917_v61, %v2435_v38  ;;  %v5395_v13 = vld [vmem:[#allocation2 + $0x92] sm:$0xff] }
 0x282   : > { %v2983_v62 = vsel %vm2981_vm6, %v2950_v10, %v2563_v42  ;;  %v1579_v42 = vld [vmem:[#allocation2 + $0xa2] sm:$0xff] }
 0x283   : > { %v5354_v35 = vpop.permute.xlu0 %2184  ;;  %v2183_v39 = vpop.permute.xlu1 %2182  ;;  %v1739_v5 = vmul.f32 %v4952_v50, %v1579_v42  ;;  %v1740_v50 = vmul.f32 %v4998_v34, %v1580_v45  ;;  %v6862_v10 = vld [vmem:[#allocation5_spill] sm:$0xff]  ;;  %v6865_v42 = vld [vmem:[#allocation40_spill] sm:$0xff] }
 0x284   : > { %2456 = vrot.lane.b32.xlu0 %v1516_v18, %s3954_s18  ;;  %2074 = vrot.lane.b32.xlu1 %v1101_v56, %s3949_s12  ;;  %v2819_v56 = vsel %vm2816_vm1, %v2786_v36, %v5276_v2 }
 0x285   : > { %v2852_v38 = vsel %vm2849_vm2, %v2819_v56, %v5282_v31 }
 0x286   : > { %v2885_v21 = vsel %vm2882_vm3, %v2852_v38, %v5293_v40 }
 0x287   : > { %v2693_v16 = vpop.permute.xlu0 %2692  ;;  %v2691_v51 = vpop.permute.xlu1 %2690  ;;  %v2918_v43 = vsel %vm2915_vm5, %v2885_v21, %v5310_v6 }
 0x288   : > { %v3016_v15 = vsel %vm3014_vm7, %v2983_v62, %v2691_v51  ;;  %2076 = vrot.lane.b32.xlu0 %v1102_v7, %s3949_s12  ;;  %2582 = vrot.lane.b32.xlu1 %v6859_v57, %s3952_s16  ;;  %v6863_v62 = vld [vmem:[#allocation39_spill] sm:$0xff]  ;;  %v6864_v51 = vld [vmem:[#allocation84_spill] sm:$0xff] }
 0x289   : > { %3811 = vmatmul.mubr.msk.f32.vlgmr.msra.gmra.mrb[0].mxu0 %vm3056_vm8, %v3016_v15  ;;  %v1357_v15 = vld [vmem:[#allocation2 + $0xae] sm:$0xff] }
 0x28b   : > { %v2313_v2 = vpop.permute.xlu0 %2312  ;;  %v2437_v18 = vpop.permute.xlu1 %2436 }
 0x28c   : > { %v2951_v28 = vsel %vm2948_vm4, %v2918_v43, %v2437_v18  ;;  %2584 = vrot.lane.b32.xlu0 %v6860_v1, %s3952_s16  ;;  %2202 = vrot.lane.b32.xlu1 %v6846_v17, %s3950_s13  ;;  %v451_v17 = vld [vmem:[#allocation2 + $0x1e] sm:$0xff]  ;;  %v912_v43 = vmul.f32 %v6865_v42, %v5328_v44  ;;  %v6866_v18 = vld [vmem:[#allocation110_spill] sm:$0xff] }
 0x28d   : > { %v2984_v31 = vsel %vm2981_vm6, %v2951_v28, %v2565_v63  ;;  %v6861_v63 = vld [vmem:[#allocation79_spill] sm:$0xff]  ;;  %v675_v36 = vmul.f32 %v6862_v10, %v451_v17  ;;  %v1517_v28 = vmul.f32 %v6866_v18, %v1357_v15  ;;  %v467_v17 = vld [vmem:[#allocation2 + $0x9e] sm:$0xff] }
 0x28e   : > { %v3017_v40 = vsel %vm3014_vm7, %v2984_v31, %v2693_v16  ;;  %v1325_v61 = vmul.f32 %v6861_v63, %v5395_v13  ;;  %v911_v16 = vmul.f32 %v6863_v62, %v5316_v24  ;;  %v6867_v31 = vld [vmem:[#allocation8_spill] sm:$0xff]  ;;  %v6868_v63 = vld [vmem:[#allocation61_spill] sm:$0xff] }
 0x28f   : > { %v5389_v48 = vpop.permute.xlu0 %1932  ;;  %3813 = vmatprep.mubr.msk.f32.mxu0 %vm3056_vm8, %v3017_v40  ;;  %v2439_v6 = vpop.permute.xlu1 %2438  ;;  %v2787_v34 = vsel %vm263_vm0, %v675_v36, %v5093_v4  ;;  %v1358_v40 = vld [vmem:[#allocation2 + $0xb6] sm:$0xff] }
 0x290   : > { %2204 = vrot.lane.b32.xlu0 %v6848_v12, %s3950_s13  ;;  %2710 = vrot.lane.b32.xlu1 %v1739_v5, %s3953_s17  ;;  %v5405_v12 = vld [vmem:[#allocation2 + $0x9a] sm:$0xff]  ;;  %v2820_v21 = vsel %vm2816_vm1, %v2787_v34, %v5237_v26  ;;  %v676_v5 = vmul.f32 %v6867_v31, %v4967_v55 }
 0x291   : > { %v1326_v56 = vmul.f32 %v6864_v51, %v5405_v12  ;;  %v2853_v24 = vsel %vm2849_vm2, %v2820_v21, %v5336_v30 }
 0x292   : > { %v2886_v4 = vsel %vm2882_vm3, %v2853_v24, %v2183_v39  ;;  %v2788_v30 = vsel %vm263_vm0, %v676_v5, %v5139_v52  ;;  %v1103_v39 = vmul.f32 %v6868_v63, %v467_v17  ;;  %v6871_v24 = vld [vmem:[#allocation109_spill] sm:$0xff]  ;;  %v6874_v63 = vld [vmem:[#allocation86_spill] sm:$0xff] }
 0x293   : > { %v2441_v27 = vpop.permute.xlu0 %2440  ;;  %v5400_v7 = vpop.permute.xlu1 %2058  ;;  %v2919_v44 = vsel %vm2915_vm5, %v2886_v4, %v5323_v8  ;;  %v2821_v55 = vsel %vm2816_vm1, %v2788_v30, %v5284_v22  ;;  %v468_v22 = vld [vmem:[#allocation2 + $0xa6] sm:$0xff] }
 0x294   : > { %2712 = vrot.lane.b32.xlu0 %v1740_v50, %s3953_s17  ;;  %2330 = vrot.lane.b32.xlu1 %v1325_v61, %s3951_s14  ;;  %v6869_v61 = vld [vmem:[#allocation102_spill] sm:$0xff]  ;;  %v2952_v10 = vsel %vm2948_vm4, %v2919_v44, %v2439_v6  ;;  %v2854_v36 = vsel %vm2849_vm2, %v2821_v55, %v5334_v9  ;;  %v6870_v9 = vld [vmem:[#allocation60_spill] sm:$0xff] }
 0x295   : > { %v1518_v50 = vmul.f32 %v6869_v61, %v1358_v40  ;;  %v2887_v8 = vsel %vm2882_vm3, %v2854_v36, %v5354_v35  ;;  %v5471_v5 = vld [vmem:[#allocation2 + $0xa2] sm:$0xff]  ;;  %v6875_v61 = vld [vmem:[#allocation128_spill] sm:$0xff] }
 0x296   : > { %v2920_v6 = vsel %vm2915_vm5, %v2887_v8, %v2313_v2  ;;  %v1581_v2 = vld [vmem:[#allocation2 + $0xb2] sm:$0xff]  ;;  %v6872_v40 = vld [vmem:[#allocation81_spill] sm:$0xff] }
 0x297   : > { %v5413_v57 = vpop.permute.xlu0 %2060  ;;  %v2567_v38 = vpop.permute.xlu1 %2566  ;;  %v2953_v15 = vsel %vm2948_vm4, %v2920_v6, %v2441_v27  ;;  %v3919_v27 = vld [vmem:[#allocation2 + $0xa0] sm:$0xff]  ;;  %v1741_v18 = vmul.f32 %v4963_v41, %v1581_v2  ;;  %v5480_v41 = vld [vmem:[#allocation2 + $0xaa] sm:$0xff]  ;;  %v6878_v8 = vld [vmem:[#allocation112_spill] sm:$0xff] }
 0x298   : > { %2332 = vrot.lane.b32.xlu0 %v1326_v56, %s3951_s14  ;;  %1950 = vrot.lane.b32.xlu1 %v911_v16, %s3948_s11  ;;  %v2985_v62 = vsel %vm2981_vm6, %v2952_v10, %v2567_v38  ;;  %v1104_v56 = vmul.f32 %v6870_v9, %v468_v22  ;;  %v1359_v10 = vld [vmem:[#allocation2 + $0xbe] sm:$0xff]  ;;  %v6879_v6 = vld [vmem:[#allocation130_spill] sm:$0xff]  ;;  %v6881_v2 = vld [vmem:[#allocation63_spill] sm:$0xff] }
 0x299   : > { %v6880_v9 = vld [vmem:[#allocation10_spill] sm:$0xff] }
 0x29b   : > { %v2569_v45 = vpop.permute.xlu0 %2568  ;;  %v5427_v26 = vpop.permute.xlu1 %2186 }
 0x29c   : > { %1952 = vrot.lane.b32.xlu0 %v912_v43, %s3948_s11  ;;  %2458 = vrot.lane.b32.xlu1 %v1517_v28, %s3954_s18  ;;  %v2986_v34 = vsel %vm2981_vm6, %v2953_v15, %v2569_v45  ;;  %v1582_v28 = vld [vmem:[#allocation2 + $0xba] sm:$0xff]  ;;  %v1327_v45 = vmul.f32 %v6872_v40, %v5471_v5  ;;  %v1360_v15 = vld [vmem:[#allocation2 + $0xc6] sm:$0xff] }
 0x29f   : > { %v5443_v16 = vpop.permute.xlu0 %2188  ;;  %v2695_v52 = vpop.permute.xlu1 %2694 }
 0x2a0   : > { %v3018_v51 = vsel %vm3014_vm7, %v2985_v62, %v2695_v52  ;;  %2460 = vrot.lane.b32.xlu0 %v1518_v50, %s3954_s18  ;;  %2078 = vrot.lane.b32.xlu1 %v1103_v39, %s3949_s12  ;;  %v1328_v39 = vmul.f32 %v6874_v63, %v5480_v41  ;;  %v6876_v50 = vld [vmem:[#allocation7_spill] sm:$0xff]  ;;  %v6877_v52 = vld [vmem:[#allocation42_spill] sm:$0xff] }
 0x2a1   : > { %3814 = vmatmul.mubr.msk.f32.gmra.mrb[2].mxu0 %vm3056_vm8, %v3018_v51  ;;  %v677_v55 = vmul.f32 %v6876_v50, %v6875_v61  ;;  %v1519_v51 = vmul.f32 %v6878_v8, %v1359_v10  ;;  %v1583_v10 = vld [vmem:[#allocation2 + $0xc2] sm:$0xff]  ;;  %v1584_v8 = vld [vmem:[#allocation2 + $0xca] sm:$0xff] }
 0x2a3   : > { %v2697_v38 = vpop.permute.xlu0 %2696  ;;  %v2315_v21 = vpop.permute.xlu1 %2314  ;;  %v2789_v62 = vsel %vm263_vm0, %v677_v55, %v5104_v11 }
 0x2a4   : > { %v3019_v35 = vsel %vm3014_vm7, %v2986_v34, %v2697_v38  ;;  %2080 = vrot.lane.b32.xlu0 %v1104_v56, %s3949_s12  ;;  %2586 = vrot.lane.b32.xlu1 %v6871_v24, %s3952_s16  ;;  %v2822_v22 = vsel %vm2816_vm1, %v2789_v62, %v5244_v53  ;;  %v678_v56 = vmul.f32 %v6880_v9, %v6879_v6  ;;  %v3921_v6 = vld [vmem:[#allocation2 + $0xb8] sm:$0xff] }
 0x2a5   : > { %3816 = vmatprep.mubr.msk.f32.mxu0 %vm3056_vm8, %v3019_v35  ;;  %v2855_v34 = vsel %vm2849_vm2, %v2822_v22, %v5400_v7  ;;  %v5548_v9 = vld [vmem:[#allocation2 + $0xb2] sm:$0xff] }
 0x2a6   : > { %v2888_v11 = vsel %vm2882_vm3, %v2855_v34, %v5427_v26  ;;  %v2790_v53 = vsel %vm263_vm0, %v678_v56, %v5148_v37  ;;  %v6885_v56 = vld [vmem:[#allocation83_spill] sm:$0xff]  ;;  %v1744_v34 = vmul.f32 %v5035_v54, %v1584_v8 }
 0x2a7   : > { %v2317_v42 = vpop.permute.xlu0 %2316  ;;  %v5460_v43 = vpop.permute.xlu1 %1934  ;;  %v2921_v24 = vsel %vm2915_vm5, %v2888_v11, %v2315_v21 }
 0x2a8   : > { %2588 = vrot.lane.b32.xlu0 %v4902_v23, %s3952_s16  ;;  %2206 = vrot.lane.b32.xlu1 %v3919_v27, %s3950_s13  ;;  %v1742_v23 = vmul.f32 %v5015_v58, %v1582_v28  ;;  %v2823_v28 = vsel %vm2816_vm1, %v2790_v53, %v5389_v48  ;;  %v470_v48 = vld [vmem:[#allocation2 + $0xb6] sm:$0xff] }
 0x2a9   : > { %v2856_v26 = vsel %vm2849_vm2, %v2823_v28, %v5413_v57  ;;  %v5529_v57 = vld [vmem:[#allocation2 + $0xc0] sm:$0xff]  ;;  %v6886_v53 = vld [vmem:[#allocation43_spill] sm:$0xff] }
 0x2aa   : > { %v2889_v37 = vsel %vm2882_vm3, %v2856_v26, %v5443_v16  ;;  %v1361_v28 = vld [vmem:[#allocation2 + $0xce] sm:$0xff] }
 0x2ab   : > { %v5466_v4 = vpop.permute.xlu0 %1936  ;;  %v2443_v31 = vpop.permute.xlu1 %2442 }
 0x2ac   : > { %2208 = vrot.lane.b32.xlu0 %v6860_v1, %s3950_s13  ;;  %2714 = vrot.lane.b32.xlu1 %v1741_v18, %s3953_s17  ;;  %v6873_v1 = vld [vmem:[#allocation41_spill] sm:$0xff]  ;;  %v2954_v40 = vsel %vm2948_vm4, %v2921_v24, %v2443_v31  ;;  %v2922_v31 = vsel %vm2915_vm5, %v2889_v37, %v2317_v42  ;;  %v1137_v42 = vld [vmem:[#allocation2 + $0xb0] sm:$0xff]  ;;  %v915_v24 = vmul.f32 %v6886_v53, %v5471_v5 }
 0x2ad   : > { %v913_v44 = vmul.f32 %v6873_v1, %v5395_v13  ;;  %v914_v13 = vmul.f32 %v6877_v52, %v5405_v12  ;;  %v469_v12 = vld [vmem:[#allocation2 + $0xae] sm:$0xff]  ;;  %v6882_v18 = vld [vmem:[#allocation105_spill] sm:$0xff] }
 0x2ae   : > { %v1105_v27 = vmul.f32 %v6881_v2, %v469_v12  ;;  %v1520_v7 = vmul.f32 %v6882_v18, %v1360_v15  ;;  %v3920_v52 = vld [vmem:[#allocation2 + $0xc8] sm:$0xff]  ;;  %v1329_v15 = vmul.f32 %v6885_v56, %v5548_v9  ;;  %v5557_v12 = vld [vmem:[#allocation2 + $0xba] sm:$0xff] }
 0x2af   : > { %v2445_v17 = vpop.permute.xlu0 %2444  ;;  %v5476_v30 = vpop.permute.xlu1 %2062  ;;  %v6887_v2 = vld [vmem:[#allocation88_spill] sm:$0xff]  ;;  %v6888_v18 = vld [vmem:[#allocation9_spill] sm:$0xff] }
 0x2b0   : > { %2716 = vrot.lane.b32.xlu0 %v1742_v23, %s3953_s17  ;;  %2334 = vrot.lane.b32.xlu1 %v1327_v45, %s3951_s14 }
 0x2b3   : > { %v5488_v58 = vpop.permute.xlu0 %2064  ;;  %v2571_v36 = vpop.permute.xlu1 %2570 }
 0x2b4   : > { %2336 = vrot.lane.b32.xlu0 %v1328_v39, %s3951_s14  ;;  %1954 = vrot.lane.b32.xlu1 %v913_v44, %s3948_s11  ;;  %v2987_v45 = vsel %vm2981_vm6, %v2954_v40, %v2571_v36  ;;  %v6883_v44 = vld [vmem:[#allocation62_spill] sm:$0xff]  ;;  %v2955_v39 = vsel %vm2948_vm4, %v2922_v31, %v2445_v17  ;;  %v6884_v17 = vld [vmem:[#allocation131_spill] sm:$0xff] }
 0x2b5   : > { %v1106_v63 = vmul.f32 %v6883_v44, %v470_v48  ;;  %v1362_v31 = vld [vmem:[#allocation2 + $0xd6] sm:$0xff] }
 0x2b7   : > { %v2573_v38 = vpop.permute.xlu0 %2572  ;;  %v5503_v35 = vpop.permute.xlu1 %2190 }
 0x2b8   : > { %1956 = vrot.lane.b32.xlu0 %v914_v13, %s3948_s11  ;;  %2462 = vrot.lane.b32.xlu1 %v1519_v51, %s3954_s18  ;;  %v2988_v61 = vsel %vm2981_vm6, %v2955_v39, %v2573_v38  ;;  %v1743_v13 = vmul.f32 %v6884_v17, %v1583_v10 }
 0x2bb   : > { %v5520_v23 = vpop.permute.xlu0 %2192  ;;  %v2699_v1 = vpop.permute.xlu1 %2698 }
 0x2bc   : > { %v3020_v21 = vsel %vm3014_vm7, %v2987_v45, %v2699_v1  ;;  %2464 = vrot.lane.b32.xlu0 %v1520_v7, %s3954_s18  ;;  %2082 = vrot.lane.b32.xlu1 %v1105_v27, %s3949_s12  ;;  %v1330_v27 = vmul.f32 %v6887_v2, %v5557_v12  ;;  %v679_v7 = vmul.f32 %v6888_v18, %v5027_v0  ;;  %v6889_v45 = vld [vmem:[#allocation44_spill] sm:$0xff]  ;;  %v6890_v1 = vld [vmem:[#allocation115_spill] sm:$0xff] }
 0x2bd   : > { %3817 = vmatmul.mubr.msk.f32.gmra.mrb[4].mxu0 %vm3056_vm8, %v3020_v21  ;;  %v916_v5 = vmul.f32 %v6889_v45, %v5480_v41  ;;  %v1521_v37 = vmul.f32 %v6890_v1, %v1361_v28  ;;  %v6891_v0 = vld [vmem:[#allocation12_spill] sm:$0xff]  ;;  %v5632_v45 = vld [vmem:[#allocation2 + $0xc2] sm:$0xff] }
 0x2be   : > { %v2791_v26 = vsel %vm263_vm0, %v679_v7, %v5114_v25  ;;  %v680_v48 = vmul.f32 %v6891_v0, %v5029_v29  ;;  %v471_v41 = vld [vmem:[#allocation2 + $0xbe] sm:$0xff]  ;;  %v5641_v0 = vld [vmem:[#allocation2 + $0xca] sm:$0xff] }
 0x2bf   : > { %v2701_v16 = vpop.permute.xlu0 %2700  ;;  %v2319_v50 = vpop.permute.xlu1 %2318  ;;  %v2824_v21 = vsel %vm2816_vm1, %v2791_v26, %v5460_v43  ;;  %v6895_v18 = vld [vmem:[#allocation132_spill] sm:$0xff] }
 0x2c0   : > { %v3021_v55 = vsel %vm3014_vm7, %v2988_v61, %v2701_v16  ;;  %2084 = vrot.lane.b32.xlu0 %v1106_v63, %s3949_s12  ;;  %2590 = vrot.lane.b32.xlu1 %v5529_v57, %s3952_s16  ;;  %v2857_v44 = vsel %vm2849_vm2, %v2824_v21, %v5476_v30  ;;  %v2792_v43 = vsel %vm263_vm0, %v680_v48, %v5156_v49  ;;  %v6892_v61 = vld [vmem:[#allocation65_spill] sm:$0xff] }
 0x2c1   : > { %3819 = vmatprep.mubr.msk.f32.mxu0 %vm3056_vm8, %v3021_v55  ;;  %v2890_v25 = vsel %vm2882_vm3, %v2857_v44, %v5503_v35  ;;  %v1107_v16 = vmul.f32 %v6892_v61, %v471_v41  ;;  %v6893_v55 = vld [vmem:[#allocation108_spill] sm:$0xff]  ;;  %v6897_v48 = vld [vmem:[#allocation45_spill] sm:$0xff]  ;;  %v6898_v44 = vld [vmem:[#allocation90_spill] sm:$0xff] }
 0x2c2   : > { %v2923_v29 = vsel %vm2915_vm5, %v2890_v25, %v2319_v50  ;;  %v1522_v30 = vmul.f32 %v6893_v55, %v1362_v31  ;;  %v1586_v28 = vld [vmem:[#allocation2 + $0xda] sm:$0xff]  ;;  %v917_v31 = vmul.f32 %v6897_v48, %v5548_v9  ;;  %v6899_v25 = vld [vmem:[#allocation11_spill] sm:$0xff]  ;;  %v6901_v55 = vld [vmem:[#allocation118_spill] sm:$0xff] }
 0x2c3   : > { %v2321_v36 = vpop.permute.xlu0 %2320  ;;  %v5539_v62 = vpop.permute.xlu1 %1938  ;;  %v681_v41 = vmul.f32 %v6899_v25, %v5097_v19  ;;  %v6902_v19 = vld [vmem:[#allocation14_spill] sm:$0xff]  ;;  %v5720_v25 = vld [vmem:[#allocation2 + $0xd2] sm:$0xff] }
 0x2c4   : > { %2592 = vrot.lane.b32.xlu0 %v3920_v52, %s3952_s16  ;;  %2210 = vrot.lane.b32.xlu1 %v1137_v42, %s3950_s13  ;;  %v2825_v42 = vsel %vm2816_vm1, %v2792_v43, %v5466_v4  ;;  %v5604_v4 = vld [vmem:[#allocation2 + $0xc6] sm:$0xff]  ;;  %v1363_v43 = vld [vmem:[#allocation2 + $0xde] sm:$0xff] }
 0x2c5   : > { %v2858_v35 = vsel %vm2849_vm2, %v2825_v42, %v5488_v58  ;;  %v5608_v58 = vld [vmem:[#allocation2 + $0xd0] sm:$0xff]  ;;  %v2793_v61 = vsel %vm263_vm0, %v681_v41, %v5121_v20 }
 0x2c6   : > { %v2891_v49 = vsel %vm2882_vm3, %v2858_v35, %v5520_v23  ;;  %v2826_v42 = vsel %vm2816_vm1, %v2793_v61, %v5539_v62  ;;  %v1364_v35 = vld [vmem:[#allocation2 + $0xe6] sm:$0xff]  ;;  %v6906_v41 = vld [vmem:[#allocation87_spill] sm:$0xff] }
 0x2c7   : > { %v5544_v51 = vpop.permute.xlu0 %1940  ;;  %v2447_v22 = vpop.permute.xlu1 %2446  ;;  %v2924_v8 = vsel %vm2915_vm5, %v2891_v49, %v2321_v36  ;;  %v5619_v36 = vld [vmem:[#allocation2 + $0xd8] sm:$0xff] }
 0x2c8   : > { %2212 = vrot.lane.b32.xlu0 %v3921_v6, %s3950_s13  ;;  %2718 = vrot.lane.b32.xlu1 %v1743_v13, %s3953_s17  ;;  %v2956_v10 = vsel %vm2948_vm4, %v2923_v29, %v2447_v22  ;;  %v6894_v22 = vld [vmem:[#allocation64_spill] sm:$0xff] }
 0x2c9   : > { %v1108_v6 = vmul.f32 %v6894_v22, %v5604_v4 }
 0x2cb   : > { %v2449_v38 = vpop.permute.xlu0 %2448  ;;  %v5553_v11 = vpop.permute.xlu1 %2066 }
 0x2cc   : > { %2720 = vrot.lane.b32.xlu0 %v1744_v34, %s3953_s17  ;;  %2338 = vrot.lane.b32.xlu1 %v1329_v15, %s3951_s14  ;;  %v2957_v56 = vsel %vm2948_vm4, %v2924_v8, %v2449_v38  ;;  %v1140_v38 = vld [vmem:[#allocation2 + $0xc8] sm:$0xff]  ;;  %v6904_v8 = vld [vmem:[#allocation111_spill] sm:$0xff] }
 0x2cd   : > { %v1524_v22 = vmul.f32 %v6904_v8, %v1364_v35 }
 0x2cf   : > { %v5565_v54 = vpop.permute.xlu0 %2068  ;;  %v2575_v40 = vpop.permute.xlu1 %2574 }
 0x2d0   : > { %2340 = vrot.lane.b32.xlu0 %v1330_v27, %s3951_s14  ;;  %1958 = vrot.lane.b32.xlu1 %v915_v24, %s3948_s11  ;;  %v2989_v52 = vsel %vm2981_vm6, %v2956_v10, %v2575_v40  ;;  %v1585_v24 = vld [vmem:[#allocation2 + $0xd2] sm:$0xff]  ;;  %v682_v10 = vmul.f32 %v6902_v19, %v5108_v3 }
 0x2d1   : > { %v1745_v7 = vmul.f32 %v6895_v18, %v1585_v24 }
 0x2d2   : > { %v2794_v62 = vsel %vm263_vm0, %v682_v10, %v5167_v59  ;;  %v1365_v10 = vld [vmem:[#allocation2 + $0xee] sm:$0xff] }
 0x2d3   : > { %v2577_v63 = vpop.permute.xlu0 %2576  ;;  %v5580_v39 = vpop.permute.xlu1 %2194 }
 0x2d4   : > { %1960 = vrot.lane.b32.xlu0 %v916_v5, %s3948_s11  ;;  %2466 = vrot.lane.b32.xlu1 %v1521_v37, %s3954_s18  ;;  %v2990_v23 = vsel %vm2981_vm6, %v2957_v56, %v2577_v63  ;;  %v6896_v5 = vld [vmem:[#allocation85_spill] sm:$0xff]  ;;  %v1746_v37 = vmul.f32 %v5047_v47, %v1586_v28  ;;  %v1332_v63 = vmul.f32 %v6898_v44, %v5641_v0 }
 0x2d5   : > { %v1331_v1 = vmul.f32 %v6896_v5, %v5632_v45 }
 0x2d7   : > { %v5597_v17 = vpop.permute.xlu0 %2196  ;;  %v2703_v13 = vpop.permute.xlu1 %2702 }
 0x2d8   : > { %v3022_v50 = vsel %vm3014_vm7, %v2989_v52, %v2703_v13  ;;  %2468 = vrot.lane.b32.xlu0 %v1522_v30, %s3954_s18  ;;  %2086 = vrot.lane.b32.xlu1 %v1107_v16, %s3949_s12  ;;  %v6900_v16 = vld [vmem:[#allocation46_spill] sm:$0xff]  ;;  %v1523_v30 = vmul.f32 %v6901_v55, %v1363_v43  ;;  %v2859_v52 = vsel %vm2849_vm2, %v2826_v42, %v5553_v11  ;;  %v6909_v55 = vld [vmem:[#allocation92_spill] sm:$0xff]  ;;  %v6910_v42 = vld [vmem:[#allocation13_spill] sm:$0xff] }
 0x2d9   : > { %3820 = vmatmul.mubr.msk.f32.gmra.mrb[6].mxu0 %vm3056_vm8, %v3022_v50  ;;  %v918_v9 = vmul.f32 %v6900_v16, %v5557_v12  ;;  %v2892_v20 = vsel %vm2882_vm3, %v2859_v52, %v5580_v39  ;;  %v5670_v12 = vld [vmem:[#allocation2 + $0xce] sm:$0xff]  ;;  %v1333_v43 = vmul.f32 %v6906_v41, %v5720_v25  ;;  %v683_v19 = vmul.f32 %v6910_v42, %v5160_v14  ;;  %v6913_v14 = vld [vmem:[#allocation16_spill] sm:$0xff] }
 0x2da   : > { %v6903_v50 = vld [vmem:[#allocation67_spill] sm:$0xff] }
 0x2db   : > { %v2705_v15 = vpop.permute.xlu0 %2704  ;;  %v2323_v34 = vpop.permute.xlu1 %2322  ;;  %v1109_v11 = vmul.f32 %v6903_v50, %v5670_v12 }
 0x2dc   : > { %v3023_v53 = vsel %vm3014_vm7, %v2990_v23, %v2705_v15  ;;  %2088 = vrot.lane.b32.xlu0 %v1108_v6, %s3949_s12  ;;  %2594 = vrot.lane.b32.xlu1 %v5608_v58, %s3952_s16  ;;  %v2925_v3 = vsel %vm2915_vm5, %v2892_v20, %v2323_v34  ;;  %v2827_v6 = vsel %vm2816_vm1, %v2794_v62, %v5544_v51  ;;  %v5691_v51 = vld [vmem:[#allocation2 + $0xd6] sm:$0xff]  ;;  %v6912_v62 = vld [vmem:[#allocation121_spill] sm:$0xff] }
 0x2dd   : > { %3822 = vmatprep.mubr.msk.f32.mxu0 %vm3056_vm8, %v3023_v53  ;;  %v2860_v56 = vsel %vm2849_vm2, %v2827_v6, %v5565_v54  ;;  %v5695_v54 = vld [vmem:[#allocation2 + $0xe0] sm:$0xff]  ;;  %v6911_v20 = vld [vmem:[#allocation48_spill] sm:$0xff] }
 0x2de   : > { %v2893_v34 = vsel %vm2882_vm3, %v2860_v56, %v5597_v17 }
 0x2df   : > { %v2325_v2 = vpop.permute.xlu0 %2324  ;;  %v5621_v27 = vpop.permute.xlu1 %1942 }
 0x2e0   : > { %2596 = vrot.lane.b32.xlu0 %v5619_v36, %s3952_s16  ;;  %2214 = vrot.lane.b32.xlu1 %v5529_v57, %s3950_s13  ;;  %v2926_v24 = vsel %vm2915_vm5, %v2893_v34, %v2325_v2  ;;  %v5706_v2 = vld [vmem:[#allocation2 + $0xe8] sm:$0xff] }
 0x2e3   : > { %v5628_v40 = vpop.permute.xlu0 %1944  ;;  %v2451_v26 = vpop.permute.xlu1 %2450 }
 0x2e4   : > { %2216 = vrot.lane.b32.xlu0 %v1140_v38, %s3950_s13  ;;  %2722 = vrot.lane.b32.xlu1 %v1745_v7, %s3953_s17  ;;  %v2958_v39 = vsel %vm2948_vm4, %v2925_v3, %v2451_v26  ;;  %v6905_v38 = vld [vmem:[#allocation66_spill] sm:$0xff]  ;;  %v1525_v3 = vmul.f32 %v6912_v62, %v1365_v10 }
 0x2e5   : > { %v1110_v18 = vmul.f32 %v6905_v38, %v5691_v51 }
 0x2e7   : > { %v2453_v21 = vpop.permute.xlu0 %2452  ;;  %v5637_v57 = vpop.permute.xlu1 %2070 }
 0x2e8   : > { %2724 = vrot.lane.b32.xlu0 %v1746_v37, %s3953_s17  ;;  %2342 = vrot.lane.b32.xlu1 %v1331_v1, %s3951_s14  ;;  %v2959_v7 = vsel %vm2948_vm4, %v2926_v24, %v2453_v21  ;;  %v1587_v1 = vld [vmem:[#allocation2 + $0xe2] sm:$0xff] }
 0x2e9   : > { %v1747_v21 = vmul.f32 %v4989_v60, %v1587_v1  ;;  %v5729_v60 = vld [vmem:[#allocation2 + $0xda] sm:$0xff] }
 0x2eb   : > { %v5649_v47 = vpop.permute.xlu0 %2072  ;;  %v2579_v29 = vpop.permute.xlu1 %2578 }
 0x2ec   : > { %2344 = vrot.lane.b32.xlu0 %v1332_v63, %s3951_s14  ;;  %1962 = vrot.lane.b32.xlu1 %v917_v31, %s3948_s11  ;;  %v2991_v23 = vsel %vm2981_vm6, %v2958_v39, %v2579_v29  ;;  %v1588_v31 = vld [vmem:[#allocation2 + $0xea] sm:$0xff]  ;;  %v6907_v29 = vld [vmem:[#allocation137_spill] sm:$0xff]  ;;  %v5760_v39 = vld [vmem:[#allocation2 + $0xf6] sm:$0xff] }
 0x2ed   : > { %v1748_v61 = vmul.f32 %v6907_v29, %v1588_v31  ;;  %v6917_v29 = vld [vmem:[#allocation133_spill] sm:$0xff] }
 0x2ef   : > { %v2581_v13 = vpop.permute.xlu0 %2580  ;;  %v5664_v49 = vpop.permute.xlu1 %2198 }
 0x2f0   : > { %1964 = vrot.lane.b32.xlu0 %v918_v9, %s3948_s11  ;;  %2470 = vrot.lane.b32.xlu1 %v1523_v30, %s3954_s18  ;;  %v2992_v17 = vsel %vm2981_vm6, %v2959_v7, %v2581_v13  ;;  %v1334_v30 = vmul.f32 %v6909_v55, %v5729_v60  ;;  %v2795_v13 = vsel %vm263_vm0, %v683_v19, %v5130_v33  ;;  %v5811_v55 = vld [vmem:[#allocation2 + $0xe2] sm:$0xff]  ;;  %v6919_v19 = vld [vmem:[#allocation139_spill] sm:$0xff] }
 0x2f1   : > { %v2828_v50 = vsel %vm2816_vm1, %v2795_v13, %v5621_v27  ;;  %v5820_v13 = vld [vmem:[#allocation2 + $0xea] sm:$0xff] }
 0x2f2   : > { %v2861_v8 = vsel %vm2849_vm2, %v2828_v50, %v5637_v57  ;;  %v6914_v57 = vld [vmem:[#allocation69_spill] sm:$0xff]  ;;  %v6923_v50 = vld [vmem:[#allocation15_spill] sm:$0xff] }
 0x2f3   : > { %v5684_v15 = vpop.permute.xlu0 %2200  ;;  %v2707_v59 = vpop.permute.xlu1 %2706  ;;  %v2894_v33 = vsel %vm2882_vm3, %v2861_v8, %v5664_v49 }
 0x2f4   : > { %v3024_v53 = vsel %vm3014_vm7, %v2991_v23, %v2707_v59  ;;  %2472 = vrot.lane.b32.xlu0 %v1524_v22, %s3954_s18  ;;  %2090 = vrot.lane.b32.xlu1 %v1109_v11, %s3949_s12  ;;  %v684_v11 = vmul.f32 %v6913_v14, %v5171_v46  ;;  %v6915_v23 = vld [vmem:[#allocation113_spill] sm:$0xff] }
 0x2f5   : > { %3823 = vmatmul.mubr.msk.f32.gmra.mrb[8].mxu0 %vm3056_vm8, %v3024_v53  ;;  %v1526_v59 = vmul.f32 %v6915_v23, %v5760_v39 }
 0x2f6   : > { %v2796_v46 = vsel %vm263_vm0, %v684_v11, %v5177_v32  ;;  %v1367_v11 = vld [vmem:[#allocation2 + $0xfe] sm:$0xff] }
 0x2f7   : > { %v2709_v28 = vpop.permute.xlu0 %2708  ;;  %v2327_v26 = vpop.permute.xlu1 %2326  ;;  %v2829_v49 = vsel %vm2816_vm1, %v2796_v46, %v5628_v40  ;;  %v5782_v40 = vld [vmem:[#allocation2 + $0xe6] sm:$0xff] }
 0x2f8   : > { %v3025_v5 = vsel %vm3014_vm7, %v2992_v17, %v2709_v28  ;;  %2092 = vrot.lane.b32.xlu0 %v1110_v18, %s3949_s12  ;;  %2598 = vrot.lane.b32.xlu1 %v5695_v54, %s3952_s16  ;;  %v2927_v27 = vsel %vm2915_vm5, %v2894_v33, %v2327_v26  ;;  %v2862_v53 = vsel %vm2849_vm2, %v2829_v49, %v5649_v47  ;;  %v5786_v47 = vld [vmem:[#allocation2 + $0xf0] sm:$0xff]  ;;  %v6916_v28 = vld [vmem:[#allocation68_spill] sm:$0xff]  ;;  %v6924_v33 = vld [vmem:[#allocation145_spill] sm:$0xff] }
 0x2f9   : > { %3825 = vmatprep.mubr.msk.f32.mxu0 %vm3056_vm8, %v3025_v5  ;;  %v2895_v18 = vsel %vm2882_vm3, %v2862_v53, %v5684_v15  ;;  %v1112_v26 = vmul.f32 %v6916_v28, %v5782_v40  ;;  %v6928_v49 = vld [vmem:[#allocation18_spill] sm:$0xff] }
 0x2fb   : > { %v2329_v37 = vpop.permute.xlu0 %2328  ;;  %v5708_v48 = vpop.permute.xlu1 %1946 }
 0x2fc   : > { %2600 = vrot.lane.b32.xlu0 %v5706_v2, %s3952_s16  ;;  %2218 = vrot.lane.b32.xlu1 %v5608_v58, %s3950_s13  ;;  %v2928_v17 = vsel %vm2915_vm5, %v2895_v18, %v2329_v37  ;;  %v5797_v37 = vld [vmem:[#allocation2 + $0xf8] sm:$0xff] }
 0x2ff   : > { %v5715_v44 = vpop.permute.xlu0 %1948  ;;  %v2455_v63 = vpop.permute.xlu1 %2454 }
 0x300   : > { %2220 = vrot.lane.b32.xlu0 %v5619_v36, %s3950_s13  ;;  %2726 = vrot.lane.b32.xlu1 %v1747_v21, %s3953_s17  ;;  %v6908_v36 = vld [vmem:[#allocation47_spill] sm:$0xff]  ;;  %v2960_v34 = vsel %vm2948_vm4, %v2927_v27, %v2455_v63  ;;  %v6925_v27 = vld [vmem:[#allocation50_spill] sm:$0xff] }
 0x301   : > { %v919_v9 = vmul.f32 %v6908_v36, %v5632_v45  ;;  %v920_v45 = vmul.f32 %v6911_v20, %v5641_v0  ;;  %v5758_v0 = vld [vmem:[#allocation2 + $0xde] sm:$0xff]  ;;  %v1589_v63 = vld [vmem:[#allocation2 + $0xf2] sm:$0xff] }
 0x302   : > { %v1111_v56 = vmul.f32 %v6914_v57, %v5758_v0  ;;  %v6926_v57 = vld [vmem:[#allocation123_spill] sm:$0xff] }
 0x303   : > { %v2457_v16 = vpop.permute.xlu0 %2456  ;;  %v5725_v58 = vpop.permute.xlu1 %2074 }
 0x304   : > { %2728 = vrot.lane.b32.xlu0 %v1748_v61, %s3953_s17  ;;  %2346 = vrot.lane.b32.xlu1 %v1333_v43, %s3951_s14  ;;  %v2961_v5 = vsel %vm2948_vm4, %v2928_v17, %v2457_v16  ;;  %v1749_v61 = vmul.f32 %v6917_v29, %v1589_v63  ;;  %v1590_v16 = vld [vmem:[#allocation2 + $0xfa] sm:$0xff] }
 0x305   : > { %v1750_v10 = vmul.f32 %v6919_v19, %v1590_v16 }
 0x307   : > { %v5737_v35 = vpop.permute.xlu0 %2076  ;;  %v2583_v52 = vpop.permute.xlu1 %2582 }
 0x308   : > { %2348 = vrot.lane.b32.xlu0 %v1334_v30, %s3951_s14  ;;  %1966 = vrot.lane.b32.xlu1 %v919_v9, %s3948_s11  ;;  %v2993_v24 = vsel %vm2981_vm6, %v2960_v34, %v2583_v52  ;;  %v6918_v30 = vld [vmem:[#allocation89_spill] sm:$0xff] }
 0x309   : > { %v1335_v42 = vmul.f32 %v6918_v30, %v5811_v55 }
 0x30b   : > { %v2585_v22 = vpop.permute.xlu0 %2584  ;;  %v5752_v6 = vpop.permute.xlu1 %2202 }
 0x30c   : > { %1968 = vrot.lane.b32.xlu0 %v920_v45, %s3948_s11  ;;  %2474 = vrot.lane.b32.xlu1 %v1525_v3, %s3954_s18  ;;  %v2994_v15 = vsel %vm2981_vm6, %v2961_v5, %v2585_v22  ;;  %v6921_v45 = vld [vmem:[#allocation94_spill] sm:$0xff]  ;;  %v6922_v3 = vld [vmem:[#allocation160_spill] sm:$0xff] }
 0x30d   : > { %v1336_v62 = vmul.f32 %v6921_v45, %v5820_v13  ;;  %v685_v14 = vmul.f32 %v6923_v50, %v6922_v3  ;;  %v6931_v5 = vld [vmem:[#allocation116_spill] sm:$0xff] }
 0x30f   : > { %v5775_v38 = vpop.permute.xlu0 %2204  ;;  %v2711_v32 = vpop.permute.xlu1 %2710  ;;  %v2797_v46 = vsel %vm263_vm0, %v685_v14, %v6924_v33  ;;  %v5900_v14 = vld [vmem:[#allocation2 + $0xf2] sm:$0xff] }
 0x310   : > { %v3026_v7 = vsel %vm3014_vm7, %v2993_v24, %v2711_v32  ;;  %2476 = vrot.lane.b32.xlu0 %v1526_v59, %s3954_s18  ;;  %2094 = vrot.lane.b32.xlu1 %v1111_v56, %s3949_s12  ;;  %v1527_v56 = vmul.f32 %v6926_v57, %v1367_v11  ;;  %v2830_v23 = vsel %vm2816_vm1, %v2797_v46, %v5708_v48  ;;  %v6927_v59 = vld [vmem:[#allocation162_spill] sm:$0xff]  ;;  %v6929_v48 = vld [vmem:[#allocation151_spill] sm:$0xff]  ;;  %v6935_v46 = vld [vmem:[#allocation141_spill] sm:$0xff] }
 0x311   : > { %3826 = vmatmul.mubr.msk.f32.gmra.mrb[10].mxu0 %vm3056_vm8, %v3026_v7  ;;  %v686_v34 = vmul.f32 %v6928_v49, %v6927_v59  ;;  %v2863_v53 = vsel %vm2849_vm2, %v2830_v23, %v5725_v58  ;;  %v5851_v7 = vld [vmem:[#allocation2 + $0x106] sm:$0xff]  ;;  %v6930_v58 = vld [vmem:[#allocation71_spill] sm:$0xff]  ;;  %v6937_v23 = vld [vmem:[#allocation96_spill] sm:$0xff] }
 0x312   : > { %v2896_v18 = vsel %vm2882_vm3, %v2863_v53, %v5752_v6  ;;  %v5902_v11 = vld [vmem:[#allocation2 + $0x10a] sm:$0xff]  ;;  %v3922_v49 = vld [vmem:[#allocation2 + $0x7e] sm:$0xff] }
 0x313   : > { %v2713_v1 = vpop.permute.xlu0 %2712  ;;  %v2331_v21 = vpop.permute.xlu1 %2330  ;;  %v2798_v17 = vsel %vm263_vm0, %v686_v34, %v6929_v48  ;;  %v6936_v57 = vld [vmem:[#allocation51_spill] sm:$0xff]  ;;  %v6938_v34 = vld [vmem:[#allocation17_spill] sm:$0xff] }
 0x314   : > { %v3027_v31 = vsel %vm3014_vm7, %v2994_v15, %v2713_v1  ;;  %2096 = vrot.lane.b32.xlu0 %v1112_v26, %s3949_s12  ;;  %2602 = vrot.lane.b32.xlu1 %v5786_v47, %s3952_s16  ;;  %v2929_v28 = vsel %vm2915_vm5, %v2896_v18, %v2331_v21  ;;  %v1528_v15 = vmul.f32 %v6931_v5, %v5851_v7  ;;  %v5923_v48 = vld [vmem:[#allocation2 + $0x10e] sm:$0xff] }
 0x315   : > { %3828 = vmatprep.mubr.msk.f32.mxu0 %vm3056_vm8, %v3027_v31  ;;  %v2831_v6 = vsel %vm2816_vm1, %v2798_v17, %v5715_v44  ;;  %v687_v53 = vmul.f32 %v3922_v49, %v6938_v34  ;;  %v6939_v17 = vld [vmem:[#allocation146_spill] sm:$0xff]  ;;  %v6947_v49 = vld [vmem:[#allocation135_spill] sm:$0xff] }
 0x316   : > { %v2864_v31 = vsel %vm2849_vm2, %v2831_v6, %v5737_v35  ;;  %v6932_v35 = vld [vmem:[#allocation70_spill] sm:$0xff] }
 0x317   : > { %v2333_v41 = vpop.permute.xlu0 %2332  ;;  %v5799_v43 = vpop.permute.xlu1 %1950  ;;  %v2897_v21 = vsel %vm2882_vm3, %v2864_v31, %v5775_v38  ;;  %v1114_v30 = vmul.f32 %v6932_v35, %v5760_v39  ;;  %v3923_v6 = vld [vmem:[#allocation2 + $0x86] sm:$0xff] }
 0x318   : > { %2604 = vrot.lane.b32.xlu0 %v5797_v37, %s3952_s16  ;;  %2222 = vrot.lane.b32.xlu1 %v5695_v54, %s3950_s13  ;;  %v2930_v44 = vsel %vm2915_vm5, %v2897_v21, %v2333_v41  ;;  %v5886_v41 = vld [vmem:[#allocation2 + $0x108] sm:$0xff] }
 0x31b   : > { %v5806_v36 = vpop.permute.xlu0 %1952  ;;  %v2459_v9 = vpop.permute.xlu1 %2458 }
 0x31c   : > { %2224 = vrot.lane.b32.xlu0 %v5706_v2, %s3950_s13  ;;  %2730 = vrot.lane.b32.xlu1 %v1749_v61, %s3953_s17  ;;  %v6920_v2 = vld [vmem:[#allocation49_spill] sm:$0xff]  ;;  %v2962_v1 = vsel %vm2948_vm4, %v2929_v28, %v2459_v9  ;;  %v2799_v28 = vsel %vm263_vm0, %v687_v53, %v6939_v17 }
 0x31d   : > { %v921_v20 = vmul.f32 %v6920_v2, %v5720_v25  ;;  %v922_v25 = vmul.f32 %v6925_v27, %v5729_v60  ;;  %v5849_v60 = vld [vmem:[#allocation2 + $0xee] sm:$0xff]  ;;  %v5875_v9 = vld [vmem:[#allocation2 + $0x100] sm:$0xff] }
 0x31e   : > { %v1113_v26 = vmul.f32 %v6930_v58, %v5849_v60  ;;  %v5998_v17 = vld [vmem:[#allocation2 + $0x102] sm:$0xff] }
 0x31f   : > { %v2461_v52 = vpop.permute.xlu0 %2460  ;;  %v5816_v54 = vpop.permute.xlu1 %2078 }
 0x320   : > { %2732 = vrot.lane.b32.xlu0 %v1750_v10, %s3953_s17  ;;  %2350 = vrot.lane.b32.xlu1 %v1335_v42, %s3951_s14  ;;  %v2963_v42 = vsel %vm2948_vm4, %v2930_v44, %v2461_v52  ;;  %v6933_v52 = vld [vmem:[#allocation134_spill] sm:$0xff]  ;;  %v5944_v44 = vld [vmem:[#allocation2 + $0x116] sm:$0xff] }
 0x323   : > { %v5828_v8 = vpop.permute.xlu0 %2080  ;;  %v2587_v22 = vpop.permute.xlu1 %2586 }
 0x324   : > { %2352 = vrot.lane.b32.xlu0 %v1336_v62, %s3951_s14  ;;  %1970 = vrot.lane.b32.xlu1 %v921_v20, %s3948_s11  ;;  %v2995_v63 = vsel %vm2981_vm6, %v2962_v1, %v2587_v22  ;;  %v1591_v20 = vld [vmem:[#allocation2 + $0x102] sm:$0xff]  ;;  %v6934_v22 = vld [vmem:[#allocation91_spill] sm:$0xff]  ;;  %v6942_v1 = vld [vmem:[#allocation20_spill] sm:$0xff] }
 0x325   : > { %v1751_v62 = vmul.f32 %v6933_v52, %v1591_v20  ;;  %v1337_v33 = vmul.f32 %v6934_v22, %v5900_v14  ;;  %v688_v31 = vmul.f32 %v3923_v6, %v6942_v1  ;;  %v6951_v1 = vld [vmem:[#allocation98_spill] sm:$0xff] }
 0x327   : > { %v2589_v24 = vpop.permute.xlu0 %2588  ;;  %v5843_v32 = vpop.permute.xlu1 %2206 }
 0x328   : > { %1972 = vrot.lane.b32.xlu0 %v922_v25, %s3948_s11  ;;  %2478 = vrot.lane.b32.xlu1 %v1527_v56, %s3954_s18  ;;  %v2996_v19 = vsel %vm2981_vm6, %v2963_v42, %v2589_v24  ;;  %v923_v56 = vmul.f32 %v6936_v57, %v5811_v55  ;;  %v6940_v55 = vld [vmem:[#allocation52_spill] sm:$0xff] }
 0x329   : > { %v924_v58 = vmul.f32 %v6940_v55, %v5820_v13  ;;  %v5942_v13 = vld [vmem:[#allocation2 + $0xfe] sm:$0xff] }
 0x32b   : > { %v5866_v29 = vpop.permute.xlu0 %2208  ;;  %v2715_v61 = vpop.permute.xlu1 %2714 }
 0x32c   : > { %v3028_v16 = vsel %vm3014_vm7, %v2995_v63, %v2715_v61  ;;  %2480 = vrot.lane.b32.xlu0 %v1528_v15, %s3954_s18  ;;  %2098 = vrot.lane.b32.xlu1 %v1113_v26, %s3949_s12  ;;  %v6941_v26 = vld [vmem:[#allocation125_spill] sm:$0xff]  ;;  %v2832_v15 = vsel %vm2816_vm1, %v2799_v28, %v5799_v43 }
 0x32d   : > { %3829 = vmatmul.mubr.msk.f32.gmra.mrb[12].mxu0 %vm3056_vm8, %v3028_v16  ;;  %v1529_v5 = vmul.f32 %v6941_v26, %v5923_v48  ;;  %v2865_v63 = vsel %vm2849_vm2, %v2832_v15, %v5816_v54  ;;  %v6943_v43 = vld [vmem:[#allocation153_spill] sm:$0xff] }
 0x32e   : > { %v2898_v16 = vsel %vm2882_vm3, %v2865_v63, %v5843_v32  ;;  %v2800_v35 = vsel %vm263_vm0, %v688_v31, %v6943_v43  ;;  %v6944_v54 = vld [vmem:[#allocation73_spill] sm:$0xff]  ;;  %v1340_v31 = vmul.f32 %v6951_v1, %v5902_v11  ;;  %v3924_v63 = vld [vmem:[#allocation2 + $0x8e] sm:$0xff] }
 0x32f   : > { %v2717_v38 = vpop.permute.xlu0 %2716  ;;  %v2335_v10 = vpop.permute.xlu1 %2334  ;;  %v1115_v42 = vmul.f32 %v6944_v54, %v5942_v13  ;;  %v2833_v32 = vsel %vm2816_vm1, %v2800_v35, %v5806_v36  ;;  %v6000_v28 = vld [vmem:[#allocation2 + $0x11a] sm:$0xff] }
 0x330   : > { %v3029_v2 = vsel %vm3014_vm7, %v2996_v19, %v2717_v38  ;;  %2100 = vrot.lane.b32.xlu0 %v1114_v30, %s3949_s12  ;;  %2606 = vrot.lane.b32.xlu1 %v5875_v9, %s3952_s16  ;;  %v2931_v30 = vsel %vm2915_vm5, %v2898_v16, %v2335_v10  ;;  %v6945_v19 = vld [vmem:[#allocation119_spill] sm:$0xff]  ;;  %v2866_v20 = vsel %vm2849_vm2, %v2833_v32, %v5828_v8  ;;  %v6946_v8 = vld [vmem:[#allocation72_spill] sm:$0xff] }
 0x331   : > { %3831 = vmatprep.mubr.msk.f32.mxu0 %vm3056_vm8, %v3029_v2  ;;  %v1530_v38 = vmul.f32 %v6945_v19, %v5944_v44  ;;  %v2899_v10 = vsel %vm2882_vm3, %v2866_v20, %v5866_v29 }
 0x333   : > { %v2337_v45 = vpop.permute.xlu0 %2336  ;;  %v5888_v39 = vpop.permute.xlu1 %1954 }
 0x334   : > { %2608 = vrot.lane.b32.xlu0 %v5886_v41, %s3952_s16  ;;  %2226 = vrot.lane.b32.xlu1 %v5786_v47, %s3950_s13  ;;  %v1752_v47 = vmul.f32 %v6935_v46, %v5902_v11  ;;  %v2932_v36 = vsel %vm2915_vm5, %v2899_v10, %v2337_v45  ;;  %v1116_v46 = vmul.f32 %v6946_v8, %v5851_v7  ;;  %v6028_v11 = vld [vmem:[#allocation2 + $0x11e] sm:$0xff]  ;;  %v3925_v10 = vld [vmem:[#allocation2 + $0x96] sm:$0xff]  ;;  %v1372_v8 = vld [vmem:[#allocation2 + $0x126] sm:$0xff] }
 0x337   : > { %v5895_v3 = vpop.permute.xlu0 %1956  ;;  %v2463_v50 = vpop.permute.xlu1 %2462 }
 0x338   : > { %2228 = vrot.lane.b32.xlu0 %v5797_v37, %s3950_s13  ;;  %2734 = vrot.lane.b32.xlu1 %v1751_v62, %s3953_s17  ;;  %v5912_v37 = vld [vmem:[#allocation2 + $0xfa] sm:$0xff]  ;;  %v2964_v2 = vsel %vm2948_vm4, %v2931_v30, %v2463_v50  ;;  %v5968_v50 = vld [vmem:[#allocation2 + $0x110] sm:$0xff] }
 0x339   : > { %v1338_v59 = vmul.f32 %v6937_v23, %v5912_v37  ;;  %v5979_v23 = vld [vmem:[#allocation2 + $0x118] sm:$0xff]  ;;  %v6953_v30 = vld [vmem:[#allocation147_spill] sm:$0xff] }
 0x33b   : > { %v2465_v27 = vpop.permute.xlu0 %2464  ;;  %v5908_v25 = vpop.permute.xlu1 %2082 }
 0x33c   : > { %2736 = vrot.lane.b32.xlu0 %v1752_v47, %s3953_s17  ;;  %2354 = vrot.lane.b32.xlu1 %v1337_v33, %s3951_s14  ;;  %v2965_v47 = vsel %vm2948_vm4, %v2932_v36, %v2465_v27  ;;  %v5989_v27 = vld [vmem:[#allocation2 + $0x112] sm:$0xff] }
 0x33d   : > { %v1753_v34 = vmul.f32 %v6947_v49, %v5989_v27 }
 0x33f   : > { %v5919_v24 = vpop.permute.xlu0 %2084  ;;  %v2591_v18 = vpop.permute.xlu1 %2590 }
 0x340   : > { %2356 = vrot.lane.b32.xlu0 %v1338_v59, %s3951_s14  ;;  %1974 = vrot.lane.b32.xlu1 %v923_v56, %s3948_s11  ;;  %v2997_v52 = vsel %vm2981_vm6, %v2964_v2, %v2591_v18  ;;  %v6955_v2 = vld [vmem:[#allocation126_spill] sm:$0xff] }
 0x341   : > { %v1531_v20 = vmul.f32 %v6955_v2, %v6028_v11 }
 0x343   : > { %v2593_v61 = vpop.permute.xlu0 %2592  ;;  %v5936_v21 = vpop.permute.xlu1 %2210 }
 0x344   : > { %1976 = vrot.lane.b32.xlu0 %v924_v58, %s3948_s11  ;;  %2482 = vrot.lane.b32.xlu1 %v1529_v5, %s3954_s18  ;;  %v2998_v57 = vsel %vm2981_vm6, %v2965_v47, %v2593_v61  ;;  %v6949_v58 = vld [vmem:[#allocation142_spill] sm:$0xff]  ;;  %v6952_v61 = vld [vmem:[#allocation19_spill] sm:$0xff] }
 0x345   : > { %v1754_v26 = vmul.f32 %v6949_v58, %v6000_v28  ;;  %v689_v16 = vmul.f32 %v3924_v63, %v6952_v61 }
 0x347   : > { %v5959_v62 = vpop.permute.xlu0 %2212  ;;  %v2719_v22 = vpop.permute.xlu1 %2718  ;;  %v2801_v54 = vsel %vm263_vm0, %v689_v16, %v6953_v30 }
 0x348   : > { %v3030_v33 = vsel %vm3014_vm7, %v2997_v52, %v2719_v22  ;;  %2484 = vrot.lane.b32.xlu0 %v1530_v38, %s3954_s18  ;;  %2102 = vrot.lane.b32.xlu1 %v1115_v42, %s3949_s12  ;;  %v6954_v38 = vld [vmem:[#allocation54_spill] sm:$0xff]  ;;  %v2834_v52 = vsel %vm2816_vm1, %v2801_v54, %v5888_v39 }
 0x349   : > { %3832 = vmatmul.mubr.msk.f32.gmra.mrb[14].mxu0 %vm3056_vm8, %v3030_v33  ;;  %v926_v32 = vmul.f32 %v6954_v38, %v5912_v37  ;;  %v6956_v33 = vld [vmem:[#allocation22_spill] sm:$0xff] }
 0x34a   : > { %v690_v36 = vmul.f32 %v3925_v10, %v6956_v33  ;;  %v1596_v38 = vld [vmem:[#allocation2 + $0x12a] sm:$0xff] }
 0x34b   : > { %v2721_v29 = vpop.permute.xlu0 %2720  ;;  %v2339_v56 = vpop.permute.xlu1 %2338 }
 0x34c   : > { %2104 = vrot.lane.b32.xlu0 %v1116_v46, %s3949_s12  ;;  %2610 = vrot.lane.b32.xlu1 %v5968_v50, %s3952_s16  ;;  %v3031_v45 = vsel %vm3014_vm7, %v2998_v57, %v2721_v29  ;;  %v2867_v46 = vsel %vm2849_vm2, %v2834_v52, %v5908_v25  ;;  %v6957_v29 = vld [vmem:[#allocation155_spill] sm:$0xff]  ;;  %v6959_v25 = vld [vmem:[#allocation122_spill] sm:$0xff] }
 0x34d   : > { %3834 = vmatprep.mubr.msk.f32.mxu1 %vm3056_vm8, %v3031_v45  ;;  %v2900_v39 = vsel %vm2882_vm3, %v2867_v46, %v5936_v21  ;;  %v2802_v45 = vsel %vm263_vm0, %v690_v36, %v6957_v29  ;;  %v3926_v29 = vld [vmem:[#allocation2 + $0x9e] sm:$0xff] }
 0x34e   : > { %v2933_v49 = vsel %vm2915_vm5, %v2900_v39, %v2339_v56  ;;  %v2835_v58 = vsel %vm2816_vm1, %v2802_v45, %v5895_v3  ;;  %v6966_v45 = vld [vmem:[#allocation21_spill] sm:$0xff] }
 0x34f   : > { %v5981_v59 = vpop.permute.xlu0 %2340  ;;  %v5983_v7 = vpop.permute.xlu1 %1958  ;;  %v2868_v21 = vsel %vm2849_vm2, %v2835_v58, %v5919_v24  ;;  %v6081_v24 = vld [vmem:[#allocation2 + $0x120] sm:$0xff] }
 0x350   : > { %2612 = vrot.lane.b32.xlu0 %v5979_v23, %s3952_s16  ;;  %2230 = vrot.lane.b32.xlu1 %v5875_v9, %s3950_s13  ;;  %v6948_v9 = vld [vmem:[#allocation93_spill] sm:$0xff]  ;;  %v2901_v56 = vsel %vm2882_vm3, %v2868_v21, %v5959_v62 }
 0x351   : > { %v1339_v55 = vmul.f32 %v6948_v9, %v5998_v17  ;;  %v2934_v3 = vsel %vm2915_vm5, %v2901_v56, %v5981_v59  ;;  %v1564_v59 = vld [vmem:[#allocation2 + $0x128] sm:$0xff]  ;;  %v6968_v21 = vld [vmem:[#allocation97_spill] sm:$0xff] }
 0x353   : > { %v5993_v53 = vpop.permute.xlu0 %1960  ;;  %v2467_v18 = vpop.permute.xlu1 %2466 }
 0x354   : > { %2232 = vrot.lane.b32.xlu0 %v5886_v41, %s3950_s13  ;;  %2738 = vrot.lane.b32.xlu1 %v1753_v34, %s3953_s17  ;;  %v6950_v41 = vld [vmem:[#allocation53_spill] sm:$0xff]  ;;  %v6958_v34 = vld [vmem:[#allocation75_spill] sm:$0xff] }
 0x355   : > { %v925_v6 = vmul.f32 %v6950_v41, %v5900_v14  ;;  %v1117_v9 = vmul.f32 %v6958_v34, %v5923_v48  ;;  %v1373_v34 = vld [vmem:[#allocation2 + $0x12e] sm:$0xff] }
 0x357   : > { %v2469_v5 = vpop.permute.xlu0 %2468  ;;  %v6006_v15 = vpop.permute.xlu1 %2086 }
 0x358   : > { %2740 = vrot.lane.b32.xlu0 %v1754_v26, %s3953_s17  ;;  %2358 = vrot.lane.b32.xlu1 %v1339_v55, %s3951_s14  ;;  %v1532_v55 = vmul.f32 %v6959_v25, %v1372_v8  ;;  %v2966_v26 = vsel %vm2948_vm4, %v2933_v49, %v2467_v18  ;;  %v6960_v18 = vld [vmem:[#allocation74_spill] sm:$0xff]  ;;  %v2967_v63 = vsel %vm2948_vm4, %v2934_v3, %v2469_v5  ;;  %v6961_v5 = vld [vmem:[#allocation136_spill] sm:$0xff]  ;;  %v6964_v8 = vld [vmem:[#allocation55_spill] sm:$0xff] }
 0x359   : > { %v927_v46 = vmul.f32 %v6964_v8, %v5998_v17  ;;  %v691_v49 = vmul.f32 %v3926_v29, %v6966_v45  ;;  %v6970_v3 = vld [vmem:[#allocation24_spill] sm:$0xff] }
 0x35b   : > { %v6022_v43 = vpop.permute.xlu0 %2088  ;;  %v2595_v35 = vpop.permute.xlu1 %2594 }
 0x35c   : > { %2360 = vrot.lane.b32.xlu0 %v1340_v31, %s3951_s14  ;;  %v6025_v14 = vpop.f32.mrb[0].mxu0  ;;  %1978 = vrot.lane.b32.xlu1 %v925_v6, %s3948_s11  ;;  %v2999_v41 = vsel %vm2981_vm6, %v2966_v26, %v2595_v35  ;;  %v1118_v31 = vmul.f32 %v6960_v18, %v5944_v44  ;;  %v1183_v44 = vld [vmem:[#allocation2 + $0x122] sm:$0xff] }
 0x35d   : > { %3379 = vst.msk [vmem:[%s6019_s27 + $0x8] sm:$0xff] %vm263_vm0, %v6025_v14  ;;  %v3411_v42 = vsel %vm263_vm0, %v6025_v14, 0.0  ;;  %v6037_v19 = vpop.f32.mrb[1].mxu0 }
 0x35e   : > { %3378 = vst.msk [vmem:[%s6019_s27] sm:$0xff] %vm263_vm0, %v6037_v19  ;;  %v3410_v22 = vsel %vm263_vm0, %v6037_v19, 0.0 }
 0x35f   : > { %v3412_v37 = vadd.f32 %v3411_v42, %v3410_v22  ;;  %v2597_v47 = vpop.permute.xlu0 %2596  ;;  %v6053_v57 = vpop.permute.xlu1 %2214  ;;  %v1755_v42 = vmul.f32 %v6961_v5, %v1183_v44  ;;  %v6963_v22 = vld [vmem:[#allocation143_spill] sm:$0xff]  ;;  %v6972_v5 = vld [vmem:[#allocation76_spill] sm:$0xff] }
 0x360   : > { %1980 = vrot.lane.b32.xlu0 %v926_v32, %s3948_s11  ;;  %2486 = vrot.lane.b32.xlu1 %v1531_v20, %s3954_s18  ;;  %v3000_v62 = vsel %vm2981_vm6, %v2967_v63, %v2597_v47  ;;  %v6962_v20 = vld [vmem:[#allocation95_spill] sm:$0xff]  ;;  %v1756_v10 = vmul.f32 %v6963_v22, %v1596_v38  ;;  %v6973_v38 = vld [vmem:[#allocation129_spill] sm:$0xff] }
 0x361   : > { %v1341_v52 = vmul.f32 %v6962_v20, %v5989_v27  ;;  %v6965_v27 = vld [vmem:[#allocation99_spill] sm:$0xff] }
 0x362   : > { %v1342_v47 = vmul.f32 %v6965_v27, %v6000_v28  ;;  %v6967_v28 = vld [vmem:[#allocation148_spill] sm:$0xff]  ;;  %v1599_v27 = vld [vmem:[#allocation2 + $0x142] sm:$0xff] }
 0x363   : > { %v6071_v6 = vpop.permute.xlu0 %2216  ;;  %v2723_v1 = vpop.permute.xlu1 %2722  ;;  %v2803_v58 = vsel %vm263_vm0, %v691_v49, %v6967_v28  ;;  %v1597_v49 = vld [vmem:[#allocation2 + $0x132] sm:$0xff] }
 0x364   : > { %v3032_v48 = vsel %vm3014_vm7, %v2999_v41, %v2723_v1  ;;  %2488 = vrot.lane.b32.xlu0 %v1532_v55, %s3954_s18  ;;  %2106 = vrot.lane.b32.xlu1 %v1117_v9, %s3949_s12  ;;  %v1343_v41 = vmul.f32 %v6968_v21, %v1183_v44  ;;  %v6969_v1 = vld [vmem:[#allocation127_spill] sm:$0xff]  ;;  %v6976_v21 = vld [vmem:[#allocation124_spill] sm:$0xff] }
 0x365   : > { %3835 = vmatmul.mubr.msk.f32.vlgmr.msra.gmra.mrb[0].mxu1 %vm3056_vm8, %v3032_v48  ;;  %v1533_v56 = vmul.f32 %v6969_v1, %v1373_v34  ;;  %v3927_v48 = vld [vmem:[#allocation2 + $0xa6] sm:$0xff] }
 0x366   : > { %v692_v18 = vmul.f32 %v3927_v48, %v6970_v3  ;;  %v1566_v48 = vld [vmem:[#allocation2 + $0x138] sm:$0xff] }
 0x367   : > { %v2725_v61 = vpop.permute.xlu0 %2724  ;;  %v2343_v16 = vpop.permute.xlu1 %2342 }
 0x368   : > { %v3033_v35 = vsel %vm3014_vm7, %v3000_v62, %v2725_v61  ;;  %2108 = vrot.lane.b32.xlu0 %v1118_v31, %s3949_s12  ;;  %2614 = vrot.lane.b32.xlu1 %v6081_v24, %s3952_s16  ;;  %v1375_v31 = vld [vmem:[#allocation2 + $0x13e] sm:$0xff] }
 0x369   : > { %3837 = vmatprep.mubr.msk.f32.mxu1 %vm3056_vm8, %v3033_v35 }
 0x36b   : > { %v2345_v30 = vpop.permute.xlu0 %2344  ;;  %v6092_v54 = vpop.permute.xlu1 %1962 }
 0x36c   : > { %2616 = vrot.lane.b32.xlu0 %v1564_v59, %s3952_s16  ;;  %2234 = vrot.lane.b32.xlu1 %v5968_v50, %s3950_s13  ;;  %v6971_v59 = vld [vmem:[#allocation157_spill] sm:$0xff] }
 0x36f   : > { %v6098_v32 = vpop.permute.xlu0 %1964  ;;  %v2471_v2 = vpop.permute.xlu1 %2470 }
 0x370   : > { %2236 = vrot.lane.b32.xlu0 %v5979_v23, %s3950_s13  ;;  %2742 = vrot.lane.b32.xlu1 %v1755_v42, %s3953_s17  ;;  %v1119_v42 = vmul.f32 %v6972_v5, %v6028_v11  ;;  %v6978_v5 = vld [vmem:[#allocation149_spill] sm:$0xff] }
 0x373   : > { %v2473_v33 = vpop.permute.xlu0 %2472  ;;  %v6106_v50 = vpop.permute.xlu1 %2090 }
 0x374   : > { %2744 = vrot.lane.b32.xlu0 %v1756_v10, %s3953_s17  ;;  %v6109_v36 = vpop.f32.mrb[2].mxu0  ;;  %2362 = vrot.lane.b32.xlu1 %v1341_v52, %s3951_s14 }
 0x375   : > { %3381 = vst.msk [vmem:[%s6019_s27 + $0x18] sm:$0xff] %vm263_vm0, %v6109_v36  ;;  %v6115_v23 = vpop.f32.mrb[3].mxu0  ;;  %v3415_v17 = vsel %vm263_vm0, %v6109_v36, 0.0 }
 0x376   : > { %3380 = vst.msk [vmem:[%s6019_s27 + $0x10] sm:$0xff] %vm263_vm0, %v6115_v23  ;;  %v3413_v39 = vsel %vm263_vm0, %v6115_v23, 0.0 }
 0x377   : > { %v3414_v9 = vadd.f32 %v3413_v39, %v3412_v37  ;;  %v6127_v25 = vpop.permute.xlu0 %2092  ;;  %v2599_v55 = vpop.permute.xlu1 %2598  ;;  %v2836_v37 = vsel %vm2816_vm1, %v2803_v58, %v5983_v7  ;;  %v2804_v7 = vsel %vm263_vm0, %v692_v18, %v6971_v59  ;;  %v3928_v18 = vld [vmem:[#allocation2 + $0xae] sm:$0xff] }
 0x378   : > { %2364 = vrot.lane.b32.xlu0 %v1342_v47, %s3951_s14  ;;  %1982 = vrot.lane.b32.xlu1 %v927_v46, %s3948_s11  ;;  %v2869_v63 = vsel %vm2849_vm2, %v2836_v37, %v6006_v15  ;;  %v1535_v15 = vmul.f32 %v6973_v38, %v1375_v31  ;;  %v2837_v20 = vsel %vm2816_vm1, %v2804_v7, %v5993_v53  ;;  %v6977_v31 = vld [vmem:[#allocation23_spill] sm:$0xff] }
 0x379   : > { %v6135_v26 = vadd.f32 %v3415_v17, %v3414_v9  ;;  %v2902_v35 = vsel %vm2882_vm3, %v2869_v63, %v6053_v57  ;;  %v2870_v57 = vsel %vm2849_vm2, %v2837_v20, %v6022_v43  ;;  %v1565_v43 = vld [vmem:[#allocation2 + $0x130] sm:$0xff]  ;;  %v693_v63 = vmul.f32 %v3928_v18, %v6977_v31  ;;  %v6982_v18 = vld [vmem:[#allocation25_spill] sm:$0xff] }
 0x37a   : > { %v2935_v44 = vsel %vm2915_vm5, %v2902_v35, %v2343_v16  ;;  %v2903_v16 = vsel %vm2882_vm3, %v2870_v57, %v6071_v6  ;;  %v1374_v17 = vld [vmem:[#allocation2 + $0x136] sm:$0xff] }
 0x37b   : > { %v2601_v62 = vpop.permute.xlu0 %2600  ;;  %v6144_v61 = vpop.permute.xlu1 %2218  ;;  %v2968_v52 = vsel %vm2948_vm4, %v2935_v44, %v2471_v2  ;;  %v2936_v53 = vsel %vm2915_vm5, %v2903_v16, %v2345_v30  ;;  %v1567_v2 = vld [vmem:[#allocation2 + $0x140] sm:$0xff]  ;;  %v6974_v30 = vld [vmem:[#allocation140_spill] sm:$0xff] }
 0x37c   : > { %2366 = vrot.lane.b32.xlu0 %v1343_v41, %s3951_s14  ;;  %2490 = vrot.lane.b32.xlu1 %v1533_v56, %s3954_s18  ;;  %v3001_v22 = vsel %vm2981_vm6, %v2968_v52, %v2599_v55  ;;  %v2969_v46 = vsel %vm2948_vm4, %v2936_v53, %v2473_v33  ;;  %v1759_v45 = vmul.f32 %v6974_v30, %v1599_v27  ;;  %v6975_v33 = vld [vmem:[#allocation138_spill] sm:$0xff]  ;;  %v3929_v57 = vld [vmem:[#allocation2 + $0xb6] sm:$0xff] }
 0x37d   : > { %v3002_v47 = vsel %vm2981_vm6, %v2969_v46, %v2601_v62  ;;  %v1757_v55 = vmul.f32 %v6975_v33, %v1597_v49  ;;  %v1534_v41 = vmul.f32 %v6976_v21, %v1374_v17  ;;  %v1598_v62 = vld [vmem:[#allocation2 + $0x13a] sm:$0xff] }
 0x37f   : > { %v6162_v10 = vpop.permute.xlu0 %2220  ;;  %v2727_v8 = vpop.permute.xlu1 %2726 }
 0x380   : > { %v3034_v11 = vsel %vm3014_vm7, %v3001_v22, %v2727_v8  ;;  %2494 = vrot.lane.b32.xlu0 %v1535_v15, %s3954_s18  ;;  %2110 = vrot.lane.b32.xlu1 %v1119_v42, %s3949_s12  ;;  %v2805_v42 = vsel %vm263_vm0, %v693_v63, %v6978_v5  ;;  %v6979_v15 = vld [vmem:[#allocation144_spill] sm:$0xff]  ;;  %v6980_v22 = vld [vmem:[#allocation26_spill] sm:$0xff] }
 0x381   : > { %3838 = vmatmul.mubr.msk.f32.gmra.mrb[2].mxu1 %vm3056_vm8, %v3034_v11  ;;  %v1758_v20 = vmul.f32 %v6979_v15, %v1598_v62  ;;  %v2838_v52 = vsel %vm2816_vm1, %v2805_v42, %v6092_v54 }
 0x382   : > { %v2871_v8 = vsel %vm2849_vm2, %v2838_v52, %v6106_v50 }
 0x383   : > { %v2729_v39 = vpop.permute.xlu0 %2728  ;;  %v2347_v29 = vpop.permute.xlu1 %2346  ;;  %v2904_v53 = vsel %vm2882_vm3, %v2871_v8, %v6144_v61  ;;  %v6985_v8 = vld [vmem:[#allocation161_spill] sm:$0xff] }
 0x384   : > { %v3035_v6 = vsel %vm3014_vm7, %v3002_v47, %v2729_v39  ;;  %2622 = vrot.lane.b32.xlu0 %v1567_v2, %s3952_s16  ;;  %2618 = vrot.lane.b32.xlu1 %v1565_v43, %s3952_s16  ;;  %v6981_v2 = vld [vmem:[#allocation159_spill] sm:$0xff]  ;;  %v2937_v46 = vsel %vm2915_vm5, %v2904_v53, %v2347_v29 }
 0x385   : > { %3840 = vmatprep.mubr.msk.f32.mxu1 %vm3056_vm8, %v3035_v6 }
 0x387   : > { %v2349_v34 = vpop.permute.xlu0 %2348  ;;  %v6178_v9 = vpop.permute.xlu1 %1966 }
 0x388   : > { %2750 = vrot.lane.b32.xlu0 %v1759_v45, %s3953_s17  ;;  %2238 = vrot.lane.b32.xlu1 %v6081_v24, %s3950_s13  ;;  %s262_s13 = scalar_lea.vmem %s6658_s6, %s3712_s8 }
 0x38b   : > { %v6184_v28 = vpop.permute.xlu0 %1968  ;;  %v2475_v58 = vpop.permute.xlu1 %2474 }
 0x38c   : > { %2746 = vrot.lane.b32.xlu1 %v1757_v55, %s3953_s17  ;;  %v2970_v27 = vsel %vm2948_vm4, %v2937_v46, %v2475_v58 }
 0x38f   : > { %v2477_v1 = vpop.permute.xlu0 %2476  ;;  %v6188_v56 = vpop.permute.xlu1 %2094 }
 0x390   : > { %2492 = vrot.lane.b32.xlu1 %v1534_v41, %s3954_s18  ;;  %v6191_v37 = vpop.f32.mrb[4].mxu0 }
 0x391   : > { %3383 = vst.msk [vmem:[%s6019_s27 + $0x28] sm:$0xff] %vm263_vm0, %v6191_v37  ;;  %v6196_v24 = vpop.f32.mrb[5].mxu0  ;;  %v3419_v44 = vsel %vm263_vm0, %v6191_v37, 0.0 }
 0x392   : > { %3382 = vst.msk [vmem:[%s6019_s27 + $0x20] sm:$0xff] %vm263_vm0, %v6196_v24  ;;  %v3417_v3 = vsel %vm263_vm0, %v6196_v24, 0.0 }
 0x393   : > { %v3418_v35 = vadd.f32 %v3417_v3, %v6135_v26  ;;  %v6205_v59 = vpop.permute.xlu0 %2096  ;;  %v2603_v7 = vpop.permute.xlu1 %2602  ;;  %v694_v26 = vmul.f32 %v3929_v57, %v6980_v22  ;;  %v3930_v3 = vld [vmem:[#allocation2 + $0xbe] sm:$0xff] }
 0x394   : > { %2620 = vrot.lane.b32.xlu1 %v1566_v48, %s3952_s16  ;;  %v3003_v47 = vsel %vm2981_vm6, %v2970_v27, %v2603_v7  ;;  %v695_v31 = vmul.f32 %v3930_v3, %v6982_v18 }
 0x395   : > { %v3420_v38 = vadd.f32 %v3419_v44, %v3418_v35  ;;  %v2806_v43 = vsel %vm263_vm0, %v694_v26, %v6981_v2  ;;  %v6983_v44 = vld [vmem:[#allocation150_spill] sm:$0xff] }
 0x396   : > { %v2839_v54 = vsel %vm2816_vm1, %v2806_v43, %v6098_v32  ;;  %v2807_v5 = vsel %vm263_vm0, %v695_v31, %v6983_v44  ;;  %v6987_v31 = vld [vmem:[#allocation152_spill] sm:$0xff]  ;;  %v6988_v44 = vld [vmem:[#allocation30_spill] sm:$0xff] }
 0x397   : > { %v2605_v16 = vpop.permute.xlu0 %2604  ;;  %v2223_v11 = vpop.permute.xlu1 %2222  ;;  %v2872_v50 = vsel %vm2849_vm2, %v2839_v54, %v6127_v25  ;;  %v2840_v15 = vsel %vm2816_vm1, %v2807_v5, %v6178_v9  ;;  %v698_v5 = vmul.f32 %v6988_v44, %v5691_v51 }
 0x398   : > { %2748 = vrot.lane.b32.xlu1 %v1758_v20, %s3953_s17  ;;  %v2905_v61 = vsel %vm2882_vm3, %v2872_v50, %v6162_v10  ;;  %v6984_v20 = vld [vmem:[#allocation28_spill] sm:$0xff]  ;;  %v2873_v57 = vsel %vm2849_vm2, %v2840_v15, %v6188_v56 }
 0x399   : > { %v2938_v29 = vsel %vm2915_vm5, %v2905_v61, %v2349_v34  ;;  %v696_v52 = vmul.f32 %v6984_v20, %v5604_v4  ;;  %v2906_v26 = vsel %vm2882_vm3, %v2873_v57, %v2223_v11 }
 0x39a   : > { %v2971_v32 = vsel %vm2948_vm4, %v2938_v29, %v2477_v1 }
 0x39b   : > { %v2225_v39 = vpop.permute.xlu0 %2224  ;;  %v2731_v6 = vpop.permute.xlu1 %2730  ;;  %v3004_v45 = vsel %vm2981_vm6, %v2971_v32, %v2605_v16  ;;  %v2808_v16 = vsel %vm263_vm0, %v696_v52, %v6985_v8 }
 0x39c   : > { %v3036_v30 = vsel %vm3014_vm7, %v3003_v47, %v2731_v6  ;;  %v2841_v2 = vsel %vm2816_vm1, %v2808_v16, %v6184_v28 }
 0x39d   : > { %3841 = vmatmul.mubr.msk.f32.gmra.mrb[4].mxu1 %vm3056_vm8, %v3036_v30  ;;  %v2874_v4 = vsel %vm2849_vm2, %v2841_v2, %v6205_v59 }
 0x39e   : > { %v2907_v54 = vsel %vm2882_vm3, %v2874_v4, %v2225_v39 }
 0x39f   : > { %v2733_v25 = vpop.permute.xlu0 %2732  ;;  %v2351_v49 = vpop.permute.xlu1 %2350 }
 0x3a0   : > { %v3037_v33 = vsel %vm3014_vm7, %v3004_v45, %v2733_v25  ;;  %v2939_v53 = vsel %vm2915_vm5, %v2906_v26, %v2351_v49 }
 0x3a1   : > { %3843 = vmatprep.mubr.msk.f32.mxu1 %vm3056_vm8, %v3037_v33 }
 0x3a3   : > { %v2353_v55 = vpop.permute.xlu0 %2352  ;;  %v1971_v10 = vpop.permute.xlu1 %1970 }
 0x3a4   : > { %v2940_v27 = vsel %vm2915_vm5, %v2907_v54, %v2353_v55  ;;  %v6986_v55 = vld [vmem:[#allocation27_spill] sm:$0xff] }
 0x3a7   : > { %v6239_v17 = vpop.permute.xlu0 %1972  ;;  %v2479_v58 = vpop.permute.xlu1 %2478 }
 0x3a8   : > { %v2972_v9 = vsel %vm2948_vm4, %v2939_v53, %v2479_v58  ;;  %v697_v58 = vmul.f32 %v6986_v55, %v5670_v12 }
 0x3ab   : > { %v2481_v21 = vpop.permute.xlu0 %2480  ;;  %v2099_v34 = vpop.permute.xlu1 %2098 }
 0x3ac   : > { %v6241_v41 = vpop.f32.mrb[6].mxu0  ;;  %v2973_v28 = vsel %vm2948_vm4, %v2940_v27, %v2481_v21 }
 0x3ad   : > { %3385 = vst.msk [vmem:[%s6019_s27 + $0x38] sm:$0xff] %vm263_vm0, %v6241_v41  ;;  %v6246_v1 = vpop.f32.mrb[7].mxu0  ;;  %v3423_v7 = vsel %vm263_vm0, %v6241_v41, 0.0 }
 0x3ae   : > { %3384 = vst.msk [vmem:[%s6019_s27 + $0x30] sm:$0xff] %vm263_vm0, %v6246_v1  ;;  %v3421_v48 = vsel %vm263_vm0, %v6246_v1, 0.0 }
 0x3af   : > { %v3422_v63 = vadd.f32 %v3421_v48, %v3420_v38  ;;  %v2101_v62 = vpop.permute.xlu0 %2100  ;;  %v2607_v35 = vpop.permute.xlu1 %2606 }
 0x3b0   : > { %v3005_v43 = vsel %vm2981_vm6, %v2972_v9, %v2607_v35 }
 0x3b1   : > { %v3424_v42 = vadd.f32 %v3423_v7, %v3422_v63  ;;  %v2809_v63 = vsel %vm263_vm0, %v697_v58, %v6987_v31  ;;  %v6991_v58 = vld [vmem:[#allocation154_spill] sm:$0xff]  ;;  %v6992_v31 = vld [vmem:[#allocation32_spill] sm:$0xff] }
 0x3b2   : > { %v2842_v7 = vsel %vm2816_vm1, %v2809_v63, %v1971_v10  ;;  %v700_v63 = vmul.f32 %v6992_v31, %v5782_v40 }
 0x3b3   : > { %v2609_v22 = vpop.permute.xlu0 %2608  ;;  %v2227_v38 = vpop.permute.xlu1 %2226  ;;  %v2875_v15 = vsel %vm2849_vm2, %v2842_v7, %v2099_v34 }
 0x3b4   : > { %v3006_v50 = vsel %vm2981_vm6, %v2973_v28, %v2609_v22  ;;  %v2908_v12 = vsel %vm2882_vm3, %v2875_v15, %v2227_v38 }
 0x3b7   : > { %v2229_v56 = vpop.permute.xlu0 %2228  ;;  %v2735_v46 = vpop.permute.xlu1 %2734 }
 0x3b8   : > { %v3038_v11 = vsel %vm3014_vm7, %v3005_v43, %v2735_v46 }
 0x3b9   : > { %3844 = vmatmul.mubr.msk.f32.gmra.mrb[6].mxu1 %vm3056_vm8, %v3038_v11 }
 0x3bb   : > { %v2737_v47 = vpop.permute.xlu0 %2736  ;;  %v2355_v59 = vpop.permute.xlu1 %2354 }
 0x3bc   : > { %v3039_v6 = vsel %vm3014_vm7, %v3006_v50, %v2737_v47  ;;  %v2941_v22 = vsel %vm2915_vm5, %v2908_v12, %v2355_v59 }
 0x3bd   : > { %3846 = vmatprep.mubr.msk.f32.mxu1 %vm3056_vm8, %v3039_v6  ;;  %v6990_v6 = vld [vmem:[#allocation29_spill] sm:$0xff] }
 0x3bf   : > { %v2357_v61 = vpop.permute.xlu0 %2356  ;;  %v1975_v39 = vpop.permute.xlu1 %1974 }
 0x3c3   : > { %v6282_v30 = vpop.permute.xlu0 %1976  ;;  %v2483_v29 = vpop.permute.xlu1 %2482 }
 0x3c4   : > { %v2974_v8 = vsel %vm2948_vm4, %v2941_v22, %v2483_v29 }
 0x3c7   : > { %v2485_v32 = vpop.permute.xlu0 %2484  ;;  %v2103_v45 = vpop.permute.xlu1 %2102 }
 0x3c8   : > { %v6284_v25 = vpop.f32.mrb[8].mxu0 }
 0x3c9   : > { %3387 = vst.msk [vmem:[%s6019_s27 + $0x48] sm:$0xff] %vm263_vm0, %v6284_v25  ;;  %v6289_v49 = vpop.f32.mrb[9].mxu0  ;;  %v3427_v18 = vsel %vm263_vm0, %v6284_v25, 0.0 }
 0x3ca   : > { %3386 = vst.msk [vmem:[%s6019_s27 + $0x40] sm:$0xff] %vm263_vm0, %v6289_v49  ;;  %v3425_v33 = vsel %vm263_vm0, %v6289_v49, 0.0 }
 0x3cb   : > { %v3426_v21 = vadd.f32 %v3425_v33, %v3424_v42  ;;  %v2105_v48 = vpop.permute.xlu0 %2104  ;;  %v2611_v3 = vpop.permute.xlu1 %2610  ;;  %v6989_v42 = vld [vmem:[#allocation163_spill] sm:$0xff] }
 0x3cc   : > { %v2810_v57 = vsel %vm263_vm0, %v698_v5, %v6989_v42  ;;  %v3007_v51 = vsel %vm2981_vm6, %v2974_v8, %v2611_v3  ;;  %v6993_v5 = vld [vmem:[#allocation164_spill] sm:$0xff] }
 0x3cd   : > { %v3428_v35 = vadd.f32 %v3427_v18, %v3426_v21  ;;  %v2843_v26 = vsel %vm2816_vm1, %v2810_v57, %v6239_v17  ;;  %v2812_v15 = vsel %vm263_vm0, %v700_v63, %v6993_v5 }
 0x3ce   : > { %v2876_v10 = vsel %vm2849_vm2, %v2843_v26, %v2101_v62  ;;  %v2845_v12 = vsel %vm2816_vm1, %v2812_v15, %v6282_v30  ;;  %v6998_v15 = vld [vmem:[#allocation34_spill] sm:$0xff] }
 0x3cf   : > { %v2613_v20 = vpop.permute.xlu0 %2612  ;;  %v2231_v52 = vpop.permute.xlu1 %2230  ;;  %v2909_v53 = vsel %vm2882_vm3, %v2876_v10, %v2229_v56 }
 0x3d0   : > { %v2942_v2 = vsel %vm2915_vm5, %v2909_v53, %v2357_v61  ;;  %v699_v61 = vmul.f32 %v6990_v6, %v5758_v0 }
 0x3d1   : > { %v2975_v17 = vsel %vm2948_vm4, %v2942_v2, %v2485_v32 }
 0x3d2   : > { %v3008_v9 = vsel %vm2981_vm6, %v2975_v17, %v2613_v20  ;;  %v2811_v21 = vsel %vm263_vm0, %v699_v61, %v6991_v58  ;;  %v6996_v58 = vld [vmem:[#allocation33_spill] sm:$0xff] }
 0x3d3   : > { %v2233_v16 = vpop.permute.xlu0 %2232  ;;  %v2739_v34 = vpop.permute.xlu1 %2738  ;;  %v2844_v18 = vsel %vm2816_vm1, %v2811_v21, %v1975_v39  ;;  %v2878_v39 = vsel %vm2849_vm2, %v2845_v12, %v2105_v48  ;;  %v703_v21 = vmul.f32 %v6996_v58, %v5942_v13 }
 0x3d4   : > { %v3040_v38 = vsel %vm3014_vm7, %v3007_v51, %v2739_v34  ;;  %v2877_v7 = vsel %vm2849_vm2, %v2844_v18, %v2103_v45  ;;  %v2911_v22 = vsel %vm2882_vm3, %v2878_v39, %v2233_v16  ;;  %v6997_v18 = vld [vmem:[#allocation158_spill] sm:$0xff] }
 0x3d5   : > { %3847 = vmatmul.mubr.msk.f32.gmra.mrb[8].mxu1 %vm3056_vm8, %v3040_v38  ;;  %v2815_v31 = vsel %vm263_vm0, %v703_v21, %v6997_v18  ;;  %v6999_v39 = vld [vmem:[#allocation114_spill] sm:$0xff] }
 0x3d7   : > { %v2741_v4 = vpop.permute.xlu0 %2740  ;;  %v2359_v62 = vpop.permute.xlu1 %2358 }
 0x3d8   : > { %v3041_v43 = vsel %vm3014_vm7, %v3008_v9, %v2741_v4  ;;  %v6994_v4 = vld [vmem:[#allocation31_spill] sm:$0xff] }
 0x3d9   : > { %3849 = vmatprep.mubr.msk.f32.mxu1 %vm3056_vm8, %v3041_v43 }
 0x3db   : > { %v2361_v46 = vpop.permute.xlu0 %2360  ;;  %v1979_v56 = vpop.permute.xlu1 %1978 }
 0x3dc   : > { %v2944_v26 = vsel %vm2915_vm5, %v2911_v22, %v2361_v46 }
 0x3df   : > { %v6323_v54 = vpop.permute.xlu0 %1980  ;;  %v2487_v11 = vpop.permute.xlu1 %2486 }
 0x3e3   : > { %v2489_v27 = vpop.permute.xlu0 %2488  ;;  %v2107_v28 = vpop.permute.xlu1 %2106 }
 0x3e4   : > { %v6325_v50 = vpop.f32.mrb[10].mxu0  ;;  %v2977_v30 = vsel %vm2948_vm4, %v2944_v26, %v2489_v27  ;;  %v6995_v27 = vld [vmem:[#allocation156_spill] sm:$0xff] }
 0x3e5   : > { %3389 = vst.msk [vmem:[%s6019_s27 + $0x58] sm:$0xff] %vm263_vm0, %v6325_v50  ;;  %v6330_v47 = vpop.f32.mrb[11].mxu0  ;;  %v3431_v55 = vsel %vm263_vm0, %v6325_v50, 0.0 }
 0x3e6   : > { %3388 = vst.msk [vmem:[%s6019_s27 + $0x50] sm:$0xff] %vm263_vm0, %v6330_v47  ;;  %v3429_v59 = vsel %vm263_vm0, %v6330_v47, 0.0 }
 0x3e7   : > { %v3430_v29 = vadd.f32 %v3429_v59, %v3428_v35  ;;  %v6339_v32 = vpop.permute.xlu0 %2108  ;;  %v2615_v33 = vpop.permute.xlu1 %2614  ;;  %v2910_v35 = vsel %vm2882_vm3, %v2877_v7, %v2231_v52 }
 0x3e8   : > { %v2943_v20 = vsel %vm2915_vm5, %v2910_v35, %v2359_v62  ;;  %v701_v62 = vmul.f32 %v6994_v4, %v5849_v60 }
 0x3e9   : > { %v3432_v3 = vadd.f32 %v3431_v55, %v3430_v29  ;;  %v2976_v42 = vsel %vm2948_vm4, %v2943_v20, %v2487_v11 }
 0x3ea   : > { %v3009_v40 = vsel %vm2981_vm6, %v2976_v42, %v2615_v33  ;;  %v2813_v59 = vsel %vm263_vm0, %v701_v62, %v6995_v27 }
 0x3eb   : > { %v2617_v44 = vpop.permute.xlu0 %2616  ;;  %v2235_v0 = vpop.permute.xlu1 %2234  ;;  %v2846_v61 = vsel %vm2816_vm1, %v2813_v59, %v1979_v56 }
 0x3ec   : > { %v3010_v8 = vsel %vm2981_vm6, %v2977_v30, %v2617_v44  ;;  %v2879_v33 = vsel %vm2849_vm2, %v2846_v61, %v2107_v28 }
 0x3ed   : > { %v2912_v60 = vsel %vm2882_vm3, %v2879_v33, %v2235_v0  ;;  %v3931_v0 = vld [vmem:[#allocation2 + $0xf6] sm:$0xff] }
 0x3ee   : > { %v702_v20 = vmul.f32 %v3931_v0, %v6998_v15 }
 0x3ef   : > { %v2237_v57 = vpop.permute.xlu0 %2236  ;;  %v2743_v45 = vpop.permute.xlu1 %2742 }
 0x3f0   : > { %v3042_v52 = vsel %vm3014_vm7, %v3009_v40, %v2743_v45  ;;  %v2814_v40 = vsel %vm263_vm0, %v702_v20, %v6999_v39 }
 0x3f1   : > { %3850 = vmatmul.mubr.msk.f32.gmra.mrb[10].mxu1 %vm3056_vm8, %v3042_v52  ;;  %v2847_v45 = vsel %vm2816_vm1, %v2814_v40, %v6323_v54 }
 0x3f2   : > { %v2880_v52 = vsel %vm2849_vm2, %v2847_v45, %v6339_v32 }
 0x3f3   : > { %v2745_v10 = vpop.permute.xlu0 %2744  ;;  %v2363_v48 = vpop.permute.xlu1 %2362 }
 0x3f4   : > { %v3043_v51 = vsel %vm3014_vm7, %v3010_v8, %v2745_v10  ;;  %v2913_v8 = vsel %vm2882_vm3, %v2880_v52, %v2237_v57 }
 0x3f5   : > { %3852 = vmatprep.mubr.msk.f32.mxu1 %vm3056_vm8, %v3043_v51 }
 0x3f7   : > { %v1983_v34 = vpop.permute.xlu1 %1982  ;;  %v2365_v38 = vpop.permute.xlu0 %2364 }
 0x3f8   : > { %v2848_v7 = vsel %vm2816_vm1, %v2815_v31, %v1983_v34  ;;  %v2946_v10 = vsel %vm2915_vm5, %v2913_v8, %v2365_v38 }
 0x3fb   : > { %v2491_v53 = vpop.permute.xlu1 %2490  ;;  %v2367_v29 = vpop.permute.xlu0 %2366 }
 0x3ff   : > { %v2111_v16 = vpop.permute.xlu1 %2110  ;;  %v2495_v35 = vpop.permute.xlu0 %2494 }
 0x400   : > { %v6366_v2 = vpop.f32.mrb[12].mxu0  ;;  %v2881_v28 = vsel %vm2849_vm2, %v2848_v7, %v2111_v16 }
 0x401   : > { %3391 = vst.msk [vmem:[%s6019_s27 + $0x68] sm:$0xff] %vm263_vm0, %v6366_v2  ;;  %v6371_v17 = vpop.f32.mrb[13].mxu0  ;;  %v3435_v11 = vsel %vm263_vm0, %v6366_v2, 0.0 }
 0x402   : > { %3390 = vst.msk [vmem:[%s6019_s27 + $0x60] sm:$0xff] %vm263_vm0, %v6371_v17  ;;  %v3433_v9 = vsel %vm263_vm0, %v6371_v17, 0.0 }
 0x403   : > { %v3434_v43 = vadd.f32 %v3433_v9, %v3432_v3  ;;  %v2619_v46 = vpop.permute.xlu1 %2618  ;;  %v2945_v3 = vsel %vm2915_vm5, %v2912_v60, %v2363_v48  ;;  %v2623_v22 = vpop.permute.xlu0 %2622 }
 0x404   : > { %v2978_v63 = vsel %vm2948_vm4, %v2945_v3, %v2491_v53 }
 0x405   : > { %v3436_v6 = vadd.f32 %v3435_v11, %v3434_v43  ;;  %v3011_v56 = vsel %vm2981_vm6, %v2978_v63, %v2619_v46 }
 0x407   : > { %v2239_v55 = vpop.permute.xlu1 %2238  ;;  %v2751_v53 = vpop.permute.xlu0 %2750 }
 0x408   : > { %v2914_v13 = vsel %vm2882_vm3, %v2881_v28, %v2239_v55 }
 0x409   : > { %v2947_v42 = vsel %vm2915_vm5, %v2914_v13, %v2367_v29 }
 0x40a   : > { %v2980_v26 = vsel %vm2948_vm4, %v2947_v42, %v2495_v35 }
 0x40b   : > { %v2747_v44 = vpop.permute.xlu1 %2746  ;;  %v3013_v51 = vsel %vm2981_vm6, %v2980_v26, %v2623_v22 }
 0x40c   : > { %v3044_v5 = vsel %vm3014_vm7, %v3011_v56, %v2747_v44  ;;  %v3046_v16 = vsel %vm3014_vm7, %v3013_v51, %v2751_v53 }
 0x40d   : > { %3853 = vmatmul.mubr.msk.f32.gmra.mrb[12].mxu1 %vm3056_vm8, %v3044_v5 }
 0x40f   : > { %v2493_v12 = vpop.permute.xlu1 %2492 }
 0x410   : > { %v2979_v48 = vsel %vm2948_vm4, %v2946_v10, %v2493_v12 }
 0x413   : > { %v2621_v30 = vpop.permute.xlu1 %2620 }
 0x414   : > { %v3012_v34 = vsel %vm2981_vm6, %v2979_v48, %v2621_v30 }
 0x417   : > { %v2749_v54 = vpop.permute.xlu1 %2748 }
 0x418   : > { %v3045_v32 = vsel %vm3014_vm7, %v3012_v34, %v2749_v54 }
 0x419   : > { %3855 = vmatprep.mubr.msk.f32.mxu1 %vm3056_vm8, %v3045_v32 }
 0x41a   : > { %3856 = vmatmul.mubr.msk.f32.gmra.mrb[14].mxu1 %vm3056_vm8, %v3046_v16 }
 0x41c   : > { %v6417_v57 = vpop.f32.mrb[14].mxu0 }
 0x41d   : > { %3393 = vst.msk [vmem:[%s6019_s27 + $0x78] sm:$0xff] %vm263_vm0, %v6417_v57  ;;  %v6422_v38 = vpop.f32.mrb[15].mxu0  ;;  %v3439_v62 = vsel %vm263_vm0, %v6417_v57, 0.0 }
 0x41e   : > { %3392 = vst.msk [vmem:[%s6019_s27 + $0x70] sm:$0xff] %vm263_vm0, %v6422_v38  ;;  %v3437_v9 = vsel %vm263_vm0, %v6422_v38, 0.0 }
 0x41f   : > { %v3438_v4 = vadd.f32 %v3437_v9, %v3436_v6 }
 0x421   : > { %v3440_v43 = vadd.f32 %v3439_v62, %v3438_v4 }
 0x438   : > { %v6431_v46 = vpop.f32.mrb[0].mxu1 }
 0x439   : > { %3395 = vst.msk [vmem:[%s6019_s27 + $0x88] sm:$0xff] %vm263_vm0, %v6431_v46  ;;  %v6436_v11 = vpop.f32.mrb[1].mxu1  ;;  %v3443_v6 = vsel %vm263_vm0, %v6431_v46, 0.0 }
 0x43a   : > { %3394 = vst.msk [vmem:[%s6019_s27 + $0x80] sm:$0xff] %vm263_vm0, %v6436_v11  ;;  %v3441_v27 = vsel %vm263_vm0, %v6436_v11, 0.0 }
 0x43b   : > { %v3442_v59 = vadd.f32 %v3441_v27, %v3440_v43 }
 0x43d   : > { %v3444_v61 = vadd.f32 %v3443_v6, %v3442_v59 }
 0x454   : > { %v6445_v29 = vpop.f32.mrb[2].mxu1 }
 0x455   : > { %3397 = vst.msk [vmem:[%s6019_s27 + $0x98] sm:$0xff] %vm263_vm0, %v6445_v29  ;;  %v6450_v33 = vpop.f32.mrb[3].mxu1  ;;  %v3447_v21 = vsel %vm263_vm0, %v6445_v29, 0.0 }
 0x456   : > { %3396 = vst.msk [vmem:[%s6019_s27 + $0x90] sm:$0xff] %vm263_vm0, %v6450_v33  ;;  %v3445_v55 = vsel %vm263_vm0, %v6450_v33, 0.0 }
 0x457   : > { %v3446_v58 = vadd.f32 %v3445_v55, %v3444_v61 }
 0x459   : > { %v3448_v60 = vadd.f32 %v3447_v21, %v3446_v58 }
 0x470   : > { %v6459_v3 = vpop.f32.mrb[4].mxu1 }
 0x471   : > { %3399 = vst.msk [vmem:[%s6019_s27 + $0xa8] sm:$0xff] %vm263_vm0, %v6459_v3  ;;  %v6464_v18 = vpop.f32.mrb[5].mxu1  ;;  %v3451_v7 = vsel %vm263_vm0, %v6459_v3, 0.0 }
 0x472   : > { %3398 = vst.msk [vmem:[%s6019_s27 + $0xa0] sm:$0xff] %vm263_vm0, %v6464_v18  ;;  %v3449_v31 = vsel %vm263_vm0, %v6464_v18, 0.0 }
 0x473   : > { %v3450_v63 = vadd.f32 %v3449_v31, %v3448_v60 }
 0x475   : > { %v3452_v56 = vadd.f32 %v3451_v7, %v3450_v63 }
 0x48c   : > { %v6473_v44 = vpop.f32.mrb[6].mxu1 }
 0x48d   : > { %3401 = vst.msk [vmem:[%s6019_s27 + $0xb8] sm:$0xff] %vm263_vm0, %v6473_v44  ;;  %v6478_v35 = vpop.f32.mrb[7].mxu1  ;;  %v3455_v13 = vsel %vm263_vm0, %v6473_v44, 0.0 }
 0x48e   : > { %3400 = vst.msk [vmem:[%s6019_s27 + $0xb0] sm:$0xff] %vm263_vm0, %v6478_v35  ;;  %v3453_v28 = vsel %vm263_vm0, %v6478_v35, 0.0 }
 0x48f   : > { %v3454_v5 = vadd.f32 %v3453_v28, %v3452_v56 }
 0x491   : > { %v3456_v0 = vadd.f32 %v3455_v13, %v3454_v5 }
 0x4a8   : > { %v6487_v15 = vpop.f32.mrb[8].mxu1 }
 0x4a9   : > { %3403 = vst.msk [vmem:[%s6019_s27 + $0xc8] sm:$0xff] %vm263_vm0, %v6487_v15  ;;  %v6492_v20 = vpop.f32.mrb[9].mxu1  ;;  %v3459_v39 = vsel %vm263_vm0, %v6487_v15, 0.0 }
 0x4aa   : > { %3402 = vst.msk [vmem:[%s6019_s27 + $0xc0] sm:$0xff] %vm263_vm0, %v6492_v20  ;;  %v3457_v12 = vsel %vm263_vm0, %v6492_v20, 0.0 }
 0x4ab   : > { %v3458_v42 = vadd.f32 %v3457_v12, %v3456_v0 }
 0x4ad   : > { %v3460_v40 = vadd.f32 %v3459_v39, %v3458_v42 }
 0x4c4   : > { %v6501_v45 = vpop.f32.mrb[10].mxu1 }
 0x4c5   : > { %3405 = vst.msk [vmem:[%s6019_s27 + $0xd8] sm:$0xff] %vm263_vm0, %v6501_v45  ;;  %v6506_v22 = vpop.f32.mrb[11].mxu1  ;;  %v3463_v30 = vsel %vm263_vm0, %v6501_v45, 0.0 }
 0x4c6   : > { %3404 = vst.msk [vmem:[%s6019_s27 + $0xd0] sm:$0xff] %vm263_vm0, %v6506_v22  ;;  %v3461_v52 = vsel %vm263_vm0, %v6506_v22, 0.0 }
 0x4c7   : > { %v3462_v26 = vadd.f32 %v3461_v52, %v3460_v40 }
 0x4c9   : > { %v3464_v8 = vadd.f32 %v3463_v30, %v3462_v26 }
 0x4e0   : > { %v6515_v10 = vpop.f32.mrb[12].mxu1 }
 0x4e1   : > { %3407 = vst.msk [vmem:[%s6019_s27 + $0xe8] sm:$0xff] %vm263_vm0, %v6515_v10  ;;  %v6520_v48 = vpop.f32.mrb[13].mxu1  ;;  %v3467_v54 = vsel %vm263_vm0, %v6515_v10, 0.0 }
 0x4e2   : > { %3406 = vst.msk [vmem:[%s6019_s27 + $0xe0] sm:$0xff] %vm263_vm0, %v6520_v48  ;;  %v3465_v51 = vsel %vm263_vm0, %v6520_v48, 0.0 }
 0x4e3   : > { %v3466_v34 = vadd.f32 %v3465_v51, %v3464_v8 }
 0x4e5   : > { %v3468_v53 = vadd.f32 %v3467_v54, %v3466_v34 }
 0x4ed   : > { %v6529_v32 = vpop.f32.mrb[14].mxu1 }
 0x4ee   : > { %3409 = vst.msk [vmem:[%s6019_s27 + $0xf8] sm:$0xff] %vm263_vm0, %v6529_v32  ;;  %v6534_v16 = vpop.f32.mrb[15].mxu1  ;;  %v3471_v62 = vsel %vm263_vm0, %v6529_v32, 0.0 }
 0x4ef   : > { %3408 = vst.msk [vmem:[%s6019_s27 + $0xf0] sm:$0xff] %vm263_vm0, %v6534_v16  ;;  %v3469_v9 = vsel %vm263_vm0, %v6534_v16, 0.0 }
 0x4f0   : > { %v3470_v4 = vadd.f32 %v3469_v9, %v3468_v53 }
 0x4f2   : > { %v3472_v43 = vadd.f32 %v3471_v62, %v3470_v4 }
 0x4f4   : > { %v3473_v27 = vrot.slane %v3472_v43, 4 }
 0x4f6   : > { %v3474_v59 = vadd.f32 %v3473_v27, %v3472_v43 }
 0x4f8   : > { %v3475_v6 = vrot.slane %v3474_v59, 2 }
 0x4fa   : > { %v3476_v61 = vadd.f32 %v3475_v6, %v3474_v59 }
 0x4fc   : > { %v3477_v55 = vrot.slane %v3476_v61, 1 }
 0x4fe   : > { %v6543_v58 = vadd.f32 %v3477_v55, %v3476_v61 }
 0x500   : > { %v6546_v21 = vmul.f32 0.00390625, %v6543_v58 }
 0x502   : > { %v3480_v60 = vsub.f32 %v6037_v19, %v6546_v21  ;;  %v3481_v31 = vsub.f32 %v6025_v14, %v6546_v21  ;;  %v3482_v63 = vsub.f32 %v6115_v23, %v6546_v21  ;;  %v3483_v7 = vsub.f32 %v6109_v36, %v6546_v21 }
 0x503   : > { %v3484_v5 = vsub.f32 %v6196_v24, %v6546_v21  ;;  %v3485_v0 = vsub.f32 %v6191_v37, %v6546_v21  ;;  %v3486_v23 = vsub.f32 %v6246_v1, %v6546_v21  ;;  %v3487_v24 = vsub.f32 %v6241_v41, %v6546_v21 }
 0x504   : > { %v3512_v56 = vmul.f32 %v3480_v60, %v3480_v60  ;;  %v3513_v28 = vmul.f32 %v3481_v31, %v3481_v31  ;;  %v3514_v13 = vmul.f32 %v3482_v63, %v3482_v63  ;;  %v3515_v12 = vmul.f32 %v3483_v7, %v3483_v7 }
 0x505   : > { %v3516_v39 = vmul.f32 %v3484_v5, %v3484_v5  ;;  %v3517_v52 = vmul.f32 %v3485_v0, %v3485_v0  ;;  %v3488_v30 = vsub.f32 %v6289_v49, %v6546_v21  ;;  %v3518_v8 = vmul.f32 %v3486_v23, %v3486_v23 }
 0x506   : > { %v3544_v19 = vsel %vm263_vm0, %v3512_v56, 0.0  ;;  %v3545_v14 = vsel %vm263_vm0, %v3513_v28, 0.0  ;;  %v3547_v36 = vsel %vm263_vm0, %v3514_v13, 0.0  ;;  %v3549_v26 = vsel %vm263_vm0, %v3515_v12, 0.0 }
 0x507   : > { %v3546_v42 = vadd.f32 %v3545_v14, %v3544_v19  ;;  %v3551_v51 = vsel %vm263_vm0, %v3516_v39, 0.0  ;;  %v3489_v1 = vsub.f32 %v6284_v25, %v6546_v21  ;;  %v3519_v54 = vmul.f32 %v3487_v24, %v3487_v24 }
 0x508   : > { %v3553_v53 = vsel %vm263_vm0, %v3517_v52, 0.0  ;;  %v3490_v41 = vsub.f32 %v6330_v47, %v6546_v21  ;;  %v3520_v4 = vmul.f32 %v3488_v30, %v3488_v30  ;;  %v3555_v62 = vsel %vm263_vm0, %v3518_v8, 0.0 }
 0x509   : > { %v3548_v40 = vadd.f32 %v3547_v36, %v3546_v42  ;;  %v3491_v49 = vsub.f32 %v6325_v50, %v6546_v21  ;;  %v3521_v27 = vmul.f32 %v3489_v1, %v3489_v1  ;;  %v3557_v59 = vsel %vm263_vm0, %v3519_v54, 0.0 }
 0x50a   : > { %v3492_v25 = vsub.f32 %v6371_v17, %v6546_v21  ;;  %v3522_v61 = vmul.f32 %v3490_v41, %v3490_v41  ;;  %v3559_v55 = vsel %vm263_vm0, %v3520_v4, 0.0  ;;  %v3493_v47 = vsub.f32 %v6366_v2, %v6546_v21 }
 0x50b   : > { %v3550_v37 = vadd.f32 %v3549_v26, %v3548_v40  ;;  %v3523_v31 = vmul.f32 %v3491_v49, %v3491_v49  ;;  %v3561_v63 = vsel %vm263_vm0, %v3521_v27, 0.0  ;;  %v3494_v50 = vsub.f32 %v6422_v38, %v6546_v21 }
 0x50c   : > { %v3524_v56 = vmul.f32 %v3492_v25, %v3492_v25  ;;  %v3563_v28 = vsel %vm263_vm0, %v3522_v61, 0.0  ;;  %v3495_v17 = vsub.f32 %v6417_v57, %v6546_v21  ;;  %v3525_v13 = vmul.f32 %v3493_v47, %v3493_v47 }
 0x50d   : > { %v3552_v34 = vadd.f32 %v3551_v51, %v3550_v37  ;;  %v3565_v0 = vsel %vm263_vm0, %v3523_v31, 0.0  ;;  %v3496_v2 = vsub.f32 %v6436_v11, %v6546_v21  ;;  %v3526_v19 = vmul.f32 %v3494_v50, %v3494_v50 }
 0x50e   : > { %v3567_v14 = vsel %vm263_vm0, %v3524_v56, 0.0  ;;  %v3497_v38 = vsub.f32 %v6431_v46, %v6546_v21  ;;  %v3527_v23 = vmul.f32 %v3495_v17, %v3495_v17  ;;  %v3569_v39 = vsel %vm263_vm0, %v3525_v13, 0.0 }
 0x50f   : > { %v3554_v9 = vadd.f32 %v3553_v53, %v3552_v34  ;;  %v3498_v57 = vsub.f32 %v6450_v33, %v6546_v21  ;;  %v3528_v40 = vmul.f32 %v3496_v2, %v3496_v2  ;;  %v3571_v24 = vsel %vm263_vm0, %v3526_v19, 0.0 }
 0x510   : > { %v3499_v11 = vsub.f32 %v6445_v29, %v6546_v21  ;;  %v3529_v26 = vmul.f32 %v3497_v38, %v3497_v38  ;;  %v3573_v37 = vsel %vm263_vm0, %v3527_v23, 0.0  ;;  %v3500_v46 = vsub.f32 %v6464_v18, %v6546_v21 }
 0x511   : > { %v3556_v43 = vadd.f32 %v3555_v62, %v3554_v9  ;;  %v3530_v8 = vmul.f32 %v3498_v57, %v3498_v57  ;;  %v3575_v51 = vsel %vm263_vm0, %v3528_v40, 0.0  ;;  %v3501_v33 = vsub.f32 %v6459_v3, %v6546_v21 }
 0x512   : > { %v3531_v1 = vmul.f32 %v3499_v11, %v3499_v11  ;;  %v3577_v54 = vsel %vm263_vm0, %v3529_v26, 0.0  ;;  %v3502_v29 = vsub.f32 %v6478_v35, %v6546_v21  ;;  %v3532_v9 = vmul.f32 %v3500_v46, %v3500_v46 }
 0x513   : > { %v3558_v6 = vadd.f32 %v3557_v59, %v3556_v43  ;;  %v3579_v41 = vsel %vm263_vm0, %v3530_v8, 0.0  ;;  %v3503_v18 = vsub.f32 %v6473_v44, %v6546_v21  ;;  %v3533_v62 = vmul.f32 %v3501_v33, %v3501_v33 }
 0x514   : > { %v3581_v43 = vsel %vm263_vm0, %v3531_v1, 0.0  ;;  %v3504_v3 = vsub.f32 %v6492_v20, %v6546_v21  ;;  %v3534_v27 = vmul.f32 %v3502_v29, %v3502_v29  ;;  %v3583_v59 = vsel %vm263_vm0, %v3532_v9, 0.0 }
 0x515   : > { %v3560_v60 = vadd.f32 %v3559_v55, %v3558_v6  ;;  %v3505_v35 = vsub.f32 %v6487_v15, %v6546_v21  ;;  %v3535_v25 = vmul.f32 %v3503_v18, %v3503_v18  ;;  %v3585_v61 = vsel %vm263_vm0, %v3533_v62, 0.0 }
 0x516   : > { %v3506_v44 = vsub.f32 %v6506_v22, %v6546_v21  ;;  %v3587_v47 = vsel %vm263_vm0, %v3534_v27, 0.0  ;;  %v3507_v20 = vsub.f32 %v6501_v45, %v6546_v21  ;;  %v3508_v15 = vsub.f32 %v6520_v48, %v6546_v21 }
 0x517   : > { %v3562_v7 = vadd.f32 %v3561_v63, %v3560_v60  ;;  %v3536_v60 = vmul.f32 %v3504_v3, %v3504_v3  ;;  %v3537_v63 = vmul.f32 %v3505_v35, %v3505_v35  ;;  %v3509_v22 = vsub.f32 %v6515_v10, %v6546_v21 }
 0x518   : > { %v3538_v56 = vmul.f32 %v3506_v44, %v3506_v44  ;;  %v3539_v17 = vmul.f32 %v3507_v20, %v3507_v20  ;;  %v3510_v45 = vsub.f32 %v6534_v16, %v6546_v21  ;;  %v3511_v48 = vsub.f32 %v6529_v32, %v6546_v21 }
 0x519   : > { %v3564_v5 = vadd.f32 %v3563_v28, %v3562_v7  ;;  %v3589_v7 = vsel %vm263_vm0, %v3535_v25, 0.0  ;;  %v3591_v28 = vsel %vm263_vm0, %v3536_v60, 0.0  ;;  %v3593_v13 = vsel %vm263_vm0, %v3537_v63, 0.0 }
 0x51a   : > { %v3595_v2 = vsel %vm263_vm0, %v3538_v56, 0.0  ;;  %v3542_v10 = vmul.f32 %v3510_v45, %v3510_v45 }
 0x51b   : > { %v3566_v12 = vadd.f32 %v3565_v0, %v3564_v5 }
 0x51c   : > { %v3603_v40 = vsel %vm263_vm0, %v3542_v10, 0.0 }
 0x51d   : > { %v3568_v42 = vadd.f32 %v3567_v14, %v3566_v12  ;;  %v3540_v12 = vmul.f32 %v3508_v15, %v3508_v15  ;;  %v3541_v14 = vmul.f32 %v3509_v22, %v3509_v22 }
 0x51f   : > { %v3570_v36 = vadd.f32 %v3569_v39, %v3568_v42  ;;  %v3597_v42 = vsel %vm263_vm0, %v3539_v17, 0.0  ;;  %v3599_v23 = vsel %vm263_vm0, %v3540_v12, 0.0  ;;  %v3601_v57 = vsel %vm263_vm0, %v3541_v14, 0.0 }
 0x521   : > { %v3572_v52 = vadd.f32 %v3571_v24, %v3570_v36  ;;  %v3543_v36 = vmul.f32 %v3511_v48, %v3511_v48 }
 0x523   : > { %v3574_v30 = vadd.f32 %v3573_v37, %v3572_v52  ;;  %v3605_v52 = vsel %vm263_vm0, %v3543_v36, 0.0 }
 0x525   : > { %v3576_v34 = vadd.f32 %v3575_v51, %v3574_v30 }
 0x527   : > { %v3578_v53 = vadd.f32 %v3577_v54, %v3576_v34 }
 0x529   : > { %v3580_v4 = vadd.f32 %v3579_v41, %v3578_v53 }
 0x52b   : > { %v3582_v49 = vadd.f32 %v3581_v43, %v3580_v4 }
 0x52d   : > { %v3584_v6 = vadd.f32 %v3583_v59, %v3582_v49 }
 0x52f   : > { %v3586_v55 = vadd.f32 %v3585_v61, %v3584_v6 }
 0x531   : > { %v3588_v31 = vadd.f32 %v3587_v47, %v3586_v55 }
 0x533   : > { %v3590_v50 = vadd.f32 %v3589_v7, %v3588_v31 }
 0x535   : > { %v3592_v5 = vadd.f32 %v3591_v28, %v3590_v50 }
 0x537   : > { %v3594_v0 = vadd.f32 %v3593_v13, %v3592_v5 }
 0x539   : > { %v3596_v19 = vadd.f32 %v3595_v2, %v3594_v0 }
 0x53b   : > { %v3598_v38 = vadd.f32 %v3597_v42, %v3596_v19 }
 0x53d   : > { %v3600_v39 = vadd.f32 %v3599_v23, %v3598_v38 }
 0x53f   : > { %v3602_v16 = vadd.f32 %v3601_v57, %v3600_v39 }
 0x541   : > { %v3604_v24 = vadd.f32 %v3603_v40, %v3602_v16 }
 0x543   : > { %v3606_v11 = vadd.f32 %v3605_v52, %v3604_v24 }
 0x545   : > { %v3607_v32 = vrot.slane %v3606_v11, 4 }
 0x547   : > { %v3608_v21 = vadd.f32 %v3607_v32, %v3606_v11 }
 0x549   : > { %v3609_v26 = vrot.slane %v3608_v21, 2 }
 0x54b   : > { %v3610_v37 = vadd.f32 %v3609_v26, %v3608_v21 }
 0x54d   : > { %v3611_v30 = vrot.slane %v3610_v37, 1 }
 0x54f   : > { %v3612_v46 = vadd.f32 %v3611_v30, %v3610_v37 }
 0x551   : > { %v3614_v8 = vsel %vm3613_vm9, %v6543_v58, %v3612_v46 }
 0x552   : > { %3616 = vst.msk [vmem:[%s262_s13] sm:$0x3] %vm3615_vm10, %v3614_v8 }
 0x553 PF: > { %s17_s21 = sadd.s32 1, %s3938_s21  }
 0x554   : > { %p14_p4 = scmp.ge.s32.totalorder %s17_s21, 4  }
 0x556   :  { %16 = sbr.rel (!%p14_p4) target bundleno = 1 (0x1), region = 82 }

</bundles_post_ra>
